<compile_context>
chip_gen: v6e
topology: v6e:2x2x1
jax: 0.10.0
libtpu: 0.0.40
codegen_flags: <defaults>
</compile_context>

<pallas_src>
import functools

import jax
import jax.numpy as jnp
from jax.experimental import pallas as pl
from jax.experimental.pallas import tpu as pltpu

LEAKY_SLOPE = 0.01  # torch.nn.LeakyReLU default negative_slope
LANE = 128          # TPU lane width


def _round_up(x, m):
    return ((x + m - 1) // m) * m


# ---------------------------------------------------------------------------
# Kernel 1: fused (Linear + LeakyReLU + W_edge-half projection) for BOTH
# encoders in a single pallas_call.  Grid axis 0 selects worker(0)/item(1)
# weights, axis 1 tiles rows.  Weights stay VMEM-resident (constant index_map)
# while the activation stream is double-buffered.
# ---------------------------------------------------------------------------
def _encoder_kernel(x_ref, w_ref, b_ref, wp_ref, enc_ref, proj_ref):
    x = x_ref[0]                                                   # (tm, cin)
    h = jnp.dot(x, w_ref[0], preferred_element_type=jnp.float32)   # MXU, f32 acc
    h = h + b_ref[0]                                               # (1, cpad) bcast
    h = jnp.where(h > 0, h, LEAKY_SLOPE * h)                       # f32 epilogue
    enc_ref[0] = h.astype(enc_ref.dtype)
    # Folded half of W_edge: per-node projection straight to class space.
    proj = jnp.dot(h.astype(wp_ref.dtype), wp_ref[0],
                   preferred_element_type=jnp.float32)
    proj_ref[0] = proj.astype(proj_ref.dtype)


def fused_encoders(x_worker, x_item, w_enc, b_enc, w_proj, *,
                   block_rows=512, out_dtype=jnp.float32):
    """x_*: (N*, cin) in compute dtype; w_enc: (2, cin, Cpad); b_enc: (2,1,Cpad)
    f32; w_proj: (2, Cpad, NCpad).  Returns (enc (2,Npad,Cpad),
    proj (2,Npad,NCpad)) in out_dtype, plus n_pad."""
    nw, cin = x_worker.shape
    ni = x_item.shape[0]
    n_both = max(nw, ni)

    block_rows = _round_up(block_rows, 16)
    tm = min(block_rows, _round_up(n_both, 16))
    n_pad = _round_up(n_both, tm)

    x_stack = jnp.stack(
        [jnp.pad(x_worker, ((0, n_pad - nw), (0, 0))),
         jnp.pad(x_item, ((0, n_pad - ni), (0, 0)))], axis=0)

    cpad = w_enc.shape[2]
    ncpad = w_proj.shape[2]
    itm = jnp.dtype(out_dtype).itemsize

    flops = int(2 * 2 * n_pad * cpad * (cin + ncpad))
    bytes_acc = int(x_stack.size * x_stack.dtype.itemsize
                    + w_enc.size * w_enc.dtype.itemsize
                    + b_enc.size * 4
                    + w_proj.size * w_proj.dtype.itemsize
                    + 2 * n_pad * (cpad + ncpad) * itm)

    enc, proj = pl.pallas_call(
        _encoder_kernel,
        out_shape=(jax.ShapeDtypeStruct((2, n_pad, cpad), out_dtype),
                   jax.ShapeDtypeStruct((2, n_pad, ncpad), out_dtype)),
        grid=(2, n_pad // tm),
        in_specs=[
            pl.BlockSpec((1, tm, cin), lambda s, i: (s, i, 0)),      # activations
            pl.BlockSpec((1, cin, cpad), lambda s, i: (s, 0, 0)),    # enc weight
            pl.BlockSpec((1, 1, cpad), lambda s, i: (s, 0, 0)),      # enc bias
            pl.BlockSpec((1, cpad, ncpad), lambda s, i: (s, 0, 0)),  # W_edge half
        ],
        out_specs=(
            pl.BlockSpec((1, tm, cpad), lambda s, i: (s, i, 0)),
            pl.BlockSpec((1, tm, ncpad), lambda s, i: (s, i, 0)),
        ),
        compiler_params=pltpu.CompilerParams(
            dimension_semantics=("parallel", "parallel"),
            vmem_limit_bytes=64 * 1024 * 1024,
        ),
        cost_estimate=pl.CostEstimate(flops=flops, transcendentals=0,
                                      bytes_accessed=bytes_acc),
    )(x_stack, w_enc, b_enc, w_proj)
    return enc, proj, n_pad


# ---------------------------------------------------------------------------
# Kernel 2: per-edge gather of the projection tables + add + bias +
# log_softmax.  The gather is a one-hot matmul against the VMEM-resident
# projection tables (exact row gather, no dynamic-gather lowering needed).
# ---------------------------------------------------------------------------
def _edge_kernel(widx_ref, iidx_ref, proj_ref, b_ref, o_ref, *, num_class):
    te = o_ref.shape[0]
    ncp = o_ref.shape[1]
    npad = proj_ref.shape[1]
    pdt = proj_ref.dtype

    node_id = jax.lax.broadcasted_iota(jnp.int32, (te, npad), 1)
    oh_w = (widx_ref[...] == node_id).astype(pdt)          # (te, npad)
    oh_i = (iidx_ref[...] == node_id).astype(pdt)
    # One nonzero per one-hot row -> the gather is exact in the table dtype,
    # so keep these dots in the compute dtype (no forced f32 intermediates).
    pw = jnp.dot(oh_w, proj_ref[0])                        # (te, ncp)
    pi = jnp.dot(oh_i, proj_ref[1])
    logits = pw.astype(jnp.float32) + pi.astype(jnp.float32) + b_ref[...]

    # Stable log_softmax over the first `num_class` lanes (rest are padding).
    class_id = jax.lax.broadcasted_iota(jnp.int32, (te, ncp), 1)
    valid = class_id < num_class
    masked = jnp.where(valid, logits, -jnp.inf)
    m = jnp.max(masked, axis=-1, keepdims=True)
    s = logits - m
    p = jnp.where(valid, jnp.exp(s), 0.0)
    lse = jnp.log(jnp.sum(p, axis=-1, keepdims=True))
    o_ref[...] = jnp.where(valid, s - lse, 0.0).astype(o_ref.dtype)


def edge_log_softmax(proj, b_edge, widx, iidx, num_class, *, block_edges=512):
    """proj: (2, Npad, NCpad); b_edge: (1, NCpad) f32; widx/iidx: (E,) ints."""
    e = widx.shape[0]
    n_pad = proj.shape[1]
    ncpad = b_edge.shape[1]

    block_edges = _round_up(block_edges, 16)
    te = min(block_edges, _round_up(e, 16))
    e_pad = _round_up(e, te)

    widx = jnp.pad(widx.astype(jnp.int32), (0, e_pad - e)).reshape(e_pad, 1)
    iidx = jnp.pad(iidx.astype(jnp.int32), (0, e_pad - e)).reshape(e_pad, 1)

    flops = int(2 * 2 * e_pad * n_pad * ncpad)
    transcend = int(e_pad * ncpad)
    bytes_acc = int(2 * e_pad * 4 + proj.size * proj.dtype.itemsize
                    + ncpad * 4 + e_pad * ncpad * 4)

    kernel = functools.partial(_edge_kernel, num_class=num_class)
    out = pl.pallas_call(
        kernel,
        out_shape=jax.ShapeDtypeStruct((e_pad, ncpad), jnp.float32),
        grid=(e_pad // te,),
        in_specs=[
            pl.BlockSpec((te, 1), lambda i: (i, 0)),          # worker ids / tile
            pl.BlockSpec((te, 1), lambda i: (i, 0)),          # item ids / tile
            pl.BlockSpec((2, n_pad, ncpad), lambda i: (0, 0, 0)),  # resident proj
            pl.BlockSpec((1, ncpad), lambda i: (0, 0)),            # resident bias
        ],
        out_specs=pl.BlockSpec((te, ncpad), lambda i: (i, 0)),
        compiler_params=pltpu.CompilerParams(
            dimension_semantics=("parallel",),
            vmem_limit_bytes=64 * 1024 * 1024,
        ),
        cost_estimate=pl.CostEstimate(flops=flops, transcendentals=transcend,
                                      bytes_accessed=bytes_acc),
    )(widx, iidx, proj, b_edge)
    return out[:e]


# ---------------------------------------------------------------------------
# Parameter padding: lane-dense (128-wide), zero padded; W_edge split into its
# worker / item halves so it can be folded into the encoder kernel.
# ---------------------------------------------------------------------------
def _pad2(a, rows, cols):
    r, c = a.shape
    return jnp.pad(a, ((0, rows - r), (0, cols - c)))


def _prepare_params(params, compute_dtype):
    in_ch, out_ch = params["w_worker"].shape
    num_class = params["w_edge"].shape[1]
    cpad = _round_up(out_ch, LANE)
    ncpad = _round_up(num_class, LANE)

    w_enc = jnp.stack([_pad2(params["w_worker"], in_ch, cpad),
                       _pad2(params["w_item"], in_ch, cpad)], 0).astype(compute_dtype)
    b_enc = jnp.stack([_pad2(params["b_worker"], 1, cpad),
                       _pad2(params["b_item"], 1, cpad)], 0).astype(jnp.float32)
    # W_edge rows [:out_ch] act on worker features, [out_ch:] on item features.
    w_proj = jnp.stack([_pad2(params["w_edge"][:out_ch], cpad, ncpad),
                        _pad2(params["w_edge"][out_ch:], cpad, ncpad)], 0
                       ).astype(compute_dtype)
    b_edge = _pad2(params["b_edge"], 1, ncpad).astype(jnp.float32)

    pp = {"w_enc": w_enc, "b_enc": b_enc, "w_proj": w_proj, "b_edge": b_edge}
    return pp, out_ch, num_class


# ---------------------------------------------------------------------------
# Full forward (matches EdgePredictor.forward)
# ---------------------------------------------------------------------------
def edge_predictor_forward(params, x_worker, x_item, edge_index, *,
                           compute_dtype=jnp.float32,   # use bf16 on v6e/v7x
                           block_rows=512, block_edges=512):
    pp, out_ch, num_class = _prepare_params(params, compute_dtype)
    nw = x_worker.shape[0]
    ni = x_item.shape[0]

    enc, proj, _ = fused_encoders(
        x_worker.astype(compute_dtype), x_item.astype(compute_dtype),
        pp["w_enc"], pp["b_enc"], pp["w_proj"],
        block_rows=block_rows, out_dtype=compute_dtype)

    log_prob = edge_log_softmax(proj, pp["b_edge"],
                                edge_index[0], edge_index[1], num_class,
                                block_edges=block_edges)

    return (enc[0, :nw, :out_ch], enc[1, :ni, :out_ch], log_prob[:, :num_class])


# ---------------------------------------------------------------------------
# Deterministic parameter init (shapes from __init__; synthetic, no checkpoint)
# ---------------------------------------------------------------------------
def init_params(key, in_channels, out_channels, num_class):
    ks = jax.random.split(key, 6)

    def uni(k, shape, fan_in):
        bound = 1.0 / jnp.sqrt(fan_in)
        return jax.random.uniform(k, shape, jnp.float32, -bound, bound)

    return {
        "w_worker": uni(ks[0], (in_channels, out_channels), in_channels),
        "b_worker": uni(ks[1], (1, out_channels), in_channels),
        "w_item":   uni(ks[2], (in_channels, out_channels), in_channels),
        "b_item":   uni(ks[3], (1, out_channels), in_channels),
        "w_edge":   uni(ks[4], (2 * out_channels, num_class), 2 * out_channels),
        "b_edge":   uni(ks[5], (1, num_class), 2 * out_channels),
    }


# Pure-JAX reference for correctness checking.
def _reference(params, x_worker, x_item, edge_index):
    def enc(x, w, b):
        y = x @ w + b
        return jnp.where(y > 0, y, LEAKY_SLOPE * y)

    xw = enc(x_worker, params["w_worker"], params["b_worker"])
    xi = enc(x_item, params["w_item"], params["b_item"])
    x_cat = jnp.concatenate([xw[edge_index[0]], xi[edge_index[1]]], axis=-1)
    logits = x_cat @ params["w_edge"] + params["b_edge"]
    return xw, xi, jax.nn.log_softmax(logits, axis=-1)


if __name__ == "__main__":
    in_channels, out_channels, num_class = 64, 32, 5
    n_workers, n_items, n_edges = 384, 256, 1000

    key = jax.random.PRNGKey(0)
    k_params, k_xw, k_xi, k_e0, k_e1 = jax.random.split(key, 5)

    params = init_params(k_params, in_channels, out_channels, num_class)
    x_worker = jax.random.normal(k_xw, (n_workers, in_channels), jnp.float32)
    x_item = jax.random.normal(k_xi, (n_items, in_channels), jnp.float32)
    edge_index = jnp.stack(
        [
            jax.random.randint(k_e0, (n_edges,), 0, n_workers, jnp.int32),
            jax.random.randint(k_e1, (n_edges,), 0, n_items, jnp.int32),
        ],
        axis=0,
    )

    ref_xw, ref_xi, ref_lp = _reference(params, x_worker, x_item, edge_index)

    # --- f32 compute path (matches the PyTorch-style reference) ------------
    fwd_f32 = jax.jit(functools.partial(edge_predictor_forward,
                                        compute_dtype=jnp.float32,
                                        block_rows=512, block_edges=512))
    xw_enc, xi_enc, log_prob = fwd_f32(params, x_worker, x_item, edge_index)
    jax.block_until_ready((xw_enc, xi_enc, log_prob))

    assert jnp.allclose(xw_enc, ref_xw, atol=5e-4, rtol=5e-4)
    assert jnp.allclose(xi_enc, ref_xi, atol=5e-4, rtol=5e-4)
    assert jnp.allclose(log_prob, ref_lp, atol=5e-4, rtol=5e-4)

    # --- bf16 matmul-input path (f32 accumulate/epilogue): bandwidth win ---
    fwd_bf16 = jax.jit(functools.partial(edge_predictor_forward,
                                         compute_dtype=jnp.bfloat16,
                                         block_rows=512, block_edges=512))
    xw_b, xi_b, lp_b = fwd_bf16(params, x_worker, x_item, edge_index)
    jax.block_until_ready((xw_b, xi_b, lp_b))

    assert jnp.allclose(xw_b.astype(jnp.float32), ref_xw, atol=5e-2, rtol=5e-2)
    assert jnp.allclose(xi_b.astype(jnp.float32), ref_xi, atol=5e-2, rtol=5e-2)
    # bf16 storage of inputs / weights / projection table -> looser tolerance.
    assert jnp.allclose(lp_b.astype(jnp.float32), ref_lp, atol=1e-1, rtol=1e-1)

    print("KERNEL_OK")
</pallas_src>

<mosaic_0001>
module attributes {stable_mosaic.version = 11 : i64} {
  func.func @_encoder_kernel(%arg0: i32, %arg1: i32, %arg2: memref<1x384x64xf32, #tpu.memory_space<vmem>>, %arg3: memref<1x64x128xf32, #tpu.memory_space<vmem>>, %arg4: memref<1x1x128xf32, #tpu.memory_space<vmem>>, %arg5: memref<1x128x128xf32, #tpu.memory_space<vmem>>, %arg6: memref<1x384x128xf32, #tpu.memory_space<vmem>>, %arg7: memref<1x384x128xf32, #tpu.memory_space<vmem>>) attributes {dimension_semantics = [#tpu.dimension_semantics<parallel>, #tpu.dimension_semantics<parallel>], iteration_bounds = array<i64: 2, 1>, scalar_prefetch = 0 : i64, scratch_operands = 0 : i64, tpu.core_type = #tpu.core_type<tc>, window_params = [{transform_indices = @transform_0, window_bounds = array<i64: 1, 384, 64>}, {transform_indices = @transform_1, window_bounds = array<i64: 1, 64, 128>}, {transform_indices = @transform_2, window_bounds = array<i64: 1, 1, 128>}, {transform_indices = @transform_3, window_bounds = array<i64: 1, 128, 128>}, {transform_indices = @transform_4, window_bounds = array<i64: 1, 384, 128>}, {transform_indices = @transform_5, window_bounds = array<i64: 1, 384, 128>}]} {
    %c0 = arith.constant 0 : index
    %c0_0 = arith.constant 0 : index
    %c0_1 = arith.constant 0 : index
    %0 = vector.load %arg2[%c0, %c0_0, %c0_1] : memref<1x384x64xf32, #tpu.memory_space<vmem>>, vector<1x384x64xf32>
    %1 = vector.shape_cast %0 : vector<1x384x64xf32> to vector<384x64xf32>
    %c0_2 = arith.constant 0 : index
    %c0_3 = arith.constant 0 : index
    %c0_4 = arith.constant 0 : index
    %2 = vector.load %arg3[%c0_2, %c0_3, %c0_4] : memref<1x64x128xf32, #tpu.memory_space<vmem>>, vector<1x64x128xf32>
    %3 = vector.shape_cast %2 : vector<1x64x128xf32> to vector<64x128xf32>
    %cst = arith.constant dense<0.000000e+00> : vector<384x128xf32>
    %4 = tpu.matmul %1, %3, %cst {dimension_numbers = #tpu.dot_dimension_numbers<[1], [0], [0], [1], [0, 0, 1, 1], [], []>} : vector<384x64xf32>, vector<64x128xf32>, vector<384x128xf32> -> vector<384x128xf32>
    %c0_5 = arith.constant 0 : index
    %c0_6 = arith.constant 0 : index
    %c0_7 = arith.constant 0 : index
    %5 = vector.load %arg4[%c0_5, %c0_6, %c0_7] : memref<1x1x128xf32, #tpu.memory_space<vmem>>, vector<1x1x128xf32>
    %6 = vector.shape_cast %5 : vector<1x1x128xf32> to vector<1x128xf32>
    %7 = vector.broadcast %6 : vector<1x128xf32> to vector<384x128xf32>
    %8 = arith.addf %4, %7 : vector<384x128xf32>
    %cst_8 = arith.constant 0.000000e+00 : f32
    %9 = vector.broadcast %cst_8 : f32 to vector<384x128xf32>
    %10 = arith.cmpf ogt, %8, %9 : vector<384x128xf32>
    %cst_9 = arith.constant 0.00999999977 : f32
    %11 = vector.broadcast %cst_9 : f32 to vector<384x128xf32>
    %12 = arith.mulf %11, %8 : vector<384x128xf32>
    %13 = arith.select %10, %8, %12 : vector<384x128xi1>, vector<384x128xf32>
    %c0_10 = arith.constant 0 : index
    %c0_11 = arith.constant 0 : index
    %c0_12 = arith.constant 0 : index
    %14 = vector.load %arg6[%c0_10, %c0_11, %c0_12] : memref<1x384x128xf32, #tpu.memory_space<vmem>>, vector<1x384x128xf32>
    %15 = vector.shape_cast %14 : vector<1x384x128xf32> to vector<384x128xf32>
    %16 = vector.shape_cast %13 : vector<384x128xf32> to vector<1x384x128xf32>
    tpu.vector_store %arg6[%c0_10, %c0_11, %c0_12], %16 {strides = array<i32>} : memref<1x384x128xf32, #tpu.memory_space<vmem>>, vector<1x384x128xf32>,
    %c0_13 = arith.constant 0 : index
    %c0_14 = arith.constant 0 : index
    %c0_15 = arith.constant 0 : index
    %17 = vector.load %arg5[%c0_13, %c0_14, %c0_15] : memref<1x128x128xf32, #tpu.memory_space<vmem>>, vector<1x128x128xf32>
    %18 = vector.shape_cast %17 : vector<1x128x128xf32> to vector<128x128xf32>
    %cst_16 = arith.constant dense<0.000000e+00> : vector<384x128xf32>
    %19 = tpu.matmul %13, %18, %cst_16 {dimension_numbers = #tpu.dot_dimension_numbers<[1], [0], [0], [1], [0, 0, 1, 1], [], []>} : vector<384x128xf32>, vector<128x128xf32>, vector<384x128xf32> -> vector<384x128xf32>
    %c0_17 = arith.constant 0 : index
    %c0_18 = arith.constant 0 : index
    %c0_19 = arith.constant 0 : index
    %20 = vector.load %arg7[%c0_17, %c0_18, %c0_19] : memref<1x384x128xf32, #tpu.memory_space<vmem>>, vector<1x384x128xf32>
    %21 = vector.shape_cast %20 : vector<1x384x128xf32> to vector<384x128xf32>
    %22 = vector.shape_cast %19 : vector<384x128xf32> to vector<1x384x128xf32>
    tpu.vector_store %arg7[%c0_17, %c0_18, %c0_19], %22 {strides = array<i32>} : memref<1x384x128xf32, #tpu.memory_space<vmem>>, vector<1x384x128xf32>,
    return
  }
  func.func @transform_0(%arg0: i32, %arg1: i32) -> (i32, i32, i32) {
    %c0_i32 = arith.constant 0 : i32
    %c0_i32_0 = arith.constant 0 : i32
    return %arg0, %arg1, %c0_i32 : i32, i32, i32
  }
  func.func @transform_1(%arg0: i32, %arg1: i32) -> (i32, i32, i32) {
    %c0_i32 = arith.constant 0 : i32
    %c0_i32_0 = arith.constant 0 : i32
    %c0_i32_1 = arith.constant 0 : i32
    return %arg0, %c0_i32, %c0_i32_0 : i32, i32, i32
  }
  func.func @transform_2(%arg0: i32, %arg1: i32) -> (i32, i32, i32) {
    %c0_i32 = arith.constant 0 : i32
    %c0_i32_0 = arith.constant 0 : i32
    %c0_i32_1 = arith.constant 0 : i32
    return %arg0, %c0_i32, %c0_i32_0 : i32, i32, i32
  }
  func.func @transform_3(%arg0: i32, %arg1: i32) -> (i32, i32, i32) {
    %c0_i32 = arith.constant 0 : i32
    %c0_i32_0 = arith.constant 0 : i32
    %c0_i32_1 = arith.constant 0 : i32
    return %arg0, %c0_i32, %c0_i32_0 : i32, i32, i32
  }
  func.func @transform_4(%arg0: i32, %arg1: i32) -> (i32, i32, i32) {
    %c0_i32 = arith.constant 0 : i32
    %c0_i32_0 = arith.constant 0 : i32
    return %arg0, %arg1, %c0_i32 : i32, i32, i32
  }
  func.func @transform_5(%arg0: i32, %arg1: i32) -> (i32, i32, i32) {
    %c0_i32 = arith.constant 0 : i32
    %c0_i32_0 = arith.constant 0 : i32
    return %arg0, %arg1, %c0_i32 : i32, i32, i32
  }
}

module attributes {stable_mosaic.version = 11 : i64} {
  func.func @_edge_kernel(%arg0: i32, %arg1: memref<512x1xi32, #tpu.memory_space<vmem>>, %arg2: memref<512x1xi32, #tpu.memory_space<vmem>>, %arg3: memref<2x384x128xf32, #tpu.memory_space<vmem>>, %arg4: memref<1x128xf32, #tpu.memory_space<vmem>>, %arg5: memref<512x128xf32, #tpu.memory_space<vmem>>) attributes {dimension_semantics = [#tpu.dimension_semantics<parallel>], iteration_bounds = array<i64: 2>, scalar_prefetch = 0 : i64, scratch_operands = 0 : i64, tpu.core_type = #tpu.core_type<tc>, window_params = [{transform_indices = @transform_0, window_bounds = array<i64: 512, 1>}, {transform_indices = @transform_1, window_bounds = array<i64: 512, 1>}, {pipeline_mode = #tpu.pipeline_mode<synchronous>, transform_indices = @transform_2, window_bounds = array<i64: 2, 384, 128>}, {pipeline_mode = #tpu.pipeline_mode<synchronous>, transform_indices = @transform_3, window_bounds = array<i64: 1, 128>}, {transform_indices = @transform_4, window_bounds = array<i64: 512, 128>}]} {
    %0 = tpu.iota {dimensions = array<i32: 1>} : vector<512x384xi32>
    %c0 = arith.constant 0 : index
    %c0_0 = arith.constant 0 : index
    %1 = vector.load %arg1[%c0, %c0_0] : memref<512x1xi32, #tpu.memory_space<vmem>>, vector<512x1xi32>
    %2 = vector.broadcast %1 : vector<512x1xi32> to vector<512x384xi32>
    %3 = arith.cmpi eq, %2, %0 : vector<512x384xi32>
    %4 = arith.extui %3 : vector<512x384xi1> to vector<512x384xi32>
    %5 = arith.sitofp %4 : vector<512x384xi32> to vector<512x384xf32>
    %c0_1 = arith.constant 0 : index
    %c0_2 = arith.constant 0 : index
    %6 = vector.load %arg2[%c0_1, %c0_2] : memref<512x1xi32, #tpu.memory_space<vmem>>, vector<512x1xi32>
    %7 = vector.broadcast %6 : vector<512x1xi32> to vector<512x384xi32>
    %8 = arith.cmpi eq, %7, %0 : vector<512x384xi32>
    %9 = arith.extui %8 : vector<512x384xi1> to vector<512x384xi32>
    %10 = arith.sitofp %9 : vector<512x384xi32> to vector<512x384xf32>
    %c0_3 = arith.constant 0 : index
    %c0_4 = arith.constant 0 : index
    %c0_5 = arith.constant 0 : index
    %11 = vector.load %arg3[%c0_3, %c0_4, %c0_5] : memref<2x384x128xf32, #tpu.memory_space<vmem>>, vector<1x384x128xf32>
    %12 = vector.shape_cast %11 : vector<1x384x128xf32> to vector<384x128xf32>
    %cst = arith.constant dense<0.000000e+00> : vector<512x128xf32>
    %13 = tpu.matmul %5, %12, %cst {dimension_numbers = #tpu.dot_dimension_numbers<[1], [0], [0], [1], [0, 0, 1, 1], [], []>} : vector<512x384xf32>, vector<384x128xf32>, vector<512x128xf32> -> vector<512x128xf32>
    %c1 = arith.constant 1 : index
    %c0_6 = arith.constant 0 : index
    %c0_7 = arith.constant 0 : index
    %14 = vector.load %arg3[%c1, %c0_6, %c0_7] : memref<2x384x128xf32, #tpu.memory_space<vmem>>, vector<1x384x128xf32>
    %15 = vector.shape_cast %14 : vector<1x384x128xf32> to vector<384x128xf32>
    %cst_8 = arith.constant dense<0.000000e+00> : vector<512x128xf32>
    %16 = tpu.matmul %10, %15, %cst_8 {dimension_numbers = #tpu.dot_dimension_numbers<[1], [0], [0], [1], [0, 0, 1, 1], [], []>} : vector<512x384xf32>, vector<384x128xf32>, vector<512x128xf32> -> vector<512x128xf32>
    %17 = arith.addf %13, %16 : vector<512x128xf32>
    %c0_9 = arith.constant 0 : index
    %c0_10 = arith.constant 0 : index
    %18 = vector.load %arg4[%c0_9, %c0_10] : memref<1x128xf32, #tpu.memory_space<vmem>>, vector<1x128xf32>
    %19 = vector.broadcast %18 : vector<1x128xf32> to vector<512x128xf32>
    %20 = arith.addf %17, %19 : vector<512x128xf32>
    %21 = tpu.iota {dimensions = array<i32: 1>} : vector<512x128xi32>
    %c5_i32 = arith.constant 5 : i32
    %22 = vector.broadcast %c5_i32 : i32 to vector<512x128xi32>
    %23 = arith.cmpi slt, %21, %22 : vector<512x128xi32>
    %cst_11 = arith.constant 0xFF800000 : f32
    %24 = vector.broadcast %cst_11 : f32 to vector<512x128xf32>
    %25 = arith.select %23, %20, %24 : vector<512x128xi1>, vector<512x128xf32>
    %cst_12 = arith.constant dense<0xFF800000> : vector<512xf32>
    %26 = vector.multi_reduction <maximumf>, %25, %cst_12 [1] : vector<512x128xf32> to vector<512xf32>
    %27 = vector.shape_cast %26 : vector<512xf32> to vector<512x1xf32>
    %28 = vector.broadcast %27 : vector<512x1xf32> to vector<512x128xf32>
    %29 = arith.subf %20, %28 : vector<512x128xf32>
    %30 = math.exp %29 : vector<512x128xf32>
    %cst_13 = arith.constant 0.000000e+00 : f32
    %31 = vector.broadcast %cst_13 : f32 to vector<512x128xf32>
    %32 = arith.select %23, %30, %31 : vector<512x128xi1>, vector<512x128xf32>
    %cst_14 = arith.constant dense<0.000000e+00> : vector<512xf32>
    %33 = vector.multi_reduction <add>, %32, %cst_14 [1] : vector<512x128xf32> to vector<512xf32>
    %34 = vector.shape_cast %33 : vector<512xf32> to vector<512x1xf32>
    %35 = math.log %34 : vector<512x1xf32>
    %36 = vector.broadcast %35 : vector<512x1xf32> to vector<512x128xf32>
    %37 = arith.subf %29, %36 : vector<512x128xf32>
    %cst_15 = arith.constant 0.000000e+00 : f32
    %38 = vector.broadcast %cst_15 : f32 to vector<512x128xf32>
    %39 = arith.select %23, %37, %38 : vector<512x128xi1>, vector<512x128xf32>
    %c0_16 = arith.constant 0 : index
    %c0_17 = arith.constant 0 : index
    %40 = vector.load %arg5[%c0_16, %c0_17] : memref<512x128xf32, #tpu.memory_space<vmem>>, vector<512x128xf32>
    tpu.vector_store %arg5[%c0_16, %c0_17], %39 {strides = array<i32>} : memref<512x128xf32, #tpu.memory_space<vmem>>, vector<512x128xf32>,
    return
  }
  func.func @transform_0(%arg0: i32) -> (i32, i32) {
    %c0_i32 = arith.constant 0 : i32
    %c0_i32_0 = arith.constant 0 : i32
    return %arg0, %c0_i32 : i32, i32
  }
  func.func @transform_1(%arg0: i32) -> (i32, i32) {
    %c0_i32 = arith.constant 0 : i32
    %c0_i32_0 = arith.constant 0 : i32
    return %arg0, %c0_i32 : i32, i32
  }
  func.func @transform_2(%arg0: i32) -> (i32, i32, i32) {
    %c0_i32 = arith.constant 0 : i32
    %c0_i32_0 = arith.constant 0 : i32
    %c0_i32_1 = arith.constant 0 : i32
    %c0_i32_2 = arith.constant 0 : i32
    return %c0_i32, %c0_i32_0, %c0_i32_1 : i32, i32, i32
  }
  func.func @transform_3(%arg0: i32) -> (i32, i32) {
    %c0_i32 = arith.constant 0 : i32
    %c0_i32_0 = arith.constant 0 : i32
    %c0_i32_1 = arith.constant 0 : i32
    return %c0_i32, %c0_i32_0 : i32, i32
  }
  func.func @transform_4(%arg0: i32) -> (i32, i32) {
    %c0_i32 = arith.constant 0 : i32
    %c0_i32_0 = arith.constant 0 : i32
    return %arg0, %c0_i32 : i32, i32
  }
}

</mosaic_0001>

<bundles_post_ra>
// kernel: edge_predictor_forward.2
= control target key start
LH: loop header
LB: loop body
LE: loop exit
PB: predicated region body
PF: predicated region fallthrough
CT: control target
= control target key end

     0   :  { %s2074_s18 = smov 0   ;;  %s2076_s19 = smov 0   ;;  %s2396_s0 = inlined_call_operand.vmem [shape: f32[2,384,64], index: 0, kind: input, shape index: {}]   ;;  %s2397_s1 = inlined_call_operand.vmem [shape: f32[2,64,128], index: 1, kind: input, shape index: {}]   ;;  %s2398_s2 = inlined_call_operand.vmem [shape: f32[2,1,128], index: 2, kind: input, shape index: {}]   ;;  %s2399_s3 = inlined_call_operand.vmem [shape: f32[2,128,128], index: 3, kind: input, shape index: {}]   ;;  %s2400_s4 = inlined_call_operand.vmem [shape: f32[2,384,128], index: 4, kind: output, shape index: {0}]   ;;  %s2401_s5 = inlined_call_operand.vmem [shape: f32[2,384,128], index: 5, kind: output, shape index: {1}]  }
   0x1   :  { %s2078_s20 = smov 0  }
   0x2 LB: > { %s28_s21 = sadd.s32 1, %s2038_s19  ;;  %p1590_p0 = scmp.ge.s32.totalorder %s2042_s20, 1  ;;  %s2042_s20 = sphi %s2078_s20, %s16_s20   ;;  %s2038_s19 = sphi %s2076_s19, %s2403_s19   ;;  %s2034_s18 = sphi %s2074_s18, %s2402_s18  }
   0x3   : > { %p30_p1 = scmp.ge.s32.totalorder %s28_s21, 2  ;;  %p241_p2 = scmp.lt.s32.totalorder %s2042_s20, 3 }
   0x5   : > { %s2405_s21 = smov (%p30_p1, %s28_s21), 0  ;;  %p242_p3 = pnand %p1590_p0, %p241_p2 }
   0x6   : > { %p300_p4 = scmp.lt.s32.totalorder (!%p242_p3), %s2034_s18, 1 }
   0x7   : > { %245 = sbr.rel (%p242_p3) target bundleno = 521 (0x209), region = 36 }
   0xc   : > { %s2407_s18 = smov (!%p300_p4, %s2034_s18), 1  ;;  %vm405_vm0 = vcmask 523264  }
   0xd   : > { %s2095_s22 = smul.u32 384, %s2407_s18  ;;  %s1649_s23 = sshll.u32 %s2407_s18, 6 }
   0xe   : > { %s313_s26 = scalar_lea.vmem %s2397_s1, %s1649_s23  ;;  %s1650_s30 = sshll.u32 %s2407_s18, 7 }
   0xf   : > { %s2105_s29 = scalar_lea.vmem %s2396_s0, %s2095_s22  ;;  %v397_v0 = vld [vmem:[%s313_s26 + $0x38] sm:$0xff]  ;;  %v396_v1 = vld [vmem:[%s313_s26 + $0x30] sm:$0xff]  ;;  %v395_v2 = vld [vmem:[%s313_s26 + $0x28] sm:$0xff]  ;;  %s2115_s8 = scalar_lea.vmem %s2399_s3, %s1650_s30 }
  0x10   : > { %1771 = vmatprep.subr.mxu0 %v397_v0  ;;  %v342_v3 = vld [vmem:[%s2105_s29] sm:$0xff]  ;;  %v393_v5 = vld [vmem:[%s313_s26 + $0x18] sm:$0xff]  ;;  %v392_v6 = vld [vmem:[%s313_s26 + $0x10] sm:$0xff]  ;;  %s316_s11 = scalar_lea.vmem %s2398_s2, %s2407_s18  ;;  %s2236_s14 = scalar_lea.vmem %s2400_s4, %s2095_s22 }
  0x11   : > { %1772 = vmatpush3.msra.mxu0 %v397_v0  ;;  %v394_v4 = vld [vmem:[%s313_s26 + $0x20] sm:$0xff]  ;;  %1787 = vmatprep.mubr.msk.f32.mxu0 %vm405_vm0, %v342_v3  ;;  %v391_v7 = vld [vmem:[%s313_s26 + $0x8] sm:$0xff]  ;;  %v344_v10 = vld [vmem:[%s2105_s29 + $0x10] sm:$0xff]  ;;  %s2337_s17 = scalar_lea.vmem %s2401_s5, %s2095_s22 }
  0x12   : > { %1773 = vmatprep.subr.mxu0 %v396_v1  ;;  %v390_v8 = vld [vmem:[%s313_s26] sm:$0xff]  ;;  %v343_v9 = vld [vmem:[%s2105_s29 + $0x8] sm:$0xff]  ;;  %v345_v11 = vld [vmem:[%s2105_s29 + $0x18] sm:$0xff] }
  0x13   : > { %1774 = vmatpush3.msra.mxu0 %v396_v1  ;;  %v346_v12 = vld [vmem:[%s2105_s29 + $0x20] sm:$0xff]  ;;  %v1062_v13 = vld [vmem:[%s2115_s8 + $0x78] sm:$0xff]  ;;  %v1061_v14 = vld [vmem:[%s2115_s8 + $0x70] sm:$0xff] }
  0x14   : > { %1775 = vmatprep.subr.mxu0 %v395_v2  ;;  %1963 = vmatprep.subr.mxu1 %v1062_v13  ;;  %v347_v15 = vld [vmem:[%s2105_s29 + $0x28] sm:$0xff]  ;;  %v348_v17 = vld [vmem:[%s2105_s29 + $0x30] sm:$0xff]  ;;  %v1059_v18 = vld [vmem:[%s2115_s8 + $0x60] sm:$0xff] }
  0x15   : > { %1776 = vmatpush3.msra.mxu0 %v395_v2  ;;  %1979 = vmatpush3.msra.mxu1 %v1062_v13  ;;  %v1060_v16 = vld [vmem:[%s2115_s8 + $0x68] sm:$0xff]  ;;  %v349_v19 = vld [vmem:[%s2105_s29 + $0x38] sm:$0xff]  ;;  %v350_v21 = vld [vmem:[%s2105_s29 + $0x40] sm:$0xff] }
  0x16   : > { %1777 = vmatprep.subr.mxu0 %v394_v4  ;;  %1964 = vmatprep.subr.mxu1 %v1061_v14  ;;  %v1058_v20 = vld [vmem:[%s2115_s8 + $0x58] sm:$0xff]  ;;  %v1057_v22 = vld [vmem:[%s2115_s8 + $0x50] sm:$0xff]  ;;  %v351_v23 = vld [vmem:[%s2105_s29 + $0x48] sm:$0xff] }
  0x17   : > { %1778 = vmatpush3.msra.mxu0 %v394_v4  ;;  %1980 = vmatpush3.msra.mxu1 %v1061_v14  ;;  %v1056_v24 = vld [vmem:[%s2115_s8 + $0x48] sm:$0xff]  ;;  %v352_v25 = vld [vmem:[%s2105_s29 + $0x50] sm:$0xff]  ;;  %v1055_v26 = vld [vmem:[%s2115_s8 + $0x40] sm:$0xff] }
  0x18   : > { %1779 = vmatprep.subr.mxu0 %v393_v5  ;;  %1965 = vmatprep.subr.mxu1 %v1060_v16  ;;  %v353_v27 = vld [vmem:[%s2105_s29 + $0x58] sm:$0xff]  ;;  %v354_v29 = vld [vmem:[%s2105_s29 + $0x60] sm:$0xff]  ;;  %v1053_v30 = vld [vmem:[%s2115_s8 + $0x30] sm:$0xff] }
  0x19   : > { %1780 = vmatpush3.msra.mxu0 %v393_v5  ;;  %1981 = vmatpush3.msra.mxu1 %v1060_v16  ;;  %v1054_v28 = vld [vmem:[%s2115_s8 + $0x38] sm:$0xff]  ;;  %v355_v31 = vld [vmem:[%s2105_s29 + $0x68] sm:$0xff]  ;;  %v356_v32 = vld [vmem:[%s2105_s29 + $0x70] sm:$0xff] }
  0x1a   : > { %1781 = vmatprep.subr.mxu0 %v392_v6  ;;  %1966 = vmatprep.subr.mxu1 %v1059_v18  ;;  %v1052_v33 = vld [vmem:[%s2115_s8 + $0x28] sm:$0xff]  ;;  %v1051_v34 = vld [vmem:[%s2115_s8 + $0x20] sm:$0xff]  ;;  %v357_v35 = vld [vmem:[%s2105_s29 + $0x78] sm:$0xff] }
  0x1b   : > { %1782 = vmatpush3.msra.mxu0 %v392_v6  ;;  %1982 = vmatpush3.msra.mxu1 %v1059_v18  ;;  %v358_v36 = vld [vmem:[%s2105_s29 + $0x80] sm:$0xff]  ;;  %v359_v37 = vld [vmem:[%s2105_s29 + $0x88] sm:$0xff]  ;;  %v360_v38 = vld [vmem:[%s2105_s29 + $0x90] sm:$0xff] }
  0x1c   : > { %1783 = vmatprep.subr.mxu0 %v391_v7  ;;  %1967 = vmatprep.subr.mxu1 %v1058_v20  ;;  %v361_v39 = vld [vmem:[%s2105_s29 + $0x98] sm:$0xff]  ;;  %v362_v40 = vld [vmem:[%s2105_s29 + $0xa0] sm:$0xff]  ;;  %v363_v41 = vld [vmem:[%s2105_s29 + $0xa8] sm:$0xff] }
  0x1d   : > { %1784 = vmatpush3.msra.mxu0 %v391_v7  ;;  %1983 = vmatpush3.msra.mxu1 %v1058_v20  ;;  %v364_v42 = vld [vmem:[%s2105_s29 + $0xb0] sm:$0xff]  ;;  %v365_v43 = vld [vmem:[%s2105_s29 + $0xb8] sm:$0xff]  ;;  %v366_v44 = vld [vmem:[%s2105_s29 + $0xc0] sm:$0xff] }
  0x1e   : > { %1785 = vmatprep.subr.mxu0 %v390_v8  ;;  %1968 = vmatprep.subr.mxu1 %v1057_v22  ;;  %v367_v45 = vld [vmem:[%s2105_s29 + $0xc8] sm:$0xff]  ;;  %v368_v46 = vld [vmem:[%s2105_s29 + $0xd0] sm:$0xff]  ;;  %v369_v47 = vld [vmem:[%s2105_s29 + $0xd8] sm:$0xff] }
  0x1f   : > { %1786 = vmatpush3.msra.mxu0 %v390_v8  ;;  %1984 = vmatpush3.msra.mxu1 %v1057_v22  ;;  %v370_v48 = vld [vmem:[%s2105_s29 + $0xe0] sm:$0xff]  ;;  %v371_v49 = vld [vmem:[%s2105_s29 + $0xe8] sm:$0xff]  ;;  %v372_v50 = vld [vmem:[%s2105_s29 + $0xf0] sm:$0xff] }
  0x20   : > { %1788 = vmatmul.mubr.msk.f32.vlgmr.msra.gmra.mxu0 %vm405_vm0, %v343_v9  ;;  %1859 = vmatprep.subr.mxu0 %v1062_v13  ;;  %v373_v51 = vld [vmem:[%s2105_s29 + $0xf8] sm:$0xff]  ;;  %v374_v52 = vld [vmem:[%s2105_s29 + $0x100] sm:$0xff]  ;;  %v375_v53 = vld [vmem:[%s2105_s29 + $0x108] sm:$0xff] }
  0x21   : > { %1790 = vmatprep.mubr.msk.f32.mxu0 %vm405_vm0, %v344_v10  ;;  %1860 = vmatpush3.msra.mxu0 %v1062_v13  ;;  %v376_v54 = vld [vmem:[%s2105_s29 + $0x110] sm:$0xff]  ;;  %v1050_v55 = vld [vmem:[%s2115_s8 + $0x18] sm:$0xff]  ;;  %v378_v57 = vld [vmem:[%s2105_s29 + $0x120] sm:$0xff] }
  0x22   : > { %1861 = vmatprep.subr.mxu0 %v1061_v14  ;;  %1969 = vmatprep.subr.mxu1 %v1056_v24  ;;  %v377_v56 = vld [vmem:[%s2105_s29 + $0x118] sm:$0xff]  ;;  %v1049_v58 = vld [vmem:[%s2115_s8 + $0x10] sm:$0xff]  ;;  %v1048_v59 = vld [vmem:[%s2115_s8 + $0x8] sm:$0xff] }
  0x23   : > { %1862 = vmatpush3.msra.mxu0 %v1061_v14  ;;  %1985 = vmatpush3.msra.mxu1 %v1056_v24  ;;  %v379_v60 = vld [vmem:[%s2105_s29 + $0x128] sm:$0xff]  ;;  %v380_v61 = vld [vmem:[%s2105_s29 + $0x130] sm:$0xff]  ;;  %v1047_v62 = vld [vmem:[%s2115_s8] sm:$0xff] }
  0x24   : > { %1791 = vmatmul.mubr.msk.f32.gmra.mxu0 %vm405_vm0, %v345_v11  ;;  %1863 = vmatprep.subr.mxu0 %v1060_v16  ;;  %v381_v63 = vld [vmem:[%s2105_s29 + $0x138] sm:$0xff]  ;;  %v382_v0 = vld [vmem:[%s2105_s29 + $0x140] sm:$0xff]  ;;  %v383_v1 = vld [vmem:[%s2105_s29 + $0x148] sm:$0xff] }
  0x25   : > { %1793 = vmatprep.mubr.msk.f32.mxu0 %vm405_vm0, %v346_v12  ;;  %1864 = vmatpush3.msra.mxu0 %v1060_v16  ;;  %v384_v2 = vld [vmem:[%s2105_s29 + $0x150] sm:$0xff]  ;;  %v385_v3 = vld [vmem:[%s2105_s29 + $0x158] sm:$0xff]  ;;  %v386_v4 = vld [vmem:[%s2105_s29 + $0x160] sm:$0xff] }
  0x26   : > { %1865 = vmatprep.subr.mxu0 %v1059_v18  ;;  %1970 = vmatprep.subr.mxu1 %v1055_v26  ;;  %v387_v5 = vld [vmem:[%s2105_s29 + $0x168] sm:$0xff]  ;;  %v388_v6 = vld [vmem:[%s2105_s29 + $0x170] sm:$0xff]  ;;  %v389_v7 = vld [vmem:[%s2105_s29 + $0x178] sm:$0xff] }
  0x27   : > { %1866 = vmatpush3.msra.mxu0 %v1059_v18  ;;  %1986 = vmatpush3.msra.mxu1 %v1055_v26  ;;  %v2229_v8 = vld [vmem:[%s316_s11] ss:$0 sm:$0xff] }
  0x28   : > { %1794 = vmatmul.mubr.msk.f32.gmra.mxu0 %vm405_vm0, %v347_v15  ;;  %1867 = vmatprep.subr.mxu0 %v1058_v20 }
  0x29   : > { %1796 = vmatprep.mubr.msk.f32.mxu0 %vm405_vm0, %v348_v17  ;;  %1868 = vmatpush3.msra.mxu0 %v1058_v20 }
  0x2a   : > { %1869 = vmatprep.subr.mxu0 %v1057_v22  ;;  %1971 = vmatprep.subr.mxu1 %v1054_v28 }
  0x2b   : > { %1870 = vmatpush3.msra.mxu0 %v1057_v22  ;;  %1987 = vmatpush3.msra.mxu1 %v1054_v28 }
  0x2c   : > { %1797 = vmatmul.mubr.msk.f32.gmra.mxu0 %vm405_vm0, %v349_v19  ;;  %1871 = vmatprep.subr.mxu0 %v1056_v24 }
  0x2d   : > { %1799 = vmatprep.mubr.msk.f32.mxu0 %vm405_vm0, %v350_v21  ;;  %1872 = vmatpush3.msra.mxu0 %v1056_v24 }
  0x2e   : > { %1873 = vmatprep.subr.mxu0 %v1055_v26  ;;  %1972 = vmatprep.subr.mxu1 %v1053_v30 }
  0x2f   : > { %1874 = vmatpush3.msra.mxu0 %v1055_v26  ;;  %1988 = vmatpush3.msra.mxu1 %v1053_v30 }
  0x30   : > { %1800 = vmatmul.mubr.msk.f32.gmra.mxu0 %vm405_vm0, %v351_v23  ;;  %1875 = vmatprep.subr.mxu0 %v1054_v28 }
  0x31   : > { %1802 = vmatprep.mubr.msk.f32.mxu0 %vm405_vm0, %v352_v25  ;;  %1876 = vmatpush3.msra.mxu0 %v1054_v28 }
  0x32   : > { %1877 = vmatprep.subr.mxu0 %v1053_v30  ;;  %1973 = vmatprep.subr.mxu1 %v1052_v33 }
  0x33   : > { %1878 = vmatpush3.msra.mxu0 %v1053_v30  ;;  %1989 = vmatpush3.msra.mxu1 %v1052_v33 }
  0x34   : > { %1803 = vmatmul.mubr.msk.f32.gmra.mxu0 %vm405_vm0, %v353_v27  ;;  %1879 = vmatprep.subr.mxu0 %v1052_v33 }
  0x35   : > { %1805 = vmatprep.mubr.msk.f32.mxu0 %vm405_vm0, %v354_v29  ;;  %1880 = vmatpush3.msra.mxu0 %v1052_v33 }
  0x36   : > { %1881 = vmatprep.subr.mxu0 %v1051_v34  ;;  %1974 = vmatprep.subr.mxu1 %v1051_v34 }
  0x37   : > { %1882 = vmatpush3.msra.mxu0 %v1051_v34  ;;  %1990 = vmatpush3.msra.mxu1 %v1051_v34 }
  0x38   : > { %1806 = vmatmul.mubr.msk.f32.gmra.mxu0 %vm405_vm0, %v355_v31  ;;  %1883 = vmatprep.subr.mxu0 %v1050_v55 }
  0x39   : > { %1808 = vmatprep.mubr.msk.f32.mxu0 %vm405_vm0, %v356_v32  ;;  %1884 = vmatpush3.msra.mxu0 %v1050_v55 }
  0x3a   : > { %1975 = vmatprep.subr.mxu1 %v1050_v55  ;;  %1885 = vmatprep.subr.mxu0 %v1049_v58 }
  0x3b   : > { %1991 = vmatpush3.msra.mxu1 %v1050_v55  ;;  %1886 = vmatpush3.msra.mxu0 %v1049_v58 }
  0x3c   : > { %1809 = vmatmul.mubr.msk.f32.gmra.mxu0 %vm405_vm0, %v357_v35  ;;  %1976 = vmatprep.subr.mxu1 %v1049_v58 }
  0x3d   : > { %1811 = vmatprep.mubr.msk.f32.mxu0 %vm405_vm0, %v358_v36  ;;  %1887 = vmatprep.subr.mxu0 %v1048_v59 }
  0x3e   : > { %1992 = vmatpush3.msra.mxu1 %v1049_v58  ;;  %1888 = vmatpush3.msra.mxu0 %v1048_v59 }
  0x3f   : > { %1977 = vmatprep.subr.mxu1 %v1048_v59  ;;  %1889 = vmatprep.subr.mxu0 %v1047_v62 }
  0x40   : > { %1812 = vmatmul.mubr.msk.f32.gmra.mxu0 %vm405_vm0, %v359_v37  ;;  %1993 = vmatpush3.msra.mxu1 %v1048_v59 }
  0x41   : > { %1814 = vmatprep.mubr.msk.f32.mxu0 %vm405_vm0, %v360_v38  ;;  %1890 = vmatpush3.msra.mxu0 %v1047_v62 }
  0x42   : > { %1978 = vmatprep.subr.mxu1 %v1047_v62 }
  0x43   : > { %1994 = vmatpush3.msra.mxu1 %v1047_v62 }
  0x44   : > { %1815 = vmatmul.mubr.msk.f32.gmra.mxu0 %vm405_vm0, %v361_v39 }
  0x45   : > { %1817 = vmatprep.mubr.msk.f32.mxu0 %vm405_vm0, %v362_v40 }
  0x48   : > { %1818 = vmatmul.mubr.msk.f32.gmra.mxu0 %vm405_vm0, %v363_v41 }
  0x49   : > { %1820 = vmatprep.mubr.msk.f32.mxu0 %vm405_vm0, %v364_v42 }
  0x4c   : > { %1821 = vmatmul.mubr.msk.f32.gmra.mxu0 %vm405_vm0, %v365_v43 }
  0x4d   : > { %1823 = vmatprep.mubr.msk.f32.mxu0 %vm405_vm0, %v366_v44 }
  0x50   : > { %1824 = vmatmul.mubr.msk.f32.gmra.mxu0 %vm405_vm0, %v367_v45 }
  0x51   : > { %1826 = vmatprep.mubr.msk.f32.mxu0 %vm405_vm0, %v368_v46 }
  0x54   : > { %1827 = vmatmul.mubr.msk.f32.gmra.mxu0 %vm405_vm0, %v369_v47 }
  0x55   : > { %1829 = vmatprep.mubr.msk.f32.mxu0 %vm405_vm0, %v370_v48 }
  0x58   : > { %1830 = vmatmul.mubr.msk.f32.gmra.mxu0 %vm405_vm0, %v371_v49 }
  0x59   : > { %1832 = vmatprep.mubr.msk.f32.mxu0 %vm405_vm0, %v372_v50 }
  0x5c   : > { %1833 = vmatmul.mubr.msk.f32.gmra.mxu0 %vm405_vm0, %v373_v51 }
  0x5d   : > { %1835 = vmatprep.mubr.msk.f32.mxu0 %vm405_vm0, %v374_v52 }
  0x60   : > { %1836 = vmatmul.mubr.msk.f32.gmra.mxu0 %vm405_vm0, %v375_v53 }
  0x61   : > { %1838 = vmatprep.mubr.msk.f32.mxu0 %vm405_vm0, %v376_v54 }
  0x64   : > { %1839 = vmatmul.mubr.msk.f32.gmra.mxu0 %vm405_vm0, %v377_v56 }
  0x65   : > { %1841 = vmatprep.mubr.msk.f32.mxu0 %vm405_vm0, %v378_v57 }
  0x68   : > { %1842 = vmatmul.mubr.msk.f32.gmra.mxu0 %vm405_vm0, %v379_v60 }
  0x69   : > { %1844 = vmatprep.mubr.msk.f32.mxu0 %vm405_vm0, %v380_v61 }
  0x6c   : > { %1845 = vmatmul.mubr.msk.f32.gmra.mxu0 %vm405_vm0, %v381_v63 }
  0x6d   : > { %1847 = vmatprep.mubr.msk.f32.mxu0 %vm405_vm0, %v382_v0 }
  0x70   : > { %1848 = vmatmul.mubr.msk.f32.gmra.mxu0 %vm405_vm0, %v383_v1 }
  0x71   : > { %1850 = vmatprep.mubr.msk.f32.mxu0 %vm405_vm0, %v384_v2 }
  0x74   : > { %1851 = vmatmul.mubr.msk.f32.gmra.mxu0 %vm405_vm0, %v385_v3 }
  0x75   : > { %1853 = vmatprep.mubr.msk.f32.mxu0 %vm405_vm0, %v386_v4 }
  0x78   : > { %1854 = vmatmul.mubr.msk.f32.gmra.mxu0 %vm405_vm0, %v387_v5 }
  0x79   : > { %1856 = vmatprep.mubr.msk.f32.mxu0 %vm405_vm0, %v388_v6 }
  0x7c   : > { %1857 = vmatmul.mubr.msk.f32.gmra.mxu0 %vm405_vm0, %v389_v7 }
  0xe0   : > { %v1789_v9 = vpop.f32.mrf.mxu0 }
  0xe1   : > { %v622_v10 = vadd.f32 %v1789_v9, %v2229_v8 }
  0xe2   : > { %v616_v11 = vpop.f32.mrf.mxu0 }
  0xe3   : > { %vm856_vm1 = vcmp.gt.f32.partialorder %v622_v10, 0.0  ;;  %v904_v12 = vmul.f32 0.01, %v622_v10  ;;  %v617_v13 = vadd.f32 %v2229_v8, %v616_v11 }
  0xe4   : > { %v1792_v14 = vpop.f32.mrf.mxu0 }
  0xe5   : > { %v952_v15 = vsel %vm856_vm1, %v622_v10, %v904_v12  ;;  %v903_v16 = vmul.f32 0.01, %v617_v13  ;;  %v632_v17 = vadd.f32 %v1792_v14, %v2229_v8  ;;  %vm855_vm2 = vcmp.gt.f32.partialorder %v617_v13, 0.0 }
  0xe6   : > { %1000 = vst [vmem:[%s2236_s14 + $0x8] sm:$0xff] %v952_v15  ;;  %v626_v18 = vpop.f32.mrf.mxu0 }
  0xe7   : > { %v906_v19 = vmul.f32 0.01, %v632_v17  ;;  %v627_v20 = vadd.f32 %v2229_v8, %v626_v18  ;;  %v951_v21 = vsel %vm855_vm2, %v617_v13, %v903_v16  ;;  %vm858_vm3 = vcmp.gt.f32.partialorder %v632_v17, 0.0 }
  0xe8   : > { %v1795_v22 = vpop.f32.mrf.mxu0  ;;  %999 = vst [vmem:[%s2236_s14] sm:$0xff] %v951_v21  ;;  %1891 = vmatprep.mubr.f32.mxu0 %v951_v21 }
  0xe9   : > { %v905_v23 = vmul.f32 0.01, %v627_v20  ;;  %v642_v24 = vadd.f32 %v1795_v22, %v2229_v8  ;;  %1892 = vmatmul.mubr.f32.vlgmr.msra.gmra.mxu0 %v952_v15  ;;  %vm857_vm4 = vcmp.gt.f32.partialorder %v627_v20, 0.0  ;;  %v954_v25 = vsel %vm858_vm3, %v632_v17, %v906_v19 }
  0xea   : > { %v636_v26 = vpop.f32.mrf.mxu0  ;;  %1002 = vst [vmem:[%s2236_s14 + $0x18] sm:$0xff] %v954_v25 }
  0xeb   : > { %v908_v27 = vmul.f32 0.01, %v642_v24  ;;  %v637_v28 = vadd.f32 %v2229_v8, %v636_v26  ;;  %v953_v29 = vsel %vm857_vm4, %v627_v20, %v905_v23  ;;  %vm860_vm5 = vcmp.gt.f32.partialorder %v642_v24, 0.0 }
  0xec   : > { %v1798_v30 = vpop.f32.mrf.mxu0  ;;  %1001 = vst [vmem:[%s2236_s14 + $0x10] sm:$0xff] %v953_v29  ;;  %1894 = vmatprep.mubr.f32.mxu0 %v953_v29 }
  0xed   : > { %v652_v31 = vadd.f32 %v1798_v30, %v2229_v8  ;;  %1895 = vmatmul.mubr.f32.gmra.mxu0 %v954_v25  ;;  %vm859_vm6 = vcmp.gt.f32.partialorder %v637_v28, 0.0  ;;  %v907_v32 = vmul.f32 0.01, %v637_v28  ;;  %v956_v33 = vsel %vm860_vm5, %v642_v24, %v908_v27 }
  0xee   : > { %v646_v34 = vpop.f32.mrf.mxu0  ;;  %1004 = vst [vmem:[%s2236_s14 + $0x28] sm:$0xff] %v956_v33 }
  0xef   : > { %v910_v35 = vmul.f32 0.01, %v652_v31  ;;  %v647_v36 = vadd.f32 %v2229_v8, %v646_v34  ;;  %v955_v37 = vsel %vm859_vm6, %v637_v28, %v907_v32  ;;  %vm862_vm7 = vcmp.gt.f32.partialorder %v652_v31, 0.0 }
  0xf0   : > { %v1801_v38 = vpop.f32.mrf.mxu0  ;;  %1003 = vst [vmem:[%s2236_s14 + $0x20] sm:$0xff] %v955_v37  ;;  %1897 = vmatprep.mubr.f32.mxu1 %v955_v37 }
  0xf1   : > { %v909_v39 = vmul.f32 0.01, %v647_v36  ;;  %v662_v40 = vadd.f32 %v1801_v38, %v2229_v8  ;;  %1898 = vmatmul.mubr.f32.vlgmr.msra.gmra.mxu1 %v956_v33  ;;  %vm861_vm8 = vcmp.gt.f32.partialorder %v647_v36, 0.0  ;;  %v958_v41 = vsel %vm862_vm7, %v652_v31, %v910_v35 }
  0xf2   : > { %v656_v42 = vpop.f32.mrf.mxu0  ;;  %1006 = vst [vmem:[%s2236_s14 + $0x38] sm:$0xff] %v958_v41 }
  0xf3   : > { %v912_v43 = vmul.f32 0.01, %v662_v40  ;;  %v657_v44 = vadd.f32 %v2229_v8, %v656_v42  ;;  %v957_v45 = vsel %vm861_vm8, %v647_v36, %v909_v39  ;;  %vm864_vm9 = vcmp.gt.f32.partialorder %v662_v40, 0.0 }
  0xf4   : > { %v1804_v46 = vpop.f32.mrf.mxu0  ;;  %1005 = vst [vmem:[%s2236_s14 + $0x30] sm:$0xff] %v957_v45  ;;  %1900 = vmatprep.mubr.f32.mxu1 %v957_v45 }
  0xf5   : > { %v911_v47 = vmul.f32 0.01, %v657_v44  ;;  %v672_v48 = vadd.f32 %v1804_v46, %v2229_v8  ;;  %1901 = vmatmul.mubr.f32.gmra.mxu1 %v958_v41  ;;  %vm863_vm10 = vcmp.gt.f32.partialorder %v657_v44, 0.0  ;;  %v960_v49 = vsel %vm864_vm9, %v662_v40, %v912_v43 }
  0xf6   : > { %v666_v50 = vpop.f32.mrf.mxu0  ;;  %1008 = vst [vmem:[%s2236_s14 + $0x48] sm:$0xff] %v960_v49 }
  0xf7   : > { %v914_v51 = vmul.f32 0.01, %v672_v48  ;;  %v667_v52 = vadd.f32 %v2229_v8, %v666_v50  ;;  %v959_v53 = vsel %vm863_vm10, %v657_v44, %v911_v47  ;;  %vm866_vm11 = vcmp.gt.f32.partialorder %v672_v48, 0.0 }
  0xf8   : > { %v1807_v54 = vpop.f32.mrf.mxu0  ;;  %1007 = vst [vmem:[%s2236_s14 + $0x40] sm:$0xff] %v959_v53  ;;  %1903 = vmatprep.mubr.f32.mxu1 %v959_v53 }
  0xf9   : > { %v913_v55 = vmul.f32 0.01, %v667_v52  ;;  %v682_v56 = vadd.f32 %v1807_v54, %v2229_v8  ;;  %1904 = vmatmul.mubr.f32.gmra.mxu1 %v960_v49  ;;  %vm865_vm12 = vcmp.gt.f32.partialorder %v667_v52, 0.0  ;;  %v962_v57 = vsel %vm866_vm11, %v672_v48, %v914_v51 }
  0xfa   : > { %v676_v58 = vpop.f32.mrf.mxu0  ;;  %1010 = vst [vmem:[%s2236_s14 + $0x58] sm:$0xff] %v962_v57 }
  0xfb   : > { %v916_v59 = vmul.f32 0.01, %v682_v56  ;;  %v677_v60 = vadd.f32 %v2229_v8, %v676_v58  ;;  %v961_v61 = vsel %vm865_vm12, %v667_v52, %v913_v55  ;;  %vm868_vm13 = vcmp.gt.f32.partialorder %v682_v56, 0.0 }
  0xfc   : > { %v1810_v62 = vpop.f32.mrf.mxu0  ;;  %1009 = vst [vmem:[%s2236_s14 + $0x50] sm:$0xff] %v961_v61  ;;  %1906 = vmatprep.mubr.f32.mxu1 %v961_v61 }
  0xfd   : > { %v915_v63 = vmul.f32 0.01, %v677_v60  ;;  %v692_v0 = vadd.f32 %v1810_v62, %v2229_v8  ;;  %1907 = vmatmul.mubr.f32.gmra.mxu1 %v962_v57  ;;  %vm867_vm14 = vcmp.gt.f32.partialorder %v677_v60, 0.0  ;;  %v964_v1 = vsel %vm868_vm13, %v682_v56, %v916_v59 }
  0xfe   : > { %v686_v2 = vpop.f32.mrf.mxu0  ;;  %1012 = vst [vmem:[%s2236_s14 + $0x68] sm:$0xff] %v964_v1 }
  0xff   : > { %v918_v3 = vmul.f32 0.01, %v692_v0  ;;  %v687_v4 = vadd.f32 %v2229_v8, %v686_v2  ;;  %v963_v5 = vsel %vm867_vm14, %v677_v60, %v915_v63  ;;  %vm870_vm15 = vcmp.gt.f32.partialorder %v692_v0, 0.0 }
 0x100   : > { %v1813_v6 = vpop.f32.mrf.mxu0  ;;  %1011 = vst [vmem:[%s2236_s14 + $0x60] sm:$0xff] %v963_v5  ;;  %1909 = vmatprep.mubr.f32.mxu1 %v963_v5 }
 0x101   : > { %v917_v7 = vmul.f32 0.01, %v687_v4  ;;  %v702_v9 = vadd.f32 %v1813_v6, %v2229_v8  ;;  %1910 = vmatmul.mubr.f32.gmra.mxu1 %v964_v1  ;;  %vm869_vm0 = vcmp.gt.f32.partialorder %v687_v4, 0.0  ;;  %v966_v10 = vsel %vm870_vm15, %v692_v0, %v918_v3 }
 0x102   : > { %v696_v11 = vpop.f32.mrf.mxu0  ;;  %1014 = vst [vmem:[%s2236_s14 + $0x78] sm:$0xff] %v966_v10 }
 0x103   : > { %v920_v12 = vmul.f32 0.01, %v702_v9  ;;  %v697_v13 = vadd.f32 %v2229_v8, %v696_v11  ;;  %v965_v14 = vsel %vm869_vm0, %v687_v4, %v917_v7  ;;  %vm872_vm1 = vcmp.gt.f32.partialorder %v702_v9, 0.0 }
 0x104   : > { %v1816_v15 = vpop.f32.mrf.mxu0  ;;  %1013 = vst [vmem:[%s2236_s14 + $0x70] sm:$0xff] %v965_v14  ;;  %1912 = vmatprep.mubr.f32.mxu1 %v965_v14 }
 0x105   : > { %v919_v16 = vmul.f32 0.01, %v697_v13  ;;  %v712_v17 = vadd.f32 %v1816_v15, %v2229_v8  ;;  %1913 = vmatmul.mubr.f32.gmra.mxu1 %v966_v10  ;;  %vm871_vm2 = vcmp.gt.f32.partialorder %v697_v13, 0.0  ;;  %v968_v18 = vsel %vm872_vm1, %v702_v9, %v920_v12 }
 0x106   : > { %v706_v19 = vpop.f32.mrf.mxu0  ;;  %1016 = vst [vmem:[%s2236_s14 + $0x88] sm:$0xff] %v968_v18 }
 0x107   : > { %v922_v20 = vmul.f32 0.01, %v712_v17  ;;  %v707_v21 = vadd.f32 %v2229_v8, %v706_v19  ;;  %v967_v22 = vsel %vm871_vm2, %v697_v13, %v919_v16  ;;  %vm874_vm3 = vcmp.gt.f32.partialorder %v712_v17, 0.0 }
 0x108   : > { %v1819_v23 = vpop.f32.mrf.mxu0  ;;  %1015 = vst [vmem:[%s2236_s14 + $0x80] sm:$0xff] %v967_v22  ;;  %1915 = vmatprep.mubr.f32.mxu1 %v967_v22 }
 0x109   : > { %v921_v24 = vmul.f32 0.01, %v707_v21  ;;  %v722_v25 = vadd.f32 %v1819_v23, %v2229_v8  ;;  %1916 = vmatmul.mubr.f32.gmra.mxu1 %v968_v18  ;;  %vm873_vm4 = vcmp.gt.f32.partialorder %v707_v21, 0.0  ;;  %v970_v26 = vsel %vm874_vm3, %v712_v17, %v922_v20 }
 0x10a   : > { %v716_v27 = vpop.f32.mrf.mxu0  ;;  %1018 = vst [vmem:[%s2236_s14 + $0x98] sm:$0xff] %v970_v26 }
 0x10b   : > { %v924_v28 = vmul.f32 0.01, %v722_v25  ;;  %v717_v29 = vadd.f32 %v2229_v8, %v716_v27  ;;  %v969_v30 = vsel %vm873_vm4, %v707_v21, %v921_v24  ;;  %vm876_vm5 = vcmp.gt.f32.partialorder %v722_v25, 0.0 }
 0x10c   : > { %v1822_v31 = vpop.f32.mrf.mxu0  ;;  %1017 = vst [vmem:[%s2236_s14 + $0x90] sm:$0xff] %v969_v30  ;;  %1918 = vmatprep.mubr.f32.mxu1 %v969_v30 }
 0x10d   : > { %v923_v32 = vmul.f32 0.01, %v717_v29  ;;  %v732_v33 = vadd.f32 %v1822_v31, %v2229_v8  ;;  %1919 = vmatmul.mubr.f32.gmra.mxu1 %v970_v26  ;;  %vm875_vm6 = vcmp.gt.f32.partialorder %v717_v29, 0.0  ;;  %v972_v34 = vsel %vm876_vm5, %v722_v25, %v924_v28 }
 0x10e   : > { %v726_v35 = vpop.f32.mrf.mxu0  ;;  %1020 = vst [vmem:[%s2236_s14 + $0xa8] sm:$0xff] %v972_v34 }
 0x10f   : > { %v926_v36 = vmul.f32 0.01, %v732_v33  ;;  %v727_v37 = vadd.f32 %v2229_v8, %v726_v35  ;;  %v971_v38 = vsel %vm875_vm6, %v717_v29, %v923_v32  ;;  %vm878_vm7 = vcmp.gt.f32.partialorder %v732_v33, 0.0 }
 0x110   : > { %v1825_v39 = vpop.f32.mrf.mxu0  ;;  %1019 = vst [vmem:[%s2236_s14 + $0xa0] sm:$0xff] %v971_v38  ;;  %1921 = vmatprep.mubr.f32.mxu1 %v971_v38 }
 0x111   : > { %v925_v40 = vmul.f32 0.01, %v727_v37  ;;  %v742_v41 = vadd.f32 %v1825_v39, %v2229_v8  ;;  %1922 = vmatmul.mubr.f32.gmra.mxu1 %v972_v34  ;;  %vm877_vm8 = vcmp.gt.f32.partialorder %v727_v37, 0.0  ;;  %v974_v42 = vsel %vm878_vm7, %v732_v33, %v926_v36 }
 0x112   : > { %v736_v43 = vpop.f32.mrf.mxu0  ;;  %1022 = vst [vmem:[%s2236_s14 + $0xb8] sm:$0xff] %v974_v42 }
 0x113   : > { %v928_v44 = vmul.f32 0.01, %v742_v41  ;;  %v737_v45 = vadd.f32 %v2229_v8, %v736_v43  ;;  %v973_v46 = vsel %vm877_vm8, %v727_v37, %v925_v40  ;;  %vm880_vm9 = vcmp.gt.f32.partialorder %v742_v41, 0.0 }
 0x114   : > { %v1828_v47 = vpop.f32.mrf.mxu0  ;;  %1021 = vst [vmem:[%s2236_s14 + $0xb0] sm:$0xff] %v973_v46  ;;  %1924 = vmatprep.mubr.f32.mxu1 %v973_v46 }
 0x115   : > { %v927_v48 = vmul.f32 0.01, %v737_v45  ;;  %v752_v49 = vadd.f32 %v1828_v47, %v2229_v8  ;;  %1925 = vmatmul.mubr.f32.gmra.mxu1 %v974_v42  ;;  %vm879_vm10 = vcmp.gt.f32.partialorder %v737_v45, 0.0  ;;  %v976_v50 = vsel %vm880_vm9, %v742_v41, %v928_v44 }
 0x116   : > { %v746_v51 = vpop.f32.mrf.mxu0  ;;  %1024 = vst [vmem:[%s2236_s14 + $0xc8] sm:$0xff] %v976_v50 }
 0x117   : > { %v930_v52 = vmul.f32 0.01, %v752_v49  ;;  %v747_v53 = vadd.f32 %v2229_v8, %v746_v51  ;;  %v975_v54 = vsel %vm879_vm10, %v737_v45, %v927_v48  ;;  %vm882_vm11 = vcmp.gt.f32.partialorder %v752_v49, 0.0 }
 0x118   : > { %v1831_v55 = vpop.f32.mrf.mxu0  ;;  %1023 = vst [vmem:[%s2236_s14 + $0xc0] sm:$0xff] %v975_v54  ;;  %1927 = vmatprep.mubr.f32.mxu1 %v975_v54 }
 0x119   : > { %v929_v56 = vmul.f32 0.01, %v747_v53  ;;  %v762_v57 = vadd.f32 %v1831_v55, %v2229_v8  ;;  %1928 = vmatmul.mubr.f32.gmra.mxu1 %v976_v50  ;;  %vm881_vm12 = vcmp.gt.f32.partialorder %v747_v53, 0.0  ;;  %v978_v58 = vsel %vm882_vm11, %v752_v49, %v930_v52 }
 0x11a   : > { %v756_v59 = vpop.f32.mrf.mxu0  ;;  %1026 = vst [vmem:[%s2236_s14 + $0xd8] sm:$0xff] %v978_v58 }
 0x11b   : > { %v932_v60 = vmul.f32 0.01, %v762_v57  ;;  %v757_v61 = vadd.f32 %v2229_v8, %v756_v59  ;;  %v977_v62 = vsel %vm881_vm12, %v747_v53, %v929_v56  ;;  %vm884_vm13 = vcmp.gt.f32.partialorder %v762_v57, 0.0 }
 0x11c   : > { %v1834_v63 = vpop.f32.mrf.mxu0  ;;  %1025 = vst [vmem:[%s2236_s14 + $0xd0] sm:$0xff] %v977_v62  ;;  %1930 = vmatprep.mubr.f32.mxu1 %v977_v62 }
 0x11d   : > { %v931_v0 = vmul.f32 0.01, %v757_v61  ;;  %v772_v1 = vadd.f32 %v1834_v63, %v2229_v8  ;;  %1931 = vmatmul.mubr.f32.gmra.mxu1 %v978_v58  ;;  %vm883_vm14 = vcmp.gt.f32.partialorder %v757_v61, 0.0  ;;  %v980_v2 = vsel %vm884_vm13, %v762_v57, %v932_v60 }
 0x11e   : > { %v766_v3 = vpop.f32.mrf.mxu0  ;;  %1028 = vst [vmem:[%s2236_s14 + $0xe8] sm:$0xff] %v980_v2 }
 0x11f   : > { %v934_v4 = vmul.f32 0.01, %v772_v1  ;;  %v767_v5 = vadd.f32 %v2229_v8, %v766_v3  ;;  %v979_v6 = vsel %vm883_vm14, %v757_v61, %v931_v0  ;;  %vm886_vm15 = vcmp.gt.f32.partialorder %v772_v1, 0.0 }
 0x120   : > { %v1837_v7 = vpop.f32.mrf.mxu0  ;;  %1027 = vst [vmem:[%s2236_s14 + $0xe0] sm:$0xff] %v979_v6  ;;  %1933 = vmatprep.mubr.f32.mxu1 %v979_v6 }
 0x121   : > { %v933_v9 = vmul.f32 0.01, %v767_v5  ;;  %v782_v10 = vadd.f32 %v1837_v7, %v2229_v8  ;;  %1934 = vmatmul.mubr.f32.gmra.mxu1 %v980_v2  ;;  %vm885_vm0 = vcmp.gt.f32.partialorder %v767_v5, 0.0  ;;  %v982_v11 = vsel %vm886_vm15, %v772_v1, %v934_v4 }
 0x122   : > { %v776_v12 = vpop.f32.mrf.mxu0  ;;  %1030 = vst [vmem:[%s2236_s14 + $0xf8] sm:$0xff] %v982_v11 }
 0x123   : > { %v936_v13 = vmul.f32 0.01, %v782_v10  ;;  %v777_v14 = vadd.f32 %v2229_v8, %v776_v12  ;;  %v981_v15 = vsel %vm885_vm0, %v767_v5, %v933_v9  ;;  %vm888_vm1 = vcmp.gt.f32.partialorder %v782_v10, 0.0 }
 0x124   : > { %v1840_v16 = vpop.f32.mrf.mxu0  ;;  %1029 = vst [vmem:[%s2236_s14 + $0xf0] sm:$0xff] %v981_v15  ;;  %1936 = vmatprep.mubr.f32.mxu1 %v981_v15 }
 0x125   : > { %v935_v17 = vmul.f32 0.01, %v777_v14  ;;  %v792_v18 = vadd.f32 %v1840_v16, %v2229_v8  ;;  %1937 = vmatmul.mubr.f32.gmra.mxu1 %v982_v11  ;;  %vm887_vm2 = vcmp.gt.f32.partialorder %v777_v14, 0.0  ;;  %v984_v19 = vsel %vm888_vm1, %v782_v10, %v936_v13 }
 0x126   : > { %v786_v20 = vpop.f32.mrf.mxu0  ;;  %1032 = vst [vmem:[%s2236_s14 + $0x108] sm:$0xff] %v984_v19 }
 0x127   : > { %v938_v21 = vmul.f32 0.01, %v792_v18  ;;  %v787_v22 = vadd.f32 %v2229_v8, %v786_v20  ;;  %v983_v23 = vsel %vm887_vm2, %v777_v14, %v935_v17  ;;  %vm890_vm3 = vcmp.gt.f32.partialorder %v792_v18, 0.0 }
 0x128   : > { %v1843_v24 = vpop.f32.mrf.mxu0  ;;  %1031 = vst [vmem:[%s2236_s14 + $0x100] sm:$0xff] %v983_v23  ;;  %1939 = vmatprep.mubr.f32.mxu1 %v983_v23 }
 0x129   : > { %v937_v25 = vmul.f32 0.01, %v787_v22  ;;  %v802_v26 = vadd.f32 %v1843_v24, %v2229_v8  ;;  %1940 = vmatmul.mubr.f32.gmra.mxu1 %v984_v19  ;;  %vm889_vm4 = vcmp.gt.f32.partialorder %v787_v22, 0.0  ;;  %v986_v27 = vsel %vm890_vm3, %v792_v18, %v938_v21 }
 0x12a   : > { %v796_v28 = vpop.f32.mrf.mxu0  ;;  %1034 = vst [vmem:[%s2236_s14 + $0x118] sm:$0xff] %v986_v27 }
 0x12b   : > { %v940_v29 = vmul.f32 0.01, %v802_v26  ;;  %v797_v30 = vadd.f32 %v2229_v8, %v796_v28  ;;  %v985_v31 = vsel %vm889_vm4, %v787_v22, %v937_v25  ;;  %vm892_vm5 = vcmp.gt.f32.partialorder %v802_v26, 0.0 }
 0x12c   : > { %v1846_v32 = vpop.f32.mrf.mxu0  ;;  %1033 = vst [vmem:[%s2236_s14 + $0x110] sm:$0xff] %v985_v31  ;;  %1942 = vmatprep.mubr.f32.mxu1 %v985_v31 }
 0x12d   : > { %v939_v33 = vmul.f32 0.01, %v797_v30  ;;  %v812_v34 = vadd.f32 %v1846_v32, %v2229_v8  ;;  %1943 = vmatmul.mubr.f32.gmra.mxu1 %v986_v27  ;;  %vm891_vm6 = vcmp.gt.f32.partialorder %v797_v30, 0.0  ;;  %v988_v35 = vsel %vm892_vm5, %v802_v26, %v940_v29 }
 0x12e   : > { %v806_v36 = vpop.f32.mrf.mxu0  ;;  %1036 = vst [vmem:[%s2236_s14 + $0x128] sm:$0xff] %v988_v35 }
 0x12f   : > { %v942_v37 = vmul.f32 0.01, %v812_v34  ;;  %v807_v38 = vadd.f32 %v2229_v8, %v806_v36  ;;  %v987_v39 = vsel %vm891_vm6, %v797_v30, %v939_v33  ;;  %vm894_vm7 = vcmp.gt.f32.partialorder %v812_v34, 0.0 }
 0x130   : > { %v1849_v40 = vpop.f32.mrf.mxu0  ;;  %1035 = vst [vmem:[%s2236_s14 + $0x120] sm:$0xff] %v987_v39  ;;  %1945 = vmatprep.mubr.f32.mxu1 %v987_v39 }
 0x131   : > { %v941_v41 = vmul.f32 0.01, %v807_v38  ;;  %v822_v42 = vadd.f32 %v1849_v40, %v2229_v8  ;;  %1946 = vmatmul.mubr.f32.gmra.mxu1 %v988_v35  ;;  %vm893_vm8 = vcmp.gt.f32.partialorder %v807_v38, 0.0  ;;  %v990_v43 = vsel %vm894_vm7, %v812_v34, %v942_v37 }
 0x132   : > { %v816_v44 = vpop.f32.mrf.mxu0  ;;  %1038 = vst [vmem:[%s2236_s14 + $0x138] sm:$0xff] %v990_v43 }
 0x133   : > { %v944_v45 = vmul.f32 0.01, %v822_v42  ;;  %v817_v46 = vadd.f32 %v2229_v8, %v816_v44  ;;  %v989_v47 = vsel %vm893_vm8, %v807_v38, %v941_v41  ;;  %vm896_vm9 = vcmp.gt.f32.partialorder %v822_v42, 0.0 }
 0x134   : > { %v1852_v48 = vpop.f32.mrf.mxu0  ;;  %1037 = vst [vmem:[%s2236_s14 + $0x130] sm:$0xff] %v989_v47  ;;  %1948 = vmatprep.mubr.f32.mxu1 %v989_v47 }
 0x135   : > { %v943_v49 = vmul.f32 0.01, %v817_v46  ;;  %v832_v50 = vadd.f32 %v1852_v48, %v2229_v8  ;;  %1949 = vmatmul.mubr.f32.gmra.mxu1 %v990_v43  ;;  %vm895_vm10 = vcmp.gt.f32.partialorder %v817_v46, 0.0  ;;  %v992_v51 = vsel %vm896_vm9, %v822_v42, %v944_v45 }
 0x136   : > { %v826_v52 = vpop.f32.mrf.mxu0  ;;  %1040 = vst [vmem:[%s2236_s14 + $0x148] sm:$0xff] %v992_v51 }
 0x137   : > { %v946_v53 = vmul.f32 0.01, %v832_v50  ;;  %v827_v54 = vadd.f32 %v2229_v8, %v826_v52  ;;  %v991_v55 = vsel %vm895_vm10, %v817_v46, %v943_v49  ;;  %vm898_vm11 = vcmp.gt.f32.partialorder %v832_v50, 0.0 }
 0x138   : > { %v1855_v56 = vpop.f32.mrf.mxu0  ;;  %1039 = vst [vmem:[%s2236_s14 + $0x140] sm:$0xff] %v991_v55  ;;  %1951 = vmatprep.mubr.f32.mxu1 %v991_v55 }
 0x139   : > { %v945_v57 = vmul.f32 0.01, %v827_v54  ;;  %v842_v58 = vadd.f32 %v1855_v56, %v2229_v8  ;;  %1952 = vmatmul.mubr.f32.gmra.mxu1 %v992_v51  ;;  %vm897_vm12 = vcmp.gt.f32.partialorder %v827_v54, 0.0  ;;  %v994_v59 = vsel %vm898_vm11, %v832_v50, %v946_v53 }
 0x13a   : > { %v836_v60 = vpop.f32.mrf.mxu0  ;;  %1042 = vst [vmem:[%s2236_s14 + $0x158] sm:$0xff] %v994_v59 }
 0x13b   : > { %v948_v61 = vmul.f32 0.01, %v842_v58  ;;  %v837_v62 = vadd.f32 %v2229_v8, %v836_v60  ;;  %v993_v63 = vsel %vm897_vm12, %v827_v54, %v945_v57  ;;  %vm900_vm13 = vcmp.gt.f32.partialorder %v842_v58, 0.0 }
 0x13c   : > { %v1858_v0 = vpop.f32.mrf.mxu0  ;;  %1041 = vst [vmem:[%s2236_s14 + $0x150] sm:$0xff] %v993_v63  ;;  %1954 = vmatprep.mubr.f32.mxu1 %v993_v63 }
 0x13d   : > { %v947_v1 = vmul.f32 0.01, %v837_v62  ;;  %v852_v2 = vadd.f32 %v1858_v0, %v2229_v8  ;;  %1955 = vmatmul.mubr.f32.gmra.mxu1 %v994_v59  ;;  %vm899_vm14 = vcmp.gt.f32.partialorder %v837_v62, 0.0  ;;  %v996_v3 = vsel %vm900_vm13, %v842_v58, %v948_v61 }
 0x13e   : > { %v846_v4 = vpop.f32.mrf.mxu0  ;;  %1044 = vst [vmem:[%s2236_s14 + $0x168] sm:$0xff] %v996_v3 }
 0x13f   : > { %v950_v5 = vmul.f32 0.01, %v852_v2  ;;  %v847_v6 = vadd.f32 %v2229_v8, %v846_v4  ;;  %v995_v7 = vsel %vm899_vm14, %v837_v62, %v947_v1  ;;  %vm902_vm15 = vcmp.gt.f32.partialorder %v852_v2, 0.0 }
 0x140   : > { %1043 = vst [vmem:[%s2236_s14 + $0x160] sm:$0xff] %v995_v7  ;;  %1957 = vmatprep.mubr.f32.mxu1 %v995_v7 }
 0x141   : > { %v949_v9 = vmul.f32 0.01, %v847_v6  ;;  %1958 = vmatmul.mubr.f32.gmra.mxu1 %v996_v3  ;;  %vm901_vm0 = vcmp.gt.f32.partialorder %v847_v6, 0.0  ;;  %v998_v10 = vsel %vm902_vm15, %v852_v2, %v950_v5 }
 0x142   : > { %1046 = vst [vmem:[%s2236_s14 + $0x178] sm:$0xff] %v998_v10 }
 0x143   : > { %v997_v11 = vsel %vm901_vm0, %v847_v6, %v949_v9 }
 0x144   : > { %1045 = vst [vmem:[%s2236_s14 + $0x170] sm:$0xff] %v997_v11  ;;  %1960 = vmatprep.mubr.f32.mxu1 %v997_v11 }
 0x145   : > { %1961 = vmatmul.mubr.f32.gmra.mxu1 %v998_v10 }
 0x1a9   : > { %v1893_v8 = vpop.f32.mrf.mxu0 }
 0x1aa   : > { %1369 = vst [vmem:[%s2337_s17 + $0x8] sm:$0xff] %v1893_v8 }
 0x1ab   : > { %v1129_v12 = vpop.f32.mrf.mxu0 }
 0x1ac   : > { %1368 = vst [vmem:[%s2337_s17] sm:$0xff] %v1129_v12 }
 0x1ad   : > { %v1896_v13 = vpop.f32.mrf.mxu0 }
 0x1ae   : > { %1371 = vst [vmem:[%s2337_s17 + $0x18] sm:$0xff] %v1896_v13 }
 0x1af   : > { %v1139_v14 = vpop.f32.mrf.mxu0 }
 0x1b0   : > { %1370 = vst [vmem:[%s2337_s17 + $0x10] sm:$0xff] %v1139_v14 }
 0x1b1   : > { %v1899_v15 = vpop.f32.mrf.mxu1 }
 0x1b2   : > { %1373 = vst [vmem:[%s2337_s17 + $0x28] sm:$0xff] %v1899_v15 }
 0x1b3   : > { %v1149_v16 = vpop.f32.mrf.mxu1 }
 0x1b4   : > { %1372 = vst [vmem:[%s2337_s17 + $0x20] sm:$0xff] %v1149_v16 }
 0x1b5   : > { %v1902_v17 = vpop.f32.mrf.mxu1 }
 0x1b6   : > { %1375 = vst [vmem:[%s2337_s17 + $0x38] sm:$0xff] %v1902_v17 }
 0x1b7   : > { %v1159_v18 = vpop.f32.mrf.mxu1 }
 0x1b8   : > { %1374 = vst [vmem:[%s2337_s17 + $0x30] sm:$0xff] %v1159_v18 }
 0x1b9   : > { %v1905_v19 = vpop.f32.mrf.mxu1 }
 0x1ba   : > { %1377 = vst [vmem:[%s2337_s17 + $0x48] sm:$0xff] %v1905_v19 }
 0x1bb   : > { %v1169_v20 = vpop.f32.mrf.mxu1 }
 0x1bc   : > { %1376 = vst [vmem:[%s2337_s17 + $0x40] sm:$0xff] %v1169_v20 }
 0x1bd   : > { %v1908_v21 = vpop.f32.mrf.mxu1 }
 0x1be   : > { %1379 = vst [vmem:[%s2337_s17 + $0x58] sm:$0xff] %v1908_v21 }
 0x1bf   : > { %v1179_v22 = vpop.f32.mrf.mxu1 }
 0x1c0   : > { %1378 = vst [vmem:[%s2337_s17 + $0x50] sm:$0xff] %v1179_v22 }
 0x1c1   : > { %v1911_v23 = vpop.f32.mrf.mxu1 }
 0x1c2   : > { %1381 = vst [vmem:[%s2337_s17 + $0x68] sm:$0xff] %v1911_v23 }
 0x1c3   : > { %v1189_v24 = vpop.f32.mrf.mxu1 }
 0x1c4   : > { %1380 = vst [vmem:[%s2337_s17 + $0x60] sm:$0xff] %v1189_v24 }
 0x1c5   : > { %v1914_v25 = vpop.f32.mrf.mxu1 }
 0x1c6   : > { %1383 = vst [vmem:[%s2337_s17 + $0x78] sm:$0xff] %v1914_v25 }
 0x1c7   : > { %v1199_v26 = vpop.f32.mrf.mxu1 }
 0x1c8   : > { %1382 = vst [vmem:[%s2337_s17 + $0x70] sm:$0xff] %v1199_v26 }
 0x1c9   : > { %v1917_v27 = vpop.f32.mrf.mxu1 }
 0x1ca   : > { %1385 = vst [vmem:[%s2337_s17 + $0x88] sm:$0xff] %v1917_v27 }
 0x1cb   : > { %v1209_v28 = vpop.f32.mrf.mxu1 }
 0x1cc   : > { %1384 = vst [vmem:[%s2337_s17 + $0x80] sm:$0xff] %v1209_v28 }
 0x1cd   : > { %v1920_v29 = vpop.f32.mrf.mxu1 }
 0x1ce   : > { %1387 = vst [vmem:[%s2337_s17 + $0x98] sm:$0xff] %v1920_v29 }
 0x1cf   : > { %v1219_v30 = vpop.f32.mrf.mxu1 }
 0x1d0   : > { %1386 = vst [vmem:[%s2337_s17 + $0x90] sm:$0xff] %v1219_v30 }
 0x1d1   : > { %v1923_v31 = vpop.f32.mrf.mxu1 }
 0x1d2   : > { %1389 = vst [vmem:[%s2337_s17 + $0xa8] sm:$0xff] %v1923_v31 }
 0x1d3   : > { %v1229_v32 = vpop.f32.mrf.mxu1 }
 0x1d4   : > { %1388 = vst [vmem:[%s2337_s17 + $0xa0] sm:$0xff] %v1229_v32 }
 0x1d5   : > { %v1926_v33 = vpop.f32.mrf.mxu1 }
 0x1d6   : > { %1391 = vst [vmem:[%s2337_s17 + $0xb8] sm:$0xff] %v1926_v33 }
 0x1d7   : > { %v1239_v34 = vpop.f32.mrf.mxu1 }
 0x1d8   : > { %1390 = vst [vmem:[%s2337_s17 + $0xb0] sm:$0xff] %v1239_v34 }
 0x1d9   : > { %v1929_v35 = vpop.f32.mrf.mxu1 }
 0x1da   : > { %1393 = vst [vmem:[%s2337_s17 + $0xc8] sm:$0xff] %v1929_v35 }
 0x1db   : > { %v1249_v36 = vpop.f32.mrf.mxu1 }
 0x1dc   : > { %1392 = vst [vmem:[%s2337_s17 + $0xc0] sm:$0xff] %v1249_v36 }
 0x1dd   : > { %v1932_v37 = vpop.f32.mrf.mxu1 }
 0x1de   : > { %1395 = vst [vmem:[%s2337_s17 + $0xd8] sm:$0xff] %v1932_v37 }
 0x1df   : > { %v1259_v38 = vpop.f32.mrf.mxu1 }
 0x1e0   : > { %1394 = vst [vmem:[%s2337_s17 + $0xd0] sm:$0xff] %v1259_v38 }
 0x1e1   : > { %v1935_v39 = vpop.f32.mrf.mxu1 }
 0x1e2   : > { %1397 = vst [vmem:[%s2337_s17 + $0xe8] sm:$0xff] %v1935_v39 }
 0x1e3   : > { %v1269_v40 = vpop.f32.mrf.mxu1 }
 0x1e4   : > { %1396 = vst [vmem:[%s2337_s17 + $0xe0] sm:$0xff] %v1269_v40 }
 0x1e5   : > { %v1938_v41 = vpop.f32.mrf.mxu1 }
 0x1e6   : > { %1399 = vst [vmem:[%s2337_s17 + $0xf8] sm:$0xff] %v1938_v41 }
 0x1e7   : > { %v1279_v42 = vpop.f32.mrf.mxu1 }
 0x1e8   : > { %1398 = vst [vmem:[%s2337_s17 + $0xf0] sm:$0xff] %v1279_v42 }
 0x1e9   : > { %v1941_v43 = vpop.f32.mrf.mxu1 }
 0x1ea   : > { %1401 = vst [vmem:[%s2337_s17 + $0x108] sm:$0xff] %v1941_v43 }
 0x1eb   : > { %v1289_v44 = vpop.f32.mrf.mxu1 }
 0x1ec   : > { %1400 = vst [vmem:[%s2337_s17 + $0x100] sm:$0xff] %v1289_v44 }
 0x1ed   : > { %v1944_v45 = vpop.f32.mrf.mxu1 }
 0x1ee   : > { %1403 = vst [vmem:[%s2337_s17 + $0x118] sm:$0xff] %v1944_v45 }
 0x1ef   : > { %v1299_v46 = vpop.f32.mrf.mxu1 }
 0x1f0   : > { %1402 = vst [vmem:[%s2337_s17 + $0x110] sm:$0xff] %v1299_v46 }
 0x1f1   : > { %v1947_v47 = vpop.f32.mrf.mxu1 }
 0x1f2   : > { %1405 = vst [vmem:[%s2337_s17 + $0x128] sm:$0xff] %v1947_v47 }
 0x1f3   : > { %v1309_v48 = vpop.f32.mrf.mxu1 }
 0x1f4   : > { %1404 = vst [vmem:[%s2337_s17 + $0x120] sm:$0xff] %v1309_v48 }
 0x1f5   : > { %v1950_v49 = vpop.f32.mrf.mxu1 }
 0x1f6   : > { %1407 = vst [vmem:[%s2337_s17 + $0x138] sm:$0xff] %v1950_v49 }
 0x1f7   : > { %v1319_v50 = vpop.f32.mrf.mxu1 }
 0x1f8   : > { %1406 = vst [vmem:[%s2337_s17 + $0x130] sm:$0xff] %v1319_v50 }
 0x1f9   : > { %v1953_v51 = vpop.f32.mrf.mxu1 }
 0x1fa   : > { %1409 = vst [vmem:[%s2337_s17 + $0x148] sm:$0xff] %v1953_v51 }
 0x1fb   : > { %v1329_v52 = vpop.f32.mrf.mxu1 }
 0x1fc   : > { %1408 = vst [vmem:[%s2337_s17 + $0x140] sm:$0xff] %v1329_v52 }
 0x1fd   : > { %v1956_v53 = vpop.f32.mrf.mxu1 }
 0x1fe   : > { %1411 = vst [vmem:[%s2337_s17 + $0x158] sm:$0xff] %v1956_v53 }
 0x1ff   : > { %v1339_v54 = vpop.f32.mrf.mxu1 }
 0x200   : > { %1410 = vst [vmem:[%s2337_s17 + $0x150] sm:$0xff] %v1339_v54 }
 0x201   : > { %v1959_v55 = vpop.f32.mrf.mxu1 }
 0x202   : > { %1413 = vst [vmem:[%s2337_s17 + $0x168] sm:$0xff] %v1959_v55 }
 0x203   : > { %v1349_v56 = vpop.f32.mrf.mxu1 }
 0x204   : > { %1412 = vst [vmem:[%s2337_s17 + $0x160] sm:$0xff] %v1349_v56 }
 0x205   : > { %v1962_v57 = vpop.f32.mrf.mxu1 }
 0x206   : > { %1415 = vst [vmem:[%s2337_s17 + $0x178] sm:$0xff] %v1962_v57 }
 0x207   : > { %v1359_v58 = vpop.f32.mrf.mxu1 }
 0x208   : > { %1414 = vst [vmem:[%s2337_s17 + $0x170] sm:$0xff] %v1359_v58 }
 0x209 PF: > { %s16_s20 = sadd.s32 1, %s2042_s20   ;;  %s2402_s18 = smov %s2038_s19 }
 0x20a   : > { %p13_p5 = scmp.ge.s32.totalorder %s16_s20, 4   ;;  %s2403_s19 = smov %s2405_s21 }
 0x20c   :  { %15 = sbr.rel (!%p13_p5) target bundleno = 2 (0x2), region = 87 }

// kernel: edge_predictor_forward.3
= control target key start
LH: loop header
LB: loop body
LE: loop exit
PB: predicated region body
PF: predicated region fallthrough
CT: control target
= control target key end

     0   :  { %s6148_s15 = smov 0   ;;  %s9689_s0 = inlined_call_operand.vmem [shape: s32[1024,1], index: 0, kind: input, shape index: {}]   ;;  %s9690_s1 = inlined_call_operand.vmem [shape: s32[1024,1], index: 1, kind: input, shape index: {}]   ;;  %s9691_s2 = inlined_call_operand.vmem [shape: f32[2,384,128], index: 2, kind: input, shape index: {}]   ;;  %s9692_s3 = inlined_call_operand.vmem [shape: f32[1,128], index: 3, kind: input, shape index: {}]   ;;  %s9693_s4 = inlined_call_operand.vmem [shape: f32[1024,128], index: 4, kind: output, shape index: {}]  }
   0x1 LB: > { %s4564_s16 = sadd.s32 4294967295, %s6118_s15   ;;  %p4568_p0 = scmp.ge.s32.totalorder %s6118_s15, 1  ;;  %s6118_s15 = sphi %s6148_s15, %s14_s15  }
   0x2   : > { %p174_p1 = scmp.lt.s32.totalorder %s6118_s15, 3 }
   0x4   : > { %p175_p2 = pnand %p4568_p0, %p174_p1 }
   0x6   : > { %178 = sbr.rel (%p175_p2) target bundleno = 1065 (0x429), region = 36 }
   0xb   : > { %s4569_s17 = sshll.u32 %s4564_s16, 6  ;;  %v4974_v0 = vld [vmem:[%s9691_s2 + $0x1f8] sm:$0xff]  ;;  %v6120_v1 = vmov 0   ;;  %v6121_v2 = vmov 0.0   ;;  %v4973_v3 = vld [vmem:[%s9691_s2 + $0x1f0] sm:$0xff]  ;;  %v4972_v4 = vld [vmem:[%s9691_s2 + $0x1e8] sm:$0xff] }
   0xc   : > { %5854 = vset.pattern.permute.xlu1 %v6120_v1  ;;  %5853 = vset.pattern.permute.xlu0 %v6120_v1  ;;  %p206_p3 = scmp.lt.s32.totalorder %s4569_s17, 127  ;;  %v5006_v5 = vld [vmem:[%s9691_s2 + $0x2f8] sm:$0xff]  ;;  %v5005_v6 = vld [vmem:[%s9691_s2 + $0x2f0] sm:$0xff]  ;;  %v4971_v9 = vld [vmem:[%s9691_s2 + $0x1e0] sm:$0xff] }
   0xd   : > { %1988 = vmatprep.subr.mxu0 %v6121_v2  ;;  %5554 = vmatprep.subr.mxu1 %v5006_v5  ;;  %v4970_v12 = vld [vmem:[%s9691_s2 + $0x1d8] sm:$0xff]  ;;  %v4969_v13 = vld [vmem:[%s9691_s2 + $0x1d0] sm:$0xff]  ;;  %v4968_v16 = vld [vmem:[%s9691_s2 + $0x1c8] sm:$0xff] }
   0xe   : > { %s9917_s17 = smov (!%p206_p3, %s4569_s17), 127  ;;  %1989 = vmatpush1.msra.mxu0 %v4974_v0  ;;  %5555 = vmatpush3.msra.mxu1 %v5006_v5  ;;  %v4967_v19 = vld [vmem:[%s9691_s2 + $0x1c0] sm:$0xff]  ;;  %v4966_v20 = vld [vmem:[%s9691_s2 + $0x1b8] sm:$0xff]  ;;  %v4965_v23 = vld [vmem:[%s9691_s2 + $0x1b0] sm:$0xff] }
   0xf   : > { %1990 = vmatprep.subr.mxu0 %v6121_v2  ;;  %s6167_s24 = sshll.u32 %s9917_s17, 3  ;;  %5556 = vmatprep.subr.mxu1 %v5005_v6  ;;  %v5004_v24 = vld [vmem:[%s9691_s2 + $0x2e8] sm:$0xff]  ;;  %v5003_v27 = vld [vmem:[%s9691_s2 + $0x2e0] sm:$0xff]  ;;  %v5002_v29 = vld [vmem:[%s9691_s2 + $0x2d8] sm:$0xff] }
  0x10   : > { %1991 = vmatpush1.msra.mxu0 %v4973_v3  ;;  %s6176_s29 = scalar_lea.vmem %s9690_s1, %s6167_s24  ;;  %5557 = vmatpush3.msra.mxu1 %v5005_v6  ;;  %v4964_v28 = vld [vmem:[%s9691_s2 + $0x1a8] sm:$0xff]  ;;  %v4963_v30 = vld [vmem:[%s9691_s2 + $0x1a0] sm:$0xff]  ;;  %v5001_v33 = vld [vmem:[%s9691_s2 + $0x2d0] sm:$0xff]  ;;  %s6423_s30 = scalar_lea.vmem %s9689_s0, %s6167_s24 }
  0x11   : > { %1992 = vmatprep.subr.mxu0 %v6121_v2  ;;  %v1061_v7 = vld [vmem:[%s6176_s29 + $0x10] sm:$0xff]  ;;  %v1059_v8 = vld [vmem:[%s6176_s29] sm:$0xff]  ;;  %v1062_v10 = vld [vmem:[%s6176_s29 + $0x18] sm:$0xff]  ;;  %5558 = vmatprep.subr.mxu1 %v5004_v24  ;;  %s9428_s11 = scalar_lea.vmem %s9693_s4, %s6167_s24 }
  0x12   : > { %1993 = vmatpush1.msra.mxu0 %v4972_v4  ;;  %1130 = vperm.xlu1 %5854, %v1061_v7   ;;  %v1060_v11 = vld [vmem:[%s6176_s29 + $0x8] sm:$0xff]  ;;  %v1063_v15 = vld [vmem:[%s6176_s29 + $0x20] sm:$0xff]  ;;  %v1066_v17 = vld [vmem:[%s6176_s29 + $0x38] sm:$0xff] }
  0x13   : > { %1124 = vperm.xlu0 %5853, %v1059_v8   ;;  %1994 = vmatprep.subr.mxu0 %v6121_v2  ;;  %v1064_v14 = vld [vmem:[%s6176_s29 + $0x28] sm:$0xff]  ;;  %v1065_v18 = vld [vmem:[%s6176_s29 + $0x30] sm:$0xff]  ;;  %v1067_v22 = vld [vmem:[%s6176_s29 + $0x40] sm:$0xff] }
  0x14   : > { %1995 = vmatpush1.msra.mxu0 %v4971_v9  ;;  %v1068_v21 = vld [vmem:[%s6176_s29 + $0x48] sm:$0xff]  ;;  %v1070_v25 = vld [vmem:[%s6176_s29 + $0x58] sm:$0xff]  ;;  %v1069_v26 = vld [vmem:[%s6176_s29 + $0x50] sm:$0xff]  ;;  %5559 = vmatpush3.msra.mxu1 %v5004_v24 }
  0x15   : > { %1996 = vmatprep.subr.mxu0 %v6121_v2  ;;  %5560 = vmatprep.subr.mxu1 %v5003_v27  ;;  %v1072_v31 = vld [vmem:[%s6176_s29 + $0x68] sm:$0xff]  ;;  %v1071_v32 = vld [vmem:[%s6176_s29 + $0x60] sm:$0xff]  ;;  %v4962_v34 = vld [vmem:[%s9691_s2 + $0x198] sm:$0xff] }
  0x16   : > { %1133 = vperm.xlu1 %5854, %v1062_v10   ;;  %1997 = vmatpush1.msra.mxu0 %v4970_v12  ;;  %v5000_v35 = vld [vmem:[%s9691_s2 + $0x2c8] sm:$0xff]  ;;  %v1074_v36 = vld [vmem:[%s6176_s29 + $0x78] sm:$0xff]  ;;  %v1073_v37 = vld [vmem:[%s6176_s29 + $0x70] sm:$0xff] }
  0x17   : > { %1127 = vperm.xlu0 %5853, %v1060_v11   ;;  %1998 = vmatprep.subr.mxu0 %v6121_v2  ;;  %v4961_v38 = vld [vmem:[%s9691_s2 + $0x190] sm:$0xff]  ;;  %v4999_v39 = vld [vmem:[%s9691_s2 + $0x2c0] sm:$0xff]  ;;  %v4960_v40 = vld [vmem:[%s9691_s2 + $0x188] sm:$0xff] }
  0x18   : > { %1999 = vmatpush1.msra.mxu0 %v4969_v13  ;;  %5561 = vmatpush3.msra.mxu1 %v5003_v27  ;;  %v1076_v41 = vld [vmem:[%s6176_s29 + $0x88] sm:$0xff]  ;;  %v1075_v42 = vld [vmem:[%s6176_s29 + $0x80] sm:$0xff]  ;;  %v4998_v43 = vld [vmem:[%s9691_s2 + $0x2b8] sm:$0xff] }
  0x19   : > { %2000 = vmatprep.subr.mxu0 %v6121_v2  ;;  %5562 = vmatprep.subr.mxu1 %v5002_v29  ;;  %v4959_v44 = vld [vmem:[%s9691_s2 + $0x180] sm:$0xff]  ;;  %v4997_v45 = vld [vmem:[%s9691_s2 + $0x2b0] sm:$0xff]  ;;  %v1078_v46 = vld [vmem:[%s6176_s29 + $0x98] sm:$0xff] }
  0x1a   : > { %1139 = vperm.xlu1 %5854, %v1064_v14   ;;  %2001 = vmatpush1.msra.mxu0 %v4968_v16  ;;  %v1077_v47 = vld [vmem:[%s6176_s29 + $0x90] sm:$0xff]  ;;  %v4990_v48 = vld [vmem:[%s9691_s2 + $0x278] sm:$0xff]  ;;  %v4996_v49 = vld [vmem:[%s9691_s2 + $0x2a8] sm:$0xff] }
  0x1b   : > { %1136 = vperm.xlu0 %5853, %v1063_v15   ;;  %2002 = vmatprep.subr.mxu0 %v6121_v2  ;;  %v4989_v50 = vld [vmem:[%s9691_s2 + $0x270] sm:$0xff]  ;;  %v1080_v51 = vld [vmem:[%s6176_s29 + $0xa8] sm:$0xff]  ;;  %v1079_v52 = vld [vmem:[%s6176_s29 + $0xa0] sm:$0xff] }
  0x1c   : > { %2003 = vmatpush1.msra.mxu0 %v4967_v19  ;;  %5563 = vmatpush3.msra.mxu1 %v5002_v29  ;;  %v4995_v53 = vld [vmem:[%s9691_s2 + $0x2a0] sm:$0xff]  ;;  %v4988_v54 = vld [vmem:[%s9691_s2 + $0x268] sm:$0xff]  ;;  %v4994_v55 = vld [vmem:[%s9691_s2 + $0x298] sm:$0xff] }
  0x1d   : > { %2004 = vmatprep.subr.mxu0 %v6121_v2  ;;  %5564 = vmatprep.subr.mxu1 %v5001_v33  ;;  %v1082_v56 = vld [vmem:[%s6176_s29 + $0xb8] sm:$0xff]  ;;  %v1081_v57 = vld [vmem:[%s6176_s29 + $0xb0] sm:$0xff]  ;;  %v4987_v58 = vld [vmem:[%s9691_s2 + $0x260] sm:$0xff] }
  0x1e   : > { %1145 = vperm.xlu1 %5854, %v1066_v17   ;;  %2005 = vmatpush1.msra.mxu0 %v4966_v20  ;;  %v4993_v59 = vld [vmem:[%s9691_s2 + $0x290] sm:$0xff]  ;;  %v4986_v60 = vld [vmem:[%s9691_s2 + $0x258] sm:$0xff]  ;;  %v1084_v61 = vld [vmem:[%s6176_s29 + $0xc8] sm:$0xff] }
  0x1f   : > { %1142 = vperm.xlu0 %5853, %v1065_v18   ;;  %2006 = vmatprep.subr.mxu0 %v6121_v2  ;;  %v1083_v62 = vld [vmem:[%s6176_s29 + $0xc0] sm:$0xff]  ;;  %v4992_v63 = vld [vmem:[%s9691_s2 + $0x288] sm:$0xff]  ;;  %v4985_v0 = vld [vmem:[%s9691_s2 + $0x250] sm:$0xff] }
  0x20   : > { %2007 = vmatpush1.msra.mxu0 %v4965_v23  ;;  %5565 = vmatpush3.msra.mxu1 %v5001_v33  ;;  %v4991_v1 = vld [vmem:[%s9691_s2 + $0x280] sm:$0xff]  ;;  %v1086_v3 = vld [vmem:[%s6176_s29 + $0xd8] sm:$0xff]  ;;  %v1085_v4 = vld [vmem:[%s6176_s29 + $0xd0] sm:$0xff] }
  0x21   : > { %2008 = vmatprep.subr.mxu0 %v6121_v2  ;;  %5566 = vmatprep.subr.mxu1 %v5000_v35  ;;  %v4984_v5 = vld [vmem:[%s9691_s2 + $0x248] sm:$0xff]  ;;  %v4983_v6 = vld [vmem:[%s9691_s2 + $0x240] sm:$0xff]  ;;  %v4982_v9 = vld [vmem:[%s9691_s2 + $0x238] sm:$0xff] }
  0x22   : > { %1151 = vperm.xlu1 %5854, %v1068_v21   ;;  %2009 = vmatpush1.msra.mxu0 %v4964_v28  ;;  %v1088_v7 = vld [vmem:[%s6176_s29 + $0xe8] sm:$0xff]  ;;  %v1087_v8 = vld [vmem:[%s6176_s29 + $0xe0] sm:$0xff]  ;;  %v1090_v10 = vld [vmem:[%s6176_s29 + $0xf8] sm:$0xff] }
  0x23   : > { %1148 = vperm.xlu0 %5853, %v1067_v22   ;;  %2010 = vmatprep.subr.mxu0 %v6121_v2  ;;  %v1089_v11 = vld [vmem:[%s6176_s29 + $0xf0] sm:$0xff]  ;;  %v4980_v13 = vld [vmem:[%s9691_s2 + $0x228] sm:$0xff]  ;;  %v1091_v15 = vld [vmem:[%s6176_s29 + $0x100] sm:$0xff] }
  0x24   : > { %2011 = vmatpush1.msra.mxu0 %v4963_v30  ;;  %5567 = vmatpush3.msra.mxu1 %v5000_v35  ;;  %v4981_v12 = vld [vmem:[%s9691_s2 + $0x230] sm:$0xff]  ;;  %v1092_v14 = vld [vmem:[%s6176_s29 + $0x108] sm:$0xff]  ;;  %v4979_v16 = vld [vmem:[%s9691_s2 + $0x220] sm:$0xff] }
  0x25   : > { %2012 = vmatprep.subr.mxu0 %v6121_v2  ;;  %5568 = vmatprep.subr.mxu1 %v4999_v39  ;;  %v1094_v17 = vld [vmem:[%s6176_s29 + $0x118] sm:$0xff]  ;;  %v1093_v18 = vld [vmem:[%s6176_s29 + $0x110] sm:$0xff]  ;;  %v1096_v21 = vld [vmem:[%s6176_s29 + $0x128] sm:$0xff] }
  0x26   : > { %1157 = vperm.xlu1 %5854, %v1070_v25   ;;  %2013 = vmatpush1.msra.mxu0 %v4962_v34  ;;  %v4978_v19 = vld [vmem:[%s9691_s2 + $0x218] sm:$0xff]  ;;  %v4977_v20 = vld [vmem:[%s9691_s2 + $0x210] sm:$0xff]  ;;  %v1095_v22 = vld [vmem:[%s6176_s29 + $0x120] sm:$0xff] }
  0x27   : > { %1154 = vperm.xlu0 %5853, %v1069_v26   ;;  %2014 = vmatprep.subr.mxu0 %v6121_v2  ;;  %v4976_v23 = vld [vmem:[%s9691_s2 + $0x208] sm:$0xff]  ;;  %v1098_v24 = vld [vmem:[%s6176_s29 + $0x138] sm:$0xff]  ;;  %v1097_v25 = vld [vmem:[%s6176_s29 + $0x130] sm:$0xff] }
  0x28   : > { %2015 = vmatpush1.msra.mxu0 %v4961_v38  ;;  %5569 = vmatpush3.msra.mxu1 %v4999_v39  ;;  %v4975_v26 = vld [vmem:[%s9691_s2 + $0x200] sm:$0xff]  ;;  %v6384_v27 = vld [vmem:[%s9691_s2 + $0x178] sm:$0xff]  ;;  %v1100_v28 = vld [vmem:[%s6176_s29 + $0x148] sm:$0xff] }
  0x29   : > { %2016 = vmatprep.subr.mxu0 %v6121_v2  ;;  %5570 = vmatprep.subr.mxu1 %v4998_v43  ;;  %v1099_v29 = vld [vmem:[%s6176_s29 + $0x140] sm:$0xff]  ;;  %v1102_v30 = vld [vmem:[%s6176_s29 + $0x158] sm:$0xff]  ;;  %v1105_v35 = vld [vmem:[%s6176_s29 + $0x170] sm:$0xff] }
  0x2a   : > { %1163 = vperm.xlu1 %5854, %v1072_v31   ;;  %2017 = vmatpush1.msra.mxu0 %v4960_v40  ;;  %v1101_v31 = vld [vmem:[%s6176_s29 + $0x150] sm:$0xff]  ;;  %v1103_v33 = vld [vmem:[%s6176_s29 + $0x160] sm:$0xff]  ;;  %v1106_v34 = vld [vmem:[%s6176_s29 + $0x178] sm:$0xff] }
  0x2b   : > { %1160 = vperm.xlu0 %5853, %v1071_v32   ;;  %2018 = vmatprep.subr.mxu0 %v6121_v2  ;;  %v1104_v32 = vld [vmem:[%s6176_s29 + $0x168] sm:$0xff]  ;;  %v1110_v38 = vld [vmem:[%s6176_s29 + $0x198] sm:$0xff]  ;;  %v1109_v39 = vld [vmem:[%s6176_s29 + $0x190] sm:$0xff] }
  0x2c   : > { %2019 = vmatpush1.msra.mxu0 %v4959_v44  ;;  %5571 = vmatpush3.msra.mxu1 %v4998_v43  ;;  %v1112_v40 = vld [vmem:[%s6176_s29 + $0x1a8] sm:$0xff]  ;;  %v1113_v43 = vld [vmem:[%s6176_s29 + $0x1b0] sm:$0xff] }
  0x2d   : > { %2020 = vmatprep.subr.mxu0 %v6121_v2  ;;  %5572 = vmatprep.subr.mxu1 %v4997_v45  ;;  %v1116_v44 = vld [vmem:[%s6176_s29 + $0x1c8] sm:$0xff] }
  0x2e   : > { %1169 = vperm.xlu1 %5854, %v1074_v36   ;;  %2021 = vmatpush2.msra.mxu0 %v4990_v48  ;;  %v1108_v36 = vld [vmem:[%s6176_s29 + $0x188] sm:$0xff]  ;;  %v1117_v48 = vld [vmem:[%s6176_s29 + $0x1d0] sm:$0xff] }
  0x2f   : > { %1166 = vperm.xlu0 %5853, %v1073_v37   ;;  %5573 = vmatpush3.msra.mxu1 %v4997_v45  ;;  %v1107_v37 = vld [vmem:[%s6176_s29 + $0x180] sm:$0xff] }
  0x30   : > { %2022 = vmatprep.subr.mxu0 %v6121_v2  ;;  %5574 = vmatprep.subr.mxu1 %v4996_v49  ;;  %v1115_v45 = vld [vmem:[%s6176_s29 + $0x1c0] sm:$0xff] }
  0x31   : > { %2023 = vmatpush2.msra.mxu0 %v4989_v50  ;;  %5575 = vmatpush3.msra.mxu1 %v4996_v49  ;;  %v1120_v50 = vld [vmem:[%s6176_s29 + $0x1e8] sm:$0xff] }
  0x32   : > { %1175 = vperm.xlu1 %5854, %v1076_v41   ;;  %2024 = vmatprep.subr.mxu0 %v6121_v2  ;;  %v1111_v41 = vld [vmem:[%s6176_s29 + $0x1a0] sm:$0xff] }
  0x33   : > { %1172 = vperm.xlu0 %5853, %v1075_v42   ;;  %5576 = vmatprep.subr.mxu1 %v4995_v53  ;;  %v1114_v42 = vld [vmem:[%s6176_s29 + $0x1b8] sm:$0xff] }
  0x34   : > { %2025 = vmatpush2.msra.mxu0 %v4988_v54  ;;  %5577 = vmatpush3.msra.mxu1 %v4995_v53  ;;  %v1122_v54 = vld [vmem:[%s6176_s29 + $0x1f8] sm:$0xff] }
  0x35   : > { %2026 = vmatprep.subr.mxu0 %v6121_v2  ;;  %5578 = vmatprep.subr.mxu1 %v4994_v55 }
  0x36   : > { %1181 = vperm.xlu1 %5854, %v1078_v46   ;;  %2027 = vmatpush2.msra.mxu0 %v4987_v58  ;;  %v223_v46 = vlaneseq  ;;  %v6122_v58 = vmov 1.0  }
  0x37   : > { %1178 = vperm.xlu0 %5853, %v1077_v47   ;;  %5579 = vmatpush3.msra.mxu1 %v4994_v55  ;;  %v1118_v47 = vld [vmem:[%s6176_s29 + $0x1d8] sm:$0xff]  ;;  %v1121_v55 = vld [vmem:[%s6176_s29 + $0x1f0] sm:$0xff] }
  0x38   : > { %2028 = vmatprep.subr.mxu0 %v6121_v2  ;;  %5580 = vmatprep.subr.mxu1 %v4993_v59  ;;  %v6407_v49 = vand.u32 127, %v223_v46  ;;  %v1897_v46 = vld [vmem:[%s9691_s2 + $0x30] sm:$0xff] }
  0x39   : > { %2029 = vmatpush2.msra.mxu0 %v4986_v60  ;;  %5581 = vmatpush3.msra.mxu1 %v4993_v59  ;;  %v228_v59 = vld [vmem:[%s6423_s30 + $0x8] sm:$0xff]  ;;  %v227_v60 = vld [vmem:[%s6423_s30] sm:$0xff] }
  0x3a   : > { %1187 = vperm.xlu1 %5854, %v1080_v51   ;;  %2030 = vmatprep.subr.mxu0 %v6121_v2  ;;  %v1119_v51 = vld [vmem:[%s6176_s29 + $0x1e0] sm:$0xff]  ;;  %v6415_v53 = vadd.s32 256, %v6407_v49 }
  0x3b   : > { %1184 = vperm.xlu0 %5853, %v1079_v52   ;;  %5582 = vmatprep.subr.mxu1 %v4992_v63  ;;  %v6412_v52 = vadd.s32 128, %v6407_v49 }
  0x3c   : > { %2031 = vmatpush2.msra.mxu0 %v4985_v0  ;;  %5583 = vmatpush3.msra.mxu1 %v4992_v63  ;;  %v1906_v63 = vld [vmem:[%s9691_s2 + $0x78] sm:$0xff] }
  0x3d   : > { %2032 = vmatprep.subr.mxu0 %v6121_v2  ;;  %5584 = vmatprep.subr.mxu1 %v4991_v1  ;;  %v230_v0 = vld [vmem:[%s6423_s30 + $0x18] sm:$0xff] }
  0x3e   : > { %1193 = vperm.xlu1 %5854, %v1082_v56   ;;  %2033 = vmatpush2.msra.mxu0 %v4984_v5  ;;  %v1905_v5 = vld [vmem:[%s9691_s2 + $0x70] sm:$0xff] }
  0x3f   : > { %1190 = vperm.xlu0 %5853, %v1081_v57   ;;  %5585 = vmatpush3.msra.mxu1 %v4991_v1  ;;  %v229_v1 = vld [vmem:[%s6423_s30 + $0x10] sm:$0xff] }
  0x40   : > { %2034 = vmatprep.subr.mxu0 %v6121_v2  ;;  %2758 = vmatprep.subr.mxu1 %v6121_v2 }
  0x41   : > { %2035 = vmatpush2.msra.mxu0 %v4983_v6  ;;  %v232_v6 = vld [vmem:[%s6423_s30 + $0x28] sm:$0xff] }
  0x42   : > { %1199 = vperm.xlu1 %5854, %v1084_v61   ;;  %2036 = vmatprep.subr.mxu0 %v6121_v2 }
  0x43   : > { %1196 = vperm.xlu0 %5853, %v1083_v62   ;;  %2037 = vmatpush2.msra.mxu0 %v4982_v9 }
  0x44   : > { %2038 = vmatprep.subr.mxu0 %v6121_v2 }
  0x45   : > { %2039 = vmatpush2.msra.mxu0 %v4981_v12  ;;  %v233_v12 = vld [vmem:[%s6423_s30 + $0x30] sm:$0xff] }
  0x46   : > { %1205 = vperm.xlu1 %5854, %v1086_v3   ;;  %2040 = vmatprep.subr.mxu0 %v6121_v2 }
  0x47   : > { %1202 = vperm.xlu0 %5853, %v1085_v4   ;;  %2041 = vmatpush2.msra.mxu0 %v4980_v13 }
  0x48   : > { %2042 = vmatprep.subr.mxu0 %v6121_v2 }
  0x49   : > { %2043 = vmatpush2.msra.mxu0 %v4979_v16  ;;  %v236_v16 = vld [vmem:[%s6423_s30 + $0x48] sm:$0xff] }
  0x4a   : > { %1211 = vperm.xlu1 %5854, %v1088_v7   ;;  %2044 = vmatprep.subr.mxu0 %v6121_v2  ;;  %v231_v7 = vld [vmem:[%s6423_s30 + $0x20] sm:$0xff] }
  0x4b   : > { %1208 = vperm.xlu0 %5853, %v1087_v8   ;;  %2045 = vmatpush2.msra.mxu0 %v4978_v19 }
  0x4c   : > { %2046 = vmatprep.subr.mxu0 %v6121_v2 }
  0x4d   : > { %2047 = vmatpush2.msra.mxu0 %v4977_v20  ;;  %v1902_v20 = vld [vmem:[%s9691_s2 + $0x58] sm:$0xff] }
  0x4e   : > { %1217 = vperm.xlu1 %5854, %v1090_v10   ;;  %2048 = vmatprep.subr.mxu0 %v6121_v2  ;;  %v1904_v10 = vld [vmem:[%s9691_s2 + $0x68] sm:$0xff] }
  0x4f   : > { %1214 = vperm.xlu0 %5853, %v1089_v11   ;;  %2049 = vmatpush2.msra.mxu0 %v4976_v23  ;;  %v234_v11 = vld [vmem:[%s6423_s30 + $0x38] sm:$0xff] }
  0x50   : > { %2050 = vmatprep.subr.mxu0 %v6121_v2 }
  0x51   : > { %2051 = vmatpush2.msra.mxu0 %v4975_v26  ;;  %v240_v26 = vld [vmem:[%s6423_s30 + $0x68] sm:$0xff] }
  0x52   : > { %1223 = vperm.xlu1 %5854, %v1092_v14   ;;  %5682 = vmatprep.subr.mxu0 %v6384_v27 }
  0x53   : > { %1220 = vperm.xlu0 %5853, %v1091_v15   ;;  %v1903_v15 = vld [vmem:[%s9691_s2 + $0x60] sm:$0xff] }
  0x56   : > { %1229 = vperm.xlu1 %5854, %v1094_v17   ;;  %v235_v17 = vld [vmem:[%s6423_s30 + $0x40] sm:$0xff] }
  0x57   : > { %1226 = vperm.xlu0 %5853, %v1093_v18  }
  0x5a   : > { %1235 = vperm.xlu1 %5854, %v1096_v21   ;;  %v238_v21 = vld [vmem:[%s6423_s30 + $0x58] sm:$0xff] }
  0x5b   : > { %1232 = vperm.xlu0 %5853, %v1095_v22   ;;  %v237_v22 = vld [vmem:[%s6423_s30 + $0x50] sm:$0xff] }
  0x5e   : > { %1241 = vperm.xlu1 %5854, %v1098_v24  }
  0x5f   : > { %1238 = vperm.xlu0 %5853, %v1097_v25   ;;  %v1901_v25 = vld [vmem:[%s9691_s2 + $0x50] sm:$0xff] }
  0x62   : > { %1247 = vperm.xlu1 %5854, %v1100_v28  }
  0x63   : > { %1244 = vperm.xlu0 %5853, %v1099_v29  }
  0x66   : > { %1253 = vperm.xlu1 %5854, %v1102_v30   ;;  %v1900_v30 = vld [vmem:[%s9691_s2 + $0x48] sm:$0xff] }
  0x67   : > { %1250 = vperm.xlu0 %5853, %v1101_v31   ;;  %v6568_v31 = vld [vmem:[%s9691_s2 + $0x170] sm:$0xff] }
  0x6a   : > { %1259 = vperm.xlu1 %5854, %v1104_v32   ;;  %v242_v32 = vld [vmem:[%s6423_s30 + $0x78] sm:$0xff] }
  0x6b   : > { %1256 = vperm.xlu0 %5853, %v1103_v33   ;;  %v241_v33 = vld [vmem:[%s6423_s30 + $0x70] sm:$0xff] }
  0x6e   : > { %1265 = vperm.xlu1 %5854, %v1106_v34  }
  0x6f   : > { %1262 = vperm.xlu0 %5853, %v1105_v35  }
  0x72   : > { %1271 = vperm.xlu1 %5854, %v1108_v36   ;;  %v1899_v36 = vld [vmem:[%s9691_s2 + $0x40] sm:$0xff] }
  0x73   : > { %1268 = vperm.xlu0 %5853, %v1107_v37   ;;  %v244_v37 = vld [vmem:[%s6423_s30 + $0x88] sm:$0xff] }
  0x76   : > { %1277 = vperm.xlu1 %5854, %v1110_v38  }
  0x77   : > { %1274 = vperm.xlu0 %5853, %v1109_v39  }
  0x7a   : > { %1283 = vperm.xlu1 %5854, %v1112_v40   ;;  %v243_v40 = vld [vmem:[%s6423_s30 + $0x80] sm:$0xff] }
  0x7b   : > { %1280 = vperm.xlu0 %5853, %v1111_v41   ;;  %v1898_v41 = vld [vmem:[%s9691_s2 + $0x38] sm:$0xff] }
  0x7e   : > { %1289 = vperm.xlu1 %5854, %v1114_v42   ;;  %v246_v42 = vld [vmem:[%s6423_s30 + $0x98] sm:$0xff] }
  0x7f   : > { %1286 = vperm.xlu0 %5853, %v1113_v43  }
  0x82   : > { %1295 = vperm.xlu1 %5854, %v1116_v44  }
  0x83   : > { %1292 = vperm.xlu0 %5853, %v1115_v45   ;;  %v245_v45 = vld [vmem:[%s6423_s30 + $0x90] sm:$0xff] }
  0x86   : > { %1301 = vperm.xlu1 %5854, %v1118_v47   ;;  %v248_v47 = vld [vmem:[%s6423_s30 + $0xa8] sm:$0xff] }
  0x87   : > { %1298 = vperm.xlu0 %5853, %v1117_v48  }
  0x8a   : > { %1307 = vperm.xlu1 %5854, %v1120_v50  }
  0x8b   : > { %1304 = vperm.xlu0 %5853, %v1119_v51   ;;  %v247_v51 = vld [vmem:[%s6423_s30 + $0xa0] sm:$0xff] }
  0x8d   : > { %v1131_v56 = vpop.permute.xlu1 %1130 }
  0x8e   : > { %v1125_v57 = vpop.permute.xlu0 %1124  ;;  %1313 = vperm.xlu1 %5854, %v1122_v54   ;;  %vm1323_vm3 = vcmp.eq.s32.totalorder %v1131_v56, %v6415_v53  ;;  %vm1322_vm7 = vcmp.eq.s32.totalorder %v1131_v56, %v6412_v52  ;;  %vm1321_vm10 = vcmp.eq.s32.totalorder %v1131_v56, %v6407_v49  ;;  %v1896_v54 = vld [vmem:[%s9691_s2 + $0x28] sm:$0xff] }
  0x8f   : > { %1310 = vperm.xlu0 %5853, %v1121_v55   ;;  %vm1316_vm0 = vcmp.eq.s32.totalorder %v1125_v57, %v6412_v52  ;;  %vm1317_vm1 = vcmp.eq.s32.totalorder %v1125_v57, %v6415_v53  ;;  %vm1315_vm2 = vcmp.eq.s32.totalorder %v1125_v57, %v6407_v49  ;;  %v6663_v55 = vld [vmem:[%s9691_s2 + $0x168] sm:$0xff] }
  0x90   : > { %5007 = vmatprep.mubr.msk.f32.mxu0 %vm1316_vm0, %v6122_v58  ;;  %5586 = vmatprep.mubr.msk.f32.mxu1 %vm1317_vm1, %v6122_v58 }
  0x91   : > { %5008 = vmatmul.mubr.msk.f32.vlgmr.msra.gmra.mxu0 %vm1315_vm2, %v6122_v58  ;;  %v1134_v61 = vpop.permute.xlu1 %1133 }
  0x92   : > { %v1128_v62 = vpop.permute.xlu0 %1127  ;;  %5683 = vmatpush3.msra.mxu0 %v6384_v27  ;;  %295 = vperm.xlu1 %5854, %v228_v59   ;;  %vm1326_vm8 = vcmp.eq.s32.totalorder %v1134_v61, %v6415_v53  ;;  %vm1325_vm11 = vcmp.eq.s32.totalorder %v1134_v61, %v6412_v52  ;;  %vm1324_vm14 = vcmp.eq.s32.totalorder %v1134_v61, %v6407_v49  ;;  %v239_v27 = vld [vmem:[%s6423_s30 + $0x60] sm:$0xff]  ;;  %v250_v59 = vld [vmem:[%s6423_s30 + $0xb8] sm:$0xff] }
  0x93   : > { %292 = vperm.xlu0 %5853, %v227_v60   ;;  %vm1319_vm4 = vcmp.eq.s32.totalorder %v1128_v62, %v6412_v52  ;;  %vm1320_vm5 = vcmp.eq.s32.totalorder %v1128_v62, %v6415_v53  ;;  %vm1318_vm6 = vcmp.eq.s32.totalorder %v1128_v62, %v6407_v49  ;;  %5684 = vmatprep.subr.mxu0 %v6568_v31  ;;  %v249_v60 = vld [vmem:[%s6423_s30 + $0xb0] sm:$0xff]  ;;  %v1895_v61 = vld [vmem:[%s9691_s2 + $0x20] sm:$0xff] }
  0x94   : > { %5009 = vmatprep.mubr.msk.f32.mxu0 %vm1319_vm4, %v6122_v58  ;;  %5587 = vmatmul.mubr.msk.f32.vlgmr.msra.gmra.mxu1 %vm1320_vm5, %v6122_v58 }
  0x95   : > { %2759 = vmatpush1.msra.mxu1 %v1906_v63  ;;  %5010 = vmatmul.mubr.msk.f32.gmra.mxu0 %vm1318_vm6, %v6122_v58  ;;  %v6448_v3 = vpop.permute.xlu1 %1139 }
  0x96   : > { %5589 = vmatprep.mubr.msk.f32.mxu1 %vm1323_vm3, %v6122_v58  ;;  %5011 = vmatprep.mubr.msk.f32.mxu0 %vm1322_vm7, %v6122_v58  ;;  %v1137_v4 = vpop.permute.xlu0 %1136  ;;  %vm1332_vm12 = vcmp.eq.s32.totalorder %v6448_v3, %v6415_v53  ;;  %vm1331_vm3 = vcmp.eq.s32.totalorder %v6448_v3, %v6412_v52  ;;  %vm1330_vm6 = vcmp.eq.s32.totalorder %v6448_v3, %v6407_v49  ;;  %v1894_v3 = vld [vmem:[%s9691_s2 + $0x18] sm:$0xff] }
  0x97   : > { %2760 = vmatprep.subr.mxu1 %v6121_v2  ;;  %301 = vperm.xlu1 %5854, %v230_v0   ;;  %vm1329_vm9 = vcmp.eq.s32.totalorder %v1137_v4, %v6415_v53  ;;  %vm1328_vm15 = vcmp.eq.s32.totalorder %v1137_v4, %v6412_v52  ;;  %vm1327_vm2 = vcmp.eq.s32.totalorder %v1137_v4, %v6407_v49  ;;  %v252_v0 = vld [vmem:[%s6423_s30 + $0xc8] sm:$0xff] }
  0x98   : > { %298 = vperm.xlu0 %5853, %v229_v1   ;;  %5590 = vmatmul.mubr.msk.f32.gmra.mxu1 %vm1326_vm8, %v6122_v58  ;;  %v251_v1 = vld [vmem:[%s6423_s30 + $0xc0] sm:$0xff] }
  0x99   : > { %2761 = vmatpush1.msra.mxu1 %v1905_v5  ;;  %5012 = vmatmul.mubr.msk.f32.gmra.mxu0 %vm1321_vm10, %v6122_v58  ;;  %v6464_v8 = vpop.permute.xlu1 %1145 }
  0x9a   : > { %5592 = vmatprep.mubr.msk.f32.mxu1 %vm1329_vm9, %v6122_v58  ;;  %5013 = vmatprep.mubr.msk.f32.mxu0 %vm1325_vm11, %v6122_v58  ;;  %v6467_v9 = vpop.permute.xlu0 %1142  ;;  %vm1338_vm0 = vcmp.eq.s32.totalorder %v6464_v8, %v6415_v53  ;;  %vm1337_vm11 = vcmp.eq.s32.totalorder %v6464_v8, %v6412_v52 }
  0x9b   : > { %2762 = vmatprep.subr.mxu1 %v6121_v2  ;;  %307 = vperm.xlu1 %5854, %v232_v6   ;;  %vm1335_vm13 = vcmp.eq.s32.totalorder %v6467_v9, %v6415_v53  ;;  %vm1334_vm7 = vcmp.eq.s32.totalorder %v6467_v9, %v6412_v52  ;;  %vm1333_vm10 = vcmp.eq.s32.totalorder %v6467_v9, %v6407_v49  ;;  %v254_v6 = vld [vmem:[%s6423_s30 + $0xd8] sm:$0xff] }
  0x9c   : > { %304 = vperm.xlu0 %5853, %v231_v7   ;;  %5593 = vmatmul.mubr.msk.f32.gmra.mxu1 %vm1332_vm12, %v6122_v58  ;;  %v253_v7 = vld [vmem:[%s6423_s30 + $0xd0] sm:$0xff] }
  0x9d   : > { %2763 = vmatpush1.msra.mxu1 %v1904_v10  ;;  %5014 = vmatmul.mubr.msk.f32.gmra.mxu0 %vm1324_vm14, %v6122_v58  ;;  %v6484_v13 = vpop.permute.xlu1 %1151  ;;  %vm1336_vm14 = vcmp.eq.s32.totalorder %v6464_v8, %v6407_v49  ;;  %v1893_v8 = vld [vmem:[%s9691_s2 + $0x10] sm:$0xff] }
  0x9e   : > { %5595 = vmatprep.mubr.msk.f32.mxu1 %vm1335_vm13, %v6122_v58  ;;  %5015 = vmatprep.mubr.msk.f32.mxu0 %vm1328_vm15, %v6122_v58  ;;  %v6487_v14 = vpop.permute.xlu0 %1148  ;;  %vm1344_vm4 = vcmp.eq.s32.totalorder %v6484_v13, %v6415_v53 }
  0x9f   : > { %2764 = vmatprep.subr.mxu1 %v6121_v2  ;;  %313 = vperm.xlu1 %5854, %v234_v11   ;;  %vm1341_vm1 = vcmp.eq.s32.totalorder %v6487_v14, %v6415_v53  ;;  %vm1340_vm15 = vcmp.eq.s32.totalorder %v6487_v14, %v6412_v52  ;;  %v256_v11 = vld [vmem:[%s6423_s30 + $0xe8] sm:$0xff] }
  0xa0   : > { %310 = vperm.xlu0 %5853, %v233_v12   ;;  %5596 = vmatmul.mubr.msk.f32.gmra.mxu1 %vm1338_vm0, %v6122_v58  ;;  %v255_v12 = vld [vmem:[%s6423_s30 + $0xe0] sm:$0xff] }
  0xa1   : > { %2765 = vmatpush1.msra.mxu1 %v1903_v15  ;;  %5016 = vmatmul.mubr.msk.f32.gmra.mxu0 %vm1327_vm2, %v6122_v58  ;;  %v6505_v18 = vpop.permute.xlu1 %1157  ;;  %vm1339_vm2 = vcmp.eq.s32.totalorder %v6487_v14, %v6407_v49 }
  0xa2   : > { %5598 = vmatprep.mubr.msk.f32.mxu1 %vm1341_vm1, %v6122_v58  ;;  %5017 = vmatprep.mubr.msk.f32.mxu0 %vm1331_vm3, %v6122_v58  ;;  %v6508_v19 = vpop.permute.xlu0 %1154  ;;  %vm1350_vm8 = vcmp.eq.s32.totalorder %v6505_v18, %v6415_v53  ;;  %vm1343_vm3 = vcmp.eq.s32.totalorder %v6484_v13, %v6412_v52 }
  0xa3   : > { %2766 = vmatprep.subr.mxu1 %v6121_v2  ;;  %319 = vperm.xlu1 %5854, %v236_v16   ;;  %vm1347_vm5 = vcmp.eq.s32.totalorder %v6508_v19, %v6415_v53  ;;  %v6762_v16 = vld [vmem:[%s9691_s2 + $0x160] sm:$0xff] }
  0xa4   : > { %316 = vperm.xlu0 %5853, %v235_v17   ;;  %5599 = vmatmul.mubr.msk.f32.gmra.mxu1 %vm1344_vm4, %v6122_v58  ;;  %v258_v17 = vld [vmem:[%s6423_s30 + $0xf8] sm:$0xff] }
  0xa5   : > { %2767 = vmatpush1.msra.mxu1 %v1902_v20  ;;  %5018 = vmatmul.mubr.msk.f32.gmra.mxu0 %vm1330_vm6, %v6122_v58  ;;  %v6527_v23 = vpop.permute.xlu1 %1163  ;;  %vm1342_vm6 = vcmp.eq.s32.totalorder %v6484_v13, %v6407_v49  ;;  %v1892_v13 = vld [vmem:[%s9691_s2 + $0x8] sm:$0xff] }
  0xa6   : > { %5601 = vmatprep.mubr.msk.f32.mxu1 %vm1347_vm5, %v6122_v58  ;;  %5019 = vmatprep.mubr.msk.f32.mxu0 %vm1334_vm7, %v6122_v58  ;;  %v6530_v24 = vpop.permute.xlu0 %1160  ;;  %vm1356_vm12 = vcmp.eq.s32.totalorder %v6527_v23, %v6415_v53  ;;  %vm1346_vm7 = vcmp.eq.s32.totalorder %v6508_v19, %v6412_v52 }
  0xa7   : > { %2768 = vmatprep.subr.mxu1 %v6121_v2  ;;  %325 = vperm.xlu1 %5854, %v238_v21   ;;  %vm1353_vm9 = vcmp.eq.s32.totalorder %v6530_v24, %v6415_v53 }
  0xa8   : > { %322 = vperm.xlu0 %5853, %v237_v22   ;;  %5602 = vmatmul.mubr.msk.f32.gmra.mxu1 %vm1350_vm8, %v6122_v58  ;;  %v260_v22 = vld [vmem:[%s6423_s30 + $0x108] sm:$0xff] }
  0xa9   : > { %2769 = vmatpush1.msra.mxu1 %v1901_v25  ;;  %5020 = vmatmul.mubr.msk.f32.gmra.mxu0 %vm1333_vm10, %v6122_v58  ;;  %v6549_v28 = vpop.permute.xlu1 %1169  ;;  %vm1345_vm10 = vcmp.eq.s32.totalorder %v6508_v19, %v6407_v49  ;;  %v1891_v19 = vld [vmem:[%s9691_s2] sm:$0xff] }
  0xaa   : > { %5604 = vmatprep.mubr.msk.f32.mxu1 %vm1353_vm9, %v6122_v58  ;;  %5021 = vmatprep.mubr.msk.f32.mxu0 %vm1337_vm11, %v6122_v58  ;;  %v6552_v29 = vpop.permute.xlu0 %1166  ;;  %vm1362_vm0 = vcmp.eq.s32.totalorder %v6549_v28, %v6415_v53  ;;  %vm1349_vm11 = vcmp.eq.s32.totalorder %v6505_v18, %v6412_v52 }
  0xab   : > { %2770 = vmatprep.subr.mxu1 %v6121_v2  ;;  %331 = vperm.xlu1 %5854, %v240_v26   ;;  %vm1359_vm13 = vcmp.eq.s32.totalorder %v6552_v29, %v6415_v53 }
  0xac   : > { %328 = vperm.xlu0 %5853, %v239_v27   ;;  %5605 = vmatmul.mubr.msk.f32.gmra.mxu1 %vm1356_vm12, %v6122_v58  ;;  %v262_v27 = vld [vmem:[%s6423_s30 + $0x118] sm:$0xff] }
  0xad   : > { %2771 = vmatpush1.msra.mxu1 %v1900_v30  ;;  %5022 = vmatmul.mubr.msk.f32.gmra.mxu0 %vm1336_vm14, %v6122_v58  ;;  %v6576_v34 = vpop.permute.xlu1 %1175  ;;  %vm1348_vm14 = vcmp.eq.s32.totalorder %v6505_v18, %v6407_v49  ;;  %v257_v18 = vld [vmem:[%s6423_s30 + $0xf0] sm:$0xff] }
  0xae   : > { %5607 = vmatprep.mubr.msk.f32.mxu1 %vm1359_vm13, %v6122_v58  ;;  %5023 = vmatprep.mubr.msk.f32.mxu0 %vm1340_vm15, %v6122_v58  ;;  %v6579_v35 = vpop.permute.xlu0 %1172  ;;  %vm1368_vm4 = vcmp.eq.s32.totalorder %v6576_v34, %v6415_v53  ;;  %vm1352_vm15 = vcmp.eq.s32.totalorder %v6530_v24, %v6412_v52 }
  0xaf   : > { %2772 = vmatprep.subr.mxu1 %v6121_v2  ;;  %337 = vperm.xlu1 %5854, %v242_v32   ;;  %vm1365_vm1 = vcmp.eq.s32.totalorder %v6579_v35, %v6415_v53 }
  0xb0   : > { %334 = vperm.xlu0 %5853, %v241_v33   ;;  %5608 = vmatmul.mubr.msk.f32.gmra.mxu1 %vm1362_vm0, %v6122_v58  ;;  %v264_v33 = vld [vmem:[%s6423_s30 + $0x128] sm:$0xff] }
  0xb1   : > { %5685 = vmatpush3.msra.mxu0 %v6568_v31  ;;  %2773 = vmatpush1.msra.mxu1 %v1899_v36  ;;  %v6596_v38 = vpop.permute.xlu1 %1181 }
  0xb2   : > { %5024 = vmatmul.mubr.msk.f32.gmra.mxu0 %vm1339_vm2, %v6122_v58  ;;  %v6600_v39 = vpop.permute.xlu0 %1178  ;;  %5610 = vmatprep.mubr.msk.f32.mxu1 %vm1365_vm1, %v6122_v58  ;;  %vm1374_vm8 = vcmp.eq.s32.totalorder %v6596_v38, %v6415_v53  ;;  %vm1351_vm2 = vcmp.eq.s32.totalorder %v6530_v24, %v6407_v49  ;;  %v1922_v24 = vld [vmem:[%s9691_s2 + $0xf8] sm:$0xff] }
  0xb3   : > { %5025 = vmatprep.mubr.msk.f32.mxu0 %vm1343_vm3, %v6122_v58  ;;  %2774 = vmatprep.subr.mxu1 %v6121_v2  ;;  %vm1371_vm5 = vcmp.eq.s32.totalorder %v6600_v39, %v6415_v53  ;;  %vm1355_vm3 = vcmp.eq.s32.totalorder %v6527_v23, %v6412_v52 }
  0xb4   : > { %343 = vperm.xlu1 %5854, %v244_v37   ;;  %340 = vperm.xlu0 %5853, %v243_v40   ;;  %v266_v40 = vld [vmem:[%s6423_s30 + $0x138] sm:$0xff] }
  0xb5   : > { %5611 = vmatmul.mubr.msk.f32.gmra.mxu1 %vm1368_vm4, %v6122_v58  ;;  %v6618_v43 = vpop.permute.xlu1 %1187  ;;  %5686 = vmatprep.subr.mxu0 %v6663_v55 }
  0xb6   : > { %2775 = vmatpush1.msra.mxu1 %v1898_v41  ;;  %5026 = vmatmul.mubr.msk.f32.gmra.mxu0 %vm1342_vm6, %v6122_v58  ;;  %v6622_v44 = vpop.permute.xlu0 %1184  ;;  %vm1380_vm12 = vcmp.eq.s32.totalorder %v6618_v43, %v6415_v53  ;;  %vm1354_vm6 = vcmp.eq.s32.totalorder %v6527_v23, %v6407_v49  ;;  %v259_v23 = vld [vmem:[%s6423_s30 + $0x100] sm:$0xff]  ;;  %v265_v41 = vld [vmem:[%s6423_s30 + $0x130] sm:$0xff] }
  0xb7   : > { %5613 = vmatprep.mubr.msk.f32.mxu1 %vm1371_vm5, %v6122_v58  ;;  %5027 = vmatprep.mubr.msk.f32.mxu0 %vm1346_vm7, %v6122_v58  ;;  %vm1377_vm9 = vcmp.eq.s32.totalorder %v6622_v44, %v6415_v53  ;;  %vm1358_vm7 = vcmp.eq.s32.totalorder %v6552_v29, %v6412_v52 }
  0xb8   : > { %2776 = vmatprep.subr.mxu1 %v6121_v2  ;;  %349 = vperm.xlu1 %5854, %v246_v42  }
  0xb9   : > { %346 = vperm.xlu0 %5853, %v245_v45   ;;  %5614 = vmatmul.mubr.msk.f32.gmra.mxu1 %vm1374_vm8, %v6122_v58  ;;  %v6640_v48 = vpop.permute.xlu1 %1193 }
  0xba   : > { %2777 = vmatpush1.msra.mxu1 %v1897_v46  ;;  %5028 = vmatmul.mubr.msk.f32.gmra.mxu0 %vm1345_vm10, %v6122_v58  ;;  %v6644_v50 = vpop.permute.xlu0 %1190  ;;  %vm1386_vm0 = vcmp.eq.s32.totalorder %v6640_v48, %v6415_v53  ;;  %vm1357_vm10 = vcmp.eq.s32.totalorder %v6552_v29, %v6407_v49  ;;  %v1921_v29 = vld [vmem:[%s9691_s2 + $0xf0] sm:$0xff]  ;;  %v268_v46 = vld [vmem:[%s6423_s30 + $0x148] sm:$0xff] }
  0xbb   : > { %5616 = vmatprep.mubr.msk.f32.mxu1 %vm1377_vm9, %v6122_v58  ;;  %5029 = vmatprep.mubr.msk.f32.mxu0 %vm1349_vm11, %v6122_v58  ;;  %vm1383_vm13 = vcmp.eq.s32.totalorder %v6644_v50, %v6415_v53  ;;  %vm1361_vm11 = vcmp.eq.s32.totalorder %v6549_v28, %v6412_v52 }
  0xbc   : > { %2778 = vmatprep.subr.mxu1 %v6121_v2  ;;  %355 = vperm.xlu1 %5854, %v248_v47   ;;  %v267_v47 = vld [vmem:[%s6423_s30 + $0x140] sm:$0xff] }
  0xbd   : > { %352 = vperm.xlu0 %5853, %v247_v51   ;;  %5617 = vmatmul.mubr.msk.f32.gmra.mxu1 %vm1380_vm12, %v6122_v58  ;;  %v6666_v56 = vpop.permute.xlu1 %1199  ;;  %v1918_v51 = vld [vmem:[%s9691_s2 + $0xd8] sm:$0xff] }
  0xbe   : > { %2779 = vmatpush1.msra.mxu1 %v1896_v54  ;;  %5030 = vmatmul.mubr.msk.f32.gmra.mxu0 %vm1348_vm14, %v6122_v58  ;;  %v6670_v57 = vpop.permute.xlu0 %1196  ;;  %vm1392_vm4 = vcmp.eq.s32.totalorder %v6666_v56, %v6415_v53  ;;  %vm1360_vm14 = vcmp.eq.s32.totalorder %v6549_v28, %v6407_v49  ;;  %v261_v28 = vld [vmem:[%s6423_s30 + $0x110] sm:$0xff] }
  0xbf   : > { %5619 = vmatprep.mubr.msk.f32.mxu1 %vm1383_vm13, %v6122_v58  ;;  %5031 = vmatprep.mubr.msk.f32.mxu0 %vm1352_vm15, %v6122_v58  ;;  %vm1389_vm1 = vcmp.eq.s32.totalorder %v6670_v57, %v6415_v53  ;;  %vm1364_vm15 = vcmp.eq.s32.totalorder %v6579_v35, %v6412_v52 }
  0xc0   : > { %2780 = vmatprep.subr.mxu1 %v6121_v2  ;;  %361 = vperm.xlu1 %5854, %v250_v59   ;;  %v270_v59 = vld [vmem:[%s6423_s30 + $0x158] sm:$0xff] }
  0xc1   : > { %358 = vperm.xlu0 %5853, %v249_v60   ;;  %5620 = vmatmul.mubr.msk.f32.gmra.mxu1 %vm1386_vm0, %v6122_v58  ;;  %v6689_v62 = vpop.permute.xlu1 %1205  ;;  %v269_v60 = vld [vmem:[%s6423_s30 + $0x150] sm:$0xff] }
  0xc2   : > { %5687 = vmatpush3.msra.mxu0 %v6663_v55  ;;  %v6691_v63 = vpop.permute.xlu0 %1202  ;;  %2781 = vmatpush1.msra.mxu1 %v1895_v61  ;;  %vm1398_vm8 = vcmp.eq.s32.totalorder %v6689_v62, %v6415_v53  ;;  %v1917_v61 = vld [vmem:[%s9691_s2 + $0xd0] sm:$0xff] }
  0xc3   : > { %5032 = vmatmul.mubr.msk.f32.gmra.mxu0 %vm1351_vm2, %v6122_v58  ;;  %5622 = vmatprep.mubr.msk.f32.mxu1 %vm1389_vm1, %v6122_v58  ;;  %vm1395_vm5 = vcmp.eq.s32.totalorder %v6691_v63, %v6415_v53  ;;  %vm1363_vm2 = vcmp.eq.s32.totalorder %v6579_v35, %v6407_v49  ;;  %v1920_v35 = vld [vmem:[%s9691_s2 + $0xe8] sm:$0xff] }
  0xc4   : > { %5033 = vmatprep.mubr.msk.f32.mxu0 %vm1355_vm3, %v6122_v58  ;;  %2782 = vmatprep.subr.mxu1 %v6121_v2  ;;  %vm1367_vm3 = vcmp.eq.s32.totalorder %v6576_v34, %v6412_v52 }
  0xc5   : > { %367 = vperm.xlu1 %5854, %v252_v0   ;;  %364 = vperm.xlu0 %5853, %v251_v1   ;;  %v6711_v4 = vpop.permute.xlu1 %1211  ;;  %v272_v1 = vld [vmem:[%s6423_s30 + $0x168] sm:$0xff] }
  0xc6   : > { %5623 = vmatmul.mubr.msk.f32.gmra.mxu1 %vm1392_vm4, %v6122_v58  ;;  %v6713_v5 = vpop.permute.xlu0 %1208  ;;  %vm1404_vm12 = vcmp.eq.s32.totalorder %v6711_v4, %v6415_v53  ;;  %5688 = vmatprep.subr.mxu0 %v6762_v16 }
  0xc7   : > { %2783 = vmatpush1.msra.mxu1 %v1894_v3  ;;  %5034 = vmatmul.mubr.msk.f32.gmra.mxu0 %vm1354_vm6, %v6122_v58  ;;  %vm1401_vm9 = vcmp.eq.s32.totalorder %v6713_v5, %v6415_v53  ;;  %vm1366_vm6 = vcmp.eq.s32.totalorder %v6576_v34, %v6407_v49  ;;  %v263_v34 = vld [vmem:[%s6423_s30 + $0x120] sm:$0xff] }
  0xc8   : > { %5625 = vmatprep.mubr.msk.f32.mxu1 %vm1395_vm5, %v6122_v58  ;;  %5035 = vmatprep.mubr.msk.f32.mxu0 %vm1358_vm7, %v6122_v58  ;;  %vm1370_vm7 = vcmp.eq.s32.totalorder %v6600_v39, %v6412_v52  ;;  %v271_v3 = vld [vmem:[%s6423_s30 + $0x160] sm:$0xff] }
  0xc9   : > { %2784 = vmatprep.subr.mxu1 %v6121_v2  ;;  %373 = vperm.xlu1 %5854, %v254_v6   ;;  %v6733_v9 = vpop.permute.xlu1 %1217  ;;  %v1916_v6 = vld [vmem:[%s9691_s2 + $0xc8] sm:$0xff] }
  0xca   : > { %370 = vperm.xlu0 %5853, %v253_v7   ;;  %5626 = vmatmul.mubr.msk.f32.gmra.mxu1 %vm1398_vm8, %v6122_v58  ;;  %v6735_v10 = vpop.permute.xlu0 %1214  ;;  %vm1410_vm0 = vcmp.eq.s32.totalorder %v6733_v9, %v6415_v53 }
  0xcb   : > { %2785 = vmatpush1.msra.mxu1 %v1893_v8  ;;  %5036 = vmatmul.mubr.msk.f32.gmra.mxu0 %vm1357_vm10, %v6122_v58  ;;  %vm1407_vm13 = vcmp.eq.s32.totalorder %v6735_v10, %v6415_v53  ;;  %vm1369_vm10 = vcmp.eq.s32.totalorder %v6600_v39, %v6407_v49  ;;  %v6857_v39 = vld [vmem:[%s9691_s2 + $0x158] sm:$0xff]  ;;  %v6952_v8 = vld [vmem:[%s9691_s2 + $0x150] sm:$0xff] }
  0xcc   : > { %5628 = vmatprep.mubr.msk.f32.mxu1 %vm1401_vm9, %v6122_v58  ;;  %5037 = vmatprep.mubr.msk.f32.mxu0 %vm1361_vm11, %v6122_v58  ;;  %vm1373_vm11 = vcmp.eq.s32.totalorder %v6596_v38, %v6412_v52 }
  0xcd   : > { %2786 = vmatprep.subr.mxu1 %v6121_v2  ;;  %379 = vperm.xlu1 %5854, %v256_v11   ;;  %v6755_v14 = vpop.permute.xlu1 %1223  ;;  %v274_v11 = vld [vmem:[%s6423_s30 + $0x178] sm:$0xff] }
  0xce   : > { %376 = vperm.xlu0 %5853, %v255_v12   ;;  %5629 = vmatmul.mubr.msk.f32.gmra.mxu1 %vm1404_vm12, %v6122_v58  ;;  %v6757_v15 = vpop.permute.xlu0 %1220  ;;  %vm1416_vm4 = vcmp.eq.s32.totalorder %v6755_v14, %v6415_v53  ;;  %v273_v12 = vld [vmem:[%s6423_s30 + $0x170] sm:$0xff] }
  0xcf   : > { %2787 = vmatpush1.msra.mxu1 %v1892_v13  ;;  %5038 = vmatmul.mubr.msk.f32.gmra.mxu0 %vm1360_vm14, %v6122_v58  ;;  %vm1413_vm1 = vcmp.eq.s32.totalorder %v6757_v15, %v6415_v53  ;;  %vm1372_vm14 = vcmp.eq.s32.totalorder %v6596_v38, %v6407_v49  ;;  %v1919_v38 = vld [vmem:[%s9691_s2 + $0xe0] sm:$0xff] }
  0xd0   : > { %5631 = vmatprep.mubr.msk.f32.mxu1 %vm1407_vm13, %v6122_v58  ;;  %5039 = vmatprep.mubr.msk.f32.mxu0 %vm1364_vm15, %v6122_v58  ;;  %vm1376_vm15 = vcmp.eq.s32.totalorder %v6622_v44, %v6412_v52 }
  0xd1   : > { %2788 = vmatprep.subr.mxu1 %v6121_v2  ;;  %385 = vperm.xlu1 %5854, %v258_v17   ;;  %v6780_v20 = vpop.permute.xlu1 %1229  ;;  %v1915_v17 = vld [vmem:[%s9691_s2 + $0xc0] sm:$0xff] }
  0xd2   : > { %382 = vperm.xlu0 %5853, %v257_v18   ;;  %v6782_v21 = vpop.permute.xlu0 %1226  ;;  %5632 = vmatmul.mubr.msk.f32.gmra.mxu1 %vm1410_vm0, %v6122_v58  ;;  %vm1422_vm8 = vcmp.eq.s32.totalorder %v6780_v20, %v6415_v53  ;;  %v276_v18 = vld [vmem:[%s6423_s30 + $0x188] sm:$0xff] }
  0xd3   : > { %5689 = vmatpush3.msra.mxu0 %v6762_v16  ;;  %2789 = vmatpush1.msra.mxu1 %v1891_v19  ;;  %vm1419_vm5 = vcmp.eq.s32.totalorder %v6782_v21, %v6415_v53  ;;  %v275_v19 = vld [vmem:[%s6423_s30 + $0x180] sm:$0xff] }
  0xd4   : > { %5040 = vmatmul.mubr.msk.f32.gmra.mxu0 %vm1363_vm2, %v6122_v58  ;;  %5634 = vmatprep.mubr.msk.f32.mxu1 %vm1413_vm1, %v6122_v58  ;;  %vm1375_vm2 = vcmp.eq.s32.totalorder %v6622_v44, %v6407_v49 }
  0xd5   : > { %5041 = vmatprep.mubr.msk.f32.mxu0 %vm1367_vm3, %v6122_v58  ;;  %2790 = vmatprep.subr.mxu1 %v6121_v2  ;;  %v6803_v25 = vpop.permute.xlu1 %1235  ;;  %vm1379_vm3 = vcmp.eq.s32.totalorder %v6618_v43, %v6412_v52 }
  0xd6   : > { %391 = vperm.xlu1 %5854, %v260_v22   ;;  %v6805_v26 = vpop.permute.xlu0 %1232  ;;  %388 = vperm.xlu0 %5853, %v259_v23   ;;  %vm1428_vm12 = vcmp.eq.s32.totalorder %v6803_v25, %v6415_v53 }
  0xd7   : > { %5635 = vmatmul.mubr.msk.f32.gmra.mxu1 %vm1416_vm4, %v6122_v58  ;;  %vm1425_vm9 = vcmp.eq.s32.totalorder %v6805_v26, %v6415_v53  ;;  %5690 = vmatprep.subr.mxu0 %v6857_v39 }
  0xd8   : > { %2791 = vmatpush2.msra.mxu1 %v1922_v24  ;;  %5042 = vmatmul.mubr.msk.f32.gmra.mxu0 %vm1366_vm6, %v6122_v58  ;;  %vm1378_vm6 = vcmp.eq.s32.totalorder %v6618_v43, %v6407_v49  ;;  %v278_v24 = vld [vmem:[%s6423_s30 + $0x198] sm:$0xff] }
  0xd9   : > { %5637 = vmatprep.mubr.msk.f32.mxu1 %vm1419_vm5, %v6122_v58  ;;  %5043 = vmatprep.mubr.msk.f32.mxu0 %vm1370_vm7, %v6122_v58  ;;  %v6825_v30 = vpop.permute.xlu1 %1241  ;;  %vm1382_vm7 = vcmp.eq.s32.totalorder %v6644_v50, %v6412_v52 }
  0xda   : > { %2792 = vmatprep.subr.mxu1 %v6121_v2  ;;  %397 = vperm.xlu1 %5854, %v262_v27   ;;  %v6827_v32 = vpop.permute.xlu0 %1238  ;;  %vm1434_vm0 = vcmp.eq.s32.totalorder %v6825_v30, %v6415_v53  ;;  %v277_v27 = vld [vmem:[%s6423_s30 + $0x190] sm:$0xff] }
  0xdb   : > { %394 = vperm.xlu0 %5853, %v261_v28   ;;  %5638 = vmatmul.mubr.msk.f32.gmra.mxu1 %vm1422_vm8, %v6122_v58  ;;  %vm1431_vm13 = vcmp.eq.s32.totalorder %v6827_v32, %v6415_v53 }
  0xdc   : > { %2793 = vmatpush2.msra.mxu1 %v1921_v29  ;;  %5044 = vmatmul.mubr.msk.f32.gmra.mxu0 %vm1369_vm10, %v6122_v58  ;;  %vm1381_vm10 = vcmp.eq.s32.totalorder %v6644_v50, %v6407_v49 }
  0xdd   : > { %5640 = vmatprep.mubr.msk.f32.mxu1 %vm1425_vm9, %v6122_v58  ;;  %5045 = vmatprep.mubr.msk.f32.mxu0 %vm1373_vm11, %v6122_v58  ;;  %v6847_v36 = vpop.permute.xlu1 %1247  ;;  %vm1385_vm11 = vcmp.eq.s32.totalorder %v6640_v48, %v6412_v52 }
  0xde   : > { %2794 = vmatprep.subr.mxu1 %v6121_v2  ;;  %403 = vperm.xlu1 %5854, %v264_v33   ;;  %v6849_v37 = vpop.permute.xlu0 %1244  ;;  %vm1440_vm4 = vcmp.eq.s32.totalorder %v6847_v36, %v6415_v53  ;;  %v280_v33 = vld [vmem:[%s6423_s30 + $0x1a8] sm:$0xff] }
  0xdf   : > { %400 = vperm.xlu0 %5853, %v263_v34   ;;  %5641 = vmatmul.mubr.msk.f32.gmra.mxu1 %vm1428_vm12, %v6122_v58  ;;  %vm1437_vm1 = vcmp.eq.s32.totalorder %v6849_v37, %v6415_v53  ;;  %v279_v34 = vld [vmem:[%s6423_s30 + $0x1a0] sm:$0xff] }
  0xe0   : > { %2795 = vmatpush2.msra.mxu1 %v1920_v35  ;;  %5046 = vmatmul.mubr.msk.f32.gmra.mxu0 %vm1372_vm14, %v6122_v58  ;;  %vm1384_vm14 = vcmp.eq.s32.totalorder %v6640_v48, %v6407_v49 }
  0xe1   : > { %5643 = vmatprep.mubr.msk.f32.mxu1 %vm1431_vm13, %v6122_v58  ;;  %5047 = vmatprep.mubr.msk.f32.mxu0 %vm1376_vm15, %v6122_v58  ;;  %v6871_v42 = vpop.permute.xlu1 %1253  ;;  %vm1388_vm15 = vcmp.eq.s32.totalorder %v6670_v57, %v6412_v52 }
  0xe2   : > { %2796 = vmatprep.subr.mxu1 %v6121_v2  ;;  %v6873_v45 = vpop.permute.xlu0 %1250  ;;  %409 = vperm.xlu1 %5854, %v266_v40   ;;  %vm1446_vm8 = vcmp.eq.s32.totalorder %v6871_v42, %v6415_v53 }
  0xe3   : > { %406 = vperm.xlu0 %5853, %v265_v41   ;;  %5644 = vmatmul.mubr.msk.f32.gmra.mxu1 %vm1434_vm0, %v6122_v58  ;;  %vm1443_vm5 = vcmp.eq.s32.totalorder %v6873_v45, %v6415_v53  ;;  %v7047_v41 = vld [vmem:[%s9691_s2 + $0x148] sm:$0xff] }
  0xe4   : > { %5691 = vmatpush3.msra.mxu0 %v6857_v39  ;;  %2797 = vmatpush2.msra.mxu1 %v1919_v38  ;;  %v282_v38 = vld [vmem:[%s6423_s30 + $0x1b8] sm:$0xff] }
  0xe5   : > { %5048 = vmatmul.mubr.msk.f32.gmra.mxu0 %vm1375_vm2, %v6122_v58  ;;  %5646 = vmatprep.mubr.msk.f32.mxu1 %vm1437_vm1, %v6122_v58  ;;  %v6893_v54 = vpop.permute.xlu1 %1259  ;;  %vm1387_vm2 = vcmp.eq.s32.totalorder %v6670_v57, %v6407_v49  ;;  %v1914_v57 = vld [vmem:[%s9691_s2 + $0xb8] sm:$0xff] }
  0xe6   : > { %5049 = vmatprep.mubr.msk.f32.mxu0 %vm1379_vm3, %v6122_v58  ;;  %v6895_v44 = vpop.permute.xlu0 %1256  ;;  %2798 = vmatprep.subr.mxu1 %v6121_v2  ;;  %vm1452_vm12 = vcmp.eq.s32.totalorder %v6893_v54, %v6415_v53  ;;  %vm1391_vm3 = vcmp.eq.s32.totalorder %v6666_v56, %v6412_v52 }
  0xe7   : > { %415 = vperm.xlu1 %5854, %v268_v46   ;;  %412 = vperm.xlu0 %5853, %v267_v47   ;;  %vm1449_vm9 = vcmp.eq.s32.totalorder %v6895_v44, %v6415_v53  ;;  %v281_v46 = vld [vmem:[%s6423_s30 + $0x1b0] sm:$0xff] }
  0xe8   : > { %5647 = vmatmul.mubr.msk.f32.gmra.mxu1 %vm1440_vm4, %v6122_v58  ;;  %5692 = vmatprep.subr.mxu0 %v6952_v8 }
  0xe9   : > { %2799 = vmatpush2.msra.mxu1 %v1918_v51  ;;  %5050 = vmatmul.mubr.msk.f32.gmra.mxu0 %vm1378_vm6, %v6122_v58  ;;  %v6915_v0 = vpop.permute.xlu1 %1265  ;;  %vm1390_vm6 = vcmp.eq.s32.totalorder %v6666_v56, %v6407_v49  ;;  %v1913_v56 = vld [vmem:[%s9691_s2 + $0xb0] sm:$0xff]  ;;  %v284_v51 = vld [vmem:[%s6423_s30 + $0x1c8] sm:$0xff] }
  0xea   : > { %5649 = vmatprep.mubr.msk.f32.mxu1 %vm1443_vm5, %v6122_v58  ;;  %5051 = vmatprep.mubr.msk.f32.mxu0 %vm1382_vm7, %v6122_v58  ;;  %v6917_v43 = vpop.permute.xlu0 %1262  ;;  %vm1458_vm0 = vcmp.eq.s32.totalorder %v6915_v0, %v6415_v53  ;;  %vm1394_vm7 = vcmp.eq.s32.totalorder %v6691_v63, %v6412_v52 }
  0xeb   : > { %2800 = vmatprep.subr.mxu1 %v6121_v2  ;;  %421 = vperm.xlu1 %5854, %v270_v59   ;;  %vm1455_vm13 = vcmp.eq.s32.totalorder %v6917_v43, %v6415_v53 }
  0xec   : > { %418 = vperm.xlu0 %5853, %v269_v60   ;;  %5650 = vmatmul.mubr.msk.f32.gmra.mxu1 %vm1446_vm8, %v6122_v58  ;;  %v283_v60 = vld [vmem:[%s6423_s30 + $0x1c0] sm:$0xff] }
  0xed   : > { %2801 = vmatpush2.msra.mxu1 %v1917_v61  ;;  %5052 = vmatmul.mubr.msk.f32.gmra.mxu0 %vm1381_vm10, %v6122_v58  ;;  %v6937_v7 = vpop.permute.xlu1 %1271  ;;  %vm1393_vm10 = vcmp.eq.s32.totalorder %v6691_v63, %v6407_v49  ;;  %v1912_v63 = vld [vmem:[%s9691_s2 + $0xa8] sm:$0xff] }
  0xee   : > { %5652 = vmatprep.mubr.msk.f32.mxu1 %vm1449_vm9, %v6122_v58  ;;  %5053 = vmatprep.mubr.msk.f32.mxu0 %vm1385_vm11, %v6122_v58  ;;  %v6939_v50 = vpop.permute.xlu0 %1268  ;;  %vm1464_vm4 = vcmp.eq.s32.totalorder %v6937_v7, %v6415_v53  ;;  %vm1397_vm11 = vcmp.eq.s32.totalorder %v6689_v62, %v6412_v52 }
  0xef   : > { %2802 = vmatprep.subr.mxu1 %v6121_v2  ;;  %427 = vperm.xlu1 %5854, %v272_v1   ;;  %vm1461_vm1 = vcmp.eq.s32.totalorder %v6939_v50, %v6415_v53  ;;  %v286_v1 = vld [vmem:[%s6423_s30 + $0x1d8] sm:$0xff] }
  0xf0   : > { %424 = vperm.xlu0 %5853, %v271_v3   ;;  %5653 = vmatmul.mubr.msk.f32.gmra.mxu1 %vm1452_vm12, %v6122_v58  ;;  %v285_v3 = vld [vmem:[%s6423_s30 + $0x1d0] sm:$0xff] }
  0xf1   : > { %2803 = vmatpush2.msra.mxu1 %v1916_v6  ;;  %5054 = vmatmul.mubr.msk.f32.gmra.mxu0 %vm1384_vm14, %v6122_v58  ;;  %v6961_v13 = vpop.permute.xlu1 %1277  ;;  %vm1396_vm14 = vcmp.eq.s32.totalorder %v6689_v62, %v6407_v49  ;;  %v1911_v62 = vld [vmem:[%s9691_s2 + $0xa0] sm:$0xff]  ;;  %v1909_v6 = vld [vmem:[%s9691_s2 + $0x90] sm:$0xff] }
  0xf2   : > { %5655 = vmatprep.mubr.msk.f32.mxu1 %vm1455_vm13, %v6122_v58  ;;  %5055 = vmatprep.mubr.msk.f32.mxu0 %vm1388_vm15, %v6122_v58  ;;  %v6963_v48 = vpop.permute.xlu0 %1274  ;;  %vm1470_vm8 = vcmp.eq.s32.totalorder %v6961_v13, %v6415_v53  ;;  %vm1400_vm15 = vcmp.eq.s32.totalorder %v6713_v5, %v6412_v52 }
  0xf3   : > { %2804 = vmatprep.subr.mxu1 %v6121_v2  ;;  %433 = vperm.xlu1 %5854, %v274_v11   ;;  %vm1467_vm5 = vcmp.eq.s32.totalorder %v6963_v48, %v6415_v53 }
  0xf4   : > { %430 = vperm.xlu0 %5853, %v273_v12   ;;  %5656 = vmatmul.mubr.msk.f32.gmra.mxu1 %vm1458_vm0, %v6122_v58  ;;  %v288_v12 = vld [vmem:[%s6423_s30 + $0x1e8] sm:$0xff] }
  0xf5   : > { %5693 = vmatpush3.msra.mxu0 %v6952_v8  ;;  %2805 = vmatpush2.msra.mxu1 %v1915_v17  ;;  %v6983_v22 = vpop.permute.xlu1 %1283  ;;  %v287_v17 = vld [vmem:[%s6423_s30 + $0x1e0] sm:$0xff] }
  0xf6   : > { %5056 = vmatmul.mubr.msk.f32.gmra.mxu0 %vm1387_vm2, %v6122_v58  ;;  %v6985_v23 = vpop.permute.xlu0 %1280  ;;  %5658 = vmatprep.mubr.msk.f32.mxu1 %vm1461_vm1, %v6122_v58  ;;  %vm1476_vm12 = vcmp.eq.s32.totalorder %v6983_v22, %v6415_v53  ;;  %vm1399_vm2 = vcmp.eq.s32.totalorder %v6713_v5, %v6407_v49  ;;  %v1910_v5 = vld [vmem:[%s9691_s2 + $0x98] sm:$0xff] }
  0xf7   : > { %5057 = vmatprep.mubr.msk.f32.mxu0 %vm1391_vm3, %v6122_v58  ;;  %2806 = vmatprep.subr.mxu1 %v6121_v2  ;;  %vm1473_vm9 = vcmp.eq.s32.totalorder %v6985_v23, %v6415_v53  ;;  %vm1403_vm3 = vcmp.eq.s32.totalorder %v6711_v4, %v6412_v52 }
  0xf8   : > { %439 = vperm.xlu1 %5854, %v276_v18   ;;  %436 = vperm.xlu0 %5853, %v275_v19   ;;  %v1908_v18 = vld [vmem:[%s9691_s2 + $0x88] sm:$0xff] }
  0xf9   : > { %5659 = vmatmul.mubr.msk.f32.gmra.mxu1 %vm1464_vm4, %v6122_v58  ;;  %v7012_v29 = vpop.permute.xlu1 %1289  ;;  %5694 = vmatprep.subr.mxu0 %v7047_v41 }
  0xfa   : > { %2807 = vmatpush2.msra.mxu1 %v1914_v57  ;;  %5058 = vmatmul.mubr.msk.f32.gmra.mxu0 %vm1390_vm6, %v6122_v58  ;;  %v7005_v28 = vpop.permute.xlu0 %1286  ;;  %vm1482_vm0 = vcmp.eq.s32.totalorder %v7012_v29, %v6415_v53  ;;  %vm1402_vm6 = vcmp.eq.s32.totalorder %v6711_v4, %v6407_v49 }
  0xfb   : > { %5661 = vmatprep.mubr.msk.f32.mxu1 %vm1467_vm5, %v6122_v58  ;;  %5059 = vmatprep.mubr.msk.f32.mxu0 %vm1394_vm7, %v6122_v58  ;;  %vm1479_vm13 = vcmp.eq.s32.totalorder %v7005_v28, %v6415_v53  ;;  %vm1406_vm7 = vcmp.eq.s32.totalorder %v6735_v10, %v6412_v52 }
  0xfc   : > { %2808 = vmatprep.subr.mxu1 %v6121_v2  ;;  %445 = vperm.xlu1 %5854, %v278_v24   ;;  %v290_v24 = vld [vmem:[%s6423_s30 + $0x1f8] sm:$0xff] }
  0xfd   : > { %442 = vperm.xlu0 %5853, %v277_v27   ;;  %5662 = vmatmul.mubr.msk.f32.gmra.mxu1 %vm1470_vm8, %v6122_v58  ;;  %v7042_v40 = vpop.permute.xlu1 %1295  ;;  %v289_v27 = vld [vmem:[%s6423_s30 + $0x1f0] sm:$0xff] }
  0xfe   : > { %2809 = vmatpush2.msra.mxu1 %v1913_v56  ;;  %5060 = vmatmul.mubr.msk.f32.gmra.mxu0 %vm1393_vm10, %v6122_v58  ;;  %v7027_v35 = vpop.permute.xlu0 %1292  ;;  %vm1488_vm4 = vcmp.eq.s32.totalorder %v7042_v40, %v6415_v53  ;;  %vm1405_vm10 = vcmp.eq.s32.totalorder %v6735_v10, %v6407_v49  ;;  %v7136_v10 = vld [vmem:[%s9691_s2 + $0x140] sm:$0xff] }
  0xff   : > { %5664 = vmatprep.mubr.msk.f32.mxu1 %vm1473_vm9, %v6122_v58  ;;  %5061 = vmatprep.mubr.msk.f32.mxu0 %vm1397_vm11, %v6122_v58  ;;  %vm1485_vm1 = vcmp.eq.s32.totalorder %v7027_v35, %v6415_v53  ;;  %vm1409_vm11 = vcmp.eq.s32.totalorder %v6733_v9, %v6412_v52 }
 0x100   : > { %2810 = vmatprep.subr.mxu1 %v6121_v2  ;;  %451 = vperm.xlu1 %5854, %v280_v33   ;;  %v7187_v33 = vld [vmem:[%s9691_s2 + $0x130] sm:$0xff] }
 0x101   : > { %448 = vperm.xlu0 %5853, %v279_v34   ;;  %5665 = vmatmul.mubr.msk.f32.gmra.mxu1 %vm1476_vm12, %v6122_v58  ;;  %v7073_v59 = vpop.permute.xlu1 %1301 }
 0x102   : > { %2811 = vmatpush2.msra.mxu1 %v1912_v63  ;;  %5062 = vmatmul.mubr.msk.f32.gmra.mxu0 %vm1396_vm14, %v6122_v58  ;;  %v7054_v47 = vpop.permute.xlu0 %1298  ;;  %vm1494_vm8 = vcmp.eq.s32.totalorder %v7073_v59, %v6415_v53  ;;  %vm1408_vm14 = vcmp.eq.s32.totalorder %v6733_v9, %v6407_v49  ;;  %v1907_v9 = vld [vmem:[%s9691_s2 + $0x80] sm:$0xff] }
 0x103   : > { %5667 = vmatprep.mubr.msk.f32.mxu1 %vm1479_vm13, %v6122_v58  ;;  %5063 = vmatprep.mubr.msk.f32.mxu0 %vm1400_vm15, %v6122_v58  ;;  %vm1491_vm5 = vcmp.eq.s32.totalorder %v7054_v47, %v6415_v53  ;;  %vm1412_vm15 = vcmp.eq.s32.totalorder %v6757_v15, %v6412_v52 }
 0x104   : > { %2812 = vmatprep.subr.mxu1 %v6121_v2  ;;  %457 = vperm.xlu1 %5854, %v282_v38  }
 0x105   : > { %454 = vperm.xlu0 %5853, %v281_v46   ;;  %5668 = vmatmul.mubr.msk.f32.gmra.mxu1 %vm1482_vm0, %v6122_v58  ;;  %v7103_v11 = vpop.permute.xlu1 %1307 }
 0x106   : > { %5695 = vmatpush3.msra.mxu0 %v7047_v41  ;;  %2813 = vmatpush2.msra.mxu1 %v1911_v62  ;;  %v7078_v61 = vpop.permute.xlu0 %1304  ;;  %vm1500_vm12 = vcmp.eq.s32.totalorder %v7103_v11, %v6415_v53 }
 0x107   : > { %5064 = vmatmul.mubr.msk.f32.gmra.mxu0 %vm1399_vm2, %v6122_v58  ;;  %5670 = vmatprep.mubr.msk.f32.mxu1 %vm1485_vm1, %v6122_v58  ;;  %vm1497_vm9 = vcmp.eq.s32.totalorder %v7078_v61, %v6415_v53  ;;  %vm1411_vm2 = vcmp.eq.s32.totalorder %v6757_v15, %v6407_v49  ;;  %v6111_v15 = vld [vmem:[%s9691_s2 + $0x178] sm:$0xff] }
 0x108   : > { %5065 = vmatprep.mubr.msk.f32.mxu0 %vm1403_vm3, %v6122_v58  ;;  %2814 = vmatprep.subr.mxu1 %v6121_v2  ;;  %vm1415_vm3 = vcmp.eq.s32.totalorder %v6755_v14, %v6412_v52 }
 0x109   : > { %463 = vperm.xlu1 %5854, %v284_v51   ;;  %460 = vperm.xlu0 %5853, %v283_v60   ;;  %v7138_v19 = vpop.permute.xlu1 %1313 }
 0x10a   : > { %5671 = vmatmul.mubr.msk.f32.gmra.mxu1 %vm1488_vm4, %v6122_v58  ;;  %v7110_v4 = vpop.permute.xlu0 %1310  ;;  %5696 = vmatprep.subr.mxu0 %v7136_v10  ;;  %vm1506_vm0 = vcmp.eq.s32.totalorder %v7138_v19, %v6415_v53 }
 0x10b   : > { %2815 = vmatpush2.msra.mxu1 %v1910_v5  ;;  %5066 = vmatmul.mubr.msk.f32.gmra.mxu0 %vm1402_vm6, %v6122_v58  ;;  %vm1503_vm13 = vcmp.eq.s32.totalorder %v7110_v4, %v6415_v53 }
 0x10c   : > { %5673 = vmatprep.mubr.msk.f32.mxu1 %vm1491_vm5, %v6122_v58  ;;  %5067 = vmatprep.mubr.msk.f32.mxu0 %vm1406_vm7, %v6122_v58  ;;  %vm1414_vm5 = vcmp.eq.s32.totalorder %v6755_v14, %v6407_v49  ;;  %vm1418_vm7 = vcmp.eq.s32.totalorder %v6782_v21, %v6412_v52  ;;  %v7211_v14 = vld [vmem:[%s9691_s2 + $0x128] sm:$0xff] }
 0x10d   : > { %2816 = vmatprep.subr.mxu1 %v6121_v2  ;;  %469 = vperm.xlu1 %5854, %v286_v1   ;;  %v7170_v56 = vpop.permute.xlu1 %295 }
 0x10e   : > { %466 = vperm.xlu0 %5853, %v285_v3   ;;  %5674 = vmatmul.mubr.msk.f32.gmra.mxu1 %vm1494_vm8, %v6122_v58  ;;  %v7143_v57 = vpop.permute.xlu0 %292  ;;  %vm487_vm6 = vcmp.eq.s32.totalorder %v7170_v56, %v6412_v52  ;;  %vm486_vm8 = vcmp.eq.s32.totalorder %v7170_v56, %v6407_v49 }
 0x10f   : > { %2817 = vmatpush2.msra.mxu1 %v1909_v6  ;;  %5068 = vmatmul.mubr.msk.f32.gmra.mxu0 %vm1405_vm10, %v6122_v58  ;;  %vm484_vm1 = vcmp.eq.s32.totalorder %v7143_v57, %v6412_v52  ;;  %vm483_vm4 = vcmp.eq.s32.totalorder %v7143_v57, %v6407_v49 }
 0x110   : > { %5676 = vmatprep.mubr.msk.f32.mxu1 %vm1497_vm9, %v6122_v58  ;;  %5069 = vmatprep.mubr.msk.f32.mxu0 %vm1409_vm11, %v6122_v58  ;;  %vm1417_vm9 = vcmp.eq.s32.totalorder %v6782_v21, %v6407_v49  ;;  %vm1421_vm11 = vcmp.eq.s32.totalorder %v6780_v20, %v6412_v52 }
 0x111   : > { %2818 = vmatprep.subr.mxu1 %v6121_v2  ;;  %475 = vperm.xlu1 %5854, %v288_v12  }
 0x112   : > { %472 = vperm.xlu0 %5853, %v287_v17   ;;  %5677 = vmatmul.mubr.msk.f32.gmra.mxu1 %vm1500_vm12, %v6122_v58  ;;  %v7213_v63 = vpop.permute.xlu1 %301 }
 0x113   : > { %2819 = vmatpush2.msra.mxu1 %v1908_v18  ;;  %5070 = vmatmul.mubr.msk.f32.gmra.mxu0 %vm1408_vm14, %v6122_v58  ;;  %v7189_v34 = vpop.permute.xlu0 %298  ;;  %vm493_vm14 = vcmp.eq.s32.totalorder %v7213_v63, %v6412_v52 }
 0x114   : > { %5679 = vmatprep.mubr.msk.f32.mxu1 %vm1503_vm13, %v6122_v58  ;;  %5071 = vmatprep.mubr.msk.f32.mxu0 %vm1412_vm15, %v6122_v58  ;;  %vm490_vm10 = vcmp.eq.s32.totalorder %v7189_v34, %v6412_v52  ;;  %vm489_vm12 = vcmp.eq.s32.totalorder %v7189_v34, %v6407_v49  ;;  %vm1420_vm13 = vcmp.eq.s32.totalorder %v6780_v20, %v6407_v49 }
 0x115   : > { %2820 = vmatprep.subr.mxu1 %v6121_v2  ;;  %481 = vperm.xlu1 %5854, %v290_v24   ;;  %v7165_v2 = vld [vmem:[%s9691_s2 + $0x138] sm:$0xff]  ;;  %vm1424_vm15 = vcmp.eq.s32.totalorder %v6805_v26, %v6412_v52 }
 0x116   : > { %478 = vperm.xlu0 %5853, %v289_v27   ;;  %5680 = vmatmul.mubr.msk.f32.gmra.mxu1 %vm1506_vm0, %v6122_v58  ;;  %vm492_vm0 = vcmp.eq.s32.totalorder %v7213_v63, %v6407_v49  ;;  %v7259_v20 = vpop.permute.xlu1 %307 }
 0x117   : > { %5697 = vmatpush3.msra.mxu0 %v7136_v10  ;;  %2821 = vmatpush2.msra.mxu1 %v1907_v9  ;;  %v7236_v21 = vpop.permute.xlu0 %304 }
 0x118   : > { %5072 = vmatmul.mubr.msk.f32.gmra.mxu0 %vm1411_vm2, %v6122_v58  ;;  %5199 = vmatprep.mubr.msk.f32.mxu1 %vm484_vm1, %v6122_v58  ;;  %vm1423_vm1 = vcmp.eq.s32.totalorder %v6805_v26, %v6407_v49  ;;  %vm496_vm2 = vcmp.eq.s32.totalorder %v7236_v21, %v6412_v52 }
 0x119   : > { %5073 = vmatprep.mubr.msk.f32.mxu0 %vm1415_vm3, %v6122_v58  ;;  %5810 = vmatprep.subr.mxu1 %v6111_v15  ;;  %vm1427_vm3 = vcmp.eq.s32.totalorder %v6803_v25, %v6412_v52 }
 0x11a   : > { %5698 = vmatprep.subr.mxu0 %v7165_v2  ;;  %5200 = vmatmul.mubr.msk.f32.vlgmr.msra.gmra.mxu1 %vm483_vm4, %v6122_v58  ;;  %vm495_vm4 = vcmp.eq.s32.totalorder %v7236_v21, %v6407_v49 }
 0x11b   : > { %5699 = vmatpush3.msra.mxu0 %v7165_v2  ;;  %5826 = vmatpush3.msra.mxu1 %v6111_v15  ;;  %v7282_v26 = vpop.permute.xlu0 %310 }
 0x11c   : > { %5074 = vmatmul.mubr.msk.f32.gmra.mxu0 %vm1414_vm5, %v6122_v58  ;;  %5201 = vmatprep.mubr.msk.f32.mxu1 %vm487_vm6, %v6122_v58  ;;  %vm1426_vm5 = vcmp.eq.s32.totalorder %v6803_v25, %v6407_v49  ;;  %vm499_vm6 = vcmp.eq.s32.totalorder %v7259_v20, %v6412_v52  ;;  %v7303_v25 = vld [vmem:[%s9691_s2 + $0x108] sm:$0xff] }
 0x11d   : > { %5075 = vmatprep.mubr.msk.f32.mxu0 %vm1418_vm7, %v6122_v58  ;;  %5811 = vmatprep.subr.mxu1 %v6568_v31  ;;  %vm1430_vm7 = vcmp.eq.s32.totalorder %v6827_v32, %v6412_v52 }
 0x11e   : > { %5700 = vmatprep.subr.mxu0 %v7187_v33  ;;  %5202 = vmatmul.mubr.msk.f32.gmra.mxu1 %vm486_vm8, %v6122_v58  ;;  %vm498_vm8 = vcmp.eq.s32.totalorder %v7259_v20, %v6407_v49 }
 0x11f   : > { %5701 = vmatpush3.msra.mxu0 %v7187_v33  ;;  %5203 = vmatprep.mubr.msk.f32.mxu1 %vm490_vm10, %v6122_v58  ;;  %vm502_vm10 = vcmp.eq.s32.totalorder %v7282_v26, %v6412_v52 }
 0x120   : > { %5076 = vmatmul.mubr.msk.f32.gmra.mxu0 %vm1417_vm9, %v6122_v58  ;;  %5827 = vmatpush3.msra.mxu1 %v6568_v31  ;;  %v7234_v31 = vld [vmem:[%s9691_s2 + $0x120] sm:$0xff]  ;;  %vm1429_vm9 = vcmp.eq.s32.totalorder %v6827_v32, %v6407_v49 }
 0x121   : > { %5077 = vmatprep.mubr.msk.f32.mxu0 %vm1421_vm11, %v6122_v58  ;;  %5812 = vmatprep.subr.mxu1 %v6663_v55  ;;  %vm1433_vm11 = vcmp.eq.s32.totalorder %v6825_v30, %v6412_v52  ;;  %v7326_v32 = vld [vmem:[%s9691_s2 + $0x100] sm:$0xff] }
 0x122   : > { %5702 = vmatprep.subr.mxu0 %v7211_v14  ;;  %5204 = vmatmul.mubr.msk.f32.gmra.mxu1 %vm489_vm12, %v6122_v58  ;;  %vm501_vm12 = vcmp.eq.s32.totalorder %v7282_v26, %v6407_v49 }
 0x123   : > { %5703 = vmatpush3.msra.mxu0 %v7211_v14  ;;  %5205 = vmatprep.mubr.msk.f32.mxu1 %vm493_vm14, %v6122_v58 }
 0x124   : > { %5078 = vmatmul.mubr.msk.f32.gmra.mxu0 %vm1420_vm13, %v6122_v58  ;;  %5828 = vmatpush3.msra.mxu1 %v6663_v55  ;;  %v7257_v55 = vld [vmem:[%s9691_s2 + $0x118] sm:$0xff]  ;;  %vm1432_vm13 = vcmp.eq.s32.totalorder %v6825_v30, %v6407_v49 }
 0x125   : > { %5079 = vmatprep.mubr.msk.f32.mxu0 %vm1424_vm15, %v6122_v58  ;;  %5813 = vmatprep.subr.mxu1 %v6762_v16  ;;  %vm1436_vm15 = vcmp.eq.s32.totalorder %v6849_v37, %v6412_v52 }
 0x126   : > { %5704 = vmatprep.subr.mxu0 %v7234_v31  ;;  %5206 = vmatmul.mubr.msk.f32.gmra.mxu1 %vm492_vm0, %v6122_v58 }
 0x127   : > { %5705 = vmatpush3.msra.mxu0 %v7234_v31  ;;  %5207 = vmatprep.mubr.msk.f32.mxu1 %vm496_vm2, %v6122_v58 }
 0x128   : > { %5080 = vmatmul.mubr.msk.f32.gmra.mxu0 %vm1423_vm1, %v6122_v58  ;;  %5829 = vmatpush3.msra.mxu1 %v6762_v16  ;;  %v7280_v16 = vld [vmem:[%s9691_s2 + $0x110] sm:$0xff]  ;;  %vm1435_vm1 = vcmp.eq.s32.totalorder %v6849_v37, %v6407_v49 }
 0x129   : > { %5081 = vmatprep.mubr.msk.f32.mxu0 %vm1427_vm3, %v6122_v58  ;;  %5814 = vmatprep.subr.mxu1 %v6857_v39  ;;  %vm1439_vm3 = vcmp.eq.s32.totalorder %v6847_v36, %v6412_v52 }
 0x12a   : > { %5706 = vmatprep.subr.mxu0 %v7257_v55  ;;  %5208 = vmatmul.mubr.msk.f32.gmra.mxu1 %vm495_vm4, %v6122_v58 }
 0x12b   : > { %5707 = vmatpush3.msra.mxu0 %v7257_v55  ;;  %5209 = vmatprep.mubr.msk.f32.mxu1 %vm499_vm6, %v6122_v58 }
 0x12c   : > { %5082 = vmatmul.mubr.msk.f32.gmra.mxu0 %vm1426_vm5, %v6122_v58  ;;  %5830 = vmatpush3.msra.mxu1 %v6857_v39  ;;  %v7305_v39 = vpop.permute.xlu1 %313  ;;  %vm1438_vm5 = vcmp.eq.s32.totalorder %v6847_v36, %v6407_v49 }
 0x12d   : > { %5083 = vmatprep.mubr.msk.f32.mxu0 %vm1430_vm7, %v6122_v58  ;;  %5815 = vmatprep.subr.mxu1 %v6952_v8  ;;  %vm505_vm14 = vcmp.eq.s32.totalorder %v7305_v39, %v6412_v52  ;;  %vm504_vm0 = vcmp.eq.s32.totalorder %v7305_v39, %v6407_v49  ;;  %vm1442_vm7 = vcmp.eq.s32.totalorder %v6873_v45, %v6412_v52 }
 0x12e   : > { %5708 = vmatprep.subr.mxu0 %v7280_v16  ;;  %5210 = vmatmul.mubr.msk.f32.gmra.mxu1 %vm498_vm8, %v6122_v58 }
 0x12f   : > { %5709 = vmatpush3.msra.mxu0 %v7280_v16  ;;  %5211 = vmatprep.mubr.msk.f32.mxu1 %vm502_vm10, %v6122_v58 }
 0x130   : > { %5084 = vmatmul.mubr.msk.f32.gmra.mxu0 %vm1429_vm9, %v6122_v58  ;;  %5831 = vmatpush3.msra.mxu1 %v6952_v8  ;;  %v7328_v8 = vpop.permute.xlu0 %316  ;;  %v7346_v30 = vpop.permute.xlu1 %319  ;;  %vm1441_vm9 = vcmp.eq.s32.totalorder %v6873_v45, %v6407_v49 }
 0x131   : > { %5085 = vmatprep.mubr.msk.f32.mxu0 %vm1433_vm11, %v6122_v58  ;;  %5816 = vmatprep.subr.mxu1 %v7047_v41  ;;  %vm508_vm2 = vcmp.eq.s32.totalorder %v7328_v8, %v6412_v52  ;;  %vm507_vm4 = vcmp.eq.s32.totalorder %v7328_v8, %v6407_v49  ;;  %vm511_vm6 = vcmp.eq.s32.totalorder %v7346_v30, %v6412_v52 }
 0x132   : > { %5710 = vmatprep.subr.mxu0 %v7303_v25  ;;  %5212 = vmatmul.mubr.msk.f32.gmra.mxu1 %vm501_vm12, %v6122_v58  ;;  %vm510_vm8 = vcmp.eq.s32.totalorder %v7346_v30, %v6407_v49  ;;  %vm1445_vm11 = vcmp.eq.s32.totalorder %v6871_v42, %v6412_v52 }
 0x133   : > { %5711 = vmatpush3.msra.mxu0 %v7303_v25  ;;  %5213 = vmatprep.mubr.msk.f32.mxu1 %vm505_vm14, %v6122_v58 }
 0x134   : > { %5086 = vmatmul.mubr.msk.f32.gmra.mxu0 %vm1432_vm13, %v6122_v58  ;;  %5832 = vmatpush3.msra.mxu1 %v7047_v41  ;;  %v7362_v37 = vpop.permute.xlu0 %322  ;;  %v7378_v36 = vpop.permute.xlu1 %325  ;;  %vm1444_vm13 = vcmp.eq.s32.totalorder %v6871_v42, %v6407_v49 }
 0x135   : > { %5087 = vmatprep.mubr.msk.f32.mxu0 %vm1436_vm15, %v6122_v58  ;;  %5817 = vmatprep.subr.mxu1 %v7136_v10  ;;  %vm514_vm10 = vcmp.eq.s32.totalorder %v7362_v37, %v6412_v52  ;;  %vm513_vm12 = vcmp.eq.s32.totalorder %v7362_v37, %v6407_v49  ;;  %vm517_vm14 = vcmp.eq.s32.totalorder %v7378_v36, %v6412_v52 }
 0x136   : > { %5712 = vmatprep.subr.mxu0 %v7326_v32  ;;  %5214 = vmatmul.mubr.msk.f32.gmra.mxu1 %vm504_vm0, %v6122_v58  ;;  %vm1448_vm15 = vcmp.eq.s32.totalorder %v6895_v44, %v6412_v52  ;;  %vm516_vm0 = vcmp.eq.s32.totalorder %v7378_v36, %v6407_v49 }
 0x137   : > { %5713 = vmatpush3.msra.mxu0 %v7326_v32  ;;  %5215 = vmatprep.mubr.msk.f32.mxu1 %vm508_vm2, %v6122_v58 }
 0x138   : > { %5088 = vmatmul.mubr.msk.f32.gmra.mxu0 %vm1435_vm1, %v6122_v58  ;;  %5833 = vmatpush3.msra.mxu1 %v7136_v10  ;;  %v7394_v45 = vpop.permute.xlu0 %328  ;;  %vm1447_vm1 = vcmp.eq.s32.totalorder %v6895_v44, %v6407_v49  ;;  %v7410_v42 = vpop.permute.xlu1 %331 }
 0x139   : > { %5089 = vmatprep.mubr.msk.f32.mxu0 %vm1439_vm3, %v6122_v58  ;;  %5818 = vmatprep.subr.mxu1 %v7165_v2  ;;  %vm520_vm2 = vcmp.eq.s32.totalorder %v7394_v45, %v6412_v52  ;;  %vm1451_vm3 = vcmp.eq.s32.totalorder %v6893_v54, %v6412_v52 }
 0x13a   : > { %5216 = vmatmul.mubr.msk.f32.gmra.mxu1 %vm507_vm4, %v6122_v58  ;;  %vm519_vm4 = vcmp.eq.s32.totalorder %v7394_v45, %v6407_v49 }
 0x13b   : > { %5217 = vmatprep.mubr.msk.f32.mxu1 %vm511_vm6, %v6122_v58  ;;  %5834 = vmatpush3.msra.mxu1 %v7165_v2  ;;  %vm523_vm6 = vcmp.eq.s32.totalorder %v7410_v42, %v6412_v52 }
 0x13c   : > { %5090 = vmatmul.mubr.msk.f32.gmra.mxu0 %vm1438_vm5, %v6122_v58  ;;  %5819 = vmatprep.subr.mxu1 %v7187_v33  ;;  %vm1450_vm5 = vcmp.eq.s32.totalorder %v6893_v54, %v6407_v49  ;;  %v7426_v44 = vpop.permute.xlu0 %334  ;;  %v7442_v54 = vpop.permute.xlu1 %337 }
 0x13d   : > { %5091 = vmatprep.mubr.msk.f32.mxu0 %vm1442_vm7, %v6122_v58  ;;  %5835 = vmatpush3.msra.mxu1 %v7187_v33  ;;  %vm1454_vm7 = vcmp.eq.s32.totalorder %v6917_v43, %v6412_v52 }
 0x13e   : > { %5218 = vmatmul.mubr.msk.f32.gmra.mxu1 %vm510_vm8, %v6122_v58  ;;  %5820 = vmatprep.subr.mxu1 %v7211_v14  ;;  %vm522_vm8 = vcmp.eq.s32.totalorder %v7410_v42, %v6407_v49 }
 0x13f   : > { %5219 = vmatprep.mubr.msk.f32.mxu1 %vm514_vm10, %v6122_v58  ;;  %5836 = vmatpush3.msra.mxu1 %v7211_v14  ;;  %vm526_vm10 = vcmp.eq.s32.totalorder %v7426_v44, %v6412_v52 }
 0x140   : > { %5092 = vmatmul.mubr.msk.f32.gmra.mxu0 %vm1441_vm9, %v6122_v58  ;;  %5821 = vmatprep.subr.mxu1 %v7234_v31  ;;  %vm1453_vm9 = vcmp.eq.s32.totalorder %v6917_v43, %v6407_v49  ;;  %v7458_v38 = vpop.permute.xlu0 %340  ;;  %v7478_v1 = vpop.permute.xlu1 %343 }
 0x141   : > { %5093 = vmatprep.mubr.msk.f32.mxu0 %vm1445_vm11, %v6122_v58  ;;  %5837 = vmatpush3.msra.mxu1 %v7234_v31  ;;  %vm1457_vm11 = vcmp.eq.s32.totalorder %v6915_v0, %v6412_v52 }
 0x142   : > { %5220 = vmatmul.mubr.msk.f32.gmra.mxu1 %vm513_vm12, %v6122_v58  ;;  %5822 = vmatprep.subr.mxu1 %v7257_v55  ;;  %vm525_vm12 = vcmp.eq.s32.totalorder %v7426_v44, %v6407_v49 }
 0x143   : > { %5221 = vmatprep.mubr.msk.f32.mxu1 %vm517_vm14, %v6122_v58  ;;  %5838 = vmatpush3.msra.mxu1 %v7257_v55  ;;  %vm529_vm14 = vcmp.eq.s32.totalorder %v7442_v54, %v6412_v52 }
 0x144   : > { %5094 = vmatmul.mubr.msk.f32.gmra.mxu0 %vm1444_vm13, %v6122_v58  ;;  %5823 = vmatprep.subr.mxu1 %v7280_v16  ;;  %vm1456_vm13 = vcmp.eq.s32.totalorder %v6915_v0, %v6407_v49  ;;  %v7495_v18 = vpop.permute.xlu0 %346  ;;  %v7511_v2 = vpop.permute.xlu1 %349 }
 0x145   : > { %5095 = vmatprep.mubr.msk.f32.mxu0 %vm1448_vm15, %v6122_v58  ;;  %5839 = vmatpush3.msra.mxu1 %v7280_v16  ;;  %vm1460_vm15 = vcmp.eq.s32.totalorder %v6939_v50, %v6412_v52 }
 0x146   : > { %5222 = vmatmul.mubr.msk.f32.gmra.mxu1 %vm516_vm0, %v6122_v58  ;;  %5824 = vmatprep.subr.mxu1 %v7303_v25  ;;  %vm528_vm0 = vcmp.eq.s32.totalorder %v7442_v54, %v6407_v49 }
 0x147   : > { %5223 = vmatprep.mubr.msk.f32.mxu1 %vm520_vm2, %v6122_v58  ;;  %5840 = vmatpush3.msra.mxu1 %v7303_v25  ;;  %vm532_vm2 = vcmp.eq.s32.totalorder %v7458_v38, %v6412_v52 }
 0x148   : > { %5096 = vmatmul.mubr.msk.f32.gmra.mxu0 %vm1447_vm1, %v6122_v58  ;;  %5825 = vmatprep.subr.mxu1 %v7326_v32  ;;  %vm1459_vm1 = vcmp.eq.s32.totalorder %v6939_v50, %v6407_v49  ;;  %v7527_v31 = vpop.permute.xlu0 %352 }
 0x149   : > { %5097 = vmatprep.mubr.msk.f32.mxu0 %vm1451_vm3, %v6122_v58  ;;  %vm1463_vm3 = vcmp.eq.s32.totalorder %v6937_v7, %v6412_v52  ;;  %5841 = vmatpush3.msra.mxu1 %v7326_v32 }
 0x14a   : > { %5224 = vmatmul.mubr.msk.f32.gmra.mxu1 %vm519_vm4, %v6122_v58  ;;  %vm531_vm4 = vcmp.eq.s32.totalorder %v7458_v38, %v6407_v49 }
 0x14b   : > { %5225 = vmatprep.mubr.msk.f32.mxu1 %vm523_vm6, %v6122_v58  ;;  %vm535_vm6 = vcmp.eq.s32.totalorder %v7478_v1, %v6412_v52 }
 0x14c   : > { %5098 = vmatmul.mubr.msk.f32.gmra.mxu0 %vm1450_vm5, %v6122_v58  ;;  %vm1462_vm5 = vcmp.eq.s32.totalorder %v6937_v7, %v6407_v49 }
 0x14d   : > { %5099 = vmatprep.mubr.msk.f32.mxu0 %vm1454_vm7, %v6122_v58  ;;  %vm1466_vm7 = vcmp.eq.s32.totalorder %v6963_v48, %v6412_v52 }
 0x14e   : > { %5226 = vmatmul.mubr.msk.f32.gmra.mxu1 %vm522_vm8, %v6122_v58  ;;  %vm534_vm8 = vcmp.eq.s32.totalorder %v7478_v1, %v6407_v49 }
 0x14f   : > { %5227 = vmatprep.mubr.msk.f32.mxu1 %vm526_vm10, %v6122_v58  ;;  %vm538_vm10 = vcmp.eq.s32.totalorder %v7495_v18, %v6412_v52 }
 0x150   : > { %5100 = vmatmul.mubr.msk.f32.gmra.mxu0 %vm1453_vm9, %v6122_v58  ;;  %vm1465_vm9 = vcmp.eq.s32.totalorder %v6963_v48, %v6407_v49 }
 0x151   : > { %5101 = vmatprep.mubr.msk.f32.mxu0 %vm1457_vm11, %v6122_v58  ;;  %v2054_v41 = vpop.f32.mrf.mxu0  ;;  %vm1469_vm11 = vcmp.eq.s32.totalorder %v6961_v13, %v6412_v52 }
 0x152   : > { %5228 = vmatmul.mubr.msk.f32.gmra.mxu1 %vm525_vm12, %v6122_v58  ;;  %vm537_vm12 = vcmp.eq.s32.totalorder %v7495_v18, %v6407_v49 }
 0x153   : > { %v2056_v43 = vpop.f32.mrf.mxu0  ;;  %5229 = vmatprep.mubr.msk.f32.mxu1 %vm529_vm14, %v6122_v58  ;;  %vm541_vm14 = vcmp.eq.s32.totalorder %v7511_v2, %v6412_v52 }
 0x154   : > { %5102 = vmatmul.mubr.msk.f32.gmra.mxu0 %vm1456_vm13, %v6122_v58  ;;  %v5588_v46 = vpop.f32.mrf.mxu1  ;;  %vm1468_vm13 = vcmp.eq.s32.totalorder %v6961_v13, %v6407_v49 }
 0x155   : > { %5103 = vmatprep.mubr.msk.f32.mxu0 %vm1460_vm15, %v6122_v58  ;;  %v2059_v62 = vpop.f32.mrf.mxu0  ;;  %vm1472_vm15 = vcmp.eq.s32.totalorder %v6985_v23, %v6412_v52 }
 0x156   : > { %v7468_v0 = vadd.f32 %v5588_v46, %v2059_v62  ;;  %v2439_v51 = vpop.f32.mrf.mxu1  ;;  %5230 = vmatmul.mubr.msk.f32.gmra.mxu1 %vm528_vm0, %v6122_v58  ;;  %vm540_vm0 = vcmp.eq.s32.totalorder %v7511_v2, %v6407_v49 }
 0x157   : > { %v7476_v60 = vadd.f32 %v2439_v51, %v2054_v41  ;;  %v2061_v5 = vpop.f32.mrf.mxu0  ;;  %5231 = vmatprep.mubr.msk.f32.mxu1 %vm532_vm2, %v6122_v58  ;;  %vm544_vm2 = vcmp.eq.s32.totalorder %v7527_v31, %v6412_v52  ;;  %v7545_v41 = vpop.permute.xlu1 %355 }
 0x158   : > { %5104 = vmatmul.mubr.msk.f32.gmra.mxu0 %vm1459_vm1, %v6122_v58  ;;  %v5591_v3 = vpop.f32.mrf.mxu1  ;;  %vm1471_vm1 = vcmp.eq.s32.totalorder %v6985_v23, %v6407_v49  ;;  %v7563_v5 = vpop.permute.xlu0 %358 }
 0x159   : > { %5105 = vmatprep.mubr.msk.f32.mxu0 %vm1463_vm3, %v6122_v58  ;;  %v2064_v6 = vpop.f32.mrf.mxu0  ;;  %vm1475_vm3 = vcmp.eq.s32.totalorder %v6983_v22, %v6412_v52 }
 0x15a   : > { %v2449_v50 = vpop.f32.mrf.mxu1  ;;  %5232 = vmatmul.mubr.msk.f32.gmra.mxu1 %vm531_vm4, %v6122_v58  ;;  %vm543_vm4 = vcmp.eq.s32.totalorder %v7527_v31, %v6407_v49 }
 0x15b   : > { %v7493_v12 = vadd.f32 %v2449_v50, %v2064_v6  ;;  %v2066_v17 = vpop.f32.mrf.mxu0  ;;  %5233 = vmatprep.mubr.msk.f32.mxu1 %vm535_vm6, %v6122_v58  ;;  %vm547_vm6 = vcmp.eq.s32.totalorder %v7545_v41, %v6412_v52  ;;  %v7574_v50 = vpop.permute.xlu1 %361 }
 0x15c   : > { %5106 = vmatmul.mubr.msk.f32.gmra.mxu0 %vm1462_vm5, %v6122_v58  ;;  %v5594_v10 = vpop.f32.mrf.mxu1  ;;  %vm1474_vm5 = vcmp.eq.s32.totalorder %v6983_v22, %v6407_v49 }
 0x15d   : > { %5107 = vmatprep.mubr.msk.f32.mxu0 %vm1466_vm7, %v6122_v58  ;;  %v2069_v24 = vpop.f32.mrf.mxu0  ;;  %vm1478_vm7 = vcmp.eq.s32.totalorder %v7005_v28, %v6412_v52 }
 0x15e   : > { %v7504_v7 = vadd.f32 %v5591_v3, %v2069_v24  ;;  %5234 = vmatmul.mubr.msk.f32.gmra.mxu1 %vm534_vm8, %v6122_v58  ;;  %v2459_v27 = vpop.f32.mrf.mxu1  ;;  %vm546_vm8 = vcmp.eq.s32.totalorder %v7545_v41, %v6407_v49 }
 0x15f   : > { %v2071_v9 = vpop.f32.mrf.mxu0  ;;  %5235 = vmatprep.mubr.msk.f32.mxu1 %vm538_vm10, %v6122_v58  ;;  %vm550_vm10 = vcmp.eq.s32.totalorder %v7563_v5, %v6412_v52 }
 0x160   : > { %5108 = vmatmul.mubr.msk.f32.gmra.mxu0 %vm1465_vm9, %v6122_v58  ;;  %v5597_v15 = vpop.f32.mrf.mxu1  ;;  %vm1477_vm9 = vcmp.eq.s32.totalorder %v7005_v28, %v6407_v49 }
 0x161   : > { %5109 = vmatprep.mubr.msk.f32.mxu0 %vm1469_vm11, %v6122_v58  ;;  %v2074_v33 = vpop.f32.mrf.mxu0  ;;  %vm1481_vm11 = vcmp.eq.s32.totalorder %v7012_v29, %v6412_v52 }
 0x162   : > { %v7520_v48 = vadd.f32 %v2459_v27, %v2074_v33  ;;  %5236 = vmatmul.mubr.msk.f32.gmra.mxu1 %vm537_vm12, %v6122_v58  ;;  %v2469_v14 = vpop.f32.mrf.mxu1  ;;  %vm549_vm12 = vcmp.eq.s32.totalorder %v7563_v5, %v6407_v49 }
 0x163   : > { %5237 = vmatprep.mubr.msk.f32.mxu1 %vm541_vm14, %v6122_v58  ;;  %v2076_v55 = vpop.f32.mrf.mxu0  ;;  %vm553_vm14 = vcmp.eq.s32.totalorder %v7574_v50, %v6412_v52 }
 0x164   : > { %5110 = vmatmul.mubr.msk.f32.gmra.mxu0 %vm1468_vm13, %v6122_v58  ;;  %v7534_v16 = vpop.f32.mrf.mxu1  ;;  %vm1480_vm13 = vcmp.eq.s32.totalorder %v7012_v29, %v6407_v49 }
 0x165   : > { %5111 = vmatprep.mubr.msk.f32.mxu0 %vm1472_vm15, %v6122_v58  ;;  %v2079_v13 = vpop.f32.mrf.mxu0  ;;  %vm1484_vm15 = vcmp.eq.s32.totalorder %v7027_v35, %v6412_v52 }
 0x166   : > { %5238 = vmatmul.mubr.msk.f32.gmra.mxu1 %vm540_vm0, %v6122_v58  ;;  %v7543_v25 = vadd.f32 %v5594_v10, %v2079_v13  ;;  %v2479_v32 = vpop.f32.mrf.mxu1  ;;  %vm552_vm0 = vcmp.eq.s32.totalorder %v7574_v50, %v6407_v49  ;;  %v7619_v13 = vpop.permute.xlu1 %367 }
 0x167   : > { %5239 = vmatprep.mubr.msk.f32.mxu1 %vm544_vm2, %v6122_v58  ;;  %v2081_v43 = vpop.f32.mrf.mxu0 }
 0x168   : > { %5112 = vmatmul.mubr.msk.f32.gmra.mxu0 %vm1471_vm1, %v6122_v58  ;;  %v7552_v46 = vpop.f32.mrf.mxu1  ;;  %vm1483_vm1 = vcmp.eq.s32.totalorder %v7027_v35, %v6407_v49 }
 0x169   : > { %5113 = vmatprep.mubr.msk.f32.mxu0 %vm1475_vm3, %v6122_v58  ;;  %v2084_v23 = vpop.f32.mrf.mxu0  ;;  %vm1487_vm3 = vcmp.eq.s32.totalorder %v7042_v40, %v6412_v52 }
 0x16a   : > { %5240 = vmatmul.mubr.msk.f32.gmra.mxu1 %vm543_vm4, %v6122_v58  ;;  %v7561_v62 = vadd.f32 %v2469_v14, %v2084_v23  ;;  %v2489_v51 = vpop.f32.mrf.mxu1 }
 0x16b   : > { %5241 = vmatprep.mubr.msk.f32.mxu1 %vm547_vm6, %v6122_v58  ;;  %v2086_v3 = vpop.f32.mrf.mxu0  ;;  %vm559_vm6 = vcmp.eq.s32.totalorder %v7619_v13, %v6412_v52 }
 0x16c   : > { %5114 = vmatmul.mubr.msk.f32.gmra.mxu0 %vm1474_vm5, %v6122_v58  ;;  %v7570_v6 = vpop.f32.mrf.mxu1  ;;  %vm1486_vm5 = vcmp.eq.s32.totalorder %v7042_v40, %v6407_v49 }
 0x16d   : > { %5115 = vmatprep.mubr.msk.f32.mxu0 %vm1478_vm7, %v6122_v58  ;;  %v2089_v22 = vpop.f32.mrf.mxu0  ;;  %vm1490_vm7 = vcmp.eq.s32.totalorder %v7054_v47, %v6412_v52 }
 0x16e   : > { %5242 = vmatmul.mubr.msk.f32.gmra.mxu1 %vm546_vm8, %v6122_v58  ;;  %v7581_v17 = vadd.f32 %v5597_v15, %v2089_v22  ;;  %v7587_v10 = vpop.f32.mrf.mxu1  ;;  %v7601_v15 = vpop.permute.xlu0 %364  ;;  %vm558_vm8 = vcmp.eq.s32.totalorder %v7619_v13, %v6407_v49 }
 0x16f   : > { %5243 = vmatprep.mubr.msk.f32.mxu1 %vm550_vm10, %v6122_v58  ;;  %v2091_v24 = vpop.f32.mrf.mxu0  ;;  %vm556_vm2 = vcmp.eq.s32.totalorder %v7601_v15, %v6412_v52  ;;  %vm555_vm4 = vcmp.eq.s32.totalorder %v7601_v15, %v6407_v49 }
 0x170   : > { %9732 = vst [vmem:[#allocation2_spill] sm:$0xff] %v7581_v17  ;;  %5116 = vmatmul.mubr.msk.f32.gmra.mxu0 %vm1477_vm9, %v6122_v58  ;;  %v7592_v28 = vpop.f32.mrf.mxu1  ;;  %vm1489_vm9 = vcmp.eq.s32.totalorder %v7054_v47, %v6407_v49 }
 0x171   : > { %5117 = vmatprep.mubr.msk.f32.mxu0 %vm1481_vm11, %v6122_v58  ;;  %vm1493_vm11 = vcmp.eq.s32.totalorder %v7073_v59, %v6412_v52 }
 0x172   : > { %v2094_v27 = vpop.f32.mrf.mxu0  ;;  %5244 = vmatmul.mubr.msk.f32.gmra.mxu1 %vm549_vm12, %v6122_v58  ;;  %v7607_v33 = vpop.f32.mrf.mxu1 }
 0x173   : > { %v7599_v9 = vadd.f32 %v2479_v32, %v2094_v27  ;;  %5245 = vmatprep.mubr.msk.f32.mxu1 %vm553_vm14, %v6122_v58  ;;  %v7640_v3 = vpop.permute.xlu0 %370 }
 0x174   : > { %5118 = vmatmul.mubr.msk.f32.gmra.mxu0 %vm1480_vm13, %v6122_v58  ;;  %v2096_v14 = vpop.f32.mrf.mxu0  ;;  %vm562_vm10 = vcmp.eq.s32.totalorder %v7640_v3, %v6412_v52  ;;  %vm561_vm12 = vcmp.eq.s32.totalorder %v7640_v3, %v6407_v49  ;;  %vm1492_vm13 = vcmp.eq.s32.totalorder %v7073_v59, %v6407_v49 }
 0x175   : > { %9733 = vst [vmem:[#allocation3_spill] sm:$0xff] %v7599_v9  ;;  %5119 = vmatprep.mubr.msk.f32.mxu0 %vm1484_vm15, %v6122_v58  ;;  %v7612_v29 = vpop.f32.mrf.mxu1  ;;  %v7660_v14 = vpop.permute.xlu1 %373  ;;  %vm1496_vm15 = vcmp.eq.s32.totalorder %v7078_v61, %v6412_v52 }
 0x176   : > { %5246 = vmatmul.mubr.msk.f32.gmra.mxu1 %vm552_vm0, %v6122_v58  ;;  %v2099_v55 = vpop.f32.mrf.mxu0  ;;  %vm565_vm14 = vcmp.eq.s32.totalorder %v7660_v14, %v6412_v52  ;;  %vm564_vm0 = vcmp.eq.s32.totalorder %v7660_v14, %v6407_v49 }
 0x177   : > { %5247 = vmatprep.mubr.msk.f32.mxu1 %vm556_vm2, %v6122_v58  ;;  %v7626_v32 = vadd.f32 %v7534_v16, %v2099_v55  ;;  %v7628_v43 = vpop.f32.mrf.mxu1 }
 0x178   : > { %5120 = vmatmul.mubr.msk.f32.gmra.mxu0 %vm1483_vm1, %v6122_v58  ;;  %v2101_v35 = vpop.f32.mrf.mxu0  ;;  %vm1495_vm1 = vcmp.eq.s32.totalorder %v7078_v61, %v6407_v49 }
 0x179   : > { %9734 = vst [vmem:[#allocation4_spill] sm:$0xff] %v7626_v32  ;;  %5121 = vmatprep.mubr.msk.f32.mxu0 %vm1487_vm3, %v6122_v58  ;;  %v7633_v23 = vpop.f32.mrf.mxu1  ;;  %vm1499_vm3 = vcmp.eq.s32.totalorder %v7103_v11, %v6412_v52 }
 0x17a   : > { %5248 = vmatmul.mubr.msk.f32.gmra.mxu1 %vm555_vm4, %v6122_v58  ;;  %v2104_v16 = vpop.f32.mrf.mxu0 }
 0x17b   : > { %5249 = vmatprep.mubr.msk.f32.mxu1 %vm559_vm6, %v6122_v58  ;;  %v7646_v22 = vadd.f32 %v2489_v51, %v2104_v16  ;;  %v7648_v24 = vpop.f32.mrf.mxu1 }
 0x17c   : > { %5122 = vmatmul.mubr.msk.f32.gmra.mxu0 %vm1486_vm5, %v6122_v58  ;;  %v2106_v40 = vpop.f32.mrf.mxu0  ;;  %vm1498_vm5 = vcmp.eq.s32.totalorder %v7103_v11, %v6407_v49 }
 0x17d   : > { %9735 = vst [vmem:[#allocation5_spill] sm:$0xff] %v7646_v22  ;;  %5123 = vmatprep.mubr.msk.f32.mxu0 %vm1490_vm7, %v6122_v58  ;;  %v7653_v27 = vpop.f32.mrf.mxu1  ;;  %v7681_v40 = vpop.permute.xlu0 %376  ;;  %vm1502_vm7 = vcmp.eq.s32.totalorder %v7110_v4, %v6412_v52 }
 0x17e   : > { %5250 = vmatmul.mubr.msk.f32.gmra.mxu1 %vm558_vm8, %v6122_v58  ;;  %v2109_v51 = vpop.f32.mrf.mxu0  ;;  %vm568_vm2 = vcmp.eq.s32.totalorder %v7681_v40, %v6412_v52  ;;  %vm567_vm4 = vcmp.eq.s32.totalorder %v7681_v40, %v6407_v49 }
 0x17f   : > { %5251 = vmatprep.mubr.msk.f32.mxu1 %vm562_vm10, %v6122_v58  ;;  %v7667_v55 = vadd.f32 %v7552_v46, %v2109_v51  ;;  %v7670_v35 = vpop.f32.mrf.mxu1 }
 0x180   : > { %5124 = vmatmul.mubr.msk.f32.gmra.mxu0 %vm1489_vm9, %v6122_v58  ;;  %v2111_v47 = vpop.f32.mrf.mxu0  ;;  %vm1501_vm9 = vcmp.eq.s32.totalorder %v7110_v4, %v6407_v49 }
 0x181   : > { %9736 = vst [vmem:[#allocation6_spill] sm:$0xff] %v7667_v55  ;;  %5125 = vmatprep.mubr.msk.f32.mxu0 %vm1493_vm11, %v6122_v58  ;;  %v7679_v16 = vpop.f32.mrf.mxu1  ;;  %v7723_v32 = vpop.permute.xlu0 %382  ;;  %vm1505_vm11 = vcmp.eq.s32.totalorder %v7138_v19, %v6412_v52 }
 0x182   : > { %5252 = vmatmul.mubr.msk.f32.gmra.mxu1 %vm561_vm12, %v6122_v58  ;;  %vm574_vm10 = vcmp.eq.s32.totalorder %v7723_v32, %v6412_v52  ;;  %vm573_vm12 = vcmp.eq.s32.totalorder %v7723_v32, %v6407_v49 }
 0x183   : > { %v2114_v46 = vpop.f32.mrf.mxu0  ;;  %5253 = vmatprep.mubr.msk.f32.mxu1 %vm565_vm14, %v6122_v58  ;;  %v7691_v59 = vpop.f32.mrf.mxu1 }
 0x184   : > { %5126 = vmatmul.mubr.msk.f32.gmra.mxu0 %vm1492_vm13, %v6122_v58  ;;  %v7688_v51 = vadd.f32 %v7587_v10, %v2114_v46  ;;  %v7702_v10 = vpop.permute.xlu1 %379  ;;  %vm1504_vm13 = vcmp.eq.s32.totalorder %v7138_v19, %v6407_v49 }
 0x185   : > { %5127 = vmatprep.mubr.msk.f32.mxu0 %vm1496_vm15, %v6122_v58  ;;  %v2116_v47 = vpop.f32.mrf.mxu0  ;;  %vm571_vm6 = vcmp.eq.s32.totalorder %v7702_v10, %v6412_v52  ;;  %vm570_vm8 = vcmp.eq.s32.totalorder %v7702_v10, %v6407_v49  ;;  %vm485_vm15 = vcmp.eq.s32.totalorder %v7143_v57, %v6415_v53 }
 0x186   : > { %9737 = vst [vmem:[#allocation7_spill] sm:$0xff] %v7688_v51  ;;  %5254 = vmatmul.mubr.msk.f32.gmra.mxu1 %vm564_vm0, %v6122_v58  ;;  %v7700_v55 = vpop.f32.mrf.mxu1 }
 0x187   : > { %5255 = vmatprep.mubr.msk.f32.mxu1 %vm568_vm2, %v6122_v58  ;;  %v2119_v46 = vpop.f32.mrf.mxu0 }
 0x188   : > { %5128 = vmatmul.mubr.msk.f32.gmra.mxu0 %vm1495_vm1, %v6122_v58  ;;  %v7710_v47 = vadd.f32 %v7570_v6, %v2119_v46  ;;  %v7712_v61 = vpop.f32.mrf.mxu1  ;;  %v7744_v9 = vpop.permute.xlu1 %385  ;;  %vm488_vm1 = vcmp.eq.s32.totalorder %v7170_v56, %v6415_v53 }
 0x189   : > { %5129 = vmatprep.mubr.msk.f32.mxu0 %vm1499_vm3, %v6122_v58  ;;  %v2121_v51 = vpop.f32.mrf.mxu0  ;;  %vm577_vm14 = vcmp.eq.s32.totalorder %v7744_v9, %v6412_v52  ;;  %vm576_vm0 = vcmp.eq.s32.totalorder %v7744_v9, %v6407_v49  ;;  %vm491_vm3 = vcmp.eq.s32.totalorder %v7189_v34, %v6415_v53 }
 0x18a   : > { %9738 = vst [vmem:[#allocation8_spill] sm:$0xff] %v7710_v47  ;;  %5256 = vmatmul.mubr.msk.f32.gmra.mxu1 %vm567_vm4, %v6122_v58  ;;  %v7721_v22 = vpop.f32.mrf.mxu1 }
 0x18b   : > { %5257 = vmatprep.mubr.msk.f32.mxu1 %vm571_vm6, %v6122_v58  ;;  %v2124_v6 = vpop.f32.mrf.mxu0  ;;  %vm494_vm6 = vcmp.eq.s32.totalorder %v7213_v63, %v6415_v53 }
 0x18c   : > { %5130 = vmatmul.mubr.msk.f32.gmra.mxu0 %vm1498_vm5, %v6122_v58  ;;  %v7731_v51 = vadd.f32 %v7607_v33, %v2124_v6  ;;  %v7733_v11 = vpop.f32.mrf.mxu1  ;;  %v7781_v17 = vpop.permute.xlu1 %391 }
 0x18d   : > { %5131 = vmatprep.mubr.msk.f32.mxu0 %vm1502_vm7, %v6122_v58  ;;  %v2126_v46 = vpop.f32.mrf.mxu0  ;;  %vm583_vm5 = vcmp.eq.s32.totalorder %v7781_v17, %v6412_v52  ;;  %vm497_vm7 = vcmp.eq.s32.totalorder %v7236_v21, %v6415_v53 }
 0x18e   : > { %9739 = vst [vmem:[#allocation9_spill] sm:$0xff] %v7731_v51  ;;  %5258 = vmatmul.mubr.msk.f32.gmra.mxu1 %vm570_vm8, %v6122_v58  ;;  %v7742_v47 = vpop.f32.mrf.mxu1  ;;  %v7758_v51 = vpop.permute.xlu0 %388  ;;  %vm582_vm8 = vcmp.eq.s32.totalorder %v7781_v17, %v6407_v49 }
 0x18f   : > { %5259 = vmatprep.mubr.msk.f32.mxu1 %vm574_vm10, %v6122_v58  ;;  %v2129_v33 = vpop.f32.mrf.mxu0  ;;  %vm580_vm2 = vcmp.eq.s32.totalorder %v7758_v51, %v6412_v52  ;;  %vm579_vm4 = vcmp.eq.s32.totalorder %v7758_v51, %v6407_v49  ;;  %vm500_vm10 = vcmp.eq.s32.totalorder %v7259_v20, %v6415_v53 }
 0x190   : > { %5132 = vmatmul.mubr.msk.f32.gmra.mxu0 %vm1501_vm9, %v6122_v58  ;;  %v7752_v6 = vadd.f32 %v7592_v28, %v2129_v33  ;;  %v7756_v4 = vpop.f32.mrf.mxu1 }
 0x191   : > { %5133 = vmatprep.mubr.msk.f32.mxu0 %vm1505_vm11, %v6122_v58  ;;  %v2131_v46 = vpop.f32.mrf.mxu0  ;;  %vm503_vm11 = vcmp.eq.s32.totalorder %v7282_v26, %v6415_v53 }
 0x192   : > { %9740 = vst [vmem:[#allocation10_spill] sm:$0xff] %v7752_v6  ;;  %5260 = vmatmul.mubr.msk.f32.gmra.mxu1 %vm573_vm12, %v6122_v58  ;;  %v7769_v28 = vpop.f32.mrf.mxu1 }
 0x193   : > { %5261 = vmatprep.mubr.msk.f32.mxu1 %vm577_vm14, %v6122_v58  ;;  %vm506_vm14 = vcmp.eq.s32.totalorder %v7305_v39, %v6415_v53 }
 0x194   : > { %5134 = vmatmul.mubr.msk.f32.gmra.mxu0 %vm1504_vm13, %v6122_v58  ;;  %v2134_v33 = vpop.f32.mrf.mxu0  ;;  %v7777_v19 = vpop.f32.mrf.mxu1 }
 0x195   : > { %5714 = vmatprep.mubr.msk.f32.mxu0 %vm485_vm15, %v6122_v58  ;;  %v7773_v46 = vadd.f32 %v7628_v43, %v2134_v33  ;;  %vm509_vm15 = vcmp.eq.s32.totalorder %v7328_v8, %v6415_v53 }
 0x196   : > { %v2136_v6 = vpop.f32.mrf.mxu0  ;;  %5262 = vmatmul.mubr.msk.f32.gmra.mxu1 %vm576_vm0, %v6122_v58 }
 0x197   : > { %9741 = vst [vmem:[#allocation11_spill] sm:$0xff] %v7773_v46  ;;  %5263 = vmatprep.mubr.msk.f32.mxu1 %vm580_vm2, %v6122_v58  ;;  %v7790_v57 = vpop.f32.mrf.mxu1  ;;  %v7800_v46 = vpop.permute.xlu0 %394  ;;  %vm512_vm2 = vcmp.eq.s32.totalorder %v7346_v30, %v6415_v53 }
 0x198   : > { %5715 = vmatmul.mubr.msk.f32.vlgmr.msra.gmra.mxu0 %vm488_vm1, %v6122_v58  ;;  %9742 = vst [vmem:[#allocation12_spill] sm:$0xff] %v7790_v57  ;;  %v2139_v43 = vpop.f32.mrf.mxu0  ;;  %v7821_v57 = vpop.permute.xlu1 %397  ;;  %vm586_vm9 = vcmp.eq.s32.totalorder %v7800_v46, %v6412_v52  ;;  %vm585_vm12 = vcmp.eq.s32.totalorder %v7800_v46, %v6407_v49 }
 0x199   : > { %5717 = vmatprep.mubr.msk.f32.mxu0 %vm491_vm3, %v6122_v58  ;;  %v7794_v56 = vadd.f32 %v7612_v29, %v2139_v43  ;;  %v7798_v6 = vpop.f32.mrf.mxu1  ;;  %vm589_vm13 = vcmp.eq.s32.totalorder %v7821_v57, %v6412_v52  ;;  %vm588_vm0 = vcmp.eq.s32.totalorder %v7821_v57, %v6407_v49  ;;  %vm515_vm3 = vcmp.eq.s32.totalorder %v7362_v37, %v6415_v53 }
 0x19a   : > { %v2141_v33 = vpop.f32.mrf.mxu0  ;;  %5264 = vmatmul.mubr.msk.f32.gmra.mxu1 %vm579_vm4, %v6122_v58 }
 0x19b   : > { %5265 = vmatprep.mubr.msk.f32.mxu1 %vm583_vm5, %v6122_v58  ;;  %v7811_v34 = vpop.f32.mrf.mxu1  ;;  %v7847_v26 = vpop.permute.xlu0 %400 }
 0x19c   : > { %5718 = vmatmul.mubr.msk.f32.gmra.mxu0 %vm494_vm6, %v6122_v58  ;;  %v2144_v29 = vpop.f32.mrf.mxu0  ;;  %vm592_vm1 = vcmp.eq.s32.totalorder %v7847_v26, %v6412_v52  ;;  %vm591_vm4 = vcmp.eq.s32.totalorder %v7847_v26, %v6407_v49  ;;  %vm518_vm6 = vcmp.eq.s32.totalorder %v7378_v36, %v6415_v53 }
 0x19d   : > { %5720 = vmatprep.mubr.msk.f32.mxu0 %vm497_vm7, %v6122_v58  ;;  %v7815_v43 = vadd.f32 %v7648_v24, %v2144_v29  ;;  %v7819_v33 = vpop.f32.mrf.mxu1  ;;  %vm521_vm7 = vcmp.eq.s32.totalorder %v7394_v45, %v6415_v53 }
 0x19e   : > { %v2146_v63 = vpop.f32.mrf.mxu0  ;;  %5266 = vmatmul.mubr.msk.f32.gmra.mxu1 %vm582_vm8, %v6122_v58 }
 0x19f   : > { %5267 = vmatprep.mubr.msk.f32.mxu1 %vm586_vm9, %v6122_v58  ;;  %v7832_v21 = vpop.f32.mrf.mxu1 }
 0x1a0   : > { %5721 = vmatmul.mubr.msk.f32.gmra.mxu0 %vm500_vm10, %v6122_v58  ;;  %v2149_v24 = vpop.f32.mrf.mxu0  ;;  %vm524_vm10 = vcmp.eq.s32.totalorder %v7410_v42, %v6415_v53 }
 0x1a1   : > { %5723 = vmatprep.mubr.msk.f32.mxu0 %vm503_vm11, %v6122_v58  ;;  %v7836_v29 = vadd.f32 %v7633_v23, %v2149_v24  ;;  %v7840_v63 = vpop.f32.mrf.mxu1  ;;  %vm527_vm11 = vcmp.eq.s32.totalorder %v7426_v44, %v6415_v53 }
 0x1a2   : > { %v2151_v20 = vpop.f32.mrf.mxu0  ;;  %5268 = vmatmul.mubr.msk.f32.gmra.mxu1 %vm585_vm12, %v6122_v58 }
 0x1a3   : > { %5269 = vmatprep.mubr.msk.f32.mxu1 %vm589_vm13, %v6122_v58  ;;  %v7853_v23 = vpop.f32.mrf.mxu1 }
 0x1a4   : > { %5724 = vmatmul.mubr.msk.f32.gmra.mxu0 %vm506_vm14, %v6122_v58  ;;  %9743 = vst [vmem:[#allocation13_spill] sm:$0xff] %v7853_v23  ;;  %v7868_v23 = vpop.permute.xlu1 %403  ;;  %vm530_vm14 = vcmp.eq.s32.totalorder %v7442_v54, %v6415_v53 }
 0x1a5   : > { %5726 = vmatprep.mubr.msk.f32.mxu0 %vm509_vm15, %v6122_v58  ;;  %v2154_v24 = vpop.f32.mrf.mxu0  ;;  %v7861_v39 = vpop.f32.mrf.mxu1  ;;  %vm595_vm5 = vcmp.eq.s32.totalorder %v7868_v23, %v6412_v52  ;;  %vm594_vm8 = vcmp.eq.s32.totalorder %v7868_v23, %v6407_v49  ;;  %vm533_vm15 = vcmp.eq.s32.totalorder %v7458_v38, %v6415_v53 }
 0x1a6   : > { %v7859_v20 = vadd.f32 %v7670_v35, %v2154_v24  ;;  %5270 = vmatmul.mubr.msk.f32.gmra.mxu1 %vm588_vm0, %v6122_v58 }
 0x1a7   : > { %v2156_v8 = vpop.f32.mrf.mxu0  ;;  %5271 = vmatprep.mubr.msk.f32.mxu1 %vm592_vm1, %v6122_v58 }
 0x1a8   : > { %5727 = vmatmul.mubr.msk.f32.gmra.mxu0 %vm512_vm2, %v6122_v58  ;;  %v7874_v35 = vpop.f32.mrf.mxu1  ;;  %vm536_vm2 = vcmp.eq.s32.totalorder %v7478_v1, %v6415_v53 }
 0x1a9   : > { %9744 = vst [vmem:[#allocation14_spill] sm:$0xff] %v7874_v35  ;;  %5729 = vmatprep.mubr.msk.f32.mxu0 %vm515_vm3, %v6122_v58  ;;  %v2159_v24 = vpop.f32.mrf.mxu0  ;;  %v7889_v35 = vpop.permute.xlu0 %406  ;;  %vm539_vm3 = vcmp.eq.s32.totalorder %v7495_v18, %v6415_v53 }
 0x1aa   : > { %v7880_v30 = vadd.f32 %v7653_v27, %v2159_v24  ;;  %v7882_v8 = vpop.f32.mrf.mxu1  ;;  %5272 = vmatmul.mubr.msk.f32.gmra.mxu1 %vm591_vm4, %v6122_v58  ;;  %vm598_vm9 = vcmp.eq.s32.totalorder %v7889_v35, %v6412_v52  ;;  %vm597_vm12 = vcmp.eq.s32.totalorder %v7889_v35, %v6407_v49 }
 0x1ab   : > { %9745 = vst [vmem:[#allocation15_spill] sm:$0xff] %v7882_v8  ;;  %v2161_v37 = vpop.f32.mrf.mxu0  ;;  %5273 = vmatprep.mubr.msk.f32.mxu1 %vm595_vm5, %v6122_v58 }
 0x1ac   : > { %5730 = vmatmul.mubr.msk.f32.gmra.mxu0 %vm518_vm6, %v6122_v58  ;;  %v7895_v27 = vpop.f32.mrf.mxu1  ;;  %vm542_vm6 = vcmp.eq.s32.totalorder %v7511_v2, %v6415_v53 }
 0x1ad   : > { %9746 = vst [vmem:[#allocation16_spill] sm:$0xff] %v7895_v27  ;;  %5732 = vmatprep.mubr.msk.f32.mxu0 %vm521_vm7, %v6122_v58  ;;  %v2164_v24 = vpop.f32.mrf.mxu0  ;;  %v7910_v27 = vpop.permute.xlu1 %409  ;;  %vm545_vm7 = vcmp.eq.s32.totalorder %v7527_v31, %v6415_v53 }
 0x1ae   : > { %v7901_v36 = vadd.f32 %v7691_v59, %v2164_v24  ;;  %v7903_v37 = vpop.f32.mrf.mxu1  ;;  %5274 = vmatmul.mubr.msk.f32.gmra.mxu1 %vm594_vm8, %v6122_v58  ;;  %vm601_vm13 = vcmp.eq.s32.totalorder %v7910_v27, %v6412_v52  ;;  %vm600_vm0 = vcmp.eq.s32.totalorder %v7910_v27, %v6407_v49 }
 0x1af   : > { %9747 = vst [vmem:[#allocation17_spill] sm:$0xff] %v7903_v37  ;;  %v2166_v45 = vpop.f32.mrf.mxu0  ;;  %5275 = vmatprep.mubr.msk.f32.mxu1 %vm598_vm9, %v6122_v58  ;;  %v9779_v37 = vld [vmem:[#allocation8_spill] sm:$0xff] }
 0x1b0   : > { %5733 = vmatmul.mubr.msk.f32.gmra.mxu0 %vm524_vm10, %v6122_v58  ;;  %v7916_v59 = vpop.f32.mrf.mxu1  ;;  %vm548_vm10 = vcmp.eq.s32.totalorder %v7545_v41, %v6415_v53 }
 0x1b1   : > { %9748 = vst [vmem:[#allocation18_spill] sm:$0xff] %v7916_v59  ;;  %5735 = vmatprep.mubr.msk.f32.mxu0 %vm527_vm11, %v6122_v58  ;;  %v2169_v24 = vpop.f32.mrf.mxu0  ;;  %v7931_v59 = vpop.permute.xlu0 %412  ;;  %vm551_vm11 = vcmp.eq.s32.totalorder %v7563_v5, %v6415_v53 }
 0x1b2   : > { %v7922_v42 = vadd.f32 %v7679_v16, %v2169_v24  ;;  %v7924_v45 = vpop.f32.mrf.mxu1  ;;  %5276 = vmatmul.mubr.msk.f32.gmra.mxu1 %vm597_vm12, %v6122_v58  ;;  %vm604_vm1 = vcmp.eq.s32.totalorder %v7931_v59, %v6412_v52  ;;  %vm603_vm4 = vcmp.eq.s32.totalorder %v7931_v59, %v6407_v49 }
 0x1b3   : > { %9749 = vst [vmem:[#allocation19_spill] sm:$0xff] %v7924_v45  ;;  %v2171_v44 = vpop.f32.mrf.mxu0  ;;  %5277 = vmatprep.mubr.msk.f32.mxu1 %vm601_vm13, %v6122_v58  ;;  %v9777_v45 = vld [vmem:[#allocation7_spill] sm:$0xff] }
 0x1b4   : > { %5736 = vmatmul.mubr.msk.f32.gmra.mxu0 %vm530_vm14, %v6122_v58  ;;  %v7938_v16 = vpop.f32.mrf.mxu1  ;;  %v7952_v44 = vpop.permute.xlu1 %415  ;;  %vm554_vm14 = vcmp.eq.s32.totalorder %v7574_v50, %v6415_v53 }
 0x1b5   : > { %5738 = vmatprep.mubr.msk.f32.mxu0 %vm533_vm15, %v6122_v58  ;;  %9750 = vst [vmem:[#allocation20_spill] sm:$0xff] %v7938_v16  ;;  %vm607_vm5 = vcmp.eq.s32.totalorder %v7952_v44, %v6412_v52  ;;  %vm606_vm8 = vcmp.eq.s32.totalorder %v7952_v44, %v6407_v49  ;;  %vm557_vm15 = vcmp.eq.s32.totalorder %v7601_v15, %v6415_v53 }
 0x1b6   : > { %v2174_v24 = vpop.f32.mrf.mxu0  ;;  %5278 = vmatmul.mubr.msk.f32.gmra.mxu1 %vm600_vm0, %v6122_v58  ;;  %v7950_v38 = vpop.f32.mrf.mxu1 }
 0x1b7   : > { %v7944_v54 = vadd.f32 %v7712_v61, %v2174_v24  ;;  %9751 = vst [vmem:[#allocation21_spill] sm:$0xff] %v7950_v38  ;;  %5279 = vmatprep.mubr.msk.f32.mxu1 %vm604_vm1, %v6122_v58 }
 0x1b8   : > { %5739 = vmatmul.mubr.msk.f32.gmra.mxu0 %vm536_vm2, %v6122_v58  ;;  %v2176_v16 = vpop.f32.mrf.mxu0  ;;  %vm560_vm2 = vcmp.eq.s32.totalorder %v7619_v13, %v6415_v53 }
 0x1b9   : > { %5741 = vmatprep.mubr.msk.f32.mxu0 %vm539_vm3, %v6122_v58  ;;  %v7959_v61 = vpop.f32.mrf.mxu1  ;;  %v7973_v16 = vpop.permute.xlu0 %418  ;;  %vm563_vm3 = vcmp.eq.s32.totalorder %v7640_v3, %v6415_v53 }
 0x1ba   : > { %9752 = vst [vmem:[#allocation22_spill] sm:$0xff] %v7959_v61  ;;  %v2179_v1 = vpop.f32.mrf.mxu0  ;;  %5280 = vmatmul.mubr.msk.f32.gmra.mxu1 %vm603_vm4, %v6122_v58  ;;  %vm610_vm9 = vcmp.eq.s32.totalorder %v7973_v16, %v6412_v52  ;;  %vm609_vm12 = vcmp.eq.s32.totalorder %v7973_v16, %v6407_v49 }
 0x1bb   : > { %v7965_v24 = vadd.f32 %v7700_v55, %v2179_v1  ;;  %v7971_v18 = vpop.f32.mrf.mxu1  ;;  %5281 = vmatprep.mubr.msk.f32.mxu1 %vm607_vm5, %v6122_v58 }
 0x1bc   : > { %9753 = vst [vmem:[#allocation23_spill] sm:$0xff] %v7971_v18  ;;  %5742 = vmatmul.mubr.msk.f32.gmra.mxu0 %vm542_vm6, %v6122_v58  ;;  %v2181_v61 = vpop.f32.mrf.mxu0  ;;  %vm566_vm6 = vcmp.eq.s32.totalorder %v7660_v14, %v6415_v53 }
 0x1bd   : > { %5744 = vmatprep.mubr.msk.f32.mxu0 %vm545_vm7, %v6122_v58  ;;  %v7980_v55 = vpop.f32.mrf.mxu1  ;;  %v7994_v61 = vpop.permute.xlu1 %421  ;;  %vm569_vm7 = vcmp.eq.s32.totalorder %v7681_v40, %v6415_v53 }
 0x1be   : > { %9754 = vst [vmem:[#allocation24_spill] sm:$0xff] %v7980_v55  ;;  %v2184_v2 = vpop.f32.mrf.mxu0  ;;  %5282 = vmatmul.mubr.msk.f32.gmra.mxu1 %vm606_vm8, %v6122_v58  ;;  %vm613_vm13 = vcmp.eq.s32.totalorder %v7994_v61, %v6412_v52  ;;  %vm612_vm0 = vcmp.eq.s32.totalorder %v7994_v61, %v6407_v49 }
 0x1bf   : > { %v7986_v1 = vadd.f32 %v7733_v11, %v2184_v2  ;;  %v7992_v31 = vpop.f32.mrf.mxu1  ;;  %5283 = vmatprep.mubr.msk.f32.mxu1 %vm610_vm9, %v6122_v58 }
 0x1c0   : > { %9755 = vst [vmem:[#allocation25_spill] sm:$0xff] %v7992_v31  ;;  %5745 = vmatmul.mubr.msk.f32.gmra.mxu0 %vm548_vm10, %v6122_v58  ;;  %v2186_v55 = vpop.f32.mrf.mxu0  ;;  %vm572_vm10 = vcmp.eq.s32.totalorder %v7702_v10, %v6415_v53 }
 0x1c1   : > { %5747 = vmatprep.mubr.msk.f32.mxu0 %vm551_vm11, %v6122_v58  ;;  %v8001_v11 = vpop.f32.mrf.mxu1  ;;  %v8015_v55 = vpop.permute.xlu0 %424  ;;  %vm575_vm11 = vcmp.eq.s32.totalorder %v7723_v32, %v6415_v53 }
 0x1c2   : > { %9756 = vst [vmem:[#allocation26_spill] sm:$0xff] %v8001_v11  ;;  %v2189_v41 = vpop.f32.mrf.mxu0  ;;  %5284 = vmatmul.mubr.msk.f32.gmra.mxu1 %vm609_vm12, %v6122_v58  ;;  %vm616_vm1 = vcmp.eq.s32.totalorder %v8015_v55, %v6412_v52  ;;  %vm615_vm4 = vcmp.eq.s32.totalorder %v8015_v55, %v6407_v49 }
 0x1c3   : > { %v8007_v2 = vadd.f32 %v7721_v22, %v2189_v41  ;;  %v8013_v5 = vpop.f32.mrf.mxu1  ;;  %5285 = vmatprep.mubr.msk.f32.mxu1 %vm613_vm13, %v6122_v58  ;;  %v8031_v41 = vpop.permute.xlu1 %427 }
 0x1c4   : > { %9757 = vst [vmem:[#allocation27_spill] sm:$0xff] %v8013_v5  ;;  %5748 = vmatmul.mubr.msk.f32.gmra.mxu0 %vm554_vm14, %v6122_v58  ;;  %v2191_v11 = vpop.f32.mrf.mxu0  ;;  %vm619_vm5 = vcmp.eq.s32.totalorder %v8031_v41, %v6412_v52  ;;  %vm618_vm8 = vcmp.eq.s32.totalorder %v8031_v41, %v6407_v49  ;;  %vm578_vm14 = vcmp.eq.s32.totalorder %v7744_v9, %v6415_v53 }
 0x1c5   : > { %5750 = vmatprep.mubr.msk.f32.mxu0 %vm557_vm15, %v6122_v58  ;;  %v8022_v22 = vpop.f32.mrf.mxu1  ;;  %vm581_vm15 = vcmp.eq.s32.totalorder %v7758_v51, %v6415_v53 }
 0x1c6   : > { %9758 = vst [vmem:[#allocation28_spill] sm:$0xff] %v8022_v22  ;;  %5286 = vmatmul.mubr.msk.f32.gmra.mxu1 %vm612_vm0, %v6122_v58 }
 0x1c7   : > { %v2194_v50 = vpop.f32.mrf.mxu0  ;;  %5287 = vmatprep.mubr.msk.f32.mxu1 %vm616_vm1, %v6122_v58  ;;  %v8038_v11 = vpop.f32.mrf.mxu1 }
 0x1c8   : > { %v8034_v15 = vadd.f32 %v7756_v4, %v2194_v50  ;;  %5751 = vmatmul.mubr.msk.f32.gmra.mxu0 %vm560_vm2, %v6122_v58  ;;  %9759 = vst [vmem:[#allocation29_spill] sm:$0xff] %v8038_v11  ;;  %v8052_v4 = vpop.permute.xlu0 %430  ;;  %vm584_vm2 = vcmp.eq.s32.totalorder %v7781_v17, %v6415_v53 }
 0x1c9   : > { %5753 = vmatprep.mubr.msk.f32.mxu0 %vm563_vm3, %v6122_v58  ;;  %v2196_v22 = vpop.f32.mrf.mxu0  ;;  %vm622_vm9 = vcmp.eq.s32.totalorder %v8052_v4, %v6412_v52  ;;  %vm621_vm12 = vcmp.eq.s32.totalorder %v8052_v4, %v6407_v49  ;;  %vm587_vm3 = vcmp.eq.s32.totalorder %v7800_v46, %v6415_v53 }
 0x1ca   : > { %v8043_v5 = vpop.f32.mrf.mxu1  ;;  %5288 = vmatmul.mubr.msk.f32.gmra.mxu1 %vm615_vm4, %v6122_v58 }
 0x1cb   : > { %9760 = vst [vmem:[#allocation30_spill] sm:$0xff] %v8043_v5  ;;  %v2199_v13 = vpop.f32.mrf.mxu0  ;;  %5289 = vmatprep.mubr.msk.f32.mxu1 %vm619_vm5, %v6122_v58 }
 0x1cc   : > { %v8055_v3 = vadd.f32 %v7742_v47, %v2199_v13  ;;  %5754 = vmatmul.mubr.msk.f32.gmra.mxu0 %vm566_vm6, %v6122_v58  ;;  %v8059_v22 = vpop.f32.mrf.mxu1  ;;  %v8073_v47 = vpop.permute.xlu1 %433  ;;  %vm590_vm6 = vcmp.eq.s32.totalorder %v7821_v57, %v6415_v53 }
 0x1cd   : > { %9761 = vst [vmem:[#allocation31_spill] sm:$0xff] %v8059_v22  ;;  %5756 = vmatprep.mubr.msk.f32.mxu0 %vm569_vm7, %v6122_v58  ;;  %v2201_v50 = vpop.f32.mrf.mxu0  ;;  %vm625_vm13 = vcmp.eq.s32.totalorder %v8073_v47, %v6412_v52  ;;  %vm624_vm0 = vcmp.eq.s32.totalorder %v8073_v47, %v6407_v49  ;;  %vm593_vm7 = vcmp.eq.s32.totalorder %v7847_v26, %v6415_v53 }
 0x1ce   : > { %v8064_v5 = vpop.f32.mrf.mxu1  ;;  %5290 = vmatmul.mubr.msk.f32.gmra.mxu1 %vm618_vm8, %v6122_v58 }
 0x1cf   : > { %9762 = vst [vmem:[#allocation32_spill] sm:$0xff] %v8064_v5  ;;  %v2204_v14 = vpop.f32.mrf.mxu0  ;;  %5291 = vmatprep.mubr.msk.f32.mxu1 %vm622_vm9, %v6122_v58 }
 0x1d0   : > { %v8076_v40 = vadd.f32 %v7777_v19, %v2204_v14  ;;  %5757 = vmatmul.mubr.msk.f32.gmra.mxu0 %vm572_vm10, %v6122_v58  ;;  %v8080_v13 = vpop.f32.mrf.mxu1  ;;  %v8094_v19 = vpop.permute.xlu0 %436  ;;  %vm596_vm10 = vcmp.eq.s32.totalorder %v7868_v23, %v6415_v53 }
 0x1d1   : > { %9763 = vst [vmem:[#allocation33_spill] sm:$0xff] %v8080_v13  ;;  %5759 = vmatprep.mubr.msk.f32.mxu0 %vm575_vm11, %v6122_v58  ;;  %v2206_v50 = vpop.f32.mrf.mxu0  ;;  %vm628_vm1 = vcmp.eq.s32.totalorder %v8094_v19, %v6412_v52  ;;  %vm627_vm4 = vcmp.eq.s32.totalorder %v8094_v19, %v6407_v49  ;;  %vm599_vm11 = vcmp.eq.s32.totalorder %v7889_v35, %v6415_v53 }
 0x1d2   : > { %v8085_v5 = vpop.f32.mrf.mxu1  ;;  %5292 = vmatmul.mubr.msk.f32.gmra.mxu1 %vm621_vm12, %v6122_v58 }
 0x1d3   : > { %9764 = vst [vmem:[#allocation34_spill] sm:$0xff] %v8085_v5  ;;  %v2209_v10 = vpop.f32.mrf.mxu0  ;;  %5293 = vmatprep.mubr.msk.f32.mxu1 %vm625_vm13, %v6122_v58 }
 0x1d4   : > { %v8097_v32 = vadd.f32 %v7769_v28, %v2209_v10  ;;  %5760 = vmatmul.mubr.msk.f32.gmra.mxu0 %vm578_vm14, %v6122_v58  ;;  %v8101_v14 = vpop.f32.mrf.mxu1  ;;  %v8115_v28 = vpop.permute.xlu1 %439  ;;  %vm602_vm14 = vcmp.eq.s32.totalorder %v7910_v27, %v6415_v53 }
 0x1d5   : > { %9765 = vst [vmem:[#allocation35_spill] sm:$0xff] %v8101_v14  ;;  %5762 = vmatprep.mubr.msk.f32.mxu0 %vm581_vm15, %v6122_v58  ;;  %v2211_v50 = vpop.f32.mrf.mxu0  ;;  %vm631_vm5 = vcmp.eq.s32.totalorder %v8115_v28, %v6412_v52  ;;  %v8134_v46 = vpop.permute.xlu0 %442  ;;  %vm630_vm8 = vcmp.eq.s32.totalorder %v8115_v28, %v6407_v49  ;;  %vm605_vm15 = vcmp.eq.s32.totalorder %v7931_v59, %v6415_v53 }
 0x1d6   : > { %v8108_v9 = vpop.f32.mrf.mxu1  ;;  %5294 = vmatmul.mubr.msk.f32.gmra.mxu1 %vm624_vm0, %v6122_v58  ;;  %vm634_vm9 = vcmp.eq.s32.totalorder %v8134_v46, %v6412_v52  ;;  %vm633_vm12 = vcmp.eq.s32.totalorder %v8134_v46, %v6407_v49 }
 0x1d7   : > { %9766 = vst [vmem:[#allocation36_spill] sm:$0xff] %v8108_v9  ;;  %5295 = vmatprep.mubr.msk.f32.mxu1 %vm628_vm1, %v6122_v58 }
 0x1d8   : > { %v2214_v10 = vpop.f32.mrf.mxu0  ;;  %5763 = vmatmul.mubr.msk.f32.gmra.mxu0 %vm584_vm2, %v6122_v58  ;;  %v8124_v50 = vpop.f32.mrf.mxu1  ;;  %vm608_vm2 = vcmp.eq.s32.totalorder %v7952_v44, %v6415_v53 }
 0x1d9   : > { %v8122_v51 = vadd.f32 %v7798_v6, %v2214_v10  ;;  %9767 = vst [vmem:[#allocation37_spill] sm:$0xff] %v8124_v50  ;;  %5765 = vmatprep.mubr.msk.f32.mxu0 %vm587_vm3, %v6122_v58  ;;  %vm611_vm3 = vcmp.eq.s32.totalorder %v7973_v16, %v6415_v53 }
 0x1da   : > { %v2216_v9 = vpop.f32.mrf.mxu0  ;;  %v2824_v17 = vpop.f32.mrf.mxu1  ;;  %5296 = vmatmul.mubr.msk.f32.gmra.mxu1 %vm627_vm4, %v6122_v58 }
 0x1db   : > { %v8137_v6 = vadd.f32 %v2824_v17, %v7476_v60  ;;  %5297 = vmatprep.mubr.msk.f32.mxu1 %vm631_vm5, %v6122_v58  ;;  %v8153_v60 = vpop.permute.xlu1 %445 }
 0x1dc   : > { %v8139_v10 = vpop.f32.mrf.mxu0  ;;  %5766 = vmatmul.mubr.msk.f32.gmra.mxu0 %vm590_vm6, %v6122_v58  ;;  %v2826_v9 = vpop.f32.mrf.mxu1  ;;  %vm637_vm13 = vcmp.eq.s32.totalorder %v8153_v60, %v6412_v52  ;;  %vm636_vm0 = vcmp.eq.s32.totalorder %v8153_v60, %v6407_v49  ;;  %vm614_vm6 = vcmp.eq.s32.totalorder %v7994_v61, %v6415_v53 }
 0x1dd   : > { %5768 = vmatprep.mubr.msk.f32.mxu0 %vm593_vm7, %v6122_v58  ;;  %vm617_vm7 = vcmp.eq.s32.totalorder %v8015_v55, %v6415_v53 }
 0x1de   : > { %v2221_v50 = vpop.f32.mrf.mxu0  ;;  %v2829_v57 = vpop.f32.mrf.mxu1  ;;  %5298 = vmatmul.mubr.msk.f32.gmra.mxu1 %vm630_vm8, %v6122_v58 }
 0x1df   : > { %v8156_v26 = vadd.f32 %v2829_v57, %v7468_v0  ;;  %5299 = vmatprep.mubr.msk.f32.mxu1 %vm634_vm9, %v6122_v58  ;;  %v8172_v0 = vpop.permute.xlu0 %448 }
 0x1e0   : > { %v8158_v17 = vpop.f32.mrf.mxu0  ;;  %5769 = vmatmul.mubr.msk.f32.gmra.mxu0 %vm596_vm10, %v6122_v58  ;;  %v2831_v50 = vpop.f32.mrf.mxu1  ;;  %vm640_vm1 = vcmp.eq.s32.totalorder %v8172_v0, %v6412_v52  ;;  %vm639_vm4 = vcmp.eq.s32.totalorder %v8172_v0, %v6407_v49  ;;  %vm620_vm10 = vcmp.eq.s32.totalorder %v8031_v41, %v6415_v53 }
 0x1e1   : > { %5771 = vmatprep.mubr.msk.f32.mxu0 %vm599_vm11, %v6122_v58  ;;  %vm623_vm11 = vcmp.eq.s32.totalorder %v8052_v4, %v6415_v53 }
 0x1e2   : > { %v2226_v9 = vpop.f32.mrf.mxu0  ;;  %v2834_v23 = vpop.f32.mrf.mxu1  ;;  %5300 = vmatmul.mubr.msk.f32.gmra.mxu1 %vm633_vm12, %v6122_v58 }
 0x1e3   : > { %v8175_v35 = vadd.f32 %v2834_v23, %v7493_v12  ;;  %5301 = vmatprep.mubr.msk.f32.mxu1 %vm637_vm13, %v6122_v58  ;;  %v8191_v12 = vpop.permute.xlu1 %451 }
 0x1e4   : > { %v8177_v57 = vpop.f32.mrf.mxu0  ;;  %5772 = vmatmul.mubr.msk.f32.gmra.mxu0 %vm602_vm14, %v6122_v58  ;;  %v2836_v50 = vpop.f32.mrf.mxu1  ;;  %vm643_vm5 = vcmp.eq.s32.totalorder %v8191_v12, %v6412_v52  ;;  %vm642_vm8 = vcmp.eq.s32.totalorder %v8191_v12, %v6407_v49  ;;  %vm626_vm14 = vcmp.eq.s32.totalorder %v8073_v47, %v6415_v53 }
 0x1e5   : > { %5774 = vmatprep.mubr.msk.f32.mxu0 %vm605_vm15, %v6122_v58  ;;  %vm629_vm15 = vcmp.eq.s32.totalorder %v8094_v19, %v6415_v53 }
 0x1e6   : > { %v2231_v9 = vpop.f32.mrf.mxu0  ;;  %v2839_v27 = vpop.f32.mrf.mxu1  ;;  %5302 = vmatmul.mubr.msk.f32.gmra.mxu1 %vm636_vm0, %v6122_v58 }
 0x1e7   : > { %v8194_v59 = vadd.f32 %v2839_v27, %v7504_v7  ;;  %5303 = vmatprep.mubr.msk.f32.mxu1 %vm640_vm1, %v6122_v58  ;;  %v8210_v7 = vpop.permute.xlu0 %454 }
 0x1e8   : > { %v8196_v23 = vpop.f32.mrf.mxu0  ;;  %5775 = vmatmul.mubr.msk.f32.gmra.mxu0 %vm608_vm2, %v6122_v58  ;;  %v2841_v50 = vpop.f32.mrf.mxu1  ;;  %vm646_vm9 = vcmp.eq.s32.totalorder %v8210_v7, %v6412_v52  ;;  %vm645_vm12 = vcmp.eq.s32.totalorder %v8210_v7, %v6407_v49  ;;  %vm632_vm2 = vcmp.eq.s32.totalorder %v8115_v28, %v6415_v53 }
 0x1e9   : > { %5777 = vmatprep.mubr.msk.f32.mxu0 %vm611_vm3, %v6122_v58  ;;  %vm635_vm3 = vcmp.eq.s32.totalorder %v8134_v46, %v6415_v53 }
 0x1ea   : > { %v2236_v9 = vpop.f32.mrf.mxu0  ;;  %v2844_v44 = vpop.f32.mrf.mxu1  ;;  %5304 = vmatmul.mubr.msk.f32.gmra.mxu1 %vm639_vm4, %v6122_v58 }
 0x1eb   : > { %v8213_v16 = vadd.f32 %v2844_v44, %v7520_v48  ;;  %5305 = vmatprep.mubr.msk.f32.mxu1 %vm643_vm5, %v6122_v58  ;;  %v8229_v48 = vpop.permute.xlu1 %457 }
 0x1ec   : > { %v8215_v27 = vpop.f32.mrf.mxu0  ;;  %5778 = vmatmul.mubr.msk.f32.gmra.mxu0 %vm614_vm6, %v6122_v58  ;;  %v2846_v50 = vpop.f32.mrf.mxu1  ;;  %vm649_vm13 = vcmp.eq.s32.totalorder %v8229_v48, %v6412_v52  ;;  %vm648_vm0 = vcmp.eq.s32.totalorder %v8229_v48, %v6407_v49  ;;  %vm638_vm6 = vcmp.eq.s32.totalorder %v8153_v60, %v6415_v53 }
 0x1ed   : > { %5780 = vmatprep.mubr.msk.f32.mxu0 %vm617_vm7, %v6122_v58  ;;  %vm641_vm7 = vcmp.eq.s32.totalorder %v8172_v0, %v6415_v53 }
 0x1ee   : > { %v2241_v9 = vpop.f32.mrf.mxu0  ;;  %v2849_v61 = vpop.f32.mrf.mxu1  ;;  %5306 = vmatmul.mubr.msk.f32.gmra.mxu1 %vm642_vm8, %v6122_v58 }
 0x1ef   : > { %v8232_v55 = vadd.f32 %v2849_v61, %v7543_v25  ;;  %5307 = vmatprep.mubr.msk.f32.mxu1 %vm646_vm9, %v6122_v58  ;;  %v8248_v25 = vpop.permute.xlu0 %460 }
 0x1f0   : > { %v8234_v44 = vpop.f32.mrf.mxu0  ;;  %5781 = vmatmul.mubr.msk.f32.gmra.mxu0 %vm620_vm10, %v6122_v58  ;;  %v2851_v50 = vpop.f32.mrf.mxu1  ;;  %vm652_vm1 = vcmp.eq.s32.totalorder %v8248_v25, %v6412_v52  ;;  %vm651_vm4 = vcmp.eq.s32.totalorder %v8248_v25, %v6407_v49  ;;  %vm644_vm10 = vcmp.eq.s32.totalorder %v8191_v12, %v6415_v53 }
 0x1f1   : > { %5783 = vmatprep.mubr.msk.f32.mxu0 %vm623_vm11, %v6122_v58  ;;  %vm647_vm11 = vcmp.eq.s32.totalorder %v8210_v7, %v6415_v53 }
 0x1f2   : > { %v2246_v9 = vpop.f32.mrf.mxu0  ;;  %v2854_v41 = vpop.f32.mrf.mxu1  ;;  %5308 = vmatmul.mubr.msk.f32.gmra.mxu1 %vm645_vm12, %v6122_v58 }
 0x1f3   : > { %v8251_v4 = vadd.f32 %v2854_v41, %v7561_v62  ;;  %5309 = vmatprep.mubr.msk.f32.mxu1 %vm649_vm13, %v6122_v58  ;;  %v8267_v62 = vpop.permute.xlu1 %463  ;;  %v9768_v41 = vld [vmem:[#allocation2_spill] sm:$0xff] }
 0x1f4   : > { %v8253_v61 = vpop.f32.mrf.mxu0  ;;  %5784 = vmatmul.mubr.msk.f32.gmra.mxu0 %vm626_vm14, %v6122_v58  ;;  %v2856_v50 = vpop.f32.mrf.mxu1  ;;  %vm655_vm5 = vcmp.eq.s32.totalorder %v8267_v62, %v6412_v52  ;;  %vm654_vm8 = vcmp.eq.s32.totalorder %v8267_v62, %v6407_v49  ;;  %vm650_vm14 = vcmp.eq.s32.totalorder %v8229_v48, %v6415_v53 }
 0x1f5   : > { %5786 = vmatprep.mubr.msk.f32.mxu0 %vm629_vm15, %v6122_v58 }
 0x1f6   : > { %v2251_v9 = vpop.f32.mrf.mxu0  ;;  %v2859_v47 = vpop.f32.mrf.mxu1  ;;  %5310 = vmatmul.mubr.msk.f32.gmra.mxu1 %vm648_vm0, %v6122_v58 }
 0x1f7   : > { %v8270_v19 = vadd.f32 %v2859_v47, %v9768_v41  ;;  %5311 = vmatprep.mubr.msk.f32.mxu1 %vm652_vm1, %v6122_v58  ;;  %v8286_v47 = vpop.permute.xlu0 %466  ;;  %v9769_v41 = vld [vmem:[#allocation3_spill] sm:$0xff] }
 0x1f8   : > { %v8272_v50 = vpop.f32.mrf.mxu0  ;;  %5787 = vmatmul.mubr.msk.f32.gmra.mxu0 %vm632_vm2, %v6122_v58  ;;  %v2861_v9 = vpop.f32.mrf.mxu1  ;;  %vm658_vm9 = vcmp.eq.s32.totalorder %v8286_v47, %v6412_v52  ;;  %vm657_vm12 = vcmp.eq.s32.totalorder %v8286_v47, %v6407_v49 }
 0x1f9   : > { %5789 = vmatprep.mubr.msk.f32.mxu0 %vm635_vm3, %v6122_v58 }
 0x1fa   : > { %v2256_v14 = vpop.f32.mrf.mxu0  ;;  %v2864_v28 = vpop.f32.mrf.mxu1  ;;  %5312 = vmatmul.mubr.msk.f32.gmra.mxu1 %vm651_vm4, %v6122_v58 }
 0x1fb   : > { %v8289_v46 = vadd.f32 %v2864_v28, %v9769_v41  ;;  %5313 = vmatprep.mubr.msk.f32.mxu1 %vm655_vm5, %v6122_v58  ;;  %v8305_v28 = vpop.permute.xlu1 %469  ;;  %v9771_v41 = vld [vmem:[#allocation4_spill] sm:$0xff] }
 0x1fc   : > { %v8291_v9 = vpop.f32.mrf.mxu0  ;;  %5790 = vmatmul.mubr.msk.f32.gmra.mxu0 %vm638_vm6, %v6122_v58  ;;  %v2866_v14 = vpop.f32.mrf.mxu1  ;;  %vm661_vm13 = vcmp.eq.s32.totalorder %v8305_v28, %v6412_v52  ;;  %vm660_vm15 = vcmp.eq.s32.totalorder %v8305_v28, %v6407_v49 }
 0x1fd   : > { %9770 = vst [vmem:[#allocation2_spill] sm:$0xff] %v8291_v9  ;;  %5792 = vmatprep.mubr.msk.f32.mxu0 %vm641_vm7, %v6122_v58 }
 0x1fe   : > { %v2261_v5 = vpop.f32.mrf.mxu0  ;;  %v2869_v60 = vpop.f32.mrf.mxu1  ;;  %5314 = vmatmul.mubr.msk.f32.gmra.mxu1 %vm654_vm8, %v6122_v58  ;;  %vm653_vm8 = vcmp.eq.s32.totalorder %v8248_v25, %v6415_v53 }
 0x1ff   : > { %v8308_v0 = vadd.f32 %v2869_v60, %v9771_v41  ;;  %5315 = vmatprep.mubr.msk.f32.mxu1 %vm658_vm9, %v6122_v58  ;;  %v8324_v60 = vpop.permute.xlu0 %472  ;;  %v9773_v41 = vld [vmem:[#allocation5_spill] sm:$0xff]  ;;  %v8338_v48 = vpop.permute.xlu1 %475  ;;  %vm656_vm9 = vcmp.eq.s32.totalorder %v8267_v62, %v6415_v53 }
 0x200   : > { %v8310_v14 = vpop.f32.mrf.mxu0  ;;  %5793 = vmatmul.mubr.msk.f32.gmra.mxu0 %vm644_vm10, %v6122_v58  ;;  %v2871_v5 = vpop.f32.mrf.mxu1  ;;  %vm664_vm0 = vcmp.eq.s32.totalorder %v8324_v60, %v6412_v52  ;;  %vm663_vm1 = vcmp.eq.s32.totalorder %v8324_v60, %v6407_v49  ;;  %vm667_vm2 = vcmp.eq.s32.totalorder %v8338_v48, %v6412_v52  ;;  %vm666_vm3 = vcmp.eq.s32.totalorder %v8338_v48, %v6407_v49 }
 0x201   : > { %9772 = vst [vmem:[#allocation3_spill] sm:$0xff] %v8310_v14  ;;  %5795 = vmatprep.mubr.msk.f32.mxu0 %vm647_vm11, %v6122_v58  ;;  %vm659_vm10 = vcmp.eq.s32.totalorder %v8286_v47, %v6415_v53  ;;  %vm662_vm11 = vcmp.eq.s32.totalorder %v8305_v28, %v6415_v53 }
 0x202   : > { %v2266_v13 = vpop.f32.mrf.mxu0  ;;  %v2874_v12 = vpop.f32.mrf.mxu1  ;;  %5316 = vmatmul.mubr.msk.f32.gmra.mxu1 %vm657_vm12, %v6122_v58  ;;  %vm665_vm12 = vcmp.eq.s32.totalorder %v8324_v60, %v6415_v53 }
 0x203   : > { %v8327_v7 = vadd.f32 %v2874_v12, %v9773_v41  ;;  %5317 = vmatprep.mubr.msk.f32.mxu1 %vm661_vm13, %v6122_v58  ;;  %v9775_v12 = vld [vmem:[#allocation6_spill] sm:$0xff]  ;;  %v479_v38 = vpop.permute.xlu0 %478  ;;  %vm668_vm13 = vcmp.eq.s32.totalorder %v8338_v48, %v6415_v53 }
 0x204   : > { %v8329_v5 = vpop.f32.mrf.mxu0  ;;  %5796 = vmatmul.mubr.msk.f32.gmra.mxu0 %vm650_vm14, %v6122_v58  ;;  %v2876_v13 = vpop.f32.mrf.mxu1  ;;  %vm670_vm4 = vcmp.eq.s32.totalorder %v479_v38, %v6412_v52  ;;  %vm669_vm5 = vcmp.eq.s32.totalorder %v479_v38, %v6407_v49  ;;  %vm671_vm14 = vcmp.eq.s32.totalorder %v479_v38, %v6415_v53 }
 0x205   : > { %9774 = vst [vmem:[#allocation4_spill] sm:$0xff] %v8329_v5 }
 0x206   : > { %v2271_v22 = vpop.f32.mrf.mxu0  ;;  %v2879_v11 = vpop.f32.mrf.mxu1  ;;  %5318 = vmatmul.mubr.msk.f32.gmra.mxu1 %vm660_vm15, %v6122_v58 }
 0x207   : > { %v8341_v41 = vadd.f32 %v2879_v11, %v9775_v12  ;;  %5319 = vmatprep.mubr.msk.f32.mxu1 %vm664_vm0, %v6122_v58  ;;  %vm3599_vm0 = vcmp.lt.s32.totalorder %v6407_v49, 5 }
 0x208   : > { %v8343_v31 = vpop.f32.mrf.mxu0  ;;  %v2881_v13 = vpop.f32.mrf.mxu1 }
 0x209   : > { %9776 = vst [vmem:[#allocation5_spill] sm:$0xff] %v8343_v31  ;;  %v482_v31 = vpop.permute.xlu1 %481 }
 0x20a   : > { %v2276_v22 = vpop.f32.mrf.mxu0  ;;  %v2884_v18 = vpop.f32.mrf.mxu1  ;;  %5320 = vmatmul.mubr.msk.f32.gmra.mxu1 %vm663_vm1, %v6122_v58  ;;  %vm673_vm6 = vcmp.eq.s32.totalorder %v482_v31, %v6412_v52  ;;  %vm672_vm7 = vcmp.eq.s32.totalorder %v482_v31, %v6407_v49  ;;  %vm674_vm15 = vcmp.eq.s32.totalorder %v482_v31, %v6415_v53 }
 0x20b   : > { %v8352_v5 = vadd.f32 %v2884_v18, %v9777_v45  ;;  %5321 = vmatprep.mubr.msk.f32.mxu1 %vm667_vm2, %v6122_v58 }
 0x20c   : > { %v8354_v11 = vpop.f32.mrf.mxu0  ;;  %v2886_v12 = vpop.f32.mrf.mxu1 }
 0x20d   : > { %9778 = vst [vmem:[#allocation6_spill] sm:$0xff] %v8354_v11 }
 0x20e   : > { %v2281_v13 = vpop.f32.mrf.mxu0  ;;  %v2889_v22 = vpop.f32.mrf.mxu1  ;;  %5322 = vmatmul.mubr.msk.f32.gmra.mxu1 %vm666_vm3, %v6122_v58 }
 0x20f   : > { %v8362_v14 = vadd.f32 %v2889_v22, %v9779_v37  ;;  %5323 = vmatprep.mubr.msk.f32.mxu1 %vm670_vm4, %v6122_v58  ;;  %v9781_v13 = vld [vmem:[#allocation9_spill] sm:$0xff] }
 0x210   : > { %v8364_v45 = vpop.f32.mrf.mxu0  ;;  %v2891_v18 = vpop.f32.mrf.mxu1 }
 0x211   : > { %9780 = vst [vmem:[#allocation7_spill] sm:$0xff] %v8364_v45 }
 0x212   : > { %v2286_v11 = vpop.f32.mrf.mxu0  ;;  %v2894_v12 = vpop.f32.mrf.mxu1  ;;  %5324 = vmatmul.mubr.msk.f32.gmra.mxu1 %vm669_vm5, %v6122_v58 }
 0x213   : > { %v8371_v9 = vadd.f32 %v2894_v12, %v9781_v13  ;;  %5325 = vmatprep.mubr.msk.f32.mxu1 %vm673_vm6, %v6122_v58  ;;  %v9782_v11 = vld [vmem:[#allocation10_spill] sm:$0xff] }
 0x214   : > { %v8373_v8 = vpop.f32.mrf.mxu0  ;;  %v2896_v37 = vpop.f32.mrf.mxu1 }
 0x216   : > { %v2291_v22 = vpop.f32.mrf.mxu0  ;;  %v2899_v18 = vpop.f32.mrf.mxu1  ;;  %5326 = vmatmul.mubr.msk.f32.gmra.mxu1 %vm672_vm7, %v6122_v58 }
 0x217   : > { %v8381_v45 = vadd.f32 %v2899_v18, %v9782_v11  ;;  %5798 = vmatprep.mubr.msk.f32.mxu1 %vm653_vm8, %v6122_v58  ;;  %v9784_v22 = vld [vmem:[#allocation11_spill] sm:$0xff] }
 0x218   : > { %v8383_v52 = vpop.f32.mrf.mxu0  ;;  %v2901_v12 = vpop.f32.mrf.mxu1 }
 0x219   : > { %9783 = vst [vmem:[#allocation8_spill] sm:$0xff] %v8383_v52 }
 0x21a   : > { %v2296_v13 = vpop.f32.mrf.mxu0  ;;  %v2904_v37 = vpop.f32.mrf.mxu1  ;;  %5799 = vmatmul.mubr.msk.f32.vlgmr.msra.gmra.mxu1 %vm656_vm9, %v6122_v58 }
 0x21b   : > { %v8392_v25 = vadd.f32 %v2904_v37, %v9784_v22  ;;  %5801 = vmatprep.mubr.msk.f32.mxu1 %vm659_vm10, %v6122_v58 }
 0x21c   : > { %v8394_v18 = vpop.f32.mrf.mxu0  ;;  %v2906_v11 = vpop.f32.mrf.mxu1 }
 0x21e   : > { %v2301_v52 = vpop.f32.mrf.mxu0  ;;  %v2909_v62 = vpop.f32.mrf.mxu1  ;;  %5802 = vmatmul.mubr.msk.f32.gmra.mxu1 %vm662_vm11, %v6122_v58 }
 0x21f   : > { %v8403_v47 = vadd.f32 %v2909_v62, %v7794_v56  ;;  %5804 = vmatprep.mubr.msk.f32.mxu1 %vm665_vm12, %v6122_v58 }
 0x220   : > { %v8405_v12 = vpop.f32.mrf.mxu0  ;;  %v2911_v13 = vpop.f32.mrf.mxu1 }
 0x222   : > { %v2306_v37 = vpop.f32.mrf.mxu0  ;;  %v2914_v52 = vpop.f32.mrf.mxu1  ;;  %5805 = vmatmul.mubr.msk.f32.gmra.mxu1 %vm668_vm13, %v6122_v58 }
 0x223   : > { %v8413_v28 = vadd.f32 %v2914_v52, %v7815_v43  ;;  %5807 = vmatprep.mubr.msk.f32.mxu1 %vm671_vm14, %v6122_v58 }
 0x224   : > { %v8415_v60 = vpop.f32.mrf.mxu0  ;;  %v2916_v56 = vpop.f32.mrf.mxu1 }
 0x225   : > { %9785 = vst [vmem:[#allocation9_spill] sm:$0xff] %v8415_v60 }
 0x226   : > { %v2311_v22 = vpop.f32.mrf.mxu0  ;;  %v2919_v11 = vpop.f32.mrf.mxu1  ;;  %5808 = vmatmul.mubr.msk.f32.gmra.mxu1 %vm674_vm15, %v6122_v58 }
 0x227   : > { %v8421_v48 = vadd.f32 %v2919_v11, %v7836_v29 }
 0x228   : > { %v8423_v62 = vpop.f32.mrf.mxu0  ;;  %v2921_v38 = vpop.f32.mrf.mxu1 }
 0x229   : > { %9786 = vst [vmem:[#allocation10_spill] sm:$0xff] %v8423_v62 }
 0x22a   : > { %v2316_v13 = vpop.f32.mrf.mxu0  ;;  %v2924_v43 = vpop.f32.mrf.mxu1 }
 0x22b   : > { %v8426_v37 = vadd.f32 %v2924_v43, %v7859_v20 }
 0x22c   : > { %v8428_v52 = vpop.f32.mrf.mxu0  ;;  %v2926_v56 = vpop.f32.mrf.mxu1 }
 0x22d   : > { %9787 = vst [vmem:[#allocation11_spill] sm:$0xff] %v8428_v52 }
 0x22e   : > { %v2321_v22 = vpop.f32.mrf.mxu0  ;;  %v2929_v60 = vpop.f32.mrf.mxu1 }
 0x22f   : > { %v8431_v53 = vadd.f32 %v2929_v60, %v7880_v30 }
 0x230   : > { %v8433_v58 = vpop.f32.mrf.mxu0  ;;  %v2931_v29 = vpop.f32.mrf.mxu1 }
 0x231   : > { %9788 = vst [vmem:[#allocation38_spill] sm:$0xff] %v8433_v58 }
 0x232   : > { %v2326_v31 = vpop.f32.mrf.mxu0  ;;  %v2934_v11 = vpop.f32.mrf.mxu1 }
 0x233   : > { %v8436_v38 = vadd.f32 %v2934_v11, %v7901_v36 }
 0x234   : > { %v8438_v13 = vpop.f32.mrf.mxu0  ;;  %v2936_v20 = vpop.f32.mrf.mxu1 }
 0x235   : > { %9789 = vst [vmem:[#allocation39_spill] sm:$0xff] %v8438_v13 }
 0x236   : > { %v2331_v43 = vpop.f32.mrf.mxu0  ;;  %v2939_v62 = vpop.f32.mrf.mxu1 }
 0x237   : > { %v8441_v56 = vadd.f32 %v2939_v62, %v7922_v42 }
 0x238   : > { %v8443_v22 = vpop.f32.mrf.mxu0  ;;  %v2941_v30 = vpop.f32.mrf.mxu1 }
 0x239   : > { %9790 = vst [vmem:[#allocation40_spill] sm:$0xff] %v8443_v22 }
 0x23a   : > { %v2336_v60 = vpop.f32.mrf.mxu0  ;;  %v2944_v52 = vpop.f32.mrf.mxu1 }
 0x23b   : > { %v8446_v29 = vadd.f32 %v2944_v52, %v7944_v54 }
 0x23c   : > { %v8448_v31 = vpop.f32.mrf.mxu0  ;;  %v2946_v36 = vpop.f32.mrf.mxu1 }
 0x23d   : > { %9791 = vst [vmem:[#allocation41_spill] sm:$0xff] %v8448_v31 }
 0x23e   : > { %v2341_v11 = vpop.f32.mrf.mxu0  ;;  %v2949_v58 = vpop.f32.mrf.mxu1 }
 0x23f   : > { %v8451_v20 = vadd.f32 %v2949_v58, %v7965_v24 }
 0x240   : > { %v8453_v43 = vpop.f32.mrf.mxu0  ;;  %v2951_v42 = vpop.f32.mrf.mxu1 }
 0x241   : > { %9792 = vst [vmem:[#allocation42_spill] sm:$0xff] %v8453_v43 }
 0x242   : > { %v2346_v62 = vpop.f32.mrf.mxu0  ;;  %v2954_v13 = vpop.f32.mrf.mxu1 }
 0x243   : > { %v8456_v30 = vadd.f32 %v2954_v13, %v7986_v1 }
 0x244   : > { %v8458_v60 = vpop.f32.mrf.mxu0  ;;  %v2956_v54 = vpop.f32.mrf.mxu1 }
 0x245   : > { %9793 = vst [vmem:[#allocation43_spill] sm:$0xff] %v8458_v60 }
 0x246   : > { %v2351_v52 = vpop.f32.mrf.mxu0  ;;  %v2959_v22 = vpop.f32.mrf.mxu1 }
 0x247   : > { %v8461_v36 = vadd.f32 %v2959_v22, %v8007_v2 }
 0x248   : > { %v8463_v11 = vpop.f32.mrf.mxu0  ;;  %v2961_v24 = vpop.f32.mrf.mxu1 }
 0x249   : > { %9794 = vst [vmem:[#allocation44_spill] sm:$0xff] %v8463_v11 }
 0x24a   : > { %v2356_v58 = vpop.f32.mrf.mxu0  ;;  %v2964_v31 = vpop.f32.mrf.mxu1 }
 0x24b   : > { %v8466_v42 = vadd.f32 %v2964_v31, %v8034_v15 }
 0x24c   : > { %v8468_v62 = vpop.f32.mrf.mxu0  ;;  %v2966_v1 = vpop.f32.mrf.mxu1 }
 0x24e   : > { %v2361_v13 = vpop.f32.mrf.mxu0  ;;  %v2969_v43 = vpop.f32.mrf.mxu1 }
 0x24f   : > { %v8471_v54 = vadd.f32 %v2969_v43, %v8055_v3  ;;  %v8486_v3 = vld [vmem:[%s9692_s3] ss:$0 sm:$0xff] }
 0x250   : > { %v8473_v52 = vpop.f32.mrf.mxu0  ;;  %v2971_v2 = vpop.f32.mrf.mxu1 }
 0x251   : > { %9795 = vst [vmem:[#allocation45_spill] sm:$0xff] %v8473_v52 }
 0x252   : > { %v2366_v22 = vpop.f32.mrf.mxu0  ;;  %v2974_v60 = vpop.f32.mrf.mxu1 }
 0x253   : > { %v8476_v24 = vadd.f32 %v2974_v60, %v8076_v40 }
 0x254   : > { %v8478_v58 = vpop.f32.mrf.mxu0  ;;  %v2976_v15 = vpop.f32.mrf.mxu1 }
 0x256   : > { %v2371_v31 = vpop.f32.mrf.mxu0  ;;  %v2979_v11 = vpop.f32.mrf.mxu1 }
 0x257   : > { %v8481_v1 = vadd.f32 %v2979_v11, %v8097_v32 }
 0x258   : > { %v5716_v13 = vpop.f32.mrf.mxu0  ;;  %v2981_v2 = vpop.f32.mrf.mxu1 }
 0x259   : > { %v3215_v43 = vadd.f32 %v5716_v13, %v8156_v26 }
 0x25a   : > { %v3209_v22 = vpop.f32.mrf.mxu0  ;;  %v8494_v15 = vpop.f32.mrf.mxu1 }
 0x25b   : > { %v8491_v40 = vadd.f32 %v8486_v3, %v3215_v43  ;;  %v3210_v60 = vadd.f32 %v3209_v22, %v8137_v6 }
 0x25c   : > { %v5719_v32 = vpop.f32.mrf.mxu0  ;;  %v2986_v52 = vpop.f32.mrf.mxu1 }
 0x25d   : > { %9796 = vst [vmem:[#allocation46_spill] sm:$0xff] %v8491_v40  ;;  %v8497_v11 = vadd.f32 %v8486_v3, %v3210_v60  ;;  %v3225_v31 = vadd.f32 %v5719_v32, %v8194_v59  ;;  %v3601_v26 = vsel %vm3599_vm0, %v8491_v40, -inf }
 0x25e   : > { %3666 = vmax.xlane.f32.xlu1 %v3601_v26  ;;  %v3219_v13 = vpop.f32.mrf.mxu0  ;;  %v8507_v2 = vpop.f32.mrf.mxu1 }
 0x25f   : > { %v8504_v43 = vadd.f32 %v8486_v3, %v3225_v31  ;;  %v3220_v6 = vadd.f32 %v3219_v13, %v8175_v35  ;;  %v3600_v22 = vsel %vm3599_vm0, %v8497_v11, -inf }
 0x260   : > { %3664 = vmax.xlane.f32.xlu0 %v3600_v22  ;;  %v5722_v59 = vpop.f32.mrf.mxu0  ;;  %v2991_v52 = vpop.f32.mrf.mxu1 }
 0x261   : > { %9797 = vst [vmem:[#allocation47_spill] sm:$0xff] %v8504_v43  ;;  %v3235_v60 = vadd.f32 %v5722_v59, %v8232_v55  ;;  %v8514_v26 = vadd.f32 %v8486_v3, %v3220_v6  ;;  %v3603_v35 = vsel %vm3599_vm0, %v8504_v43, -inf }
 0x262   : > { %v3229_v32 = vpop.f32.mrf.mxu0  ;;  %v8517_v40 = vpop.f32.mrf.mxu1 }
 0x263   : > { %9798 = vst [vmem:[#allocation48_spill] sm:$0xff] %v8514_v26  ;;  %v3230_v31 = vadd.f32 %v3229_v32, %v8213_v16  ;;  %v8526_v55 = vadd.f32 %v8486_v3, %v3235_v60  ;;  %v3602_v43 = vsel %vm3599_vm0, %v8514_v26, -inf }
 0x264   : > { %3670 = vmax.xlane.f32.xlu0 %v3603_v35  ;;  %v5725_v13 = vpop.f32.mrf.mxu0  ;;  %v2996_v52 = vpop.f32.mrf.mxu1 }
 0x265   : > { %v8523_v22 = vadd.f32 %v8486_v3, %v3230_v31  ;;  %9799 = vst [vmem:[#allocation49_spill] sm:$0xff] %v8526_v55  ;;  %v3245_v6 = vadd.f32 %v5725_v13, %v8270_v19 }
 0x266   : > { %v3239_v59 = vpop.f32.mrf.mxu0  ;;  %v8530_v32 = vpop.f32.mrf.mxu1 }
 0x267   : > { %v3240_v16 = vadd.f32 %v3239_v59, %v8251_v4  ;;  %v3604_v31 = vsel %vm3599_vm0, %v8523_v22, -inf  ;;  %v8543_v13 = vadd.f32 %v8486_v3, %v3245_v6 }
 0x268   : > { %3668 = vmax.xlane.f32.xlu0 %v3602_v43  ;;  %3672 = vmax.xlane.f32.xlu1 %v3604_v31  ;;  %v5728_v35 = vpop.f32.mrf.mxu0  ;;  %v3001_v52 = vpop.f32.mrf.mxu1  ;;  %v3605_v43 = vsel %vm3599_vm0, %v8526_v55, -inf }
 0x269   : > { %v8539_v60 = vadd.f32 %v8486_v3, %v3240_v16  ;;  %v3255_v19 = vadd.f32 %v5728_v35, %v8308_v0  ;;  %9800 = vst [vmem:[#allocation50_spill] sm:$0xff] %v8543_v13 }
 0x26a   : > { %v3249_v4 = vpop.f32.mrf.mxu0  ;;  %v8546_v26 = vpop.f32.mrf.mxu1 }
 0x26b   : > { %v3250_v59 = vadd.f32 %v3249_v4, %v8289_v46  ;;  %v3606_v16 = vsel %vm3599_vm0, %v8539_v60, -inf  ;;  %v8558_v35 = vadd.f32 %v8486_v3, %v3255_v19 }
 0x26c   : > { %3674 = vmax.xlane.f32.xlu0 %v3605_v43  ;;  %3676 = vmax.xlane.f32.xlu1 %v3606_v16  ;;  %v5731_v31 = vpop.f32.mrf.mxu0  ;;  %v3006_v6 = vpop.f32.mrf.mxu1  ;;  %v3607_v43 = vsel %vm3599_vm0, %v8543_v13, -inf }
 0x26d   : > { %v8555_v0 = vadd.f32 %v8486_v3, %v3250_v59  ;;  %9802 = vst [vmem:[#allocation52_spill] sm:$0xff] %v8558_v35  ;;  %v3265_v52 = vadd.f32 %v5731_v31, %v8341_v41 }
 0x26e   : > { %v3259_v46 = vpop.f32.mrf.mxu0  ;;  %v8562_v55 = vpop.f32.mrf.mxu1 }
 0x26f   : > { %9801 = vst [vmem:[#allocation51_spill] sm:$0xff] %v8555_v0  ;;  %v3260_v4 = vadd.f32 %v3259_v46, %v8327_v7  ;;  %v3608_v59 = vsel %vm3599_vm0, %v8555_v0, -inf  ;;  %v3609_v7 = vsel %vm3599_vm0, %v8558_v35, -inf  ;;  %v8577_v31 = vadd.f32 %v8486_v3, %v3265_v52 }
 0x270   : > { %3678 = vmax.xlane.f32.xlu0 %v3607_v43  ;;  %3680 = vmax.xlane.f32.xlu1 %v3608_v59  ;;  %v5734_v16 = vpop.f32.mrf.mxu0  ;;  %v3011_v6 = vpop.f32.mrf.mxu1 }
 0x271   : > { %v8571_v19 = vadd.f32 %v8486_v3, %v3260_v4  ;;  %v3275_v46 = vadd.f32 %v5734_v16, %v8362_v14 }
 0x272   : > { %v3269_v41 = vpop.f32.mrf.mxu0  ;;  %v8581_v0 = vpop.f32.mrf.mxu1 }
 0x273   : > { %v3270_v13 = vadd.f32 %v3269_v41, %v8352_v5  ;;  %v3610_v4 = vsel %vm3599_vm0, %v8571_v19, -inf  ;;  %v8591_v14 = vadd.f32 %v8486_v3, %v3275_v46  ;;  %v3611_v41 = vsel %vm3599_vm0, %v8577_v31, -inf }
 0x274   : > { %3682 = vmax.xlane.f32.xlu0 %v3609_v7  ;;  %3684 = vmax.xlane.f32.xlu1 %v3610_v4  ;;  %v5737_v43 = vpop.f32.mrf.mxu0  ;;  %v3016_v6 = vpop.f32.mrf.mxu1 }
 0x275   : > { %v8587_v59 = vadd.f32 %v8486_v3, %v3270_v13  ;;  %v3285_v52 = vadd.f32 %v5737_v43, %v8381_v45  ;;  %9803 = vst [vmem:[#allocation53_spill] sm:$0xff] %v8591_v14 }
 0x276   : > { %v3279_v35 = vpop.f32.mrf.mxu0  ;;  %v8594_v16 = vpop.f32.mrf.mxu1 }
 0x277   : > { %v3280_v5 = vadd.f32 %v3279_v35, %v8371_v9  ;;  %v3612_v13 = vsel %vm3599_vm0, %v8587_v59, -inf  ;;  %v8606_v4 = vadd.f32 %v8486_v3, %v3285_v52 }
 0x278   : > { %3686 = vmax.xlane.f32.xlu0 %v3611_v41  ;;  %3688 = vmax.xlane.f32.xlu1 %v3612_v13  ;;  %v5740_v7 = vpop.f32.mrf.mxu0  ;;  %v3021_v46 = vpop.f32.mrf.mxu1  ;;  %v3613_v41 = vsel %vm3599_vm0, %v8591_v14, -inf }
 0x279   : > { %v8603_v45 = vadd.f32 %v8486_v3, %v3280_v5  ;;  %9805 = vst [vmem:[#allocation55_spill] sm:$0xff] %v8606_v4  ;;  %v3295_v35 = vadd.f32 %v5740_v7, %v8403_v47 }
 0x27a   : > { %v3289_v9 = vpop.f32.mrf.mxu0  ;;  %v8610_v6 = vpop.f32.mrf.mxu1 }
 0x27b   : > { %9804 = vst [vmem:[#allocation54_spill] sm:$0xff] %v8603_v45  ;;  %v3290_v43 = vadd.f32 %v3289_v9, %v8392_v25  ;;  %v3614_v5 = vsel %vm3599_vm0, %v8603_v45, -inf  ;;  %v3615_v25 = vsel %vm3599_vm0, %v8606_v4, -inf  ;;  %v8625_v7 = vadd.f32 %v8486_v3, %v3295_v35 }
 0x27c   : > { %3690 = vmax.xlane.f32.xlu0 %v3613_v41  ;;  %3692 = vmax.xlane.f32.xlu1 %v3614_v5  ;;  %v5743_v13 = vpop.f32.mrf.mxu0  ;;  %v3026_v46 = vpop.f32.mrf.mxu1 }
 0x27d   : > { %v8619_v52 = vadd.f32 %v8486_v3, %v3290_v43  ;;  %v3305_v9 = vadd.f32 %v5743_v13, %v8421_v48 }
 0x27e   : > { %v3299_v47 = vpop.f32.mrf.mxu0  ;;  %v8629_v45 = vpop.f32.mrf.mxu1 }
 0x27f   : > { %v3300_v14 = vadd.f32 %v3299_v47, %v8413_v28  ;;  %v3616_v43 = vsel %vm3599_vm0, %v8619_v52, -inf  ;;  %v8639_v48 = vadd.f32 %v8486_v3, %v3305_v9  ;;  %v3617_v47 = vsel %vm3599_vm0, %v8625_v7, -inf }
 0x280   : > { %3694 = vmax.xlane.f32.xlu0 %v3615_v25  ;;  %3696 = vmax.xlane.f32.xlu1 %v3616_v43  ;;  %v5746_v41 = vpop.f32.mrf.mxu0  ;;  %v3031_v46 = vpop.f32.mrf.mxu1 }
 0x281   : > { %v8635_v5 = vadd.f32 %v8486_v3, %v3300_v14  ;;  %v3315_v35 = vadd.f32 %v5746_v41, %v8431_v53  ;;  %9806 = vst [vmem:[#allocation56_spill] sm:$0xff] %v8639_v48 }
 0x282   : > { %v3309_v4 = vpop.f32.mrf.mxu0  ;;  %v8642_v13 = vpop.f32.mrf.mxu1 }
 0x283   : > { %v3310_v28 = vadd.f32 %v3309_v4, %v8426_v37  ;;  %v3618_v14 = vsel %vm3599_vm0, %v8635_v5, -inf  ;;  %v8654_v43 = vadd.f32 %v8486_v3, %v3315_v35 }
 0x284   : > { %3698 = vmax.xlane.f32.xlu0 %v3617_v47  ;;  %3700 = vmax.xlane.f32.xlu1 %v3618_v14  ;;  %v5749_v25 = vpop.f32.mrf.mxu0  ;;  %v3036_v9 = vpop.f32.mrf.mxu1  ;;  %v3619_v47 = vsel %vm3599_vm0, %v8639_v48, -inf }
 0x285   : > { %v8651_v53 = vadd.f32 %v8486_v3, %v3310_v28  ;;  %9808 = vst [vmem:[#allocation58_spill] sm:$0xff] %v8654_v43  ;;  %v3325_v4 = vadd.f32 %v5749_v25, %v8441_v56 }
 0x286   : > { %v3319_v37 = vpop.f32.mrf.mxu0  ;;  %v8658_v46 = vpop.f32.mrf.mxu1 }
 0x287   : > { %9807 = vst [vmem:[#allocation57_spill] sm:$0xff] %v8651_v53  ;;  %v3320_v41 = vadd.f32 %v3319_v37, %v8436_v38  ;;  %v3620_v28 = vsel %vm3599_vm0, %v8651_v53, -inf  ;;  %v3621_v38 = vsel %vm3599_vm0, %v8654_v43, -inf  ;;  %v8673_v25 = vadd.f32 %v8486_v3, %v3325_v4 }
 0x288   : > { %3702 = vmax.xlane.f32.xlu0 %v3619_v47  ;;  %3704 = vmax.xlane.f32.xlu1 %v3620_v28  ;;  %v5752_v14 = vpop.f32.mrf.mxu0  ;;  %v3041_v9 = vpop.f32.mrf.mxu1 }
 0x289   : > { %v8667_v35 = vadd.f32 %v8486_v3, %v3320_v41  ;;  %v3335_v37 = vadd.f32 %v5752_v14, %v8451_v20 }
 0x28a   : > { %v3329_v56 = vpop.f32.mrf.mxu0  ;;  %v8677_v53 = vpop.f32.mrf.mxu1 }
 0x28b   : > { %v3330_v48 = vadd.f32 %v3329_v56, %v8446_v29  ;;  %v3622_v41 = vsel %vm3599_vm0, %v8667_v35, -inf  ;;  %v8687_v20 = vadd.f32 %v8486_v3, %v3335_v37  ;;  %v3623_v56 = vsel %vm3599_vm0, %v8673_v25, -inf }
 0x28c   : > { %3706 = vmax.xlane.f32.xlu0 %v3621_v38  ;;  %3708 = vmax.xlane.f32.xlu1 %v3622_v41  ;;  %v5755_v47 = vpop.f32.mrf.mxu0  ;;  %v3046_v9 = vpop.f32.mrf.mxu1 }
 0x28d   : > { %v8683_v28 = vadd.f32 %v8486_v3, %v3330_v48  ;;  %v3345_v4 = vadd.f32 %v5755_v47, %v8461_v36  ;;  %9809 = vst [vmem:[#allocation59_spill] sm:$0xff] %v8687_v20 }
 0x28e   : > { %v3339_v43 = vpop.f32.mrf.mxu0  ;;  %v8690_v14 = vpop.f32.mrf.mxu1 }
 0x28f   : > { %v3340_v29 = vadd.f32 %v3339_v43, %v8456_v30  ;;  %v3624_v48 = vsel %vm3599_vm0, %v8683_v28, -inf  ;;  %v8702_v41 = vadd.f32 %v8486_v3, %v3345_v4 }
 0x290   : > { %3710 = vmax.xlane.f32.xlu0 %v3623_v56  ;;  %3712 = vmax.xlane.f32.xlu1 %v3624_v48  ;;  %v5758_v38 = vpop.f32.mrf.mxu0  ;;  %v3051_v37 = vpop.f32.mrf.mxu1  ;;  %v3625_v56 = vsel %vm3599_vm0, %v8687_v20, -inf }
 0x291   : > { %v8699_v36 = vadd.f32 %v8486_v3, %v3340_v29  ;;  %9811 = vst [vmem:[#allocation61_spill] sm:$0xff] %v8702_v41  ;;  %v3355_v43 = vadd.f32 %v5758_v38, %v8471_v54  ;;  %v9812_v54 = vld [vmem:[#allocation12_spill] sm:$0xff] }
 0x292   : > { %v3349_v30 = vpop.f32.mrf.mxu0  ;;  %v8706_v9 = vpop.f32.mrf.mxu1 }
 0x293   : > { %9810 = vst [vmem:[#allocation60_spill] sm:$0xff] %v8699_v36  ;;  %v3350_v47 = vadd.f32 %v3349_v30, %v8466_v42  ;;  %v3626_v29 = vsel %vm3599_vm0, %v8699_v36, -inf  ;;  %v2605_v42 = vadd.f32 %v9812_v54, %v8139_v10  ;;  %v3627_v30 = vsel %vm3599_vm0, %v8702_v41, -inf }
 0x294   : > { %3714 = vmax.xlane.f32.xlu0 %v3625_v56  ;;  %3716 = vmax.xlane.f32.xlu1 %v3626_v29  ;;  %v5761_v48 = vpop.f32.mrf.mxu0  ;;  %v3056_v37 = vpop.f32.mrf.mxu1  ;;  %v8723_v20 = vadd.f32 %v8486_v3, %v3355_v43  ;;  %v2985_v54 = vadd.f32 %v8494_v15, %v8122_v51 }
 0x295   : > { %v8715_v4 = vadd.f32 %v8486_v3, %v3350_v47  ;;  %v3365_v36 = vadd.f32 %v5761_v48, %v8481_v1  ;;  %v2990_v10 = vadd.f32 %v8507_v2, %v2605_v42  ;;  %v2615_v48 = vadd.f32 %v7811_v34, %v8177_v57 }
 0x296   : > { %v3359_v38 = vpop.f32.mrf.mxu0  ;;  %v8727_v29 = vpop.f32.mrf.mxu1  ;;  %v3629_v51 = vsel %vm3599_vm0, %v8723_v20, -inf }
 0x297   : > { %v3360_v56 = vadd.f32 %v3359_v38, %v8476_v24  ;;  %v3628_v47 = vsel %vm3599_vm0, %v8715_v4, -inf  ;;  %v2610_v24 = vadd.f32 %v7819_v33, %v8158_v17  ;;  %v8743_v2 = vadd.f32 %v8486_v3, %v3365_v36 }
 0x298   : > { %3718 = vmax.xlane.f32.xlu0 %v3627_v30  ;;  %3720 = vmax.xlane.f32.xlu1 %v3628_v47  ;;  %v5764_v37 = vpop.f32.mrf.mxu0  ;;  %v3061_v1 = vpop.f32.mrf.mxu1  ;;  %v3000_v17 = vadd.f32 %v8530_v32, %v2615_v48  ;;  %v2630_v48 = vadd.f32 %v7861_v39, %v8234_v44 }
 0x299   : > { %v8736_v43 = vadd.f32 %v8486_v3, %v3360_v56  ;;  %v3375_v38 = vadd.f32 %v5764_v37, %v2990_v10  ;;  %v2995_v34 = vadd.f32 %v8517_v40, %v2610_v24  ;;  %v2625_v56 = vadd.f32 %v7832_v21, %v8215_v27 }
 0x29a   : > { %v3369_v41 = vpop.f32.mrf.mxu0  ;;  %v8745_v30 = vpop.f32.mrf.mxu1  ;;  %v3631_v40 = vsel %vm3599_vm0, %v8743_v2, -inf }
 0x29b   : > { %v3370_v42 = vadd.f32 %v3369_v41, %v2985_v54  ;;  %v3630_v15 = vsel %vm3599_vm0, %v8736_v43, -inf  ;;  %v2620_v41 = vadd.f32 %v7840_v63, %v8196_v23  ;;  %v8763_v47 = vadd.f32 %v8486_v3, %v3375_v38  ;;  %v9813_v38 = vld [vmem:[#allocation13_spill] sm:$0xff] }
 0x29c   : > { %3722 = vmax.xlane.f32.xlu0 %v3629_v51  ;;  %3724 = vmax.xlane.f32.xlu1 %v3630_v15  ;;  %v5767_v33 = vpop.f32.mrf.mxu0  ;;  %v3066_v36 = vpop.f32.mrf.mxu1  ;;  %v3010_v23 = vadd.f32 %v8562_v55, %v2625_v56  ;;  %v9814_v56 = vld [vmem:[#allocation15_spill] sm:$0xff] }
 0x29d   : > { %v8756_v57 = vadd.f32 %v8486_v3, %v3370_v42  ;;  %v3385_v37 = vadd.f32 %v5767_v33, %v3000_v17  ;;  %v3005_v21 = vadd.f32 %v8546_v26, %v2620_v41  ;;  %v2635_v42 = vadd.f32 %v9813_v38, %v8253_v61 }
 0x29e   : > { %v3379_v10 = vpop.f32.mrf.mxu0  ;;  %v8765_v1 = vpop.f32.mrf.mxu1  ;;  %v3633_v15 = vsel %vm3599_vm0, %v8763_v47, -inf  ;;  %v3015_v61 = vadd.f32 %v8581_v0, %v2630_v48 }
 0x29f   : > { %v3380_v54 = vadd.f32 %v3379_v10, %v2995_v34  ;;  %v3632_v32 = vsel %vm3599_vm0, %v8756_v57, -inf  ;;  %v8786_v33 = vadd.f32 %v8486_v3, %v3385_v37  ;;  %v3020_v39 = vadd.f32 %v8594_v16, %v2635_v42  ;;  %v9815_v37 = vld [vmem:[#allocation2_spill] sm:$0xff] }
 0x2a0   : > { %3726 = vmax.xlane.f32.xlu0 %v3631_v40  ;;  %3728 = vmax.xlane.f32.xlu1 %v3632_v32  ;;  %v5770_v63 = vpop.f32.mrf.mxu0  ;;  %v3071_v24 = vpop.f32.mrf.mxu1  ;;  %v2640_v10 = vadd.f32 %v9814_v56, %v8272_v50 }
 0x2a1   : > { %v8776_v27 = vadd.f32 %v8486_v3, %v3380_v54  ;;  %v3395_v26 = vadd.f32 %v5770_v63, %v3010_v23  ;;  %v9816_v54 = vld [vmem:[#allocation14_spill] sm:$0xff]  ;;  %v3635_v0 = vsel %vm3599_vm0, %v8786_v33, -inf }
 0x2a2   : > { %v3389_v51 = vpop.f32.mrf.mxu0  ;;  %v8788_v34 = vpop.f32.mrf.mxu1  ;;  %v2645_v40 = vadd.f32 %v9816_v54, %v9815_v37  ;;  %v3025_v48 = vadd.f32 %v8610_v6, %v2640_v10 }
 0x2a3   : > { %v3390_v55 = vadd.f32 %v3389_v51, %v3005_v21  ;;  %v3634_v17 = vsel %vm3599_vm0, %v8776_v27, -inf  ;;  %v8803_v21 = vadd.f32 %v8486_v3, %v3395_v26  ;;  %v9818_v26 = vld [vmem:[#allocation17_spill] sm:$0xff] }
 0x2a4   : > { %3730 = vmax.xlane.f32.xlu0 %v3633_v15  ;;  %3732 = vmax.xlane.f32.xlu1 %v3634_v17  ;;  %v5773_v44 = vpop.f32.mrf.mxu0  ;;  %v3076_v41 = vpop.f32.mrf.mxu1  ;;  %v3030_v38 = vadd.f32 %v8629_v45, %v2645_v40  ;;  %v9817_v15 = vld [vmem:[#allocation3_spill] sm:$0xff]  ;;  %v9819_v17 = vld [vmem:[#allocation4_spill] sm:$0xff] }
 0x2a5   : > { %v8796_v36 = vadd.f32 %v8486_v3, %v3390_v55  ;;  %v3405_v32 = vadd.f32 %v5773_v44, %v3020_v39  ;;  %v2650_v55 = vadd.f32 %v9818_v26, %v9817_v15  ;;  %v9820_v39 = vld [vmem:[#allocation16_spill] sm:$0xff]  ;;  %v3637_v45 = vsel %vm3599_vm0, %v8803_v21, -inf }
 0x2a6   : > { %v3399_v63 = vpop.f32.mrf.mxu0  ;;  %v8805_v23 = vpop.f32.mrf.mxu1  ;;  %v2655_v44 = vadd.f32 %v9820_v39, %v9819_v17 }
 0x2a7   : > { %v3400_v16 = vadd.f32 %v3399_v63, %v3015_v61  ;;  %v3636_v24 = vsel %vm3599_vm0, %v8796_v36, -inf  ;;  %v8823_v61 = vadd.f32 %v8486_v3, %v3405_v32  ;;  %v3035_v40 = vadd.f32 %v8642_v13, %v2650_v55 }
 0x2a8   : > { %3734 = vmax.xlane.f32.xlu0 %v3635_v0  ;;  %3736 = vmax.xlane.f32.xlu1 %v3636_v24  ;;  %v5776_v50 = vpop.f32.mrf.mxu0  ;;  %v3081_v51 = vpop.f32.mrf.mxu1  ;;  %v3040_v32 = vadd.f32 %v8658_v46, %v2655_v44  ;;  %v9821_v0 = vld [vmem:[#allocation5_spill] sm:$0xff]  ;;  %v9822_v24 = vld [vmem:[#allocation19_spill] sm:$0xff] }
 0x2a9   : > { %v8816_v42 = vadd.f32 %v8486_v3, %v3400_v16  ;;  %v3415_v56 = vadd.f32 %v5776_v50, %v3030_v38  ;;  %v2660_v50 = vadd.f32 %v9822_v24, %v9821_v0  ;;  %v9824_v38 = vld [vmem:[#allocation18_spill] sm:$0xff]  ;;  %v3639_v26 = vsel %vm3599_vm0, %v8823_v61, -inf }
 0x2aa   : > { %v3409_v41 = vpop.f32.mrf.mxu0  ;;  %v8825_v54 = vpop.f32.mrf.mxu1 }
 0x2ab   : > { %v3410_v37 = vadd.f32 %v3409_v41, %v3025_v48  ;;  %v3638_v6 = vsel %vm3599_vm0, %v8816_v42, -inf  ;;  %v9823_v48 = vld [vmem:[#allocation6_spill] sm:$0xff]  ;;  %v8846_v17 = vadd.f32 %v8486_v3, %v3415_v56 }
 0x2ac   : > { %3738 = vmax.xlane.f32.xlu0 %v3637_v45  ;;  %3740 = vmax.xlane.f32.xlu1 %v3638_v6  ;;  %v5779_v10 = vpop.f32.mrf.mxu0  ;;  %v3086_v16 = vpop.f32.mrf.mxu1  ;;  %v2665_v51 = vadd.f32 %v9824_v38, %v9823_v48  ;;  %v9825_v6 = vld [vmem:[#allocation7_spill] sm:$0xff] }
 0x2ad   : > { %v8836_v63 = vadd.f32 %v8486_v3, %v3410_v37  ;;  %v3425_v13 = vadd.f32 %v5779_v10, %v3040_v32  ;;  %v3045_v37 = vadd.f32 %v8677_v53, %v2660_v50  ;;  %v9826_v10 = vld [vmem:[#allocation21_spill] sm:$0xff]  ;;  %v9827_v32 = vld [vmem:[#allocation20_spill] sm:$0xff]  ;;  %v3641_v53 = vsel %vm3599_vm0, %v8846_v17, -inf }
 0x2ae   : > { %v3419_v15 = vpop.f32.mrf.mxu0  ;;  %v8848_v55 = vpop.f32.mrf.mxu1  ;;  %v3050_v44 = vadd.f32 %v8690_v14, %v2665_v51  ;;  %v2675_v16 = vadd.f32 %v9827_v32, %v8373_v8 }
 0x2af   : > { %v3420_v46 = vadd.f32 %v3419_v15, %v3035_v40  ;;  %v3640_v39 = vsel %vm3599_vm0, %v8836_v63, -inf  ;;  %v2670_v40 = vadd.f32 %v9826_v10, %v9825_v6  ;;  %v8863_v48 = vadd.f32 %v8486_v3, %v3425_v13 }
 0x2b0   : > { %3742 = vmax.xlane.f32.xlu0 %v3639_v26  ;;  %3744 = vmax.xlane.f32.xlu1 %v3640_v39  ;;  %v5782_v41 = vpop.f32.mrf.mxu0  ;;  %v3091_v56 = vpop.f32.mrf.mxu1  ;;  %v3060_v15 = vadd.f32 %v8727_v29, %v2675_v16  ;;  %v9829_v39 = vld [vmem:[#allocation23_spill] sm:$0xff] }
 0x2b1   : > { %v8856_v45 = vadd.f32 %v8486_v3, %v3420_v46  ;;  %v3435_v0 = vadd.f32 %v5782_v41, %v3050_v44  ;;  %v3055_v8 = vadd.f32 %v8706_v9, %v2670_v40  ;;  %v9828_v46 = vld [vmem:[#allocation8_spill] sm:$0xff]  ;;  %v9830_v41 = vld [vmem:[#allocation22_spill] sm:$0xff]  ;;  %v3643_v9 = vsel %vm3599_vm0, %v8863_v48, -inf }
 0x2b2   : > { %v3429_v24 = vpop.f32.mrf.mxu0  ;;  %v8865_v38 = vpop.f32.mrf.mxu1  ;;  %v2680_v44 = vadd.f32 %v9829_v39, %v9828_v46 }
 0x2b3   : > { %v3430_v14 = vadd.f32 %v3429_v24, %v3045_v37  ;;  %v3642_v50 = vsel %vm3599_vm0, %v8856_v45, -inf  ;;  %v2685_v37 = vadd.f32 %v9830_v41, %v8394_v18  ;;  %v8883_v56 = vadd.f32 %v8486_v3, %v3435_v0 }
 0x2b4   : > { %3746 = vmax.xlane.f32.xlu0 %v3641_v53  ;;  %3748 = vmax.xlane.f32.xlu1 %v3642_v50  ;;  %v5785_v51 = vpop.f32.mrf.mxu0  ;;  %v3096_v13 = vpop.f32.mrf.mxu1  ;;  %v3065_v18 = vadd.f32 %v8745_v30, %v2680_v44  ;;  %v9831_v53 = vld [vmem:[#allocation25_spill] sm:$0xff] }
 0x2b5   : > { %v8876_v26 = vadd.f32 %v8486_v3, %v3430_v14  ;;  %v3445_v10 = vadd.f32 %v5785_v51, %v3060_v15  ;;  %v3070_v16 = vadd.f32 %v8765_v1, %v2685_v37  ;;  %v2690_v50 = vadd.f32 %v9831_v53, %v8405_v12  ;;  %v9832_v51 = vld [vmem:[#allocation9_spill] sm:$0xff] }
 0x2b6   : > { %v3439_v6 = vpop.f32.mrf.mxu0  ;;  %v3099_v24 = vpop.f32.mrf.mxu1  ;;  %v3645_v46 = vsel %vm3599_vm0, %v8883_v56, -inf }
 0x2b7   : > { %v3440_v32 = vadd.f32 %v3439_v6, %v3055_v8  ;;  %v3644_v29 = vsel %vm3599_vm0, %v8876_v26, -inf  ;;  %v9833_v8 = vld [vmem:[#allocation24_spill] sm:$0xff]  ;;  %v8904_v39 = vadd.f32 %v8486_v3, %v3445_v10  ;;  %v3075_v6 = vadd.f32 %v8788_v34, %v2690_v50 }
 0x2b8   : > { %3750 = vmax.xlane.f32.xlu0 %v3643_v9  ;;  %3752 = vmax.xlane.f32.xlu1 %v3644_v29  ;;  %v5788_v40 = vpop.f32.mrf.mxu0  ;;  %v3101_v14 = vpop.f32.mrf.mxu1  ;;  %v2695_v15 = vadd.f32 %v9833_v8, %v9832_v51  ;;  %v9835_v9 = vld [vmem:[#allocation10_spill] sm:$0xff]  ;;  %v9836_v29 = vld [vmem:[#allocation27_spill] sm:$0xff] }
 0x2b9   : > { %v8894_v0 = vadd.f32 %v8486_v3, %v3440_v32  ;;  %9834 = vst [vmem:[#allocation12_spill] sm:$0xff] %v8904_v39  ;;  %v3455_v30 = vadd.f32 %v5788_v40, %v3070_v16  ;;  %v2700_v40 = vadd.f32 %v9836_v29, %v9835_v9  ;;  %v9838_v16 = vld [vmem:[#allocation26_spill] sm:$0xff]  ;;  %v3647_v34 = vsel %vm3599_vm0, %v8904_v39, -inf  ;;  %v9844_v9 = vld [vmem:[#allocation28_spill] sm:$0xff] }
 0x2ba   : > { %v3449_v13 = vpop.f32.mrf.mxu0  ;;  %v8906_v44 = vpop.f32.mrf.mxu1  ;;  %v3080_v12 = vadd.f32 %v8805_v23, %v2695_v15 }
 0x2bb   : > { %v3450_v1 = vadd.f32 %v3449_v13, %v3065_v18  ;;  %v3646_v41 = vsel %vm3599_vm0, %v8894_v0, -inf  ;;  %v9837_v18 = vld [vmem:[#allocation11_spill] sm:$0xff]  ;;  %v8921_v8 = vadd.f32 %v8486_v3, %v3455_v30 }
 0x2bc   : > { %3754 = vmax.xlane.f32.xlu0 %v3645_v46  ;;  %3756 = vmax.xlane.f32.xlu1 %v3646_v41  ;;  %v5791_v37 = vpop.f32.mrf.mxu0  ;;  %v3106_v10 = vpop.f32.mrf.mxu1  ;;  %v2705_v14 = vadd.f32 %v9838_v16, %v9837_v18  ;;  %v3085_v46 = vadd.f32 %v8825_v54, %v2700_v40 }
 0x2bd   : > { %v8914_v32 = vadd.f32 %v8486_v3, %v3450_v1  ;;  %v3465_v53 = vadd.f32 %v5791_v37, %v3080_v12  ;;  %9839 = vst [vmem:[#allocation13_spill] sm:$0xff] %v8921_v8  ;;  %v9841_v12 = vld [vmem:[#allocation38_spill] sm:$0xff]  ;;  %v9842_v37 = vld [vmem:[#allocation29_spill] sm:$0xff]  ;;  %v9843_v10 = vld [vmem:[#allocation39_spill] sm:$0xff]  ;;  %v3649_v54 = vsel %vm3599_vm0, %v8921_v8, -inf }
 0x2be   : > { %v3459_v51 = vpop.f32.mrf.mxu0  ;;  %v3109_v15 = vpop.f32.mrf.mxu1  ;;  %v3090_v1 = vadd.f32 %v8848_v55, %v2705_v14  ;;  %v2715_v29 = vadd.f32 %v9844_v9, %v9843_v10  ;;  %v9857_v8 = vld [vmem:[#allocation33_spill] sm:$0xff] }
 0x2bf   : > { %v3460_v23 = vadd.f32 %v3459_v51, %v3075_v6  ;;  %v3648_v50 = vsel %vm3599_vm0, %v8914_v32, -inf  ;;  %v2710_v6 = vadd.f32 %v9842_v37, %v9841_v12  ;;  %v8939_v18 = vadd.f32 %v8486_v3, %v3465_v53 }
 0x2c0   : > { %3758 = vmax.xlane.f32.xlu0 %v3647_v34  ;;  %3760 = vmax.xlane.f32.xlu1 %v3648_v50  ;;  %v5794_v13 = vpop.f32.mrf.mxu0  ;;  %v3111_v41 = vpop.f32.mrf.mxu1 }
 0x2c1   : > { %v8932_v30 = vadd.f32 %v8486_v3, %v3460_v23  ;;  %9845 = vst [vmem:[#allocation2_spill] sm:$0xff] %v8939_v18  ;;  %v3475_v51 = vadd.f32 %v5794_v13, %v3090_v1  ;;  %v3095_v14 = vadd.f32 %v8865_v38, %v2710_v6  ;;  %v3100_v23 = vadd.f32 %v3099_v24, %v2715_v29 }
 0x2c2   : > { %v3469_v16 = vpop.f32.mrf.mxu0  ;;  %v3114_v50 = vpop.f32.mrf.mxu1  ;;  %v3651_v1 = vsel %vm3599_vm0, %v8939_v18, -inf }
 0x2c3   : > { %9840 = vst [vmem:[#allocation15_spill] sm:$0xff] %v8932_v30  ;;  %v3470_v34 = vadd.f32 %v3469_v16, %v3085_v46  ;;  %v3650_v55 = vsel %vm3599_vm0, %v8932_v30, -inf  ;;  %v8955_v41 = vadd.f32 %v8486_v3, %v3475_v51 }
 0x2c4   : > { %3762 = vmax.xlane.f32.xlu0 %v3649_v54  ;;  %3764 = vmax.xlane.f32.xlu1 %v3650_v55  ;;  %v5797_v40 = vpop.f32.mrf.mxu0  ;;  %v3116_v13 = vpop.f32.mrf.mxu1 }
 0x2c5   : > { %v8949_v53 = vadd.f32 %v8486_v3, %v3470_v34  ;;  %9847 = vst [vmem:[#allocation3_spill] sm:$0xff] %v8955_v41  ;;  %v3485_v12 = vadd.f32 %v5797_v40, %v3100_v23  ;;  %v3653_v16 = vsel %vm3599_vm0, %v8955_v41, -inf }
 0x2c6   : > { %v3479_v46 = vpop.f32.mrf.mxu0  ;;  %v3119_v10 = vpop.f32.mrf.mxu1 }
 0x2c7   : > { %9846 = vst [vmem:[#allocation14_spill] sm:$0xff] %v8949_v53  ;;  %v3480_v37 = vadd.f32 %v3479_v46, %v3095_v14  ;;  %v3652_v38 = vsel %vm3599_vm0, %v8949_v53, -inf  ;;  %v8964_v9 = vadd.f32 %v8486_v3, %v3485_v12  ;;  %v9850_v46 = vld [vmem:[#allocation41_spill] sm:$0xff] }
 0x2c8   : > { %3766 = vmax.xlane.f32.xlu0 %v3651_v1  ;;  %3768 = vmax.xlane.f32.xlu1 %v3652_v38  ;;  %v3121_v6 = vpop.f32.mrf.mxu1  ;;  %v9851_v1 = vld [vmem:[#allocation30_spill] sm:$0xff]  ;;  %v9852_v38 = vld [vmem:[#allocation40_spill] sm:$0xff] }
 0x2c9   : > { %v8961_v24 = vadd.f32 %v8486_v3, %v3480_v37  ;;  %9849 = vst [vmem:[#allocation4_spill] sm:$0xff] %v8964_v9  ;;  %v3655_v55 = vsel %vm3599_vm0, %v8964_v9, -inf  ;;  %v2725_v12 = vadd.f32 %v9851_v1, %v9850_v46  ;;  %v9853_v6 = vld [vmem:[#allocation31_spill] sm:$0xff]  ;;  %v9858_v1 = vld [vmem:[#allocation34_spill] sm:$0xff] }
 0x2ca   : > { %v3124_v29 = vpop.f32.mrf.mxu1  ;;  %v2720_v41 = vadd.f32 %v9853_v6, %v9852_v38 }
 0x2cb   : > { %9848 = vst [vmem:[#allocation17_spill] sm:$0xff] %v8961_v24  ;;  %v3654_v51 = vsel %vm3599_vm0, %v8961_v24, -inf  ;;  %v9855_v24 = vld [vmem:[#allocation32_spill] sm:$0xff] }
 0x2cc   : > { %3770 = vmax.xlane.f32.xlu0 %v3653_v16  ;;  %3772 = vmax.xlane.f32.xlu1 %v3654_v51  ;;  %v3126_v34 = vpop.f32.mrf.mxu1  ;;  %v3110_v16 = vadd.f32 %v3109_v15, %v2725_v12  ;;  %v3105_v53 = vadd.f32 %v8906_v44, %v2720_v41  ;;  %v9859_v41 = vld [vmem:[#allocation44_spill] sm:$0xff] }
 0x2cd   : > { %v9854_v34 = vld [vmem:[#allocation43_spill] sm:$0xff] }
 0x2ce   : > { %v3129_v54 = vpop.f32.mrf.mxu1  ;;  %v2735_v18 = vadd.f32 %v9855_v24, %v9854_v34 }
 0x2d0   : > { %3774 = vmax.xlane.f32.xlu0 %v3655_v55  ;;  %v3131_v40 = vpop.f32.mrf.mxu1  ;;  %v3120_v30 = vadd.f32 %v3119_v10, %v2735_v18 }
 0x2d1   : > { %v9856_v40 = vld [vmem:[#allocation42_spill] sm:$0xff] }
 0x2d2   : > { %v3134_v14 = vpop.f32.mrf.mxu1 }
 0x2d4   : > { %v3136_v23 = vpop.f32.mrf.mxu1 }
 0x2d5   : > { %v2730_v23 = vadd.f32 %v9857_v8, %v9856_v40  ;;  %v9860_v8 = vld [vmem:[#allocation35_spill] sm:$0xff]  ;;  %v9862_v40 = vld [vmem:[#allocation45_spill] sm:$0xff] }
 0x2d6   : > { %v3139_v13 = vpop.f32.mrf.mxu1  ;;  %v2740_v18 = vadd.f32 %v9860_v8, %v9859_v41  ;;  %v9864_v8 = vld [vmem:[#allocation46_spill] sm:$0xff] }
 0x2d7   : > { %v3115_v12 = vadd.f32 %v3114_v50, %v2730_v23  ;;  %v9863_v23 = vld [vmem:[#allocation37_spill] sm:$0xff] }
 0x2d8   : > { %v3141_v37 = vpop.f32.mrf.mxu1 }
 0x2d9   : > { %v2745_v37 = vadd.f32 %v9858_v1, %v8468_v62 }
 0x2da   : > { %v5800_v51 = vpop.f32.mrf.mxu1 }
 0x2db   : > { %v3495_v9 = vadd.f32 %v5800_v51, %v3110_v16  ;;  %v3125_v51 = vadd.f32 %v3124_v29, %v2740_v18 }
 0x2dc   : > { %v3489_v55 = vpop.f32.mrf.mxu1 }
 0x2dd   : > { %v8985_v39 = vadd.f32 %v8486_v3, %v3495_v9  ;;  %v3490_v46 = vadd.f32 %v3489_v55, %v3105_v53  ;;  %v3130_v9 = vadd.f32 %v3129_v54, %v2745_v37 }
 0x2de   : > { %v5803_v15 = vpop.f32.mrf.mxu1 }
 0x2df   : > { %v8990_v38 = vadd.f32 %v8486_v3, %v3490_v46  ;;  %v3505_v24 = vadd.f32 %v5803_v15, %v3120_v30  ;;  %v3657_v44 = vsel %vm3599_vm0, %v8985_v39, -inf  ;;  %v9861_v30 = vld [vmem:[#allocation36_spill] sm:$0xff]  ;;  %v2750_v46 = vadd.f32 %v9863_v23, %v9862_v40 }
 0x2e0   : > { %3778 = vmax.xlane.f32.xlu0 %v3657_v44  ;;  %v3499_v10 = vpop.f32.mrf.mxu1  ;;  %v2755_v6 = vadd.f32 %v9861_v30, %v8478_v58 }
 0x2e1   : > { %v8998_v53 = vadd.f32 %v8486_v3, %v3505_v24  ;;  %v3500_v62 = vadd.f32 %v3499_v10, %v3115_v12  ;;  %v3656_v50 = vsel %vm3599_vm0, %v8990_v38, -inf  ;;  %v3135_v12 = vadd.f32 %v3134_v14, %v2750_v46 }
 0x2e2   : > { %v5806_v16 = vpop.f32.mrf.mxu1  ;;  %3776 = vmax.xlane.f32.xlu1 %v3656_v50  ;;  %v3140_v37 = vadd.f32 %v3139_v13, %v2755_v6 }
 0x2e3   : > { %v9006_v34 = vadd.f32 %v8486_v3, %v3500_v62  ;;  %v3515_v55 = vadd.f32 %v5806_v16, %v3130_v9  ;;  %v3659_v54 = vsel %vm3599_vm0, %v8998_v53, -inf }
 0x2e4   : > { %3782 = vmax.xlane.f32.xlu0 %v3659_v54  ;;  %v3509_v1 = vpop.f32.mrf.mxu1 }
 0x2e5   : > { %v9014_v15 = vadd.f32 %v8486_v3, %v3515_v55  ;;  %v3510_v58 = vadd.f32 %v3509_v1, %v3125_v51  ;;  %v3658_v29 = vsel %vm3599_vm0, %v9006_v34, -inf }
 0x2e6   : > { %v5809_v44 = vpop.f32.mrf.mxu1  ;;  %3780 = vmax.xlane.f32.xlu1 %v3658_v29  ;;  %v9866_v29 = vld [vmem:[#allocation48_spill] sm:$0xff] }
 0x2e7   : > { %v3667_v24 = vpop.xlane.xlu1 %3666  ;;  %v9020_v41 = vadd.f32 %v8486_v3, %v3510_v58  ;;  %v3525_v10 = vadd.f32 %v5809_v44, %v3140_v37  ;;  %v3661_v13 = vsel %vm3599_vm0, %v9014_v15, -inf }
 0x2e8   : > { %v9023_v18 = vsub.f32 %v9864_v8, %v3667_v24  ;;  %3786 = vmax.xlane.f32.xlu0 %v3661_v13  ;;  %v3519_v9 = vpop.f32.mrf.mxu1 }
 0x2e9   : > { %v3665_v62 = vpop.xlane.xlu0 %3664  ;;  %v9030_v14 = vadd.f32 %v8486_v3, %v3525_v10  ;;  %v3520_v30 = vadd.f32 %v3519_v9, %v3135_v12  ;;  %v3660_v16 = vsel %vm3599_vm0, %v9020_v41, -inf  ;;  %v9867_v9 = vld [vmem:[#allocation49_spill] sm:$0xff] }
 0x2ea   : > { %v3858_v50 = vmul.f32 1.442695, %v9023_v18  ;;  %v9033_v6 = vsub.f32 %v8497_v11, %v3665_v62  ;;  %3784 = vmax.xlane.f32.xlu1 %v3660_v16  ;;  %v9865_v11 = vld [vmem:[#allocation47_spill] sm:$0xff] }
 0x2eb   : > { %v9039_v51 = vadd.f32 %v8486_v3, %v3520_v30  ;;  %v3663_v54 = vsel %vm3599_vm0, %v9030_v14, -inf }
 0x2ec   : > { %5855 = vpow2.f32 %v3858_v50  ;;  %v3856_v55 = vmul.f32 1.442695, %v9033_v6  ;;  %3790 = vmax.xlane.f32.xlu0 %v3663_v54  ;;  %v9868_v54 = vld [vmem:[#allocation51_spill] sm:$0xff] }
 0x2ed   : > { %v3671_v40 = vpop.xlane.xlu0 %3670  ;;  %v3662_v46 = vsel %vm3599_vm0, %v9039_v51, -inf }
 0x2ee   : > { %5857 = vpow2.f32 %v3856_v55  ;;  %v9046_v23 = vsub.f32 %v9865_v11, %v3671_v40  ;;  %3788 = vmax.xlane.f32.xlu1 %v3662_v46  ;;  %v9869_v11 = vld [vmem:[#allocation50_spill] sm:$0xff] }
 0x2f0   : > { %v3862_v3 = vmul.f32 1.442695, %v9046_v23 }
 0x2f1   : > { %v3673_v1 = vpop.xlane.xlu1 %3672  ;;  %v3669_v37 = vpop.xlane.xlu0 %3668 }
 0x2f2   : > { %5859 = vpow2.f32 %v3862_v3  ;;  %v9053_v58 = vsub.f32 %v8523_v22, %v3673_v1  ;;  %v9056_v12 = vsub.f32 %v9866_v29, %v3669_v37 }
 0x2f4   : > { %v3860_v24 = vmul.f32 1.442695, %v9056_v12  ;;  %v3864_v44 = vmul.f32 1.442695, %v9053_v58 }
 0x2f5   : > { %v3677_v8 = vpop.xlane.xlu1 %3676  ;;  %v3675_v10 = vpop.xlane.xlu0 %3674 }
 0x2f6   : > { %v9061_v13 = vsub.f32 %v8539_v60, %v3677_v8  ;;  %v9064_v62 = vsub.f32 %v9867_v9, %v3675_v10  ;;  %5861 = vpow2.f32 %v3860_v24  ;;  %v9870_v10 = vld [vmem:[#allocation52_spill] sm:$0xff] }
 0x2f7   : > { %5863 = vpow2.f32 %v3864_v44 }
 0x2f8   : > { %v3866_v50 = vmul.f32 1.442695, %v9064_v62  ;;  %v3868_v30 = vmul.f32 1.442695, %v9061_v13 }
 0x2f9   : > { %v5856_v22 = vpop.eup %5855  ;;  %v3681_v16 = vpop.xlane.xlu1 %3680 }
 0x2fa   : > { %v3679_v55 = vpop.xlane.xlu0 %3678  ;;  %v9069_v40 = vsub.f32 %v9868_v54, %v3681_v16  ;;  %v3985_v60 = vsel %vm3599_vm0, %v5856_v22, 0.0  ;;  %5865 = vpow2.f32 %v3866_v50 }
 0x2fb   : > { %v9072_v46 = vsub.f32 %v9869_v11, %v3679_v55  ;;  %v5858_v3 = vpop.eup %5857  ;;  %4050 = vadd.xlane.f32.xlu0 %v3985_v60  ;;  %5867 = vpow2.f32 %v3868_v30 }
 0x2fc   : > { %v3984_v37 = vsel %vm3599_vm0, %v5858_v3, 0.0  ;;  %v3872_v29 = vmul.f32 1.442695, %v9069_v40 }
 0x2fd   : > { %v3870_v1 = vmul.f32 1.442695, %v9072_v46  ;;  %v3685_v24 = vpop.xlane.xlu1 %3684  ;;  %4048 = vadd.xlane.f32.xlu1 %v3984_v37 }
 0x2fe   : > { %v3683_v44 = vpop.xlane.xlu0 %3682  ;;  %v9081_v8 = vsub.f32 %v8571_v19, %v3685_v24 }
 0x2ff   : > { %v9084_v9 = vsub.f32 %v9870_v10, %v3683_v44  ;;  %v5860_v22 = vpop.eup %5859  ;;  %5869 = vpow2.f32 %v3870_v1  ;;  %v9871_v10 = vld [vmem:[#allocation54_spill] sm:$0xff] }
 0x300   : > { %v3987_v16 = vsel %vm3599_vm0, %v5860_v22, 0.0  ;;  %5871 = vpow2.f32 %v3872_v29  ;;  %v3876_v30 = vmul.f32 1.442695, %v9081_v8 }
 0x301   : > { %v3874_v50 = vmul.f32 1.442695, %v9084_v9  ;;  %v3689_v55 = vpop.xlane.xlu1 %3688  ;;  %4054 = vadd.xlane.f32.xlu0 %v3987_v16 }
 0x302   : > { %v3687_v54 = vpop.xlane.xlu0 %3686  ;;  %v9091_v11 = vsub.f32 %v8587_v59, %v3689_v55  ;;  %v9873_v59 = vld [vmem:[#allocation53_spill] sm:$0xff] }
 0x303   : > { %v9094_v19 = vsub.f32 %v8577_v31, %v3687_v54  ;;  %5873 = vpow2.f32 %v3874_v50  ;;  %v5862_v60 = vpop.eup %5861 }
 0x304   : > { %5875 = vpow2.f32 %v3876_v30  ;;  %v3880_v1 = vmul.f32 1.442695, %v9091_v11  ;;  %v3986_v29 = vsel %vm3599_vm0, %v5862_v60, 0.0  ;;  %v5864_v44 = vpop.eup %5863 }
 0x305   : > { %v3878_v3 = vmul.f32 1.442695, %v9094_v19  ;;  %v3693_v37 = vpop.xlane.xlu1 %3692  ;;  %4052 = vadd.xlane.f32.xlu1 %v3986_v29  ;;  %v3988_v54 = vsel %vm3599_vm0, %v5864_v44, 0.0 }
 0x306   : > { %v3691_v24 = vpop.xlane.xlu0 %3690  ;;  %v9101_v22 = vsub.f32 %v9871_v10, %v3693_v37 }
 0x307   : > { %v9104_v31 = vsub.f32 %v9873_v59, %v3691_v24  ;;  %5877 = vpow2.f32 %v3878_v3  ;;  %v5866_v50 = vpop.eup %5865  ;;  %v9875_v3 = vld [vmem:[#allocation55_spill] sm:$0xff] }
 0x308   : > { %9872 = vst [vmem:[#allocation16_spill] sm:$0xff] %v9101_v22  ;;  %5879 = vpow2.f32 %v3880_v1  ;;  %v3884_v30 = vmul.f32 1.442695, %v9101_v22  ;;  %v3989_v60 = vsel %vm3599_vm0, %v5866_v50, 0.0  ;;  %v5868_v10 = vpop.eup %5867 }
 0x309   : > { %v3882_v16 = vmul.f32 1.442695, %v9104_v31  ;;  %v3697_v55 = vpop.xlane.xlu1 %3696  ;;  %4056 = vadd.xlane.f32.xlu1 %v3988_v54  ;;  %4058 = vadd.xlane.f32.xlu0 %v3989_v60  ;;  %v3990_v50 = vsel %vm3599_vm0, %v5868_v10, 0.0 }
 0x30a   : > { %v3695_v37 = vpop.xlane.xlu0 %3694  ;;  %v9113_v29 = vsub.f32 %v8619_v52, %v3697_v55 }
 0x30b   : > { %v9116_v24 = vsub.f32 %v9875_v3, %v3695_v37  ;;  %5881 = vpow2.f32 %v3882_v16 }
 0x30c   : > { %9874 = vst [vmem:[#allocation5_spill] sm:$0xff] %v9113_v29  ;;  %v5870_v1 = vpop.eup %5869  ;;  %5883 = vpow2.f32 %v3884_v30  ;;  %v3888_v44 = vmul.f32 1.442695, %v9113_v29 }
 0x30d   : > { %v3886_v59 = vmul.f32 1.442695, %v9116_v24  ;;  %v3701_v22 = vpop.xlane.xlu1 %3700  ;;  %v3991_v52 = vsel %vm3599_vm0, %v5870_v1, 0.0  ;;  %v5872_v54 = vpop.eup %5871  ;;  %4060 = vadd.xlane.f32.xlu1 %v3990_v50 }
 0x30e   : > { %v3699_v55 = vpop.xlane.xlu0 %3698  ;;  %v9125_v60 = vsub.f32 %v8635_v5, %v3701_v22  ;;  %4062 = vadd.xlane.f32.xlu0 %v3991_v52  ;;  %v3992_v1 = vsel %vm3599_vm0, %v5872_v54, 0.0  ;;  %v9877_v52 = vld [vmem:[#allocation57_spill] sm:$0xff] }
 0x30f   : > { %v9128_v16 = vsub.f32 %v8625_v7, %v3699_v55  ;;  %5885 = vpow2.f32 %v3886_v59  ;;  %v9879_v7 = vld [vmem:[#allocation56_spill] sm:$0xff] }
 0x310   : > { %9876 = vst [vmem:[#allocation19_spill] sm:$0xff] %v9125_v60  ;;  %v5874_v30 = vpop.eup %5873  ;;  %5887 = vpow2.f32 %v3888_v44  ;;  %v3892_v10 = vmul.f32 1.442695, %v9125_v60 }
 0x311   : > { %v3890_v37 = vmul.f32 1.442695, %v9128_v16  ;;  %v3705_v3 = vpop.xlane.xlu1 %3704  ;;  %v3993_v5 = vsel %vm3599_vm0, %v5874_v30, 0.0  ;;  %v5876_v50 = vpop.eup %5875  ;;  %4064 = vadd.xlane.f32.xlu1 %v3992_v1 }
 0x312   : > { %v3703_v22 = vpop.xlane.xlu0 %3702  ;;  %v9137_v29 = vsub.f32 %v9877_v52, %v3705_v3  ;;  %4066 = vadd.xlane.f32.xlu0 %v3993_v5  ;;  %v3994_v30 = vsel %vm3599_vm0, %v5876_v50, 0.0 }
 0x313   : > { %v9140_v59 = vsub.f32 %v9879_v7, %v3703_v22  ;;  %5889 = vpow2.f32 %v3890_v37  ;;  %v9881_v37 = vld [vmem:[#allocation58_spill] sm:$0xff] }
 0x314   : > { %9878 = vst [vmem:[#allocation6_spill] sm:$0xff] %v9137_v29  ;;  %v5878_v44 = vpop.eup %5877  ;;  %5891 = vpow2.f32 %v3892_v10  ;;  %v3896_v54 = vmul.f32 1.442695, %v9137_v29 }
 0x315   : > { %v3894_v55 = vmul.f32 1.442695, %v9140_v59  ;;  %v3709_v60 = vpop.xlane.xlu1 %3708  ;;  %v3995_v3 = vsel %vm3599_vm0, %v5878_v44, 0.0  ;;  %v5880_v1 = vpop.eup %5879  ;;  %4068 = vadd.xlane.f32.xlu1 %v3994_v30 }
 0x316   : > { %v3707_v52 = vpop.xlane.xlu0 %3706  ;;  %v9149_v5 = vsub.f32 %v8667_v35, %v3709_v60  ;;  %4070 = vadd.xlane.f32.xlu0 %v3995_v3  ;;  %v3996_v44 = vsel %vm3599_vm0, %v5880_v1, 0.0 }
 0x317   : > { %v9152_v22 = vsub.f32 %v9881_v37, %v3707_v52  ;;  %5893 = vpow2.f32 %v3894_v55 }
 0x318   : > { %9880 = vst [vmem:[#allocation18_spill] sm:$0xff] %v9149_v5  ;;  %v5882_v10 = vpop.eup %5881  ;;  %5895 = vpow2.f32 %v3896_v54  ;;  %v3900_v50 = vmul.f32 1.442695, %v9149_v5 }
 0x319   : > { %v3898_v7 = vmul.f32 1.442695, %v9152_v22  ;;  %v3713_v29 = vpop.xlane.xlu1 %3712  ;;  %v3997_v35 = vsel %vm3599_vm0, %v5882_v10, 0.0  ;;  %v5884_v30 = vpop.eup %5883  ;;  %4072 = vadd.xlane.f32.xlu1 %v3996_v44 }
 0x31a   : > { %v3711_v60 = vpop.xlane.xlu0 %3710  ;;  %v9161_v3 = vsub.f32 %v8683_v28, %v3713_v29  ;;  %4074 = vadd.xlane.f32.xlu0 %v3997_v35  ;;  %v3998_v10 = vsel %vm3599_vm0, %v5884_v30, 0.0  ;;  %v9883_v35 = vld [vmem:[#allocation60_spill] sm:$0xff] }
 0x31b   : > { %v9164_v55 = vsub.f32 %v8673_v25, %v3711_v60  ;;  %5897 = vpow2.f32 %v3898_v7  ;;  %v9885_v25 = vld [vmem:[#allocation59_spill] sm:$0xff] }
 0x31c   : > { %9882 = vst [vmem:[#allocation7_spill] sm:$0xff] %v9161_v3  ;;  %v5886_v54 = vpop.eup %5885  ;;  %5899 = vpow2.f32 %v3900_v50  ;;  %v3904_v1 = vmul.f32 1.442695, %v9161_v3 }
 0x31d   : > { %v3902_v52 = vmul.f32 1.442695, %v9164_v55  ;;  %v3717_v37 = vpop.xlane.xlu1 %3716  ;;  %v3999_v28 = vsel %vm3599_vm0, %v5886_v54, 0.0  ;;  %v5888_v44 = vpop.eup %5887  ;;  %4076 = vadd.xlane.f32.xlu1 %v3998_v10 }
 0x31e   : > { %v3715_v29 = vpop.xlane.xlu0 %3714  ;;  %v9173_v5 = vsub.f32 %v9883_v35, %v3717_v37  ;;  %4078 = vadd.xlane.f32.xlu0 %v3999_v28  ;;  %v4000_v54 = vsel %vm3599_vm0, %v5888_v44, 0.0 }
 0x31f   : > { %v9176_v7 = vsub.f32 %v9885_v25, %v3715_v29  ;;  %5901 = vpow2.f32 %v3902_v52  ;;  %v9886_v52 = vld [vmem:[#allocation61_spill] sm:$0xff] }
 0x320   : > { %9884 = vst [vmem:[#allocation21_spill] sm:$0xff] %v9173_v5  ;;  %v5890_v50 = vpop.eup %5889  ;;  %5903 = vpow2.f32 %v3904_v1  ;;  %v3908_v30 = vmul.f32 1.442695, %v9173_v5 }
 0x321   : > { %v3906_v60 = vmul.f32 1.442695, %v9176_v7  ;;  %v3721_v3 = vpop.xlane.xlu1 %3720  ;;  %v4001_v37 = vsel %vm3599_vm0, %v5890_v50, 0.0  ;;  %v5892_v10 = vpop.eup %5891  ;;  %4080 = vadd.xlane.f32.xlu1 %v4000_v54 }
 0x322   : > { %v3719_v35 = vpop.xlane.xlu0 %3718  ;;  %v9185_v28 = vsub.f32 %v8715_v4, %v3721_v3  ;;  %4082 = vadd.xlane.f32.xlu0 %v4001_v37  ;;  %v4002_v50 = vsel %vm3599_vm0, %v5892_v10, 0.0 }
 0x323   : > { %v9188_v29 = vsub.f32 %v9886_v52, %v3719_v35  ;;  %5905 = vpow2.f32 %v3906_v60 }
 0x324   : > { %v5894_v1 = vpop.eup %5893  ;;  %5907 = vpow2.f32 %v3908_v30  ;;  %v3912_v44 = vmul.f32 1.442695, %v9185_v28 }
 0x325   : > { %v3910_v25 = vmul.f32 1.442695, %v9188_v29  ;;  %v3725_v5 = vpop.xlane.xlu1 %3724  ;;  %v4003_v4 = vsel %vm3599_vm0, %v5894_v1, 0.0  ;;  %v5896_v54 = vpop.eup %5895  ;;  %4084 = vadd.xlane.f32.xlu1 %v4002_v50 }
 0x326   : > { %v3723_v3 = vpop.xlane.xlu0 %3722  ;;  %v9197_v37 = vsub.f32 %v8736_v43, %v3725_v5  ;;  %4086 = vadd.xlane.f32.xlu0 %v4003_v4  ;;  %v4004_v1 = vsel %vm3599_vm0, %v5896_v54, 0.0 }
 0x327   : > { %v9200_v60 = vsub.f32 %v8723_v20, %v3723_v3  ;;  %5909 = vpow2.f32 %v3910_v25 }
 0x328   : > { %v5898_v30 = vpop.eup %5897  ;;  %5911 = vpow2.f32 %v3912_v44  ;;  %v3916_v10 = vmul.f32 1.442695, %v9197_v37 }
 0x329   : > { %v3914_v35 = vmul.f32 1.442695, %v9200_v60  ;;  %v3729_v52 = vpop.xlane.xlu1 %3728  ;;  %v4005_v43 = vsel %vm3599_vm0, %v5898_v30, 0.0  ;;  %v5900_v50 = vpop.eup %5899  ;;  %4088 = vadd.xlane.f32.xlu1 %v4004_v1 }
 0x32a   : > { %v3727_v5 = vpop.xlane.xlu0 %3726  ;;  %v9209_v4 = vsub.f32 %v8756_v57, %v3729_v52  ;;  %4090 = vadd.xlane.f32.xlu0 %v4005_v43  ;;  %v4006_v30 = vsel %vm3599_vm0, %v5900_v50, 0.0 }
 0x32b   : > { %v9212_v20 = vsub.f32 %v8743_v2, %v3727_v5  ;;  %5913 = vpow2.f32 %v3914_v35 }
 0x32c   : > { %v5902_v25 = vpop.eup %5901  ;;  %5915 = vpow2.f32 %v3916_v10  ;;  %v3920_v3 = vmul.f32 1.442695, %v9209_v4 }
 0x32d   : > { %v3918_v44 = vmul.f32 1.442695, %v9212_v20  ;;  %v3733_v54 = vpop.xlane.xlu1 %3732  ;;  %v4007_v57 = vsel %vm3599_vm0, %v5902_v25, 0.0  ;;  %v5904_v1 = vpop.eup %5903  ;;  %4092 = vadd.xlane.f32.xlu1 %v4006_v30 }
 0x32e   : > { %v3731_v52 = vpop.xlane.xlu0 %3730  ;;  %v9221_v43 = vsub.f32 %v8776_v27, %v3733_v54  ;;  %4094 = vadd.xlane.f32.xlu0 %v4007_v57  ;;  %v4008_v25 = vsel %vm3599_vm0, %v5904_v1, 0.0 }
 0x32f   : > { %v9224_v2 = vsub.f32 %v8763_v47, %v3731_v52  ;;  %5917 = vpow2.f32 %v3918_v44 }
 0x330   : > { %v5906_v35 = vpop.eup %5905  ;;  %5919 = vpow2.f32 %v3920_v3  ;;  %v3924_v5 = vmul.f32 1.442695, %v9221_v43 }
 0x331   : > { %v3922_v10 = vmul.f32 1.442695, %v9224_v2  ;;  %v3737_v50 = vpop.xlane.xlu1 %3736  ;;  %v4009_v27 = vsel %vm3599_vm0, %v5906_v35, 0.0  ;;  %v5908_v30 = vpop.eup %5907  ;;  %4096 = vadd.xlane.f32.xlu1 %v4008_v25 }
 0x332   : > { %v3735_v54 = vpop.xlane.xlu0 %3734  ;;  %v9233_v57 = vsub.f32 %v8796_v36, %v3737_v50  ;;  %4098 = vadd.xlane.f32.xlu0 %v4009_v27  ;;  %v4010_v35 = vsel %vm3599_vm0, %v5908_v30, 0.0 }
 0x333   : > { %v9236_v47 = vsub.f32 %v8786_v33, %v3735_v54  ;;  %5921 = vpow2.f32 %v3922_v10 }
 0x334   : > { %v5910_v44 = vpop.eup %5909  ;;  %5923 = vpow2.f32 %v3924_v5  ;;  %v3928_v52 = vmul.f32 1.442695, %v9233_v57 }
 0x335   : > { %v3926_v3 = vmul.f32 1.442695, %v9236_v47  ;;  %v3741_v1 = vpop.xlane.xlu1 %3740  ;;  %v4011_v36 = vsel %vm3599_vm0, %v5910_v44, 0.0  ;;  %v5912_v25 = vpop.eup %5911  ;;  %4100 = vadd.xlane.f32.xlu1 %v4010_v35 }
 0x336   : > { %v3739_v50 = vpop.xlane.xlu0 %3738  ;;  %v9245_v27 = vsub.f32 %v8816_v42, %v3741_v1  ;;  %4102 = vadd.xlane.f32.xlu0 %v4011_v36  ;;  %v4012_v44 = vsel %vm3599_vm0, %v5912_v25, 0.0 }
 0x337   : > { %v9248_v33 = vsub.f32 %v8803_v21, %v3739_v50  ;;  %5925 = vpow2.f32 %v3926_v3 }
 0x338   : > { %v5914_v10 = vpop.eup %5913  ;;  %5927 = vpow2.f32 %v3928_v52  ;;  %v3932_v54 = vmul.f32 1.442695, %v9245_v27 }
 0x339   : > { %v3930_v5 = vmul.f32 1.442695, %v9248_v33  ;;  %v3745_v30 = vpop.xlane.xlu1 %3744  ;;  %v4013_v42 = vsel %vm3599_vm0, %v5914_v10, 0.0  ;;  %v5916_v35 = vpop.eup %5915  ;;  %4104 = vadd.xlane.f32.xlu1 %v4012_v44 }
 0x33a   : > { %v3743_v1 = vpop.xlane.xlu0 %3742  ;;  %v9257_v36 = vsub.f32 %v8836_v63, %v3745_v30  ;;  %4106 = vadd.xlane.f32.xlu0 %v4013_v42  ;;  %v4014_v10 = vsel %vm3599_vm0, %v5916_v35, 0.0 }
 0x33b   : > { %v9260_v21 = vsub.f32 %v8823_v61, %v3743_v1  ;;  %5929 = vpow2.f32 %v3930_v5 }
 0x33c   : > { %v5918_v3 = vpop.eup %5917  ;;  %5931 = vpow2.f32 %v3932_v54  ;;  %v3936_v50 = vmul.f32 1.442695, %v9257_v36 }
 0x33d   : > { %v3934_v52 = vmul.f32 1.442695, %v9260_v21  ;;  %v3749_v25 = vpop.xlane.xlu1 %3748  ;;  %v4015_v63 = vsel %vm3599_vm0, %v5918_v3, 0.0  ;;  %v5920_v44 = vpop.eup %5919  ;;  %4108 = vadd.xlane.f32.xlu1 %v4014_v10 }
 0x33e   : > { %v3747_v30 = vpop.xlane.xlu0 %3746  ;;  %v9269_v42 = vsub.f32 %v8856_v45, %v3749_v25  ;;  %4110 = vadd.xlane.f32.xlu0 %v4015_v63  ;;  %v4016_v3 = vsel %vm3599_vm0, %v5920_v44, 0.0 }
 0x33f   : > { %v9272_v61 = vsub.f32 %v8846_v17, %v3747_v30  ;;  %5933 = vpow2.f32 %v3934_v52 }
 0x340   : > { %v5922_v5 = vpop.eup %5921  ;;  %5935 = vpow2.f32 %v3936_v50  ;;  %v3940_v1 = vmul.f32 1.442695, %v9269_v42 }
 0x341   : > { %v3938_v54 = vmul.f32 1.442695, %v9272_v61  ;;  %v3753_v35 = vpop.xlane.xlu1 %3752  ;;  %v4017_v45 = vsel %vm3599_vm0, %v5922_v5, 0.0  ;;  %v5924_v10 = vpop.eup %5923  ;;  %4112 = vadd.xlane.f32.xlu1 %v4016_v3 }
 0x342   : > { %v3751_v25 = vpop.xlane.xlu0 %3750  ;;  %v9281_v63 = vsub.f32 %v8876_v26, %v3753_v35  ;;  %4114 = vadd.xlane.f32.xlu0 %v4017_v45  ;;  %v4018_v5 = vsel %vm3599_vm0, %v5924_v10, 0.0 }
 0x343   : > { %v9284_v17 = vsub.f32 %v8863_v48, %v3751_v25  ;;  %5937 = vpow2.f32 %v3938_v54 }
 0x344   : > { %v5926_v52 = vpop.eup %5925  ;;  %5939 = vpow2.f32 %v3940_v1  ;;  %v3944_v30 = vmul.f32 1.442695, %v9281_v63 }
 0x345   : > { %v3942_v50 = vmul.f32 1.442695, %v9284_v17  ;;  %v3757_v44 = vpop.xlane.xlu1 %3756  ;;  %v4019_v26 = vsel %vm3599_vm0, %v5926_v52, 0.0  ;;  %v5928_v3 = vpop.eup %5927  ;;  %4116 = vadd.xlane.f32.xlu1 %v4018_v5 }
 0x346   : > { %v3755_v35 = vpop.xlane.xlu0 %3754  ;;  %v9293_v45 = vsub.f32 %v8894_v0, %v3757_v44  ;;  %4118 = vadd.xlane.f32.xlu0 %v4019_v26  ;;  %v4020_v52 = vsel %vm3599_vm0, %v5928_v3, 0.0 }
 0x347   : > { %v9296_v48 = vsub.f32 %v8883_v56, %v3755_v35  ;;  %5941 = vpow2.f32 %v3942_v50  ;;  %v9890_v56 = vld [vmem:[#allocation12_spill] sm:$0xff] }
 0x348   : > { %9887 = vst [vmem:[#allocation20_spill] sm:$0xff] %v9293_v45  ;;  %v5930_v54 = vpop.eup %5929  ;;  %5943 = vpow2.f32 %v3944_v30  ;;  %v3948_v25 = vmul.f32 1.442695, %v9293_v45 }
 0x349   : > { %9888 = vst [vmem:[#allocation8_spill] sm:$0xff] %v9296_v48  ;;  %v3946_v1 = vmul.f32 1.442695, %v9296_v48  ;;  %v3761_v10 = vpop.xlane.xlu1 %3760  ;;  %v4021_v0 = vsel %vm3599_vm0, %v5930_v54, 0.0  ;;  %v5932_v5 = vpop.eup %5931  ;;  %4120 = vadd.xlane.f32.xlu1 %v4020_v52 }
 0x34a   : > { %v3759_v44 = vpop.xlane.xlu0 %3758  ;;  %v9305_v26 = vsub.f32 %v8914_v32, %v3761_v10  ;;  %4122 = vadd.xlane.f32.xlu0 %v4021_v0  ;;  %v4022_v54 = vsel %vm3599_vm0, %v5932_v5, 0.0  ;;  %v9892_v0 = vld [vmem:[#allocation15_spill] sm:$0xff] }
 0x34b   : > { %v9308_v50 = vsub.f32 %v9890_v56, %v3759_v44  ;;  %5945 = vpow2.f32 %v3946_v1  ;;  %v9894_v1 = vld [vmem:[#allocation13_spill] sm:$0xff] }
 0x34c   : > { %9889 = vst [vmem:[#allocation23_spill] sm:$0xff] %v9305_v26  ;;  %v5934_v30 = vpop.eup %5933  ;;  %5947 = vpow2.f32 %v3948_v25  ;;  %v3952_v3 = vmul.f32 1.442695, %v9305_v26 }
 0x34d   : > { %9891 = vst [vmem:[#allocation22_spill] sm:$0xff] %v9308_v50  ;;  %v3950_v35 = vmul.f32 1.442695, %v9308_v50  ;;  %v3765_v45 = vpop.xlane.xlu1 %3764  ;;  %v4023_v32 = vsel %vm3599_vm0, %v5934_v30, 0.0  ;;  %v5936_v52 = vpop.eup %5935  ;;  %4124 = vadd.xlane.f32.xlu1 %v4022_v54 }
 0x34e   : > { %v3763_v10 = vpop.xlane.xlu0 %3762  ;;  %v9317_v48 = vsub.f32 %v9892_v0, %v3765_v45  ;;  %4126 = vadd.xlane.f32.xlu0 %v4023_v32  ;;  %v4024_v30 = vsel %vm3599_vm0, %v5936_v52, 0.0  ;;  %v9896_v32 = vld [vmem:[#allocation14_spill] sm:$0xff] }
 0x34f   : > { %v9320_v44 = vsub.f32 %v9894_v1, %v3763_v10  ;;  %5949 = vpow2.f32 %v3950_v35  ;;  %v9898_v35 = vld [vmem:[#allocation2_spill] sm:$0xff] }
 0x350   : > { %9893 = vst [vmem:[#allocation25_spill] sm:$0xff] %v9317_v48  ;;  %v5938_v25 = vpop.eup %5937  ;;  %5951 = vpow2.f32 %v3952_v3  ;;  %v3956_v5 = vmul.f32 1.442695, %v9317_v48 }
 0x351   : > { %9895 = vst [vmem:[#allocation9_spill] sm:$0xff] %v9320_v44  ;;  %v3954_v56 = vmul.f32 1.442695, %v9320_v44  ;;  %v3769_v26 = vpop.xlane.xlu1 %3768  ;;  %v4025_v45 = vsel %vm3599_vm0, %v5938_v25, 0.0  ;;  %v5940_v54 = vpop.eup %5939  ;;  %4128 = vadd.xlane.f32.xlu1 %v4024_v30 }
 0x352   : > { %v3767_v0 = vpop.xlane.xlu0 %3766  ;;  %v9329_v50 = vsub.f32 %v9896_v32, %v3769_v26  ;;  %4130 = vadd.xlane.f32.xlu0 %v4025_v45  ;;  %v4026_v25 = vsel %vm3599_vm0, %v5940_v54, 0.0  ;;  %v9899_v45 = vld [vmem:[#allocation17_spill] sm:$0xff] }
 0x353   : > { %v9332_v10 = vsub.f32 %v9898_v35, %v3767_v0  ;;  %5953 = vpow2.f32 %v3954_v56  ;;  %v9900_v56 = vld [vmem:[#allocation3_spill] sm:$0xff] }
 0x354   : > { %9897 = vst [vmem:[#allocation24_spill] sm:$0xff] %v9329_v50  ;;  %v5942_v3 = vpop.eup %5941  ;;  %5955 = vpow2.f32 %v3956_v5  ;;  %v3960_v52 = vmul.f32 1.442695, %v9329_v50 }
 0x355   : > { %v3958_v1 = vmul.f32 1.442695, %v9332_v10  ;;  %v3773_v48 = vpop.xlane.xlu1 %3772  ;;  %v4027_v26 = vsel %vm3599_vm0, %v5942_v3, 0.0  ;;  %v5944_v30 = vpop.eup %5943  ;;  %4132 = vadd.xlane.f32.xlu1 %v4026_v25  ;;  %v9901_v25 = vld [vmem:[#allocation4_spill] sm:$0xff] }
 0x356   : > { %v3771_v32 = vpop.xlane.xlu0 %3770  ;;  %v9341_v44 = vsub.f32 %v9899_v45, %v3773_v48  ;;  %4134 = vadd.xlane.f32.xlu0 %v4027_v26  ;;  %v4028_v3 = vsel %vm3599_vm0, %v5944_v30, 0.0 }
 0x357   : > { %v9344_v0 = vsub.f32 %v9900_v56, %v3771_v32  ;;  %5957 = vpow2.f32 %v3958_v1 }
 0x358   : > { %v5946_v5 = vpop.eup %5945  ;;  %5959 = vpow2.f32 %v3960_v52  ;;  %v3964_v54 = vmul.f32 1.442695, %v9341_v44 }
 0x359   : > { %v3962_v35 = vmul.f32 1.442695, %v9344_v0  ;;  %v4029_v50 = vsel %vm3599_vm0, %v5946_v5, 0.0  ;;  %v5948_v45 = vpop.eup %5947  ;;  %4136 = vadd.xlane.f32.xlu1 %v4028_v3 }
 0x35a   : > { %v3775_v48 = vpop.xlane.xlu0 %3774  ;;  %4138 = vadd.xlane.f32.xlu0 %v4029_v50  ;;  %v4030_v52 = vsel %vm3599_vm0, %v5948_v45, 0.0 }
 0x35b   : > { %v9353_v26 = vsub.f32 %v9901_v25, %v3775_v48  ;;  %5961 = vpow2.f32 %v3962_v35 }
 0x35c   : > { %v5950_v1 = vpop.eup %5949  ;;  %5963 = vpow2.f32 %v3964_v54 }
 0x35d   : > { %v3966_v32 = vmul.f32 1.442695, %v9353_v26  ;;  %v4031_v30 = vsel %vm3599_vm0, %v5950_v1, 0.0  ;;  %v5952_v56 = vpop.eup %5951  ;;  %4140 = vadd.xlane.f32.xlu1 %v4030_v52 }
 0x35e   : > { %4142 = vadd.xlane.f32.xlu0 %v4031_v30  ;;  %v4032_v50 = vsel %vm3599_vm0, %v5952_v56, 0.0 }
 0x35f   : > { %5965 = vpow2.f32 %v3966_v32 }
 0x360   : > { %v5954_v5 = vpop.eup %5953 }
 0x361   : > { %v4033_v35 = vsel %vm3599_vm0, %v5954_v5, 0.0  ;;  %v5956_v3 = vpop.eup %5955  ;;  %4144 = vadd.xlane.f32.xlu1 %v4032_v50 }
 0x362   : > { %4146 = vadd.xlane.f32.xlu0 %v4033_v35  ;;  %v4034_v48 = vsel %vm3599_vm0, %v5956_v3, 0.0 }
 0x364   : > { %v5958_v54 = vpop.eup %5957 }
 0x365   : > { %v4035_v45 = vsel %vm3599_vm0, %v5958_v54, 0.0  ;;  %v5960_v25 = vpop.eup %5959  ;;  %4148 = vadd.xlane.f32.xlu1 %v4034_v48 }
 0x366   : > { %4150 = vadd.xlane.f32.xlu0 %v4035_v45  ;;  %v4036_v32 = vsel %vm3599_vm0, %v5960_v25, 0.0 }
 0x368   : > { %v5962_v1 = vpop.eup %5961 }
 0x369   : > { %v4037_v52 = vsel %vm3599_vm0, %v5962_v1, 0.0  ;;  %v5964_v30 = vpop.eup %5963  ;;  %4152 = vadd.xlane.f32.xlu1 %v4036_v32  ;;  %v3779_v56 = vpop.xlane.xlu0 %3778 }
 0x36a   : > { %4154 = vadd.xlane.f32.xlu0 %v4037_v52  ;;  %v9373_v50 = vsub.f32 %v8985_v39, %v3779_v56  ;;  %v4038_v45 = vsel %vm3599_vm0, %v5964_v30, 0.0 }
 0x36b   : > { %v3777_v35 = vpop.xlane.xlu1 %3776 }
 0x36c   : > { %v5966_v5 = vpop.eup %5965  ;;  %v3970_v54 = vmul.f32 1.442695, %v9373_v50  ;;  %v9379_v48 = vsub.f32 %v8990_v38, %v3777_v35 }
 0x36d   : > { %v4039_v3 = vsel %vm3599_vm0, %v5966_v5, 0.0  ;;  %4156 = vadd.xlane.f32.xlu1 %v4038_v45  ;;  %v3783_v25 = vpop.xlane.xlu0 %3782 }
 0x36e   : > { %4158 = vadd.xlane.f32.xlu0 %v4039_v3  ;;  %5967 = vpow2.f32 %v3970_v54  ;;  %v3968_v1 = vmul.f32 1.442695, %v9379_v48  ;;  %v9385_v39 = vsub.f32 %v8998_v53, %v3783_v25 }
 0x36f   : > { %v3781_v32 = vpop.xlane.xlu1 %3780 }
 0x370   : > { %5969 = vpow2.f32 %v3968_v1  ;;  %v3974_v52 = vmul.f32 1.442695, %v9385_v39  ;;  %v9389_v56 = vsub.f32 %v9006_v34, %v3781_v32 }
 0x371   : > { %v3787_v38 = vpop.xlane.xlu0 %3786 }
 0x372   : > { %5971 = vpow2.f32 %v3974_v52  ;;  %v3972_v30 = vmul.f32 1.442695, %v9389_v56  ;;  %v9393_v5 = vsub.f32 %v9014_v15, %v3787_v38 }
 0x373   : > { %v3785_v3 = vpop.xlane.xlu1 %3784 }
 0x374   : > { %5973 = vpow2.f32 %v3972_v30  ;;  %v3978_v35 = vmul.f32 1.442695, %v9393_v5  ;;  %v9397_v53 = vsub.f32 %v9020_v41, %v3785_v3 }
 0x375   : > { %v3791_v54 = vpop.xlane.xlu0 %3790 }
 0x376   : > { %5975 = vpow2.f32 %v3978_v35  ;;  %v9400_v45 = vsub.f32 %v9030_v14, %v3791_v54  ;;  %v3976_v34 = vmul.f32 1.442695, %v9397_v53 }
 0x377   : > { %v3789_v1 = vpop.xlane.xlu1 %3788 }
 0x378   : > { %v3982_v25 = vmul.f32 1.442695, %v9400_v45  ;;  %5977 = vpow2.f32 %v3976_v34  ;;  %v9405_v15 = vsub.f32 %v9039_v51, %v3789_v1 }
 0x37a   : > { %5979 = vpow2.f32 %v3982_v25  ;;  %v3980_v52 = vmul.f32 1.442695, %v9405_v15 }
 0x37b   : > { %v5968_v32 = vpop.eup %5967 }
 0x37c   : > { %v4041_v41 = vsel %vm3599_vm0, %v5968_v32, 0.0  ;;  %5981 = vpow2.f32 %v3980_v52 }
 0x37d   : > { %v5970_v38 = vpop.eup %5969  ;;  %4162 = vadd.xlane.f32.xlu0 %v4041_v41 }
 0x37e   : > { %v4040_v14 = vsel %vm3599_vm0, %v5970_v38, 0.0 }
 0x37f   : > { %v5972_v30 = vpop.eup %5971  ;;  %4160 = vadd.xlane.f32.xlu1 %v4040_v14 }
 0x380   : > { %v4043_v35 = vsel %vm3599_vm0, %v5972_v30, 0.0 }
 0x381   : > { %v5974_v51 = vpop.eup %5973  ;;  %4166 = vadd.xlane.f32.xlu0 %v4043_v35 }
 0x382   : > { %v4042_v3 = vsel %vm3599_vm0, %v5974_v51, 0.0 }
 0x383   : > { %v5976_v54 = vpop.eup %5975  ;;  %4164 = vadd.xlane.f32.xlu1 %v4042_v3 }
 0x384   : > { %v4051_v34 = vpop.xlane.xlu0 %4050  ;;  %v4045_v25 = vsel %vm3599_vm0, %v5976_v54, 0.0 }
 0x385   : > { %5983 = vlog2.f32 %v4051_v34  ;;  %4170 = vadd.xlane.f32.xlu0 %v4045_v25  ;;  %v5978_v32 = vpop.eup %5977 }
 0x386   : > { %v4049_v1 = vpop.xlane.xlu1 %4048  ;;  %v4044_v41 = vsel %vm3599_vm0, %v5978_v32, 0.0 }
 0x387   : > { %5985 = vlog2.f32 %v4049_v1  ;;  %v5980_v52 = vpop.eup %5979  ;;  %4168 = vadd.xlane.f32.xlu1 %v4044_v41 }
 0x388   : > { %v4047_v38 = vsel %vm3599_vm0, %v5980_v52, 0.0 }
 0x389   : > { %4174 = vadd.xlane.f32.xlu0 %v4047_v38  ;;  %v5982_v30 = vpop.eup %5981 }
 0x38a   : > { %v4055_v14 = vpop.xlane.xlu0 %4054  ;;  %v4046_v35 = vsel %vm3599_vm0, %v5982_v30, 0.0 }
 0x38b   : > { %5987 = vlog2.f32 %v4055_v14  ;;  %4172 = vadd.xlane.f32.xlu1 %v4046_v35 }
 0x38e   : > { %v4053_v51 = vpop.xlane.xlu1 %4052 }
 0x38f   : > { %5989 = vlog2.f32 %v4053_v51 }
 0x392   : > { %v5984_v3 = vpop.eup %5983  ;;  %v4057_v34 = vpop.xlane.xlu1 %4056 }
 0x393   : > { %v4179_v54 = vmul.f32 0.6931472, %v5984_v3  ;;  %v4059_v25 = vpop.xlane.xlu0 %4058  ;;  %5991 = vlog2.f32 %v4057_v34 }
 0x394   : > { %v5986_v1 = vpop.eup %5985  ;;  %5993 = vlog2.f32 %v4059_v25 }
 0x395   : > { %v4305_v32 = vsub.f32 %v9023_v18, %v4179_v54  ;;  %v4177_v52 = vmul.f32 0.6931472, %v5986_v1 }
 0x396   : > { %v4061_v14 = vpop.xlane.xlu1 %4060 }
 0x397   : > { %v4369_v41 = vsel %vm3599_vm0, %v4305_v32, 0.0  ;;  %v4304_v38 = vsub.f32 %v9033_v6, %v4177_v52  ;;  %v4063_v30 = vpop.xlane.xlu0 %4062  ;;  %5995 = vlog2.f32 %v4061_v14 }
 0x398   : > { %v5988_v35 = vpop.eup %5987  ;;  %4433 = vst [vmem:[%s9428_s11 + $0x8] sm:$0xff] %v4369_v41  ;;  %5997 = vlog2.f32 %v4063_v30 }
 0x399   : > { %v4368_v51 = vsel %vm3599_vm0, %v4304_v38, 0.0  ;;  %v4183_v3 = vmul.f32 0.6931472, %v5988_v35 }
 0x39a   : > { %4432 = vst [vmem:[%s9428_s11] sm:$0xff] %v4368_v51  ;;  %v4065_v54 = vpop.xlane.xlu1 %4064 }
 0x39b   : > { %v4307_v18 = vsub.f32 %v9046_v23, %v4183_v3  ;;  %v4067_v34 = vpop.xlane.xlu0 %4066  ;;  %5999 = vlog2.f32 %v4065_v54 }
 0x39c   : > { %v5990_v25 = vpop.eup %5989  ;;  %6001 = vlog2.f32 %v4067_v34 }
 0x39d   : > { %v4371_v6 = vsel %vm3599_vm0, %v4307_v18, 0.0  ;;  %v4181_v1 = vmul.f32 0.6931472, %v5990_v25 }
 0x39e   : > { %4435 = vst [vmem:[%s9428_s11 + $0x18] sm:$0xff] %v4371_v6  ;;  %v4069_v32 = vpop.xlane.xlu1 %4068 }
 0x39f   : > { %v4071_v52 = vpop.xlane.xlu0 %4070  ;;  %v4306_v41 = vsub.f32 %v9056_v12, %v4181_v1  ;;  %6003 = vlog2.f32 %v4069_v32 }
 0x3a0   : > { %v5992_v38 = vpop.eup %5991  ;;  %6005 = vlog2.f32 %v4071_v52 }
 0x3a1   : > { %v5994_v23 = vpop.eup %5993  ;;  %v4370_v14 = vsel %vm3599_vm0, %v4306_v41, 0.0  ;;  %v4185_v30 = vmul.f32 0.6931472, %v5992_v38 }
 0x3a2   : > { %4434 = vst [vmem:[%s9428_s11 + $0x10] sm:$0xff] %v4370_v14  ;;  %v4187_v35 = vmul.f32 0.6931472, %v5994_v23  ;;  %v4073_v51 = vpop.xlane.xlu1 %4072 }
 0x3a3   : > { %v4075_v3 = vpop.xlane.xlu0 %4074  ;;  %v4308_v18 = vsub.f32 %v9053_v58, %v4185_v30  ;;  %6007 = vlog2.f32 %v4073_v51 }
 0x3a4   : > { %v5996_v54 = vpop.eup %5995  ;;  %v4309_v12 = vsub.f32 %v9064_v62, %v4187_v35  ;;  %6009 = vlog2.f32 %v4075_v3 }
 0x3a5   : > { %v5998_v34 = vpop.eup %5997  ;;  %v4372_v25 = vsel %vm3599_vm0, %v4308_v18, 0.0  ;;  %v4189_v6 = vmul.f32 0.6931472, %v5996_v54 }
 0x3a6   : > { %4436 = vst [vmem:[%s9428_s11 + $0x20] sm:$0xff] %v4372_v25  ;;  %v4373_v1 = vsel %vm3599_vm0, %v4309_v12, 0.0  ;;  %v4191_v32 = vmul.f32 0.6931472, %v5998_v34  ;;  %v4077_v52 = vpop.xlane.xlu1 %4076 }
 0x3a7   : > { %v4079_v41 = vpop.xlane.xlu0 %4078  ;;  %4437 = vst [vmem:[%s9428_s11 + $0x28] sm:$0xff] %v4373_v1  ;;  %v4310_v58 = vsub.f32 %v9061_v13, %v4189_v6  ;;  %6011 = vlog2.f32 %v4077_v52 }
 0x3a8   : > { %v6000_v62 = vpop.eup %5999  ;;  %v4311_v38 = vsub.f32 %v9072_v46, %v4191_v32  ;;  %6013 = vlog2.f32 %v4079_v41 }
 0x3a9   : > { %v6002_v23 = vpop.eup %6001  ;;  %v4374_v14 = vsel %vm3599_vm0, %v4310_v58, 0.0  ;;  %v4193_v30 = vmul.f32 0.6931472, %v6000_v62 }
 0x3aa   : > { %4438 = vst [vmem:[%s9428_s11 + $0x30] sm:$0xff] %v4374_v14  ;;  %v4375_v35 = vsel %vm3599_vm0, %v4311_v38, 0.0  ;;  %v4195_v51 = vmul.f32 0.6931472, %v6002_v23  ;;  %v4081_v3 = vpop.xlane.xlu1 %4080 }
 0x3ab   : > { %v4083_v18 = vpop.xlane.xlu0 %4082  ;;  %4439 = vst [vmem:[%s9428_s11 + $0x38] sm:$0xff] %v4375_v35  ;;  %v4312_v13 = vsub.f32 %v9069_v40, %v4193_v30  ;;  %6015 = vlog2.f32 %v4081_v3 }
 0x3ac   : > { %v6004_v46 = vpop.eup %6003  ;;  %v4313_v54 = vsub.f32 %v9084_v9, %v4195_v51  ;;  %6017 = vlog2.f32 %v4083_v18 }
 0x3ad   : > { %v6006_v12 = vpop.eup %6005  ;;  %v4376_v34 = vsel %vm3599_vm0, %v4312_v13, 0.0  ;;  %v4197_v25 = vmul.f32 0.6931472, %v6004_v46 }
 0x3ae   : > { %4440 = vst [vmem:[%s9428_s11 + $0x40] sm:$0xff] %v4376_v34  ;;  %v4377_v6 = vsel %vm3599_vm0, %v4313_v54, 0.0  ;;  %v4199_v1 = vmul.f32 0.6931472, %v6006_v12  ;;  %v4085_v32 = vpop.xlane.xlu1 %4084 }
 0x3af   : > { %v4087_v52 = vpop.xlane.xlu0 %4086  ;;  %4441 = vst [vmem:[%s9428_s11 + $0x48] sm:$0xff] %v4377_v6  ;;  %v4314_v40 = vsub.f32 %v9081_v8, %v4197_v25  ;;  %6019 = vlog2.f32 %v4085_v32 }
 0x3b0   : > { %v6008_v9 = vpop.eup %6007  ;;  %v4315_v41 = vsub.f32 %v9094_v19, %v4199_v1  ;;  %6021 = vlog2.f32 %v4087_v52 }
 0x3b1   : > { %v6010_v58 = vpop.eup %6009  ;;  %v4378_v62 = vsel %vm3599_vm0, %v4314_v40, 0.0  ;;  %v4201_v38 = vmul.f32 0.6931472, %v6008_v9 }
 0x3b2   : > { %4442 = vst [vmem:[%s9428_s11 + $0x50] sm:$0xff] %v4378_v62  ;;  %v4379_v23 = vsel %vm3599_vm0, %v4315_v41, 0.0  ;;  %v4203_v14 = vmul.f32 0.6931472, %v6010_v58  ;;  %v4089_v30 = vpop.xlane.xlu1 %4088  ;;  %v9903_v62 = vld [vmem:[#allocation5_spill] sm:$0xff] }
 0x3b3   : > { %v4091_v35 = vpop.xlane.xlu0 %4090  ;;  %4443 = vst [vmem:[%s9428_s11 + $0x58] sm:$0xff] %v4379_v23  ;;  %v4316_v8 = vsub.f32 %v9091_v11, %v4201_v38  ;;  %6023 = vlog2.f32 %v4089_v30  ;;  %v9902_v11 = vld [vmem:[#allocation16_spill] sm:$0xff] }
 0x3b4   : > { %v6012_v19 = vpop.eup %6011  ;;  %v4317_v51 = vsub.f32 %v9104_v31, %v4203_v14  ;;  %6025 = vlog2.f32 %v4091_v35 }
 0x3b5   : > { %v6014_v3 = vpop.eup %6013  ;;  %v4380_v18 = vsel %vm3599_vm0, %v4316_v8, 0.0  ;;  %v4205_v13 = vmul.f32 0.6931472, %v6012_v19 }
 0x3b6   : > { %4444 = vst [vmem:[%s9428_s11 + $0x60] sm:$0xff] %v4380_v18  ;;  %v4381_v46 = vsel %vm3599_vm0, %v4317_v51, 0.0  ;;  %v4207_v54 = vmul.f32 0.6931472, %v6014_v3  ;;  %v4093_v12 = vpop.xlane.xlu1 %4092  ;;  %v9904_v18 = vld [vmem:[#allocation19_spill] sm:$0xff] }
 0x3b7   : > { %v4095_v34 = vpop.xlane.xlu0 %4094  ;;  %4445 = vst [vmem:[%s9428_s11 + $0x68] sm:$0xff] %v4381_v46  ;;  %v4318_v25 = vsub.f32 %v9902_v11, %v4205_v13  ;;  %6027 = vlog2.f32 %v4093_v12 }
 0x3b8   : > { %v6016_v31 = vpop.eup %6015  ;;  %v4319_v6 = vsub.f32 %v9116_v24, %v4207_v54  ;;  %6029 = vlog2.f32 %v4095_v34 }
 0x3b9   : > { %v6018_v1 = vpop.eup %6017  ;;  %v4382_v32 = vsel %vm3599_vm0, %v4318_v25, 0.0  ;;  %v4209_v52 = vmul.f32 0.6931472, %v6016_v31 }
 0x3ba   : > { %4446 = vst [vmem:[%s9428_s11 + $0x70] sm:$0xff] %v4382_v32  ;;  %v4383_v40 = vsel %vm3599_vm0, %v4319_v6, 0.0  ;;  %v4211_v9 = vmul.f32 0.6931472, %v6018_v1  ;;  %v4097_v41 = vpop.xlane.xlu1 %4096  ;;  %v9905_v1 = vld [vmem:[#allocation6_spill] sm:$0xff] }
 0x3bb   : > { %v4099_v58 = vpop.xlane.xlu0 %4098  ;;  %4447 = vst [vmem:[%s9428_s11 + $0x78] sm:$0xff] %v4383_v40  ;;  %v4320_v38 = vsub.f32 %v9903_v62, %v4209_v52  ;;  %6031 = vlog2.f32 %v4097_v41 }
 0x3bc   : > { %v6020_v24 = vpop.eup %6019  ;;  %v4321_v23 = vsub.f32 %v9128_v16, %v4211_v9  ;;  %6033 = vlog2.f32 %v4099_v58 }
 0x3bd   : > { %v6022_v14 = vpop.eup %6021  ;;  %v4384_v30 = vsel %vm3599_vm0, %v4320_v38, 0.0  ;;  %v4213_v35 = vmul.f32 0.6931472, %v6020_v24 }
 0x3be   : > { %4448 = vst [vmem:[%s9428_s11 + $0x80] sm:$0xff] %v4384_v30  ;;  %v4385_v8 = vsel %vm3599_vm0, %v4321_v23, 0.0  ;;  %v4215_v19 = vmul.f32 0.6931472, %v6022_v14  ;;  %v4101_v51 = vpop.xlane.xlu1 %4100  ;;  %v9906_v23 = vld [vmem:[#allocation18_spill] sm:$0xff] }
 0x3bf   : > { %v4103_v3 = vpop.xlane.xlu0 %4102  ;;  %4449 = vst [vmem:[%s9428_s11 + $0x88] sm:$0xff] %v4385_v8  ;;  %v4322_v13 = vsub.f32 %v9904_v18, %v4213_v35  ;;  %6035 = vlog2.f32 %v4101_v51 }
 0x3c0   : > { %v6024_v16 = vpop.eup %6023  ;;  %v4323_v46 = vsub.f32 %v9140_v59, %v4215_v19  ;;  %6037 = vlog2.f32 %v4103_v3 }
 0x3c1   : > { %v6026_v54 = vpop.eup %6025  ;;  %v4386_v12 = vsel %vm3599_vm0, %v4322_v13, 0.0  ;;  %v4217_v34 = vmul.f32 0.6931472, %v6024_v16  ;;  %v9907_v16 = vld [vmem:[#allocation7_spill] sm:$0xff] }
 0x3c2   : > { %4450 = vst [vmem:[%s9428_s11 + $0x90] sm:$0xff] %v4386_v12  ;;  %v4387_v11 = vsel %vm3599_vm0, %v4323_v46, 0.0  ;;  %v4219_v25 = vmul.f32 0.6931472, %v6026_v54  ;;  %v4105_v31 = vpop.xlane.xlu1 %4104 }
 0x3c3   : > { %v4107_v6 = vpop.xlane.xlu0 %4106  ;;  %4451 = vst [vmem:[%s9428_s11 + $0x98] sm:$0xff] %v4387_v11  ;;  %v4324_v32 = vsub.f32 %v9905_v1, %v4217_v34  ;;  %6039 = vlog2.f32 %v4105_v31 }
 0x3c4   : > { %v6028_v59 = vpop.eup %6027  ;;  %v4325_v52 = vsub.f32 %v9152_v22, %v4219_v25  ;;  %6041 = vlog2.f32 %v4107_v6 }
 0x3c5   : > { %v6030_v40 = vpop.eup %6029  ;;  %v4388_v9 = vsel %vm3599_vm0, %v4324_v32, 0.0  ;;  %v4221_v41 = vmul.f32 0.6931472, %v6028_v59  ;;  %v9908_v32 = vld [vmem:[#allocation21_spill] sm:$0xff] }
 0x3c6   : > { %4452 = vst [vmem:[%s9428_s11 + $0xa0] sm:$0xff] %v4388_v9  ;;  %v4389_v58 = vsel %vm3599_vm0, %v4325_v52, 0.0  ;;  %v4223_v62 = vmul.f32 0.6931472, %v6030_v40  ;;  %v4109_v38 = vpop.xlane.xlu1 %4108 }
 0x3c7   : > { %v4111_v24 = vpop.xlane.xlu0 %4110  ;;  %4453 = vst [vmem:[%s9428_s11 + $0xa8] sm:$0xff] %v4389_v58  ;;  %v4326_v14 = vsub.f32 %v9906_v23, %v4221_v41  ;;  %6043 = vlog2.f32 %v4109_v38 }
 0x3c8   : > { %v6032_v22 = vpop.eup %6031  ;;  %v4327_v30 = vsub.f32 %v9164_v55, %v4223_v62  ;;  %6045 = vlog2.f32 %v4111_v24 }
 0x3c9   : > { %v6034_v35 = vpop.eup %6033  ;;  %v4390_v8 = vsel %vm3599_vm0, %v4326_v14, 0.0  ;;  %v4225_v19 = vmul.f32 0.6931472, %v6032_v22 }
 0x3ca   : > { %4454 = vst [vmem:[%s9428_s11 + $0xb0] sm:$0xff] %v4390_v8  ;;  %v4391_v51 = vsel %vm3599_vm0, %v4327_v30, 0.0  ;;  %v4227_v3 = vmul.f32 0.6931472, %v6034_v35  ;;  %v4113_v18 = vpop.xlane.xlu1 %4112 }
 0x3cb   : > { %v4115_v13 = vpop.xlane.xlu0 %4114  ;;  %4455 = vst [vmem:[%s9428_s11 + $0xb8] sm:$0xff] %v4391_v51  ;;  %v4328_v46 = vsub.f32 %v9907_v16, %v4225_v19  ;;  %6047 = vlog2.f32 %v4113_v18 }
 0x3cc   : > { %v6036_v55 = vpop.eup %6035  ;;  %v4329_v54 = vsub.f32 %v9176_v7, %v4227_v3  ;;  %6049 = vlog2.f32 %v4115_v13 }
 0x3cd   : > { %v6038_v12 = vpop.eup %6037  ;;  %v4392_v34 = vsel %vm3599_vm0, %v4328_v46, 0.0  ;;  %v4229_v11 = vmul.f32 0.6931472, %v6036_v55 }
 0x3ce   : > { %4456 = vst [vmem:[%s9428_s11 + $0xc0] sm:$0xff] %v4392_v34  ;;  %v4393_v25 = vsel %vm3599_vm0, %v4329_v54, 0.0  ;;  %v4231_v31 = vmul.f32 0.6931472, %v6038_v12  ;;  %v4117_v6 = vpop.xlane.xlu1 %4116 }
 0x3cf   : > { %v4119_v1 = vpop.xlane.xlu0 %4118  ;;  %4457 = vst [vmem:[%s9428_s11 + $0xc8] sm:$0xff] %v4393_v25  ;;  %v4330_v59 = vsub.f32 %v9908_v32, %v4229_v11  ;;  %6051 = vlog2.f32 %v4117_v6 }
 0x3d0   : > { %v6040_v7 = vpop.eup %6039  ;;  %v4331_v52 = vsub.f32 %v9188_v29, %v4231_v31  ;;  %6053 = vlog2.f32 %v4119_v1 }
 0x3d1   : > { %v6042_v40 = vpop.eup %6041  ;;  %v4394_v9 = vsel %vm3599_vm0, %v4330_v59, 0.0  ;;  %v4233_v41 = vmul.f32 0.6931472, %v6040_v7 }
 0x3d2   : > { %4458 = vst [vmem:[%s9428_s11 + $0xd0] sm:$0xff] %v4394_v9  ;;  %v4395_v58 = vsel %vm3599_vm0, %v4331_v52, 0.0  ;;  %v4235_v62 = vmul.f32 0.6931472, %v6042_v40  ;;  %v4121_v38 = vpop.xlane.xlu1 %4120 }
 0x3d3   : > { %v4123_v24 = vpop.xlane.xlu0 %4122  ;;  %4459 = vst [vmem:[%s9428_s11 + $0xd8] sm:$0xff] %v4395_v58  ;;  %v4332_v23 = vsub.f32 %v9185_v28, %v4233_v41  ;;  %6055 = vlog2.f32 %v4121_v38 }
 0x3d4   : > { %v6044_v29 = vpop.eup %6043  ;;  %v4333_v14 = vsub.f32 %v9200_v60, %v4235_v62  ;;  %6057 = vlog2.f32 %v4123_v24 }
 0x3d5   : > { %v6046_v22 = vpop.eup %6045  ;;  %v4396_v30 = vsel %vm3599_vm0, %v4332_v23, 0.0  ;;  %v4237_v35 = vmul.f32 0.6931472, %v6044_v29 }
 0x3d6   : > { %4460 = vst [vmem:[%s9428_s11 + $0xe0] sm:$0xff] %v4396_v30  ;;  %v4397_v8 = vsel %vm3599_vm0, %v4333_v14, 0.0  ;;  %v4239_v19 = vmul.f32 0.6931472, %v6046_v22  ;;  %v4125_v51 = vpop.xlane.xlu1 %4124 }
 0x3d7   : > { %v4127_v3 = vpop.xlane.xlu0 %4126  ;;  %4461 = vst [vmem:[%s9428_s11 + $0xe8] sm:$0xff] %v4397_v8  ;;  %v4334_v28 = vsub.f32 %v9197_v37, %v4237_v35  ;;  %6059 = vlog2.f32 %v4125_v51 }
 0x3d8   : > { %v6048_v60 = vpop.eup %6047  ;;  %v4335_v18 = vsub.f32 %v9212_v20, %v4239_v19  ;;  %6061 = vlog2.f32 %v4127_v3 }
 0x3d9   : > { %v6050_v13 = vpop.eup %6049  ;;  %v4398_v16 = vsel %vm3599_vm0, %v4334_v28, 0.0  ;;  %v4241_v46 = vmul.f32 0.6931472, %v6048_v60 }
 0x3da   : > { %4462 = vst [vmem:[%s9428_s11 + $0xf0] sm:$0xff] %v4398_v16  ;;  %v4399_v55 = vsel %vm3599_vm0, %v4335_v18, 0.0  ;;  %v4243_v54 = vmul.f32 0.6931472, %v6050_v13  ;;  %v4129_v12 = vpop.xlane.xlu1 %4128 }
 0x3db   : > { %v4131_v34 = vpop.xlane.xlu0 %4130  ;;  %4463 = vst [vmem:[%s9428_s11 + $0xf8] sm:$0xff] %v4399_v55  ;;  %v4336_v37 = vsub.f32 %v9209_v4, %v4241_v46  ;;  %6063 = vlog2.f32 %v4129_v12 }
 0x3dc   : > { %v6052_v20 = vpop.eup %6051  ;;  %v4337_v11 = vsub.f32 %v9224_v2, %v4243_v54  ;;  %6065 = vlog2.f32 %v4131_v34 }
 0x3dd   : > { %v6054_v25 = vpop.eup %6053  ;;  %v4400_v31 = vsel %vm3599_vm0, %v4336_v37, 0.0  ;;  %v4245_v6 = vmul.f32 0.6931472, %v6052_v20 }
 0x3de   : > { %4464 = vst [vmem:[%s9428_s11 + $0x100] sm:$0xff] %v4400_v31  ;;  %v4401_v1 = vsel %vm3599_vm0, %v4337_v11, 0.0  ;;  %v4247_v32 = vmul.f32 0.6931472, %v6054_v25  ;;  %v4133_v59 = vpop.xlane.xlu1 %4132 }
 0x3df   : > { %v4135_v7 = vpop.xlane.xlu0 %4134  ;;  %4465 = vst [vmem:[%s9428_s11 + $0x108] sm:$0xff] %v4401_v1  ;;  %v4338_v4 = vsub.f32 %v9221_v43, %v4245_v6  ;;  %6067 = vlog2.f32 %v4133_v59 }
 0x3e0   : > { %v6056_v2 = vpop.eup %6055  ;;  %v4339_v52 = vsub.f32 %v9236_v47, %v4247_v32  ;;  %6069 = vlog2.f32 %v4135_v7 }
 0x3e1   : > { %v6058_v40 = vpop.eup %6057  ;;  %v4402_v9 = vsel %vm3599_vm0, %v4338_v4, 0.0  ;;  %v4249_v41 = vmul.f32 0.6931472, %v6056_v2 }
 0x3e2   : > { %4466 = vst [vmem:[%s9428_s11 + $0x110] sm:$0xff] %v4402_v9  ;;  %v4403_v58 = vsel %vm3599_vm0, %v4339_v52, 0.0  ;;  %v4251_v62 = vmul.f32 0.6931472, %v6058_v40  ;;  %v4137_v38 = vpop.xlane.xlu1 %4136  ;;  %v9909_v52 = vld [vmem:[#allocation8_spill] sm:$0xff] }
 0x3e3   : > { %v4139_v24 = vpop.xlane.xlu0 %4138  ;;  %4467 = vst [vmem:[%s9428_s11 + $0x118] sm:$0xff] %v4403_v58  ;;  %v4340_v43 = vsub.f32 %v9233_v57, %v4249_v41  ;;  %6071 = vlog2.f32 %v4137_v38 }
 0x3e4   : > { %v6060_v47 = vpop.eup %6059  ;;  %v4341_v23 = vsub.f32 %v9248_v33, %v4251_v62  ;;  %6073 = vlog2.f32 %v4139_v24 }
 0x3e5   : > { %v6062_v29 = vpop.eup %6061  ;;  %v4404_v14 = vsel %vm3599_vm0, %v4340_v43, 0.0  ;;  %v4253_v22 = vmul.f32 0.6931472, %v6060_v47 }
 0x3e6   : > { %4468 = vst [vmem:[%s9428_s11 + $0x120] sm:$0xff] %v4404_v14  ;;  %v4405_v30 = vsel %vm3599_vm0, %v4341_v23, 0.0  ;;  %v4255_v35 = vmul.f32 0.6931472, %v6062_v29  ;;  %v4141_v8 = vpop.xlane.xlu1 %4140  ;;  %v9911_v29 = vld [vmem:[#allocation22_spill] sm:$0xff] }
 0x3e7   : > { %v4143_v19 = vpop.xlane.xlu0 %4142  ;;  %4469 = vst [vmem:[%s9428_s11 + $0x128] sm:$0xff] %v4405_v30  ;;  %v4342_v57 = vsub.f32 %v9245_v27, %v4253_v22  ;;  %6075 = vlog2.f32 %v4141_v8 }
 0x3e8   : > { %v6064_v33 = vpop.eup %6063  ;;  %v4343_v51 = vsub.f32 %v9260_v21, %v4255_v35  ;;  %6077 = vlog2.f32 %v4143_v19 }
 0x3e9   : > { %v6066_v3 = vpop.eup %6065  ;;  %v4406_v28 = vsel %vm3599_vm0, %v4342_v57, 0.0  ;;  %v4257_v60 = vmul.f32 0.6931472, %v6064_v33  ;;  %v9912_v57 = vld [vmem:[#allocation23_spill] sm:$0xff] }
 0x3ea   : > { %4470 = vst [vmem:[%s9428_s11 + $0x130] sm:$0xff] %v4406_v28  ;;  %v4407_v18 = vsel %vm3599_vm0, %v4343_v51, 0.0  ;;  %v4259_v13 = vmul.f32 0.6931472, %v6066_v3  ;;  %v4145_v16 = vpop.xlane.xlu1 %4144  ;;  %v9913_v3 = vld [vmem:[#allocation9_spill] sm:$0xff] }
 0x3eb   : > { %v4147_v46 = vpop.xlane.xlu0 %4146  ;;  %4471 = vst [vmem:[%s9428_s11 + $0x138] sm:$0xff] %v4407_v18  ;;  %v4344_v27 = vsub.f32 %v9257_v36, %v4257_v60  ;;  %6079 = vlog2.f32 %v4145_v16 }
 0x3ec   : > { %v6068_v21 = vpop.eup %6067  ;;  %v4345_v55 = vsub.f32 %v9272_v61, %v4259_v13  ;;  %6081 = vlog2.f32 %v4147_v46 }
 0x3ed   : > { %v6070_v54 = vpop.eup %6069  ;;  %v4408_v12 = vsel %vm3599_vm0, %v4344_v27, 0.0  ;;  %v4261_v34 = vmul.f32 0.6931472, %v6068_v21  ;;  %v9914_v27 = vld [vmem:[#allocation25_spill] sm:$0xff] }
 0x3ee   : > { %4472 = vst [vmem:[%s9428_s11 + $0x140] sm:$0xff] %v4408_v12  ;;  %v4409_v37 = vsel %vm3599_vm0, %v4345_v55, 0.0  ;;  %v4263_v20 = vmul.f32 0.6931472, %v6070_v54  ;;  %v4149_v11 = vpop.xlane.xlu1 %4148 }
 0x3ef   : > { %v4151_v25 = vpop.xlane.xlu0 %4150  ;;  %4473 = vst [vmem:[%s9428_s11 + $0x148] sm:$0xff] %v4409_v37  ;;  %v4346_v36 = vsub.f32 %v9269_v42, %v4261_v34  ;;  %6083 = vlog2.f32 %v4149_v11 }
 0x3f0   : > { %v6072_v61 = vpop.eup %6071  ;;  %v4347_v31 = vsub.f32 %v9284_v17, %v4263_v20  ;;  %6085 = vlog2.f32 %v4151_v25  ;;  %v9915_v25 = vld [vmem:[#allocation24_spill] sm:$0xff] }
 0x3f1   : > { %v6074_v6 = vpop.eup %6073  ;;  %v4410_v1 = vsel %vm3599_vm0, %v4346_v36, 0.0  ;;  %v4265_v32 = vmul.f32 0.6931472, %v6072_v61 }
 0x3f2   : > { %4474 = vst [vmem:[%s9428_s11 + $0x150] sm:$0xff] %v4410_v1  ;;  %v4411_v59 = vsel %vm3599_vm0, %v4347_v31, 0.0  ;;  %v4267_v7 = vmul.f32 0.6931472, %v6074_v6  ;;  %v4153_v4 = vpop.xlane.xlu1 %4152 }
 0x3f3   : > { %v4155_v2 = vpop.xlane.xlu0 %4154  ;;  %4475 = vst [vmem:[%s9428_s11 + $0x158] sm:$0xff] %v4411_v59  ;;  %v4348_v42 = vsub.f32 %v9281_v63, %v4265_v32  ;;  %6087 = vlog2.f32 %v4153_v4  ;;  %v9910_v63 = vld [vmem:[#allocation20_spill] sm:$0xff] }
 0x3f4   : > { %v6076_v17 = vpop.eup %6075  ;;  %v4349_v40 = vsub.f32 %v9909_v52, %v4267_v7  ;;  %6089 = vlog2.f32 %v4155_v2 }
 0x3f5   : > { %v6078_v9 = vpop.eup %6077  ;;  %v4412_v41 = vsel %vm3599_vm0, %v4348_v42, 0.0  ;;  %v4269_v58 = vmul.f32 0.6931472, %v6076_v17 }
 0x3f6   : > { %4476 = vst [vmem:[%s9428_s11 + $0x160] sm:$0xff] %v4412_v41  ;;  %v4413_v62 = vsel %vm3599_vm0, %v4349_v40, 0.0  ;;  %v4271_v38 = vmul.f32 0.6931472, %v6078_v9  ;;  %v4157_v24 = vpop.xlane.xlu1 %4156 }
 0x3f7   : > { %v4159_v43 = vpop.xlane.xlu0 %4158  ;;  %4477 = vst [vmem:[%s9428_s11 + $0x168] sm:$0xff] %v4413_v62  ;;  %v4350_v47 = vsub.f32 %v9910_v63, %v4269_v58  ;;  %6091 = vlog2.f32 %v4157_v24 }
 0x3f8   : > { %v6080_v23 = vpop.eup %6079  ;;  %v4351_v14 = vsub.f32 %v9911_v29, %v4271_v38  ;;  %6093 = vlog2.f32 %v4159_v43 }
 0x3f9   : > { %v6082_v22 = vpop.eup %6081  ;;  %v4414_v30 = vsel %vm3599_vm0, %v4350_v47, 0.0  ;;  %v4273_v35 = vmul.f32 0.6931472, %v6080_v23 }
 0x3fa   : > { %4478 = vst [vmem:[%s9428_s11 + $0x170] sm:$0xff] %v4414_v30  ;;  %v4415_v8 = vsel %vm3599_vm0, %v4351_v14, 0.0  ;;  %v4275_v19 = vmul.f32 0.6931472, %v6082_v22 }
 0x3fb   : > { %4479 = vst [vmem:[%s9428_s11 + $0x178] sm:$0xff] %v4415_v8  ;;  %v4352_v33 = vsub.f32 %v9912_v57, %v4273_v35 }
 0x3fc   : > { %v6084_v51 = vpop.eup %6083  ;;  %v4353_v28 = vsub.f32 %v9913_v3, %v4275_v19 }
 0x3fd   : > { %v6086_v60 = vpop.eup %6085  ;;  %v4416_v18 = vsel %vm3599_vm0, %v4352_v33, 0.0  ;;  %v4277_v13 = vmul.f32 0.6931472, %v6084_v51 }
 0x3fe   : > { %4480 = vst [vmem:[%s9428_s11 + $0x180] sm:$0xff] %v4416_v18  ;;  %v4417_v16 = vsel %vm3599_vm0, %v4353_v28, 0.0  ;;  %v4279_v46 = vmul.f32 0.6931472, %v6086_v60 }
 0x3ff   : > { %4481 = vst [vmem:[%s9428_s11 + $0x188] sm:$0xff] %v4417_v16  ;;  %v4354_v21 = vsub.f32 %v9914_v27, %v4277_v13 }
 0x400   : > { %v6088_v55 = vpop.eup %6087  ;;  %v4355_v54 = vsub.f32 %v9332_v10, %v4279_v46 }
 0x401   : > { %v6090_v12 = vpop.eup %6089  ;;  %v4418_v34 = vsel %vm3599_vm0, %v4354_v21, 0.0  ;;  %v4281_v37 = vmul.f32 0.6931472, %v6088_v55 }
 0x402   : > { %4482 = vst [vmem:[%s9428_s11 + $0x190] sm:$0xff] %v4418_v34  ;;  %v4419_v20 = vsel %vm3599_vm0, %v4355_v54, 0.0  ;;  %v4283_v11 = vmul.f32 0.6931472, %v6090_v12 }
 0x403   : > { %4483 = vst [vmem:[%s9428_s11 + $0x198] sm:$0xff] %v4419_v20  ;;  %v4356_v36 = vsub.f32 %v9915_v25, %v4281_v37 }
 0x404   : > { %v6092_v61 = vpop.eup %6091  ;;  %v4357_v31 = vsub.f32 %v9344_v0, %v4283_v11 }
 0x405   : > { %v6094_v6 = vpop.eup %6093  ;;  %v4420_v10 = vsel %vm3599_vm0, %v4356_v36, 0.0  ;;  %v4285_v1 = vmul.f32 0.6931472, %v6092_v61 }
 0x406   : > { %4484 = vst [vmem:[%s9428_s11 + $0x1a0] sm:$0xff] %v4420_v10  ;;  %v4421_v32 = vsel %vm3599_vm0, %v4357_v31, 0.0  ;;  %v4287_v59 = vmul.f32 0.6931472, %v6094_v6  ;;  %v4163_v7 = vpop.xlane.xlu0 %4162 }
 0x407   : > { %4485 = vst [vmem:[%s9428_s11 + $0x1a8] sm:$0xff] %v4421_v32  ;;  %v4358_v4 = vsub.f32 %v9341_v44, %v4285_v1  ;;  %6095 = vlog2.f32 %v4163_v7 }
 0x408   : > { %v4359_v2 = vsub.f32 %v9353_v26, %v4287_v59  ;;  %v4161_v42 = vpop.xlane.xlu1 %4160 }
 0x409   : > { %v4422_v0 = vsel %vm3599_vm0, %v4358_v4, 0.0  ;;  %6097 = vlog2.f32 %v4161_v42 }
 0x40a   : > { %4486 = vst [vmem:[%s9428_s11 + $0x1b0] sm:$0xff] %v4422_v0  ;;  %v4423_v17 = vsel %vm3599_vm0, %v4359_v2, 0.0  ;;  %v4167_v52 = vpop.xlane.xlu0 %4166 }
 0x40b   : > { %4487 = vst [vmem:[%s9428_s11 + $0x1b8] sm:$0xff] %v4423_v17  ;;  %6099 = vlog2.f32 %v4167_v52 }
 0x40c   : > { %v4165_v40 = vpop.xlane.xlu1 %4164 }
 0x40d   : > { %6101 = vlog2.f32 %v4165_v40 }
 0x40e   : > { %v4171_v9 = vpop.xlane.xlu0 %4170 }
 0x40f   : > { %6103 = vlog2.f32 %v4171_v9 }
 0x410   : > { %v4169_v44 = vpop.xlane.xlu1 %4168 }
 0x411   : > { %6105 = vlog2.f32 %v4169_v44 }
 0x412   : > { %v4175_v26 = vpop.xlane.xlu0 %4174 }
 0x413   : > { %6107 = vlog2.f32 %v4175_v26 }
 0x414   : > { %v6096_v41 = vpop.eup %6095  ;;  %v4173_v62 = vpop.xlane.xlu1 %4172 }
 0x415   : > { %v4291_v58 = vmul.f32 0.6931472, %v6096_v41  ;;  %6109 = vlog2.f32 %v4173_v62 }
 0x416   : > { %v6098_v38 = vpop.eup %6097 }
 0x417   : > { %v4361_v24 = vsub.f32 %v9373_v50, %v4291_v58  ;;  %v4289_v43 = vmul.f32 0.6931472, %v6098_v38 }
 0x418   : > { %v6100_v63 = vpop.eup %6099 }
 0x419   : > { %v4425_v47 = vsel %vm3599_vm0, %v4361_v24, 0.0  ;;  %v4360_v23 = vsub.f32 %v9379_v48, %v4289_v43  ;;  %v4295_v29 = vmul.f32 0.6931472, %v6100_v63 }
 0x41a   : > { %v6102_v14 = vpop.eup %6101  ;;  %4489 = vst [vmem:[%s9428_s11 + $0x1c8] sm:$0xff] %v4425_v47 }
 0x41b   : > { %v4424_v22 = vsel %vm3599_vm0, %v4360_v23, 0.0  ;;  %v4363_v30 = vsub.f32 %v9385_v39, %v4295_v29  ;;  %v4293_v35 = vmul.f32 0.6931472, %v6102_v14 }
 0x41c   : > { %v6104_v50 = vpop.eup %6103  ;;  %4488 = vst [vmem:[%s9428_s11 + $0x1c0] sm:$0xff] %v4424_v22 }
 0x41d   : > { %v4427_v8 = vsel %vm3599_vm0, %v4363_v30, 0.0  ;;  %v4362_v19 = vsub.f32 %v9389_v56, %v4293_v35  ;;  %v4299_v57 = vmul.f32 0.6931472, %v6104_v50 }
 0x41e   : > { %4491 = vst [vmem:[%s9428_s11 + $0x1d8] sm:$0xff] %v4427_v8  ;;  %v6106_v48 = vpop.eup %6105 }
 0x41f   : > { %v4426_v33 = vsel %vm3599_vm0, %v4362_v19, 0.0  ;;  %v4365_v51 = vsub.f32 %v9393_v5, %v4299_v57  ;;  %v4297_v3 = vmul.f32 0.6931472, %v6106_v48 }
 0x420   : > { %v6108_v39 = vpop.eup %6107  ;;  %4490 = vst [vmem:[%s9428_s11 + $0x1d0] sm:$0xff] %v4426_v33 }
 0x421   : > { %v4429_v28 = vsel %vm3599_vm0, %v4365_v51, 0.0  ;;  %v4303_v60 = vmul.f32 0.6931472, %v6108_v39  ;;  %v4364_v56 = vsub.f32 %v9397_v53, %v4297_v3 }
 0x422   : > { %4493 = vst [vmem:[%s9428_s11 + $0x1e8] sm:$0xff] %v4429_v28  ;;  %v6110_v18 = vpop.eup %6109 }
 0x423   : > { %v4367_v13 = vsub.f32 %v9400_v45, %v4303_v60  ;;  %v4428_v16 = vsel %vm3599_vm0, %v4364_v56, 0.0  ;;  %v4301_v46 = vmul.f32 0.6931472, %v6110_v18 }
 0x424   : > { %4492 = vst [vmem:[%s9428_s11 + $0x1e0] sm:$0xff] %v4428_v16 }
 0x425   : > { %v4431_v5 = vsel %vm3599_vm0, %v4367_v13, 0.0  ;;  %v4366_v27 = vsub.f32 %v9405_v15, %v4301_v46 }
 0x426   : > { %4495 = vst [vmem:[%s9428_s11 + $0x1f8] sm:$0xff] %v4431_v5 }
 0x427   : > { %v4430_v21 = vsel %vm3599_vm0, %v4366_v27, 0.0 }
 0x428   : > { %4494 = vst [vmem:[%s9428_s11 + $0x1f0] sm:$0xff] %v4430_v21 }
 0x429 PF: > { %s14_s15 = sadd.s32 1, %s6118_s15  }
 0x42a   : > { %p11_p4 = scmp.ge.s32.totalorder %s14_s15, 4  }
 0x42c   :  { %13 = sbr.rel (!%p11_p4) target bundleno = 1 (0x1), region = 70 }

</bundles_post_ra>
